<compile_context>
chip_gen: v5e
topology: v5e:2x2
jax: 0.10.0
libtpu: 0.0.40
codegen_flags: <defaults>
</compile_context>

<pallas_src>
import functools

import jax
import jax.numpy as jnp
from jax import lax
from jax.experimental import pallas as pl
from jax.experimental.pallas import tpu as pltpu


def _round_up(x, m):
    return ((x + m - 1) // m) * m


def _device_kind():
    try:
        return jax.devices()[0].device_kind.lower()
    except Exception:
        return ""


def _char_cnn_tuning():
    """(block_n, vmem_limit_bytes) per TPU generation."""
    kind = _device_kind()
    if ("v5" in kind) or ("v6" in kind):
        # 128 MiB physical VMEM: bigger blocks amortize the ~0.35us per-grid-step overhead.
        return 1024, 64 * 1024 * 1024
    # v7x: only 64 MiB VMEM per TC (and 2 TCs active) -> keep the conservative tile.
    # Also the safe default for unknown targets.
    return 512, 32 * 1024 * 1024


def _lstm_dirs_per_call():
    """2 = fuse both LSTM directions in one call (single-TC v5e/v6e: interleaving the two
    independent recurrences hides MXU drain latency).  1 = one direction per grid step so
    the "parallel" grid axis can shard across the two TensorCores of a v7x chip."""
    kind = _device_kind()
    return 1 if "v7" in kind else 2


# --------------------------------------------------------------------------
# Pallas kernels
# --------------------------------------------------------------------------

def char_conv_kernel(x_ref, w_ref, b_ref, o_ref, *, L_out, K, C):
    """Conv1d(char_dim -> F, kernel K, padding K-1) -> max over positions -> tanh.

    x_ref: (block_n, L_pad*C) bf16; row n holds [pos0(c0..c_{C-1}), pos1(...), ...],
           zero padded by K-1 positions on both sides.
    w_ref: (K*C, F_pad) bf16 im2col weight (row k*C + c  <->  PyTorch conv_w[f, c, k]).
    b_ref: (1, F_pad)   f32.
    o_ref: (block_n, F_pad) bf16 (math in f32, cast on store).
    """
    x = x_ref[...]                                   # bf16; stays bf16 until the dot
    w = w_ref[...]
    m = None
    for t in range(L_out):                           # static position loop
        # Slice the bf16 *input* lanes (cheap) before the dot; the only f32 value is the
        # (block_n, F_pad) matmul result, folded into a running elementwise max.
        y = jnp.dot(x[:, t * C:(t + K) * C], w, preferred_element_type=jnp.float32)
        m = y if m is None else jnp.maximum(m, y)
    o_ref[...] = jnp.tanh(m + b_ref[...]).astype(o_ref.dtype)


def bilstm_kernel(x_ref, xd_ref, wih_in_ref, wih_df_ref, whh_ref, b_ref,
                  out_ref, hn_ref, cn_ref, gx_ref, *, T, B_pad, H_pad, nd, unroll):
    """LSTM recurrence; `nd` directions are handled per call.

    nd == 2 : both directions fused in one call (grid=(1,)), interleaved per step.
    nd == 1 : one direction per grid step (grid=(2,), direction = pl.program_id(0)).

    x_ref/xd_ref : (T*B_pad, de_pad)    bf16, time-major (input rows / gathered-head rows).
    wih_in_ref   : (de_pad, nd*G)       bf16 (W_ih rows acting on `input`; dir-stacked cols).
    wih_df_ref   : (de_pad, nd*G)       bf16 (W_ih rows acting on `df`).
    whh_ref      : (nd, H_pad, G)       bf16.
    b_ref        : (1, nd*G)            f32 (b_ih + b_hh).
    out_ref      : (nd, T*B_pad, H_pad) f32 per-direction hidden sequence (time-major).
    hn_ref/cn_ref: (nd, B_pad, H_pad)   f32 final state.
    gx_ref       : (T*B_pad, nd*G)      bf16 scratch: precomputed input projections.
    """
    G = 4 * H_pad

    # ---- batched input projection for ALL timesteps (and both dirs when fused) ----
    # TODO(synk): for very large T*B this projection could be tiled over T-chunks with
    #             pltpu.emit_pipeline to bound the transient f32 value.
    gx = (jnp.dot(x_ref[...], wih_in_ref[...], preferred_element_type=jnp.float32)
          + jnp.dot(xd_ref[...], wih_df_ref[...], preferred_element_type=jnp.float32)
          + b_ref[...])
    gx_ref[...] = gx.astype(gx_ref.dtype)            # bf16 scratch: halves per-step loads

    whh = [whh_ref[d] for d in range(nd)]             # loop-invariant, hoisted
    is_fwd0 = pl.program_id(0) == 0                    # only meaningful when nd == 1

    def step(s, carry):
        new_carry = []
        for d in range(nd):
            h, c = carry[2 * d], carry[2 * d + 1]
            if nd == 2:
                t = s if d == 0 else T - 1 - s         # direction known statically
            else:
                t = jnp.where(is_fwd0, s, T - 1 - s)
            row = pl.ds(pl.multiple_of(t * B_pad, 8), B_pad)
            gates = (gx_ref[row, d * G:(d + 1) * G].astype(jnp.float32)
                     + jnp.dot(h.astype(jnp.bfloat16), whh[d],
                               preferred_element_type=jnp.float32))
            # lane-aligned gate slices (each gate padded to H_pad = 128 lanes)
            i_g = jax.nn.sigmoid(gates[:, 0:H_pad])
            f_g = jax.nn.sigmoid(gates[:, H_pad:2 * H_pad])
            g_g = jnp.tanh(gates[:, 2 * H_pad:3 * H_pad])
            o_g = jax.nn.sigmoid(gates[:, 3 * H_pad:])
            c = f_g * c + i_g * g_g
            h = o_g * jnp.tanh(c)
            out_ref[d, row] = h                        # dense 128-lane store
            new_carry += [h, c]
        return tuple(new_carry)

    carry0 = tuple(jnp.zeros((B_pad, H_pad), jnp.float32) for _ in range(2 * nd))
    carry = lax.fori_loop(0, T, step, carry0, unroll=unroll)
    for d in range(nd):
        hn_ref[d] = carry[2 * d]
        cn_ref[d] = carry[2 * d + 1]


# --------------------------------------------------------------------------
# Wrappers
# --------------------------------------------------------------------------

def char_cnn_pallas(char_emb, conv_w, conv_b, *, block_n=None, vmem_limit=None):
    """char_emb: (B, T, L, C) -> (B, T, F) bf16 via the Pallas conv/max/tanh kernel."""
    B, T, L, C = char_emb.shape
    F, _, K = conv_w.shape
    N = B * T
    L_pad = L + 2 * (K - 1)
    L_out = L + K - 1
    F_pad = _round_up(F, 128)
    bn_d, vm_d = _char_cnn_tuning()
    block_n = block_n or bn_d
    vmem_limit = vmem_limit or vm_d
    block_n = min(block_n, _round_up(N, 16))          # bf16 output tile = 16-row sublanes
    N_pad = _round_up(N, block_n)

    x = char_emb.reshape(N, L, C)
    x = jnp.pad(x, ((0, N_pad - N), (K - 1, K - 1), (0, 0)))    # conv padding = K-1
    x2 = x.reshape(N_pad, L_pad * C).astype(jnp.bfloat16)       # position-major lanes
    # im2col weight: (F, C, K) -> (K, C, F) -> (K*C, F_pad)
    w_t = jnp.transpose(conv_w, (2, 1, 0)).reshape(K * C, F)
    w_t = jnp.pad(w_t, ((0, 0), (0, F_pad - F))).astype(jnp.bfloat16)
    b2 = jnp.pad(conv_b, (0, F_pad - F)).reshape(1, F_pad).astype(jnp.float32)

    out = pl.pallas_call(
        functools.partial(char_conv_kernel, L_out=L_out, K=K, C=C),
        grid=(N_pad // block_n,),
        in_specs=[
            pl.BlockSpec((block_n, L_pad * C), lambda i: (i, 0)),
            pl.BlockSpec((K * C, F_pad), lambda i: (0, 0)),
            pl.BlockSpec((1, F_pad), lambda i: (0, 0)),
        ],
        out_specs=pl.BlockSpec((block_n, F_pad), lambda i: (i, 0)),
        out_shape=jax.ShapeDtypeStruct((N_pad, F_pad), jnp.bfloat16),
        compiler_params=pltpu.CompilerParams(
            dimension_semantics=("parallel",),
            vmem_limit_bytes=vmem_limit),
    )(x2, w_t, b2)
    return out[:N, :F].reshape(B, T, F)


def _pad_gates(w, H, H_pad):
    """Zero-pad each of the 4 LSTM gate blocks (PyTorch i,f,g,o layout) to H_pad cols."""
    lead = w.shape[:-1]
    w4 = w.reshape(lead + (4, H))
    pad = [(0, 0)] * (len(lead) + 1) + [(0, H_pad - H)]
    return jnp.pad(w4, pad).reshape(lead + (4 * H_pad,))


def bilstm_pallas(inp, df, params, *, unroll=8):
    """inp/df: (B, T, dim_enc) -> (output (B,T,2H), h_n (2,B,H), c_n (2,B,H))."""
    B, T, de = inp.shape
    H = params["whh_f"].shape[0]
    H_pad = _round_up(H, 128)
    G = 4 * H_pad
    B_pad = _round_up(B, 8)          # sublane-aligned per-step rows
    de_pad = _round_up(de, 128)      # lane-dense contraction for the input projections
    assert params["wih_f"].shape[0] == 2 * de

    nd = _lstm_dirs_per_call()        # 2 = fuse dirs (v5e/v6e), 1 = one dir/grid step (v7x)
    ncalls = 2 // nd

    def prep(wih, whh, b):
        wih_p = _pad_gates(wih, H, H_pad)                        # (2*de, G)
        whh_p = _pad_gates(whh, H, H_pad)                        # (H, G)
        whh_p = jnp.pad(whh_p, ((0, H_pad - H), (0, 0)))         # (H_pad, G)
        b_p = _pad_gates(b, H, H_pad)                            # (1, G)
        w_in = jnp.pad(wih_p[:de], ((0, de_pad - de), (0, 0)))   # (de_pad, G)
        w_df = jnp.pad(wih_p[de:], ((0, de_pad - de), (0, 0)))   # (de_pad, G)
        return w_in, w_df, whh_p, b_p

    win_f, wdf_f, whh_f, b_f = prep(params["wih_f"], params["whh_f"], params["b_f"])
    win_b, wdf_b, whh_b, b_b = prep(params["wih_b"], params["whh_b"], params["b_b"])

    def pack_cols(a_f, a_b):
        # (2, R, G) -> (ncalls, R, nd*G): per-call, direction blocks column-stacked
        s = jnp.stack([a_f, a_b])
        R = s.shape[1]
        return (s.reshape(ncalls, nd, R, G).transpose(0, 2, 1, 3)
                .reshape(ncalls, R, nd * G))

    wih_in = pack_cols(win_f, win_b).astype(jnp.bfloat16)        # (ncalls, de_pad, nd*G)
    wih_df = pack_cols(wdf_f, wdf_b).astype(jnp.bfloat16)        # (ncalls, de_pad, nd*G)
    b_s = pack_cols(b_f, b_b).astype(jnp.float32)                # (ncalls, 1, nd*G)
    whh_s = (jnp.stack([whh_f, whh_b]).reshape(ncalls, nd, H_pad, G)
             .astype(jnp.bfloat16))                              # (ncalls, nd, H_pad, G)

    # time-major, batch/feature zero-padded, flattened to (T*B_pad, de_pad)
    def to_tm(a):
        a = jnp.pad(a, ((0, B_pad - B), (0, 0), (0, de_pad - de)))
        return jnp.transpose(a, (1, 0, 2)).reshape(T * B_pad, de_pad).astype(jnp.bfloat16)

    x2d = to_tm(inp)
    df2d = to_tm(df)

    vmem_limit = 32 * 1024 * 1024 if "v7" in _device_kind() else 64 * 1024 * 1024
    # TODO(synk): the f32 hidden-sequence writeback could be bf16 if the downstream
    #             consumer runs in bf16 (halves the largest HBM write of this kernel).

    out, hn, cn = pl.pallas_call(
        functools.partial(bilstm_kernel, T=T, B_pad=B_pad, H_pad=H_pad, nd=nd,
                          unroll=max(1, min(unroll, T))),
        grid=(ncalls,),
        in_specs=[
            pl.BlockSpec((T * B_pad, de_pad), lambda i: (0, 0)),
            pl.BlockSpec((T * B_pad, de_pad), lambda i: (0, 0)),
            pl.BlockSpec((None, de_pad, nd * G), lambda i: (i, 0, 0)),
            pl.BlockSpec((None, de_pad, nd * G), lambda i: (i, 0, 0)),
            pl.BlockSpec((None, nd, H_pad, G), lambda i: (i, 0, 0, 0)),
            pl.BlockSpec((None, 1, nd * G), lambda i: (i, 0, 0)),
        ],
        out_specs=(
            pl.BlockSpec((None, nd, T * B_pad, H_pad), lambda i: (i, 0, 0, 0)),
            pl.BlockSpec((None, nd, B_pad, H_pad), lambda i: (i, 0, 0, 0)),
            pl.BlockSpec((None, nd, B_pad, H_pad), lambda i: (i, 0, 0, 0)),
        ),
        out_shape=(
            jax.ShapeDtypeStruct((ncalls, nd, T * B_pad, H_pad), jnp.float32),
            jax.ShapeDtypeStruct((ncalls, nd, B_pad, H_pad), jnp.float32),
            jax.ShapeDtypeStruct((ncalls, nd, B_pad, H_pad), jnp.float32),
        ),
        scratch_shapes=[pltpu.VMEM((T * B_pad, nd * G), jnp.bfloat16)],
        compiler_params=pltpu.CompilerParams(
            dimension_semantics=("parallel",),     # on v7x (nd=1) this can shard dirs to TCs
            vmem_limit_bytes=vmem_limit),
    )(x2d, df2d, wih_in, wih_df, whh_s, b_s)

    out = out.reshape(2, T, B_pad, H_pad)
    out_f = jnp.transpose(out[0, :, :B, :H], (1, 0, 2))      # (B, T, H)
    out_b = jnp.transpose(out[1, :, :B, :H], (1, 0, 2))
    output = jnp.concatenate([out_f, out_b], axis=-1)        # (B, T, 2H)
    hn = hn.reshape(2, B_pad, H_pad)[:, :B, :H]
    cn = cn.reshape(2, B_pad, H_pad)[:, :B, :H]
    return output, hn, cn


def birecurrent_conv_encoder_forward(params, input_word, input_char, input_pos,
                                     heads, mask=None, length=None, hx=None):
    """Mirrors BiRecurrentConv_Encoder.forward (use_char=True, use_pos=True, LSTM)."""
    word = params["word_embedd"][input_word]                 # (B, T, Dw)
    # dropout_in: identity (eval)
    char_emb = params["char_embedd"][input_char]             # (B, T, L, Dc)
    char_feat = char_cnn_pallas(char_emb, params["conv_w"], params["conv_b"])
    pos = params["pos_embedd"][input_pos]                    # (B, T, Dp)
    inp = jnp.concatenate([word, char_feat, pos], axis=2)    # (B, T, dim_enc)
    # dropout_rnn_in: identity (eval)

    # heads gather: df[b, t] = inp[b, heads[b, t]]  (the batch-offset trick in torch)
    df = jnp.take_along_axis(inp, heads[:, :, None].astype(jnp.int32), axis=1)

    # biLSTM (Pallas): `inp` and `df` are passed separately; the [inp, df] concat is fused
    # into the input-projection matmuls inside the kernel.
    output, h_n, c_n = bilstm_pallas(inp, df, params)
    # dropout_out: identity (eval)
    return output, (h_n, c_n), mask, length


# --------------------------------------------------------------------------
# Pure-JAX f32 reference (PyTorch semantics) for a correctness check
# --------------------------------------------------------------------------

def reference_forward(params, input_word, input_char, input_pos, heads):
    word = params["word_embedd"][input_word]
    char = params["char_embedd"][input_char]
    pos = params["pos_embedd"][input_pos]
    B, T, L, C = char.shape
    F, _, K = params["conv_w"].shape
    x = char.reshape(B * T, L, C)
    x_pad = jnp.pad(x, ((0, 0), (K - 1, K - 1), (0, 0)))
    w_t = jnp.transpose(params["conv_w"], (2, 1, 0))
    ys = []
    for t in range(L + K - 1):
        acc = params["conv_b"][None, :]
        for k in range(K):
            acc = acc + x_pad[:, t + k, :] @ w_t[k]
        ys.append(acc)
    char_feat = jnp.tanh(jnp.max(jnp.stack(ys, 0), axis=0)).reshape(B, T, F)
    inp = jnp.concatenate([word, char_feat, pos], axis=2)
    df = jnp.take_along_axis(inp, heads[:, :, None].astype(jnp.int32), axis=1)
    inp = jnp.concatenate([inp, df], axis=2)

    H = params["whh_f"].shape[0]

    def run(wih, whh, b, reverse):
        h = jnp.zeros((B, H), jnp.float32)
        c = jnp.zeros((B, H), jnp.float32)
        outs = [None] * T
        order = range(T - 1, -1, -1) if reverse else range(T)
        for t in order:
            g = inp[:, t] @ wih + h @ whh + b
            i = jax.nn.sigmoid(g[:, :H])
            f = jax.nn.sigmoid(g[:, H:2 * H])
            gg = jnp.tanh(g[:, 2 * H:3 * H])
            o = jax.nn.sigmoid(g[:, 3 * H:])
            c = f * c + i * gg
            h = o * jnp.tanh(c)
            outs[t] = h
        return jnp.stack(outs, axis=1), h, c

    of, hf, cf = run(params["wih_f"], params["whh_f"], params["b_f"], False)
    ob, hb, cb = run(params["wih_b"], params["whh_b"], params["b_b"], True)
    out = jnp.concatenate([of, ob], axis=2)
    return out, jnp.stack([hf, hb], 0), jnp.stack([cf, cb], 0)


# --------------------------------------------------------------------------
# Deterministic parameter init + example run
# --------------------------------------------------------------------------

def init_params(key, *, num_words, word_dim, num_chars, char_dim, num_pos,
                pos_dim, num_filters, kernel_size, hidden_size):
    ks = jax.random.split(key, 12)
    dim_enc = word_dim + pos_dim + num_filters
    D = 2 * dim_enc
    H = hidden_size

    def n(k, shape, s=0.1):
        return (s * jax.random.normal(k, shape)).astype(jnp.float32)

    return {
        "word_embedd": n(ks[0], (num_words, word_dim)),
        "char_embedd": n(ks[1], (num_chars, char_dim)),
        "pos_embedd":  n(ks[2], (num_pos, pos_dim)),
        "conv_w":      n(ks[3], (num_filters, char_dim, kernel_size)),
        "conv_b":      n(ks[4], (num_filters,)),
        # LSTM params, PyTorch gate order (i, f, g, o), already transposed for x @ W
        "wih_f": n(ks[5], (D, 4 * H)),
        "whh_f": n(ks[6], (H, 4 * H)),
        "b_f":   n(ks[7], (1, 4 * H)),
        "wih_b": n(ks[8], (D, 4 * H)),
        "whh_b": n(ks[9], (H, 4 * H)),
        "b_b":   n(ks[10], (1, 4 * H)),
    }


if __name__ == "__main__":
    # small shapes consistent with the module's forward
    B, T, L = 2, 8, 4
    num_words, num_chars, num_pos = 50, 20, 10
    word_dim, char_dim, pos_dim = 16, 8, 8
    num_filters, kernel_size, hidden_size = 16, 3, 32

    key = jax.random.PRNGKey(0)
    kp, kw, kc, kpo, kh = jax.random.split(key, 5)

    params = init_params(kp, num_words=num_words, word_dim=word_dim,
                         num_chars=num_chars, char_dim=char_dim,
                         num_pos=num_pos, pos_dim=pos_dim,
                         num_filters=num_filters, kernel_size=kernel_size,
                         hidden_size=hidden_size)

    input_word = jax.random.randint(kw, (B, T), 0, num_words)
    input_char = jax.random.randint(kc, (B, T, L), 0, num_chars)
    input_pos = jax.random.randint(kpo, (B, T), 0, num_pos)
    heads = jax.random.randint(kh, (B, T), 0, T)

    fwd = jax.jit(birecurrent_conv_encoder_forward)
    output, (h_n, c_n), mask, length = fwd(
        params, input_word, input_char, input_pos, heads)
    jax.block_until_ready((output, h_n, c_n))

    # sanity check against pure-JAX f32 reference (bf16 matmuls -> loose-ish tolerance)
    ref_out, ref_hn, ref_cn = reference_forward(
        params, input_word, input_char, input_pos, heads)
    assert output.shape == (B, T, 2 * hidden_size)
    assert h_n.shape == (2, B, hidden_size) and c_n.shape == (2, B, hidden_size)
    assert bool(jnp.allclose(output, ref_out, atol=2e-2, rtol=2e-2))
    assert bool(jnp.allclose(h_n, ref_hn, atol=2e-2, rtol=2e-2))
    assert bool(jnp.allclose(c_n, ref_cn, atol=2e-2, rtol=2e-2))

    print("KERNEL_OK")
</pallas_src>

<mosaic_0001>
module attributes {stable_mosaic.version = 11 : i64} {
  func.func @char_conv_kernel(%arg0: i32, %arg1: memref<16x64xbf16, #tpu.memory_space<vmem>>, %arg2: memref<24x128xbf16, #tpu.memory_space<vmem>>, %arg3: memref<1x128xf32, #tpu.memory_space<vmem>>, %arg4: memref<16x128xbf16, #tpu.memory_space<vmem>>) attributes {dimension_semantics = [#tpu.dimension_semantics<parallel>], iteration_bounds = array<i64: 1>, scalar_prefetch = 0 : i64, scratch_operands = 0 : i64, tpu.core_type = #tpu.core_type<tc>, window_params = [{transform_indices = @transform_0, window_bounds = array<i64: 16, 64>}, {pipeline_mode = #tpu.pipeline_mode<synchronous>, transform_indices = @transform_1, window_bounds = array<i64: 24, 128>}, {pipeline_mode = #tpu.pipeline_mode<synchronous>, transform_indices = @transform_2, window_bounds = array<i64: 1, 128>}, {transform_indices = @transform_3, window_bounds = array<i64: 16, 128>}]} {
    %c0 = arith.constant 0 : index
    %c0_0 = arith.constant 0 : index
    %0 = vector.load %arg1[%c0, %c0_0] : memref<16x64xbf16, #tpu.memory_space<vmem>>, vector<16x64xbf16>
    %c0_1 = arith.constant 0 : index
    %c0_2 = arith.constant 0 : index
    %1 = vector.load %arg2[%c0_1, %c0_2] : memref<24x128xbf16, #tpu.memory_space<vmem>>, vector<24x128xbf16>
    %2 = vector.extract_strided_slice %0 {offsets = [0, 0], sizes = [16, 24], strides = [1, 1]} : vector<16x64xbf16> to vector<16x24xbf16>
    %cst = arith.constant dense<0.000000e+00> : vector<16x128xf32>
    %3 = tpu.matmul %2, %1, %cst {dimension_numbers = #tpu.dot_dimension_numbers<[1], [0], [0], [1], [0, 0, 1, 1], [], []>} : vector<16x24xbf16>, vector<24x128xbf16>, vector<16x128xf32> -> vector<16x128xf32>
    %4 = vector.extract_strided_slice %0 {offsets = [0, 8], sizes = [16, 24], strides = [1, 1]} : vector<16x64xbf16> to vector<16x24xbf16>
    %cst_3 = arith.constant dense<0.000000e+00> : vector<16x128xf32>
    %5 = tpu.matmul %4, %1, %cst_3 {dimension_numbers = #tpu.dot_dimension_numbers<[1], [0], [0], [1], [0, 0, 1, 1], [], []>} : vector<16x24xbf16>, vector<24x128xbf16>, vector<16x128xf32> -> vector<16x128xf32>
    %6 = arith.maximumf %3, %5 : vector<16x128xf32>
    %7 = vector.extract_strided_slice %0 {offsets = [0, 16], sizes = [16, 24], strides = [1, 1]} : vector<16x64xbf16> to vector<16x24xbf16>
    %cst_4 = arith.constant dense<0.000000e+00> : vector<16x128xf32>
    %8 = tpu.matmul %7, %1, %cst_4 {dimension_numbers = #tpu.dot_dimension_numbers<[1], [0], [0], [1], [0, 0, 1, 1], [], []>} : vector<16x24xbf16>, vector<24x128xbf16>, vector<16x128xf32> -> vector<16x128xf32>
    %9 = arith.maximumf %6, %8 : vector<16x128xf32>
    %10 = vector.extract_strided_slice %0 {offsets = [0, 24], sizes = [16, 24], strides = [1, 1]} : vector<16x64xbf16> to vector<16x24xbf16>
    %cst_5 = arith.constant dense<0.000000e+00> : vector<16x128xf32>
    %11 = tpu.matmul %10, %1, %cst_5 {dimension_numbers = #tpu.dot_dimension_numbers<[1], [0], [0], [1], [0, 0, 1, 1], [], []>} : vector<16x24xbf16>, vector<24x128xbf16>, vector<16x128xf32> -> vector<16x128xf32>
    %12 = arith.maximumf %9, %11 : vector<16x128xf32>
    %13 = vector.extract_strided_slice %0 {offsets = [0, 32], sizes = [16, 24], strides = [1, 1]} : vector<16x64xbf16> to vector<16x24xbf16>
    %cst_6 = arith.constant dense<0.000000e+00> : vector<16x128xf32>
    %14 = tpu.matmul %13, %1, %cst_6 {dimension_numbers = #tpu.dot_dimension_numbers<[1], [0], [0], [1], [0, 0, 1, 1], [], []>} : vector<16x24xbf16>, vector<24x128xbf16>, vector<16x128xf32> -> vector<16x128xf32>
    %15 = arith.maximumf %12, %14 : vector<16x128xf32>
    %16 = vector.extract_strided_slice %0 {offsets = [0, 40], sizes = [16, 24], strides = [1, 1]} : vector<16x64xbf16> to vector<16x24xbf16>
    %cst_7 = arith.constant dense<0.000000e+00> : vector<16x128xf32>
    %17 = tpu.matmul %16, %1, %cst_7 {dimension_numbers = #tpu.dot_dimension_numbers<[1], [0], [0], [1], [0, 0, 1, 1], [], []>} : vector<16x24xbf16>, vector<24x128xbf16>, vector<16x128xf32> -> vector<16x128xf32>
    %18 = arith.maximumf %15, %17 : vector<16x128xf32>
    %c0_8 = arith.constant 0 : index
    %c0_9 = arith.constant 0 : index
    %19 = vector.load %arg3[%c0_8, %c0_9] : memref<1x128xf32, #tpu.memory_space<vmem>>, vector<1x128xf32>
    %20 = vector.broadcast %19 : vector<1x128xf32> to vector<16x128xf32>
    %21 = arith.addf %18, %20 : vector<16x128xf32>
    %22 = math.tanh %21 : vector<16x128xf32>
    %23 = arith.truncf %22 : vector<16x128xf32> to vector<16x128xbf16>
    %c0_10 = arith.constant 0 : index
    %c0_11 = arith.constant 0 : index
    %24 = vector.load %arg4[%c0_10, %c0_11] : memref<16x128xbf16, #tpu.memory_space<vmem>>, vector<16x128xbf16>
    tpu.vector_store %arg4[%c0_10, %c0_11], %23 {strides = array<i32>} : memref<16x128xbf16, #tpu.memory_space<vmem>>, vector<16x128xbf16>,
    return
  }
  func.func @transform_0(%arg0: i32) -> (i32, i32) {
    %c0_i32 = arith.constant 0 : i32
    %c0_i32_0 = arith.constant 0 : i32
    return %arg0, %c0_i32 : i32, i32
  }
  func.func @transform_1(%arg0: i32) -> (i32, i32) {
    %c0_i32 = arith.constant 0 : i32
    %c0_i32_0 = arith.constant 0 : i32
    %c0_i32_1 = arith.constant 0 : i32
    return %c0_i32, %c0_i32_0 : i32, i32
  }
  func.func @transform_2(%arg0: i32) -> (i32, i32) {
    %c0_i32 = arith.constant 0 : i32
    %c0_i32_0 = arith.constant 0 : i32
    %c0_i32_1 = arith.constant 0 : i32
    return %c0_i32, %c0_i32_0 : i32, i32
  }
  func.func @transform_3(%arg0: i32) -> (i32, i32) {
    %c0_i32 = arith.constant 0 : i32
    %c0_i32_0 = arith.constant 0 : i32
    return %arg0, %c0_i32 : i32, i32
  }
}

module attributes {stable_mosaic.version = 11 : i64} {
  func.func @bilstm_kernel(%arg0: i32, %arg1: memref<64x128xbf16, #tpu.memory_space<vmem>>, %arg2: memref<64x128xbf16, #tpu.memory_space<vmem>>, %arg3: memref<1x128x1024xbf16, #tpu.memory_space<vmem>>, %arg4: memref<1x128x1024xbf16, #tpu.memory_space<vmem>>, %arg5: memref<1x2x128x512xbf16, #tpu.memory_space<vmem>>, %arg6: memref<1x1x1024xf32, #tpu.memory_space<vmem>>, %arg7: memref<1x2x64x128xf32, #tpu.memory_space<vmem>>, %arg8: memref<1x2x8x128xf32, #tpu.memory_space<vmem>>, %arg9: memref<1x2x8x128xf32, #tpu.memory_space<vmem>>, %arg10: memref<64x1024xbf16, #tpu.memory_space<vmem>>) attributes {dimension_semantics = [#tpu.dimension_semantics<parallel>], iteration_bounds = array<i64: 1>, scalar_prefetch = 0 : i64, scratch_operands = 1 : i64, tpu.core_type = #tpu.core_type<tc>, window_params = [{pipeline_mode = #tpu.pipeline_mode<synchronous>, transform_indices = @transform_0, window_bounds = array<i64: 64, 128>}, {pipeline_mode = #tpu.pipeline_mode<synchronous>, transform_indices = @transform_1, window_bounds = array<i64: 64, 128>}, {transform_indices = @transform_2, window_bounds = array<i64: 1, 128, 1024>}, {transform_indices = @transform_3, window_bounds = array<i64: 1, 128, 1024>}, {transform_indices = @transform_4, window_bounds = array<i64: 1, 2, 128, 512>}, {transform_indices = @transform_5, window_bounds = array<i64: 1, 1, 1024>}, {transform_indices = @transform_6, window_bounds = array<i64: 1, 2, 64, 128>}, {transform_indices = @transform_7, window_bounds = array<i64: 1, 2, 8, 128>}, {transform_indices = @transform_8, window_bounds = array<i64: 1, 2, 8, 128>}]} {
    %c0 = arith.constant 0 : index
    %c0_0 = arith.constant 0 : index
    %0 = vector.load %arg1[%c0, %c0_0] : memref<64x128xbf16, #tpu.memory_space<vmem>>, vector<64x128xbf16>
    %c0_1 = arith.constant 0 : index
    %c0_2 = arith.constant 0 : index
    %c0_3 = arith.constant 0 : index
    %1 = vector.load %arg3[%c0_1, %c0_2, %c0_3] : memref<1x128x1024xbf16, #tpu.memory_space<vmem>>, vector<1x128x1024xbf16>
    %2 = vector.shape_cast %1 : vector<1x128x1024xbf16> to vector<128x1024xbf16>
    %cst = arith.constant dense<0.000000e+00> : vector<64x1024xf32>
    %3 = tpu.matmul %0, %2, %cst {dimension_numbers = #tpu.dot_dimension_numbers<[1], [0], [0], [1], [0, 0, 1, 1], [], []>} : vector<64x128xbf16>, vector<128x1024xbf16>, vector<64x1024xf32> -> vector<64x1024xf32>
    %c0_4 = arith.constant 0 : index
    %c0_5 = arith.constant 0 : index
    %4 = vector.load %arg2[%c0_4, %c0_5] : memref<64x128xbf16, #tpu.memory_space<vmem>>, vector<64x128xbf16>
    %c0_6 = arith.constant 0 : index
    %c0_7 = arith.constant 0 : index
    %c0_8 = arith.constant 0 : index
    %5 = vector.load %arg4[%c0_6, %c0_7, %c0_8] : memref<1x128x1024xbf16, #tpu.memory_space<vmem>>, vector<1x128x1024xbf16>
    %6 = vector.shape_cast %5 : vector<1x128x1024xbf16> to vector<128x1024xbf16>
    %cst_9 = arith.constant dense<0.000000e+00> : vector<64x1024xf32>
    %7 = tpu.matmul %4, %6, %cst_9 {dimension_numbers = #tpu.dot_dimension_numbers<[1], [0], [0], [1], [0, 0, 1, 1], [], []>} : vector<64x128xbf16>, vector<128x1024xbf16>, vector<64x1024xf32> -> vector<64x1024xf32>
    %8 = arith.addf %3, %7 : vector<64x1024xf32>
    %c0_10 = arith.constant 0 : index
    %c0_11 = arith.constant 0 : index
    %c0_12 = arith.constant 0 : index
    %9 = vector.load %arg6[%c0_10, %c0_11, %c0_12] : memref<1x1x1024xf32, #tpu.memory_space<vmem>>, vector<1x1x1024xf32>
    %10 = vector.shape_cast %9 : vector<1x1x1024xf32> to vector<1x1024xf32>
    %11 = vector.broadcast %10 : vector<1x1024xf32> to vector<64x1024xf32>
    %12 = arith.addf %8, %11 : vector<64x1024xf32>
    %13 = arith.truncf %12 : vector<64x1024xf32> to vector<64x1024xbf16>
    %c0_13 = arith.constant 0 : index
    %c0_14 = arith.constant 0 : index
    %14 = vector.load %arg10[%c0_13, %c0_14] : memref<64x1024xbf16, #tpu.memory_space<vmem>>, vector<64x1024xbf16>
    tpu.vector_store %arg10[%c0_13, %c0_14], %13 {strides = array<i32>} : memref<64x1024xbf16, #tpu.memory_space<vmem>>, vector<64x1024xbf16>,
    %c0_15 = arith.constant 0 : index
    %c0_16 = arith.constant 0 : index
    %c0_17 = arith.constant 0 : index
    %c0_18 = arith.constant 0 : index
    %15 = vector.load %arg5[%c0_15, %c0_16, %c0_17, %c0_18] : memref<1x2x128x512xbf16, #tpu.memory_space<vmem>>, vector<1x1x128x512xbf16>
    %16 = vector.shape_cast %15 : vector<1x1x128x512xbf16> to vector<128x512xbf16>
    %c0_19 = arith.constant 0 : index
    %c1 = arith.constant 1 : index
    %c0_20 = arith.constant 0 : index
    %c0_21 = arith.constant 0 : index
    %17 = vector.load %arg5[%c0_19, %c1, %c0_20, %c0_21] : memref<1x2x128x512xbf16, #tpu.memory_space<vmem>>, vector<1x1x128x512xbf16>
    %18 = vector.shape_cast %17 : vector<1x1x128x512xbf16> to vector<128x512xbf16>
    %cst_22 = arith.constant 0.000000e+00 : f32
    %19 = vector.broadcast %cst_22 : f32 to vector<8x128xf32>
    %cst_23 = arith.constant 0.000000e+00 : f32
    %20 = vector.broadcast %cst_23 : f32 to vector<8x128xf32>
    %cst_24 = arith.constant 0.000000e+00 : f32
    %21 = vector.broadcast %cst_24 : f32 to vector<8x128xf32>
    %cst_25 = arith.constant 0.000000e+00 : f32
    %22 = vector.broadcast %cst_25 : f32 to vector<8x128xf32>
    %c0_i32 = arith.constant 0 : i32
    %c8_i32 = arith.constant 8 : i32
    %23 = arith.muli %c0_i32, %c8_i32 : i32
    %24 = tpu.assume_multiple %23, 8 : i32
    %25 = arith.index_cast %24 : i32 to index
    %c0_26 = arith.constant 0 : index
    %26 = vector.load %arg10[%25, %c0_26] : memref<64x1024xbf16, #tpu.memory_space<vmem>>, vector<8x512xbf16>
    %27 = arith.extf %26 : vector<8x512xbf16> to vector<8x512xf32>
    %28 = arith.truncf %19 : vector<8x128xf32> to vector<8x128xbf16>
    %cst_27 = arith.constant dense<0.000000e+00> : vector<8x512xf32>
    %29 = tpu.matmul %28, %16, %cst_27 {dimension_numbers = #tpu.dot_dimension_numbers<[1], [0], [0], [1], [0, 0, 1, 1], [], []>} : vector<8x128xbf16>, vector<128x512xbf16>, vector<8x512xf32> -> vector<8x512xf32>
    %30 = arith.addf %27, %29 : vector<8x512xf32>
    %31 = vector.extract_strided_slice %30 {offsets = [0, 0], sizes = [8, 128], strides = [1, 1]} : vector<8x512xf32> to vector<8x128xf32>
    %32 = arith.negf %31 : vector<8x128xf32>
    %33 = math.exp %32 : vector<8x128xf32>
    %cst_28 = arith.constant 1.000000e+00 : f32
    %34 = vector.broadcast %cst_28 : f32 to vector<8x128xf32>
    %35 = arith.addf %34, %33 : vector<8x128xf32>
    %36 = arith.divf %34, %35 : vector<8x128xf32>
    %37 = vector.extract_strided_slice %30 {offsets = [0, 128], sizes = [8, 128], strides = [1, 1]} : vector<8x512xf32> to vector<8x128xf32>
    %38 = arith.negf %37 : vector<8x128xf32>
    %39 = math.exp %38 : vector<8x128xf32>
    %cst_29 = arith.constant 1.000000e+00 : f32
    %40 = vector.broadcast %cst_29 : f32 to vector<8x128xf32>
    %41 = arith.addf %40, %39 : vector<8x128xf32>
    %42 = arith.divf %40, %41 : vector<8x128xf32>
    %43 = vector.extract_strided_slice %30 {offsets = [0, 256], sizes = [8, 128], strides = [1, 1]} : vector<8x512xf32> to vector<8x128xf32>
    %44 = math.tanh %43 : vector<8x128xf32>
    %45 = vector.extract_strided_slice %30 {offsets = [0, 384], sizes = [8, 128], strides = [1, 1]} : vector<8x512xf32> to vector<8x128xf32>
    %46 = arith.negf %45 : vector<8x128xf32>
    %47 = math.exp %46 : vector<8x128xf32>
    %cst_30 = arith.constant 1.000000e+00 : f32
    %48 = vector.broadcast %cst_30 : f32 to vector<8x128xf32>
    %49 = arith.addf %48, %47 : vector<8x128xf32>
    %50 = arith.divf %48, %49 : vector<8x128xf32>
    %51 = arith.mulf %42, %20 : vector<8x128xf32>
    %52 = arith.mulf %36, %44 : vector<8x128xf32>
    %53 = arith.addf %51, %52 : vector<8x128xf32>
    %54 = math.tanh %53 : vector<8x128xf32>
    %55 = arith.mulf %50, %54 : vector<8x128xf32>
    %c0_31 = arith.constant 0 : index
    %c0_32 = arith.constant 0 : index
    %56 = arith.index_cast %24 : i32 to index
    %c0_33 = arith.constant 0 : index
    %57 = vector.load %arg7[%c0_31, %c0_32, %56, %c0_33] : memref<1x2x64x128xf32, #tpu.memory_space<vmem>>, vector<1x1x8x128xf32>
    %58 = vector.shape_cast %57 : vector<1x1x8x128xf32> to vector<8x128xf32>
    %59 = vector.shape_cast %55 : vector<8x128xf32> to vector<1x1x8x128xf32>
    tpu.vector_store %arg7[%c0_31, %c0_32, %56, %c0_33], %59 {strides = array<i32>} : memref<1x2x64x128xf32, #tpu.memory_space<vmem>>, vector<1x1x8x128xf32>,
    %c7_i32 = arith.constant 7 : i32
    %60 = arith.subi %c7_i32, %c0_i32 : i32
    %c8_i32_34 = arith.constant 8 : i32
    %61 = arith.muli %60, %c8_i32_34 : i32
    %62 = tpu.assume_multiple %61, 8 : i32
    %63 = arith.index_cast %62 : i32 to index
    %c512 = arith.constant 512 : index
    %64 = vector.load %arg10[%63, %c512] : memref<64x1024xbf16, #tpu.memory_space<vmem>>, vector<8x512xbf16>
    %65 = arith.extf %64 : vector<8x512xbf16> to vector<8x512xf32>
    %66 = arith.truncf %21 : vector<8x128xf32> to vector<8x128xbf16>
    %cst_35 = arith.constant dense<0.000000e+00> : vector<8x512xf32>
    %67 = tpu.matmul %66, %18, %cst_35 {dimension_numbers = #tpu.dot_dimension_numbers<[1], [0], [0], [1], [0, 0, 1, 1], [], []>} : vector<8x128xbf16>, vector<128x512xbf16>, vector<8x512xf32> -> vector<8x512xf32>
    %68 = arith.addf %65, %67 : vector<8x512xf32>
    %69 = vector.extract_strided_slice %68 {offsets = [0, 0], sizes = [8, 128], strides = [1, 1]} : vector<8x512xf32> to vector<8x128xf32>
    %70 = arith.negf %69 : vector<8x128xf32>
    %71 = math.exp %70 : vector<8x128xf32>
    %cst_36 = arith.constant 1.000000e+00 : f32
    %72 = vector.broadcast %cst_36 : f32 to vector<8x128xf32>
    %73 = arith.addf %72, %71 : vector<8x128xf32>
    %74 = arith.divf %72, %73 : vector<8x128xf32>
    %75 = vector.extract_strided_slice %68 {offsets = [0, 128], sizes = [8, 128], strides = [1, 1]} : vector<8x512xf32> to vector<8x128xf32>
    %76 = arith.negf %75 : vector<8x128xf32>
    %77 = math.exp %76 : vector<8x128xf32>
    %cst_37 = arith.constant 1.000000e+00 : f32
    %78 = vector.broadcast %cst_37 : f32 to vector<8x128xf32>
    %79 = arith.addf %78, %77 : vector<8x128xf32>
    %80 = arith.divf %78, %79 : vector<8x128xf32>
    %81 = vector.extract_strided_slice %68 {offsets = [0, 256], sizes = [8, 128], strides = [1, 1]} : vector<8x512xf32> to vector<8x128xf32>
    %82 = math.tanh %81 : vector<8x128xf32>
    %83 = vector.extract_strided_slice %68 {offsets = [0, 384], sizes = [8, 128], strides = [1, 1]} : vector<8x512xf32> to vector<8x128xf32>
    %84 = arith.negf %83 : vector<8x128xf32>
    %85 = math.exp %84 : vector<8x128xf32>
    %cst_38 = arith.constant 1.000000e+00 : f32
    %86 = vector.broadcast %cst_38 : f32 to vector<8x128xf32>
    %87 = arith.addf %86, %85 : vector<8x128xf32>
    %88 = arith.divf %86, %87 : vector<8x128xf32>
    %89 = arith.mulf %80, %22 : vector<8x128xf32>
    %90 = arith.mulf %74, %82 : vector<8x128xf32>
    %91 = arith.addf %89, %90 : vector<8x128xf32>
    %92 = math.tanh %91 : vector<8x128xf32>
    %93 = arith.mulf %88, %92 : vector<8x128xf32>
    %c0_39 = arith.constant 0 : index
    %c1_40 = arith.constant 1 : index
    %94 = arith.index_cast %62 : i32 to index
    %c0_41 = arith.constant 0 : index
    %95 = vector.load %arg7[%c0_39, %c1_40, %94, %c0_41] : memref<1x2x64x128xf32, #tpu.memory_space<vmem>>, vector<1x1x8x128xf32>
    %96 = vector.shape_cast %95 : vector<1x1x8x128xf32> to vector<8x128xf32>
    %97 = vector.shape_cast %93 : vector<8x128xf32> to vector<1x1x8x128xf32>
    tpu.vector_store %arg7[%c0_39, %c1_40, %94, %c0_41], %97 {strides = array<i32>} : memref<1x2x64x128xf32, #tpu.memory_space<vmem>>, vector<1x1x8x128xf32>,
    %c1_i32 = arith.constant 1 : i32
    %c8_i32_42 = arith.constant 8 : i32
    %98 = arith.muli %c1_i32, %c8_i32_42 : i32
    %99 = tpu.assume_multiple %98, 8 : i32
    %100 = arith.index_cast %99 : i32 to index
    %c0_43 = arith.constant 0 : index
    %101 = vector.load %arg10[%100, %c0_43] : memref<64x1024xbf16, #tpu.memory_space<vmem>>, vector<8x512xbf16>
    %102 = arith.extf %101 : vector<8x512xbf16> to vector<8x512xf32>
    %103 = arith.truncf %55 : vector<8x128xf32> to vector<8x128xbf16>
    %cst_44 = arith.constant dense<0.000000e+00> : vector<8x512xf32>
    %104 = tpu.matmul %103, %16, %cst_44 {dimension_numbers = #tpu.dot_dimension_numbers<[1], [0], [0], [1], [0, 0, 1, 1], [], []>} : vector<8x128xbf16>, vector<128x512xbf16>, vector<8x512xf32> -> vector<8x512xf32>
    %105 = arith.addf %102, %104 : vector<8x512xf32>
    %106 = vector.extract_strided_slice %105 {offsets = [0, 0], sizes = [8, 128], strides = [1, 1]} : vector<8x512xf32> to vector<8x128xf32>
    %107 = arith.negf %106 : vector<8x128xf32>
    %108 = math.exp %107 : vector<8x128xf32>
    %cst_45 = arith.constant 1.000000e+00 : f32
    %109 = vector.broadcast %cst_45 : f32 to vector<8x128xf32>
    %110 = arith.addf %109, %108 : vector<8x128xf32>
    %111 = arith.divf %109, %110 : vector<8x128xf32>
    %112 = vector.extract_strided_slice %105 {offsets = [0, 128], sizes = [8, 128], strides = [1, 1]} : vector<8x512xf32> to vector<8x128xf32>
    %113 = arith.negf %112 : vector<8x128xf32>
    %114 = math.exp %113 : vector<8x128xf32>
    %cst_46 = arith.constant 1.000000e+00 : f32
    %115 = vector.broadcast %cst_46 : f32 to vector<8x128xf32>
    %116 = arith.addf %115, %114 : vector<8x128xf32>
    %117 = arith.divf %115, %116 : vector<8x128xf32>
    %118 = vector.extract_strided_slice %105 {offsets = [0, 256], sizes = [8, 128], strides = [1, 1]} : vector<8x512xf32> to vector<8x128xf32>
    %119 = math.tanh %118 : vector<8x128xf32>
    %120 = vector.extract_strided_slice %105 {offsets = [0, 384], sizes = [8, 128], strides = [1, 1]} : vector<8x512xf32> to vector<8x128xf32>
    %121 = arith.negf %120 : vector<8x128xf32>
    %122 = math.exp %121 : vector<8x128xf32>
    %cst_47 = arith.constant 1.000000e+00 : f32
    %123 = vector.broadcast %cst_47 : f32 to vector<8x128xf32>
    %124 = arith.addf %123, %122 : vector<8x128xf32>
    %125 = arith.divf %123, %124 : vector<8x128xf32>
    %126 = arith.mulf %117, %53 : vector<8x128xf32>
    %127 = arith.mulf %111, %119 : vector<8x128xf32>
    %128 = arith.addf %126, %127 : vector<8x128xf32>
    %129 = math.tanh %128 : vector<8x128xf32>
    %130 = arith.mulf %125, %129 : vector<8x128xf32>
    %c0_48 = arith.constant 0 : index
    %c0_49 = arith.constant 0 : index
    %131 = arith.index_cast %99 : i32 to index
    %c0_50 = arith.constant 0 : index
    %132 = vector.load %arg7[%c0_48, %c0_49, %131, %c0_50] : memref<1x2x64x128xf32, #tpu.memory_space<vmem>>, vector<1x1x8x128xf32>
    %133 = vector.shape_cast %132 : vector<1x1x8x128xf32> to vector<8x128xf32>
    %134 = vector.shape_cast %130 : vector<8x128xf32> to vector<1x1x8x128xf32>
    tpu.vector_store %arg7[%c0_48, %c0_49, %131, %c0_50], %134 {strides = array<i32>} : memref<1x2x64x128xf32, #tpu.memory_space<vmem>>, vector<1x1x8x128xf32>,
    %c7_i32_51 = arith.constant 7 : i32
    %135 = arith.subi %c7_i32_51, %c1_i32 : i32
    %c8_i32_52 = arith.constant 8 : i32
    %136 = arith.muli %135, %c8_i32_52 : i32
    %137 = tpu.assume_multiple %136, 8 : i32
    %138 = arith.index_cast %137 : i32 to index
    %c512_53 = arith.constant 512 : index
    %139 = vector.load %arg10[%138, %c512_53] : memref<64x1024xbf16, #tpu.memory_space<vmem>>, vector<8x512xbf16>
    %140 = arith.extf %139 : vector<8x512xbf16> to vector<8x512xf32>
    %141 = arith.truncf %93 : vector<8x128xf32> to vector<8x128xbf16>
    %cst_54 = arith.constant dense<0.000000e+00> : vector<8x512xf32>
    %142 = tpu.matmul %141, %18, %cst_54 {dimension_numbers = #tpu.dot_dimension_numbers<[1], [0], [0], [1], [0, 0, 1, 1], [], []>} : vector<8x128xbf16>, vector<128x512xbf16>, vector<8x512xf32> -> vector<8x512xf32>
    %143 = arith.addf %140, %142 : vector<8x512xf32>
    %144 = vector.extract_strided_slice %143 {offsets = [0, 0], sizes = [8, 128], strides = [1, 1]} : vector<8x512xf32> to vector<8x128xf32>
    %145 = arith.negf %144 : vector<8x128xf32>
    %146 = math.exp %145 : vector<8x128xf32>
    %cst_55 = arith.constant 1.000000e+00 : f32
    %147 = vector.broadcast %cst_55 : f32 to vector<8x128xf32>
    %148 = arith.addf %147, %146 : vector<8x128xf32>
    %149 = arith.divf %147, %148 : vector<8x128xf32>
    %150 = vector.extract_strided_slice %143 {offsets = [0, 128], sizes = [8, 128], strides = [1, 1]} : vector<8x512xf32> to vector<8x128xf32>
    %151 = arith.negf %150 : vector<8x128xf32>
    %152 = math.exp %151 : vector<8x128xf32>
    %cst_56 = arith.constant 1.000000e+00 : f32
    %153 = vector.broadcast %cst_56 : f32 to vector<8x128xf32>
    %154 = arith.addf %153, %152 : vector<8x128xf32>
    %155 = arith.divf %153, %154 : vector<8x128xf32>
    %156 = vector.extract_strided_slice %143 {offsets = [0, 256], sizes = [8, 128], strides = [1, 1]} : vector<8x512xf32> to vector<8x128xf32>
    %157 = math.tanh %156 : vector<8x128xf32>
    %158 = vector.extract_strided_slice %143 {offsets = [0, 384], sizes = [8, 128], strides = [1, 1]} : vector<8x512xf32> to vector<8x128xf32>
    %159 = arith.negf %158 : vector<8x128xf32>
    %160 = math.exp %159 : vector<8x128xf32>
    %cst_57 = arith.constant 1.000000e+00 : f32
    %161 = vector.broadcast %cst_57 : f32 to vector<8x128xf32>
    %162 = arith.addf %161, %160 : vector<8x128xf32>
    %163 = arith.divf %161, %162 : vector<8x128xf32>
    %164 = arith.mulf %155, %91 : vector<8x128xf32>
    %165 = arith.mulf %149, %157 : vector<8x128xf32>
    %166 = arith.addf %164, %165 : vector<8x128xf32>
    %167 = math.tanh %166 : vector<8x128xf32>
    %168 = arith.mulf %163, %167 : vector<8x128xf32>
    %c0_58 = arith.constant 0 : index
    %c1_59 = arith.constant 1 : index
    %169 = arith.index_cast %137 : i32 to index
    %c0_60 = arith.constant 0 : index
    %170 = vector.load %arg7[%c0_58, %c1_59, %169, %c0_60] : memref<1x2x64x128xf32, #tpu.memory_space<vmem>>, vector<1x1x8x128xf32>
    %171 = vector.shape_cast %170 : vector<1x1x8x128xf32> to vector<8x128xf32>
    %172 = vector.shape_cast %168 : vector<8x128xf32> to vector<1x1x8x128xf32>
    tpu.vector_store %arg7[%c0_58, %c1_59, %169, %c0_60], %172 {strides = array<i32>} : memref<1x2x64x128xf32, #tpu.memory_space<vmem>>, vector<1x1x8x128xf32>,
    %c2_i32 = arith.constant 2 : i32
    %c8_i32_61 = arith.constant 8 : i32
    %173 = arith.muli %c2_i32, %c8_i32_61 : i32
    %174 = tpu.assume_multiple %173, 8 : i32
    %175 = arith.index_cast %174 : i32 to index
    %c0_62 = arith.constant 0 : index
    %176 = vector.load %arg10[%175, %c0_62] : memref<64x1024xbf16, #tpu.memory_space<vmem>>, vector<8x512xbf16>
    %177 = arith.extf %176 : vector<8x512xbf16> to vector<8x512xf32>
    %178 = arith.truncf %130 : vector<8x128xf32> to vector<8x128xbf16>
    %cst_63 = arith.constant dense<0.000000e+00> : vector<8x512xf32>
    %179 = tpu.matmul %178, %16, %cst_63 {dimension_numbers = #tpu.dot_dimension_numbers<[1], [0], [0], [1], [0, 0, 1, 1], [], []>} : vector<8x128xbf16>, vector<128x512xbf16>, vector<8x512xf32> -> vector<8x512xf32>
    %180 = arith.addf %177, %179 : vector<8x512xf32>
    %181 = vector.extract_strided_slice %180 {offsets = [0, 0], sizes = [8, 128], strides = [1, 1]} : vector<8x512xf32> to vector<8x128xf32>
    %182 = arith.negf %181 : vector<8x128xf32>
    %183 = math.exp %182 : vector<8x128xf32>
    %cst_64 = arith.constant 1.000000e+00 : f32
    %184 = vector.broadcast %cst_64 : f32 to vector<8x128xf32>
    %185 = arith.addf %184, %183 : vector<8x128xf32>
    %186 = arith.divf %184, %185 : vector<8x128xf32>
    %187 = vector.extract_strided_slice %180 {offsets = [0, 128], sizes = [8, 128], strides = [1, 1]} : vector<8x512xf32> to vector<8x128xf32>
    %188 = arith.negf %187 : vector<8x128xf32>
    %189 = math.exp %188 : vector<8x128xf32>
    %cst_65 = arith.constant 1.000000e+00 : f32
    %190 = vector.broadcast %cst_65 : f32 to vector<8x128xf32>
    %191 = arith.addf %190, %189 : vector<8x128xf32>
    %192 = arith.divf %190, %191 : vector<8x128xf32>
    %193 = vector.extract_strided_slice %180 {offsets = [0, 256], sizes = [8, 128], strides = [1, 1]} : vector<8x512xf32> to vector<8x128xf32>
    %194 = math.tanh %193 : vector<8x128xf32>
    %195 = vector.extract_strided_slice %180 {offsets = [0, 384], sizes = [8, 128], strides = [1, 1]} : vector<8x512xf32> to vector<8x128xf32>
    %196 = arith.negf %195 : vector<8x128xf32>
    %197 = math.exp %196 : vector<8x128xf32>
    %cst_66 = arith.constant 1.000000e+00 : f32
    %198 = vector.broadcast %cst_66 : f32 to vector<8x128xf32>
    %199 = arith.addf %198, %197 : vector<8x128xf32>
    %200 = arith.divf %198, %199 : vector<8x128xf32>
    %201 = arith.mulf %192, %128 : vector<8x128xf32>
    %202 = arith.mulf %186, %194 : vector<8x128xf32>
    %203 = arith.addf %201, %202 : vector<8x128xf32>
    %204 = math.tanh %203 : vector<8x128xf32>
    %205 = arith.mulf %200, %204 : vector<8x128xf32>
    %c0_67 = arith.constant 0 : index
    %c0_68 = arith.constant 0 : index
    %206 = arith.index_cast %174 : i32 to index
    %c0_69 = arith.constant 0 : index
    %207 = vector.load %arg7[%c0_67, %c0_68, %206, %c0_69] : memref<1x2x64x128xf32, #tpu.memory_space<vmem>>, vector<1x1x8x128xf32>
    %208 = vector.shape_cast %207 : vector<1x1x8x128xf32> to vector<8x128xf32>
    %209 = vector.shape_cast %205 : vector<8x128xf32> to vector<1x1x8x128xf32>
    tpu.vector_store %arg7[%c0_67, %c0_68, %206, %c0_69], %209 {strides = array<i32>} : memref<1x2x64x128xf32, #tpu.memory_space<vmem>>, vector<1x1x8x128xf32>,
    %c7_i32_70 = arith.constant 7 : i32
    %210 = arith.subi %c7_i32_70, %c2_i32 : i32
    %c8_i32_71 = arith.constant 8 : i32
    %211 = arith.muli %210, %c8_i32_71 : i32
    %212 = tpu.assume_multiple %211, 8 : i32
    %213 = arith.index_cast %212 : i32 to index
    %c512_72 = arith.constant 512 : index
    %214 = vector.load %arg10[%213, %c512_72] : memref<64x1024xbf16, #tpu.memory_space<vmem>>, vector<8x512xbf16>
    %215 = arith.extf %214 : vector<8x512xbf16> to vector<8x512xf32>
    %216 = arith.truncf %168 : vector<8x128xf32> to vector<8x128xbf16>
    %cst_73 = arith.constant dense<0.000000e+00> : vector<8x512xf32>
    %217 = tpu.matmul %216, %18, %cst_73 {dimension_numbers = #tpu.dot_dimension_numbers<[1], [0], [0], [1], [0, 0, 1, 1], [], []>} : vector<8x128xbf16>, vector<128x512xbf16>, vector<8x512xf32> -> vector<8x512xf32>
    %218 = arith.addf %215, %217 : vector<8x512xf32>
    %219 = vector.extract_strided_slice %218 {offsets = [0, 0], sizes = [8, 128], strides = [1, 1]} : vector<8x512xf32> to vector<8x128xf32>
    %220 = arith.negf %219 : vector<8x128xf32>
    %221 = math.exp %220 : vector<8x128xf32>
    %cst_74 = arith.constant 1.000000e+00 : f32
    %222 = vector.broadcast %cst_74 : f32 to vector<8x128xf32>
    %223 = arith.addf %222, %221 : vector<8x128xf32>
    %224 = arith.divf %222, %223 : vector<8x128xf32>
    %225 = vector.extract_strided_slice %218 {offsets = [0, 128], sizes = [8, 128], strides = [1, 1]} : vector<8x512xf32> to vector<8x128xf32>
    %226 = arith.negf %225 : vector<8x128xf32>
    %227 = math.exp %226 : vector<8x128xf32>
    %cst_75 = arith.constant 1.000000e+00 : f32
    %228 = vector.broadcast %cst_75 : f32 to vector<8x128xf32>
    %229 = arith.addf %228, %227 : vector<8x128xf32>
    %230 = arith.divf %228, %229 : vector<8x128xf32>
    %231 = vector.extract_strided_slice %218 {offsets = [0, 256], sizes = [8, 128], strides = [1, 1]} : vector<8x512xf32> to vector<8x128xf32>
    %232 = math.tanh %231 : vector<8x128xf32>
    %233 = vector.extract_strided_slice %218 {offsets = [0, 384], sizes = [8, 128], strides = [1, 1]} : vector<8x512xf32> to vector<8x128xf32>
    %234 = arith.negf %233 : vector<8x128xf32>
    %235 = math.exp %234 : vector<8x128xf32>
    %cst_76 = arith.constant 1.000000e+00 : f32
    %236 = vector.broadcast %cst_76 : f32 to vector<8x128xf32>
    %237 = arith.addf %236, %235 : vector<8x128xf32>
    %238 = arith.divf %236, %237 : vector<8x128xf32>
    %239 = arith.mulf %230, %166 : vector<8x128xf32>
    %240 = arith.mulf %224, %232 : vector<8x128xf32>
    %241 = arith.addf %239, %240 : vector<8x128xf32>
    %242 = math.tanh %241 : vector<8x128xf32>
    %243 = arith.mulf %238, %242 : vector<8x128xf32>
    %c0_77 = arith.constant 0 : index
    %c1_78 = arith.constant 1 : index
    %244 = arith.index_cast %212 : i32 to index
    %c0_79 = arith.constant 0 : index
    %245 = vector.load %arg7[%c0_77, %c1_78, %244, %c0_79] : memref<1x2x64x128xf32, #tpu.memory_space<vmem>>, vector<1x1x8x128xf32>
    %246 = vector.shape_cast %245 : vector<1x1x8x128xf32> to vector<8x128xf32>
    %247 = vector.shape_cast %243 : vector<8x128xf32> to vector<1x1x8x128xf32>
    tpu.vector_store %arg7[%c0_77, %c1_78, %244, %c0_79], %247 {strides = array<i32>} : memref<1x2x64x128xf32, #tpu.memory_space<vmem>>, vector<1x1x8x128xf32>,
    %c3_i32 = arith.constant 3 : i32
    %c8_i32_80 = arith.constant 8 : i32
    %248 = arith.muli %c3_i32, %c8_i32_80 : i32
    %249 = tpu.assume_multiple %248, 8 : i32
    %250 = arith.index_cast %249 : i32 to index
    %c0_81 = arith.constant 0 : index
    %251 = vector.load %arg10[%250, %c0_81] : memref<64x1024xbf16, #tpu.memory_space<vmem>>, vector<8x512xbf16>
    %252 = arith.extf %251 : vector<8x512xbf16> to vector<8x512xf32>
    %253 = arith.truncf %205 : vector<8x128xf32> to vector<8x128xbf16>
    %cst_82 = arith.constant dense<0.000000e+00> : vector<8x512xf32>
    %254 = tpu.matmul %253, %16, %cst_82 {dimension_numbers = #tpu.dot_dimension_numbers<[1], [0], [0], [1], [0, 0, 1, 1], [], []>} : vector<8x128xbf16>, vector<128x512xbf16>, vector<8x512xf32> -> vector<8x512xf32>
    %255 = arith.addf %252, %254 : vector<8x512xf32>
    %256 = vector.extract_strided_slice %255 {offsets = [0, 0], sizes = [8, 128], strides = [1, 1]} : vector<8x512xf32> to vector<8x128xf32>
    %257 = arith.negf %256 : vector<8x128xf32>
    %258 = math.exp %257 : vector<8x128xf32>
    %cst_83 = arith.constant 1.000000e+00 : f32
    %259 = vector.broadcast %cst_83 : f32 to vector<8x128xf32>
    %260 = arith.addf %259, %258 : vector<8x128xf32>
    %261 = arith.divf %259, %260 : vector<8x128xf32>
    %262 = vector.extract_strided_slice %255 {offsets = [0, 128], sizes = [8, 128], strides = [1, 1]} : vector<8x512xf32> to vector<8x128xf32>
    %263 = arith.negf %262 : vector<8x128xf32>
    %264 = math.exp %263 : vector<8x128xf32>
    %cst_84 = arith.constant 1.000000e+00 : f32
    %265 = vector.broadcast %cst_84 : f32 to vector<8x128xf32>
    %266 = arith.addf %265, %264 : vector<8x128xf32>
    %267 = arith.divf %265, %266 : vector<8x128xf32>
    %268 = vector.extract_strided_slice %255 {offsets = [0, 256], sizes = [8, 128], strides = [1, 1]} : vector<8x512xf32> to vector<8x128xf32>
    %269 = math.tanh %268 : vector<8x128xf32>
    %270 = vector.extract_strided_slice %255 {offsets = [0, 384], sizes = [8, 128], strides = [1, 1]} : vector<8x512xf32> to vector<8x128xf32>
    %271 = arith.negf %270 : vector<8x128xf32>
    %272 = math.exp %271 : vector<8x128xf32>
    %cst_85 = arith.constant 1.000000e+00 : f32
    %273 = vector.broadcast %cst_85 : f32 to vector<8x128xf32>
    %274 = arith.addf %273, %272 : vector<8x128xf32>
    %275 = arith.divf %273, %274 : vector<8x128xf32>
    %276 = arith.mulf %267, %203 : vector<8x128xf32>
    %277 = arith.mulf %261, %269 : vector<8x128xf32>
    %278 = arith.addf %276, %277 : vector<8x128xf32>
    %279 = math.tanh %278 : vector<8x128xf32>
    %280 = arith.mulf %275, %279 : vector<8x128xf32>
    %c0_86 = arith.constant 0 : index
    %c0_87 = arith.constant 0 : index
    %281 = arith.index_cast %249 : i32 to index
    %c0_88 = arith.constant 0 : index
    %282 = vector.load %arg7[%c0_86, %c0_87, %281, %c0_88] : memref<1x2x64x128xf32, #tpu.memory_space<vmem>>, vector<1x1x8x128xf32>
    %283 = vector.shape_cast %282 : vector<1x1x8x128xf32> to vector<8x128xf32>
    %284 = vector.shape_cast %280 : vector<8x128xf32> to vector<1x1x8x128xf32>
    tpu.vector_store %arg7[%c0_86, %c0_87, %281, %c0_88], %284 {strides = array<i32>} : memref<1x2x64x128xf32, #tpu.memory_space<vmem>>, vector<1x1x8x128xf32>,
    %c7_i32_89 = arith.constant 7 : i32
    %285 = arith.subi %c7_i32_89, %c3_i32 : i32
    %c8_i32_90 = arith.constant 8 : i32
    %286 = arith.muli %285, %c8_i32_90 : i32
    %287 = tpu.assume_multiple %286, 8 : i32
    %288 = arith.index_cast %287 : i32 to index
    %c512_91 = arith.constant 512 : index
    %289 = vector.load %arg10[%288, %c512_91] : memref<64x1024xbf16, #tpu.memory_space<vmem>>, vector<8x512xbf16>
    %290 = arith.extf %289 : vector<8x512xbf16> to vector<8x512xf32>
    %291 = arith.truncf %243 : vector<8x128xf32> to vector<8x128xbf16>
    %cst_92 = arith.constant dense<0.000000e+00> : vector<8x512xf32>
    %292 = tpu.matmul %291, %18, %cst_92 {dimension_numbers = #tpu.dot_dimension_numbers<[1], [0], [0], [1], [0, 0, 1, 1], [], []>} : vector<8x128xbf16>, vector<128x512xbf16>, vector<8x512xf32> -> vector<8x512xf32>
    %293 = arith.addf %290, %292 : vector<8x512xf32>
    %294 = vector.extract_strided_slice %293 {offsets = [0, 0], sizes = [8, 128], strides = [1, 1]} : vector<8x512xf32> to vector<8x128xf32>
    %295 = arith.negf %294 : vector<8x128xf32>
    %296 = math.exp %295 : vector<8x128xf32>
    %cst_93 = arith.constant 1.000000e+00 : f32
    %297 = vector.broadcast %cst_93 : f32 to vector<8x128xf32>
    %298 = arith.addf %297, %296 : vector<8x128xf32>
    %299 = arith.divf %297, %298 : vector<8x128xf32>
    %300 = vector.extract_strided_slice %293 {offsets = [0, 128], sizes = [8, 128], strides = [1, 1]} : vector<8x512xf32> to vector<8x128xf32>
    %301 = arith.negf %300 : vector<8x128xf32>
    %302 = math.exp %301 : vector<8x128xf32>
    %cst_94 = arith.constant 1.000000e+00 : f32
    %303 = vector.broadcast %cst_94 : f32 to vector<8x128xf32>
    %304 = arith.addf %303, %302 : vector<8x128xf32>
    %305 = arith.divf %303, %304 : vector<8x128xf32>
    %306 = vector.extract_strided_slice %293 {offsets = [0, 256], sizes = [8, 128], strides = [1, 1]} : vector<8x512xf32> to vector<8x128xf32>
    %307 = math.tanh %306 : vector<8x128xf32>
    %308 = vector.extract_strided_slice %293 {offsets = [0, 384], sizes = [8, 128], strides = [1, 1]} : vector<8x512xf32> to vector<8x128xf32>
    %309 = arith.negf %308 : vector<8x128xf32>
    %310 = math.exp %309 : vector<8x128xf32>
    %cst_95 = arith.constant 1.000000e+00 : f32
    %311 = vector.broadcast %cst_95 : f32 to vector<8x128xf32>
    %312 = arith.addf %311, %310 : vector<8x128xf32>
    %313 = arith.divf %311, %312 : vector<8x128xf32>
    %314 = arith.mulf %305, %241 : vector<8x128xf32>
    %315 = arith.mulf %299, %307 : vector<8x128xf32>
    %316 = arith.addf %314, %315 : vector<8x128xf32>
    %317 = math.tanh %316 : vector<8x128xf32>
    %318 = arith.mulf %313, %317 : vector<8x128xf32>
    %c0_96 = arith.constant 0 : index
    %c1_97 = arith.constant 1 : index
    %319 = arith.index_cast %287 : i32 to index
    %c0_98 = arith.constant 0 : index
    %320 = vector.load %arg7[%c0_96, %c1_97, %319, %c0_98] : memref<1x2x64x128xf32, #tpu.memory_space<vmem>>, vector<1x1x8x128xf32>
    %321 = vector.shape_cast %320 : vector<1x1x8x128xf32> to vector<8x128xf32>
    %322 = vector.shape_cast %318 : vector<8x128xf32> to vector<1x1x8x128xf32>
    tpu.vector_store %arg7[%c0_96, %c1_97, %319, %c0_98], %322 {strides = array<i32>} : memref<1x2x64x128xf32, #tpu.memory_space<vmem>>, vector<1x1x8x128xf32>,
    %c4_i32 = arith.constant 4 : i32
    %c8_i32_99 = arith.constant 8 : i32
    %323 = arith.muli %c4_i32, %c8_i32_99 : i32
    %324 = tpu.assume_multiple %323, 8 : i32
    %325 = arith.index_cast %324 : i32 to index
    %c0_100 = arith.constant 0 : index
    %326 = vector.load %arg10[%325, %c0_100] : memref<64x1024xbf16, #tpu.memory_space<vmem>>, vector<8x512xbf16>
    %327 = arith.extf %326 : vector<8x512xbf16> to vector<8x512xf32>
    %328 = arith.truncf %280 : vector<8x128xf32> to vector<8x128xbf16>
    %cst_101 = arith.constant dense<0.000000e+00> : vector<8x512xf32>
    %329 = tpu.matmul %328, %16, %cst_101 {dimension_numbers = #tpu.dot_dimension_numbers<[1], [0], [0], [1], [0, 0, 1, 1], [], []>} : vector<8x128xbf16>, vector<128x512xbf16>, vector<8x512xf32> -> vector<8x512xf32>
    %330 = arith.addf %327, %329 : vector<8x512xf32>
    %331 = vector.extract_strided_slice %330 {offsets = [0, 0], sizes = [8, 128], strides = [1, 1]} : vector<8x512xf32> to vector<8x128xf32>
    %332 = arith.negf %331 : vector<8x128xf32>
    %333 = math.exp %332 : vector<8x128xf32>
    %cst_102 = arith.constant 1.000000e+00 : f32
    %334 = vector.broadcast %cst_102 : f32 to vector<8x128xf32>
    %335 = arith.addf %334, %333 : vector<8x128xf32>
    %336 = arith.divf %334, %335 : vector<8x128xf32>
    %337 = vector.extract_strided_slice %330 {offsets = [0, 128], sizes = [8, 128], strides = [1, 1]} : vector<8x512xf32> to vector<8x128xf32>
    %338 = arith.negf %337 : vector<8x128xf32>
    %339 = math.exp %338 : vector<8x128xf32>
    %cst_103 = arith.constant 1.000000e+00 : f32
    %340 = vector.broadcast %cst_103 : f32 to vector<8x128xf32>
    %341 = arith.addf %340, %339 : vector<8x128xf32>
    %342 = arith.divf %340, %341 : vector<8x128xf32>
    %343 = vector.extract_strided_slice %330 {offsets = [0, 256], sizes = [8, 128], strides = [1, 1]} : vector<8x512xf32> to vector<8x128xf32>
    %344 = math.tanh %343 : vector<8x128xf32>
    %345 = vector.extract_strided_slice %330 {offsets = [0, 384], sizes = [8, 128], strides = [1, 1]} : vector<8x512xf32> to vector<8x128xf32>
    %346 = arith.negf %345 : vector<8x128xf32>
    %347 = math.exp %346 : vector<8x128xf32>
    %cst_104 = arith.constant 1.000000e+00 : f32
    %348 = vector.broadcast %cst_104 : f32 to vector<8x128xf32>
    %349 = arith.addf %348, %347 : vector<8x128xf32>
    %350 = arith.divf %348, %349 : vector<8x128xf32>
    %351 = arith.mulf %342, %278 : vector<8x128xf32>
    %352 = arith.mulf %336, %344 : vector<8x128xf32>
    %353 = arith.addf %351, %352 : vector<8x128xf32>
    %354 = math.tanh %353 : vector<8x128xf32>
    %355 = arith.mulf %350, %354 : vector<8x128xf32>
    %c0_105 = arith.constant 0 : index
    %c0_106 = arith.constant 0 : index
    %356 = arith.index_cast %324 : i32 to index
    %c0_107 = arith.constant 0 : index
    %357 = vector.load %arg7[%c0_105, %c0_106, %356, %c0_107] : memref<1x2x64x128xf32, #tpu.memory_space<vmem>>, vector<1x1x8x128xf32>
    %358 = vector.shape_cast %357 : vector<1x1x8x128xf32> to vector<8x128xf32>
    %359 = vector.shape_cast %355 : vector<8x128xf32> to vector<1x1x8x128xf32>
    tpu.vector_store %arg7[%c0_105, %c0_106, %356, %c0_107], %359 {strides = array<i32>} : memref<1x2x64x128xf32, #tpu.memory_space<vmem>>, vector<1x1x8x128xf32>,
    %c7_i32_108 = arith.constant 7 : i32
    %360 = arith.subi %c7_i32_108, %c4_i32 : i32
    %c8_i32_109 = arith.constant 8 : i32
    %361 = arith.muli %360, %c8_i32_109 : i32
    %362 = tpu.assume_multiple %361, 8 : i32
    %363 = arith.index_cast %362 : i32 to index
    %c512_110 = arith.constant 512 : index
    %364 = vector.load %arg10[%363, %c512_110] : memref<64x1024xbf16, #tpu.memory_space<vmem>>, vector<8x512xbf16>
    %365 = arith.extf %364 : vector<8x512xbf16> to vector<8x512xf32>
    %366 = arith.truncf %318 : vector<8x128xf32> to vector<8x128xbf16>
    %cst_111 = arith.constant dense<0.000000e+00> : vector<8x512xf32>
    %367 = tpu.matmul %366, %18, %cst_111 {dimension_numbers = #tpu.dot_dimension_numbers<[1], [0], [0], [1], [0, 0, 1, 1], [], []>} : vector<8x128xbf16>, vector<128x512xbf16>, vector<8x512xf32> -> vector<8x512xf32>
    %368 = arith.addf %365, %367 : vector<8x512xf32>
    %369 = vector.extract_strided_slice %368 {offsets = [0, 0], sizes = [8, 128], strides = [1, 1]} : vector<8x512xf32> to vector<8x128xf32>
    %370 = arith.negf %369 : vector<8x128xf32>
    %371 = math.exp %370 : vector<8x128xf32>
    %cst_112 = arith.constant 1.000000e+00 : f32
    %372 = vector.broadcast %cst_112 : f32 to vector<8x128xf32>
    %373 = arith.addf %372, %371 : vector<8x128xf32>
    %374 = arith.divf %372, %373 : vector<8x128xf32>
    %375 = vector.extract_strided_slice %368 {offsets = [0, 128], sizes = [8, 128], strides = [1, 1]} : vector<8x512xf32> to vector<8x128xf32>
    %376 = arith.negf %375 : vector<8x128xf32>
    %377 = math.exp %376 : vector<8x128xf32>
    %cst_113 = arith.constant 1.000000e+00 : f32
    %378 = vector.broadcast %cst_113 : f32 to vector<8x128xf32>
    %379 = arith.addf %378, %377 : vector<8x128xf32>
    %380 = arith.divf %378, %379 : vector<8x128xf32>
    %381 = vector.extract_strided_slice %368 {offsets = [0, 256], sizes = [8, 128], strides = [1, 1]} : vector<8x512xf32> to vector<8x128xf32>
    %382 = math.tanh %381 : vector<8x128xf32>
    %383 = vector.extract_strided_slice %368 {offsets = [0, 384], sizes = [8, 128], strides = [1, 1]} : vector<8x512xf32> to vector<8x128xf32>
    %384 = arith.negf %383 : vector<8x128xf32>
    %385 = math.exp %384 : vector<8x128xf32>
    %cst_114 = arith.constant 1.000000e+00 : f32
    %386 = vector.broadcast %cst_114 : f32 to vector<8x128xf32>
    %387 = arith.addf %386, %385 : vector<8x128xf32>
    %388 = arith.divf %386, %387 : vector<8x128xf32>
    %389 = arith.mulf %380, %316 : vector<8x128xf32>
    %390 = arith.mulf %374, %382 : vector<8x128xf32>
    %391 = arith.addf %389, %390 : vector<8x128xf32>
    %392 = math.tanh %391 : vector<8x128xf32>
    %393 = arith.mulf %388, %392 : vector<8x128xf32>
    %c0_115 = arith.constant 0 : index
    %c1_116 = arith.constant 1 : index
    %394 = arith.index_cast %362 : i32 to index
    %c0_117 = arith.constant 0 : index
    %395 = vector.load %arg7[%c0_115, %c1_116, %394, %c0_117] : memref<1x2x64x128xf32, #tpu.memory_space<vmem>>, vector<1x1x8x128xf32>
    %396 = vector.shape_cast %395 : vector<1x1x8x128xf32> to vector<8x128xf32>
    %397 = vector.shape_cast %393 : vector<8x128xf32> to vector<1x1x8x128xf32>
    tpu.vector_store %arg7[%c0_115, %c1_116, %394, %c0_117], %397 {strides = array<i32>} : memref<1x2x64x128xf32, #tpu.memory_space<vmem>>, vector<1x1x8x128xf32>,
    %c5_i32 = arith.constant 5 : i32
    %c8_i32_118 = arith.constant 8 : i32
    %398 = arith.muli %c5_i32, %c8_i32_118 : i32
    %399 = tpu.assume_multiple %398, 8 : i32
    %400 = arith.index_cast %399 : i32 to index
    %c0_119 = arith.constant 0 : index
    %401 = vector.load %arg10[%400, %c0_119] : memref<64x1024xbf16, #tpu.memory_space<vmem>>, vector<8x512xbf16>
    %402 = arith.extf %401 : vector<8x512xbf16> to vector<8x512xf32>
    %403 = arith.truncf %355 : vector<8x128xf32> to vector<8x128xbf16>
    %cst_120 = arith.constant dense<0.000000e+00> : vector<8x512xf32>
    %404 = tpu.matmul %403, %16, %cst_120 {dimension_numbers = #tpu.dot_dimension_numbers<[1], [0], [0], [1], [0, 0, 1, 1], [], []>} : vector<8x128xbf16>, vector<128x512xbf16>, vector<8x512xf32> -> vector<8x512xf32>
    %405 = arith.addf %402, %404 : vector<8x512xf32>
    %406 = vector.extract_strided_slice %405 {offsets = [0, 0], sizes = [8, 128], strides = [1, 1]} : vector<8x512xf32> to vector<8x128xf32>
    %407 = arith.negf %406 : vector<8x128xf32>
    %408 = math.exp %407 : vector<8x128xf32>
    %cst_121 = arith.constant 1.000000e+00 : f32
    %409 = vector.broadcast %cst_121 : f32 to vector<8x128xf32>
    %410 = arith.addf %409, %408 : vector<8x128xf32>
    %411 = arith.divf %409, %410 : vector<8x128xf32>
    %412 = vector.extract_strided_slice %405 {offsets = [0, 128], sizes = [8, 128], strides = [1, 1]} : vector<8x512xf32> to vector<8x128xf32>
    %413 = arith.negf %412 : vector<8x128xf32>
    %414 = math.exp %413 : vector<8x128xf32>
    %cst_122 = arith.constant 1.000000e+00 : f32
    %415 = vector.broadcast %cst_122 : f32 to vector<8x128xf32>
    %416 = arith.addf %415, %414 : vector<8x128xf32>
    %417 = arith.divf %415, %416 : vector<8x128xf32>
    %418 = vector.extract_strided_slice %405 {offsets = [0, 256], sizes = [8, 128], strides = [1, 1]} : vector<8x512xf32> to vector<8x128xf32>
    %419 = math.tanh %418 : vector<8x128xf32>
    %420 = vector.extract_strided_slice %405 {offsets = [0, 384], sizes = [8, 128], strides = [1, 1]} : vector<8x512xf32> to vector<8x128xf32>
    %421 = arith.negf %420 : vector<8x128xf32>
    %422 = math.exp %421 : vector<8x128xf32>
    %cst_123 = arith.constant 1.000000e+00 : f32
    %423 = vector.broadcast %cst_123 : f32 to vector<8x128xf32>
    %424 = arith.addf %423, %422 : vector<8x128xf32>
    %425 = arith.divf %423, %424 : vector<8x128xf32>
    %426 = arith.mulf %417, %353 : vector<8x128xf32>
    %427 = arith.mulf %411, %419 : vector<8x128xf32>
    %428 = arith.addf %426, %427 : vector<8x128xf32>
    %429 = math.tanh %428 : vector<8x128xf32>
    %430 = arith.mulf %425, %429 : vector<8x128xf32>
    %c0_124 = arith.constant 0 : index
    %c0_125 = arith.constant 0 : index
    %431 = arith.index_cast %399 : i32 to index
    %c0_126 = arith.constant 0 : index
    %432 = vector.load %arg7[%c0_124, %c0_125, %431, %c0_126] : memref<1x2x64x128xf32, #tpu.memory_space<vmem>>, vector<1x1x8x128xf32>
    %433 = vector.shape_cast %432 : vector<1x1x8x128xf32> to vector<8x128xf32>
    %434 = vector.shape_cast %430 : vector<8x128xf32> to vector<1x1x8x128xf32>
    tpu.vector_store %arg7[%c0_124, %c0_125, %431, %c0_126], %434 {strides = array<i32>} : memref<1x2x64x128xf32, #tpu.memory_space<vmem>>, vector<1x1x8x128xf32>,
    %c7_i32_127 = arith.constant 7 : i32
    %435 = arith.subi %c7_i32_127, %c5_i32 : i32
    %c8_i32_128 = arith.constant 8 : i32
    %436 = arith.muli %435, %c8_i32_128 : i32
    %437 = tpu.assume_multiple %436, 8 : i32
    %438 = arith.index_cast %437 : i32 to index
    %c512_129 = arith.constant 512 : index
    %439 = vector.load %arg10[%438, %c512_129] : memref<64x1024xbf16, #tpu.memory_space<vmem>>, vector<8x512xbf16>
    %440 = arith.extf %439 : vector<8x512xbf16> to vector<8x512xf32>
    %441 = arith.truncf %393 : vector<8x128xf32> to vector<8x128xbf16>
    %cst_130 = arith.constant dense<0.000000e+00> : vector<8x512xf32>
    %442 = tpu.matmul %441, %18, %cst_130 {dimension_numbers = #tpu.dot_dimension_numbers<[1], [0], [0], [1], [0, 0, 1, 1], [], []>} : vector<8x128xbf16>, vector<128x512xbf16>, vector<8x512xf32> -> vector<8x512xf32>
    %443 = arith.addf %440, %442 : vector<8x512xf32>
    %444 = vector.extract_strided_slice %443 {offsets = [0, 0], sizes = [8, 128], strides = [1, 1]} : vector<8x512xf32> to vector<8x128xf32>
    %445 = arith.negf %444 : vector<8x128xf32>
    %446 = math.exp %445 : vector<8x128xf32>
    %cst_131 = arith.constant 1.000000e+00 : f32
    %447 = vector.broadcast %cst_131 : f32 to vector<8x128xf32>
    %448 = arith.addf %447, %446 : vector<8x128xf32>
    %449 = arith.divf %447, %448 : vector<8x128xf32>
    %450 = vector.extract_strided_slice %443 {offsets = [0, 128], sizes = [8, 128], strides = [1, 1]} : vector<8x512xf32> to vector<8x128xf32>
    %451 = arith.negf %450 : vector<8x128xf32>
    %452 = math.exp %451 : vector<8x128xf32>
    %cst_132 = arith.constant 1.000000e+00 : f32
    %453 = vector.broadcast %cst_132 : f32 to vector<8x128xf32>
    %454 = arith.addf %453, %452 : vector<8x128xf32>
    %455 = arith.divf %453, %454 : vector<8x128xf32>
    %456 = vector.extract_strided_slice %443 {offsets = [0, 256], sizes = [8, 128], strides = [1, 1]} : vector<8x512xf32> to vector<8x128xf32>
    %457 = math.tanh %456 : vector<8x128xf32>
    %458 = vector.extract_strided_slice %443 {offsets = [0, 384], sizes = [8, 128], strides = [1, 1]} : vector<8x512xf32> to vector<8x128xf32>
    %459 = arith.negf %458 : vector<8x128xf32>
    %460 = math.exp %459 : vector<8x128xf32>
    %cst_133 = arith.constant 1.000000e+00 : f32
    %461 = vector.broadcast %cst_133 : f32 to vector<8x128xf32>
    %462 = arith.addf %461, %460 : vector<8x128xf32>
    %463 = arith.divf %461, %462 : vector<8x128xf32>
    %464 = arith.mulf %455, %391 : vector<8x128xf32>
    %465 = arith.mulf %449, %457 : vector<8x128xf32>
    %466 = arith.addf %464, %465 : vector<8x128xf32>
    %467 = math.tanh %466 : vector<8x128xf32>
    %468 = arith.mulf %463, %467 : vector<8x128xf32>
    %c0_134 = arith.constant 0 : index
    %c1_135 = arith.constant 1 : index
    %469 = arith.index_cast %437 : i32 to index
    %c0_136 = arith.constant 0 : index
    %470 = vector.load %arg7[%c0_134, %c1_135, %469, %c0_136] : memref<1x2x64x128xf32, #tpu.memory_space<vmem>>, vector<1x1x8x128xf32>
    %471 = vector.shape_cast %470 : vector<1x1x8x128xf32> to vector<8x128xf32>
    %472 = vector.shape_cast %468 : vector<8x128xf32> to vector<1x1x8x128xf32>
    tpu.vector_store %arg7[%c0_134, %c1_135, %469, %c0_136], %472 {strides = array<i32>} : memref<1x2x64x128xf32, #tpu.memory_space<vmem>>, vector<1x1x8x128xf32>,
    %c6_i32 = arith.constant 6 : i32
    %c8_i32_137 = arith.constant 8 : i32
    %473 = arith.muli %c6_i32, %c8_i32_137 : i32
    %474 = tpu.assume_multiple %473, 8 : i32
    %475 = arith.index_cast %474 : i32 to index
    %c0_138 = arith.constant 0 : index
    %476 = vector.load %arg10[%475, %c0_138] : memref<64x1024xbf16, #tpu.memory_space<vmem>>, vector<8x512xbf16>
    %477 = arith.extf %476 : vector<8x512xbf16> to vector<8x512xf32>
    %478 = arith.truncf %430 : vector<8x128xf32> to vector<8x128xbf16>
    %cst_139 = arith.constant dense<0.000000e+00> : vector<8x512xf32>
    %479 = tpu.matmul %478, %16, %cst_139 {dimension_numbers = #tpu.dot_dimension_numbers<[1], [0], [0], [1], [0, 0, 1, 1], [], []>} : vector<8x128xbf16>, vector<128x512xbf16>, vector<8x512xf32> -> vector<8x512xf32>
    %480 = arith.addf %477, %479 : vector<8x512xf32>
    %481 = vector.extract_strided_slice %480 {offsets = [0, 0], sizes = [8, 128], strides = [1, 1]} : vector<8x512xf32> to vector<8x128xf32>
    %482 = arith.negf %481 : vector<8x128xf32>
    %483 = math.exp %482 : vector<8x128xf32>
    %cst_140 = arith.constant 1.000000e+00 : f32
    %484 = vector.broadcast %cst_140 : f32 to vector<8x128xf32>
    %485 = arith.addf %484, %483 : vector<8x128xf32>
    %486 = arith.divf %484, %485 : vector<8x128xf32>
    %487 = vector.extract_strided_slice %480 {offsets = [0, 128], sizes = [8, 128], strides = [1, 1]} : vector<8x512xf32> to vector<8x128xf32>
    %488 = arith.negf %487 : vector<8x128xf32>
    %489 = math.exp %488 : vector<8x128xf32>
    %cst_141 = arith.constant 1.000000e+00 : f32
    %490 = vector.broadcast %cst_141 : f32 to vector<8x128xf32>
    %491 = arith.addf %490, %489 : vector<8x128xf32>
    %492 = arith.divf %490, %491 : vector<8x128xf32>
    %493 = vector.extract_strided_slice %480 {offsets = [0, 256], sizes = [8, 128], strides = [1, 1]} : vector<8x512xf32> to vector<8x128xf32>
    %494 = math.tanh %493 : vector<8x128xf32>
    %495 = vector.extract_strided_slice %480 {offsets = [0, 384], sizes = [8, 128], strides = [1, 1]} : vector<8x512xf32> to vector<8x128xf32>
    %496 = arith.negf %495 : vector<8x128xf32>
    %497 = math.exp %496 : vector<8x128xf32>
    %cst_142 = arith.constant 1.000000e+00 : f32
    %498 = vector.broadcast %cst_142 : f32 to vector<8x128xf32>
    %499 = arith.addf %498, %497 : vector<8x128xf32>
    %500 = arith.divf %498, %499 : vector<8x128xf32>
    %501 = arith.mulf %492, %428 : vector<8x128xf32>
    %502 = arith.mulf %486, %494 : vector<8x128xf32>
    %503 = arith.addf %501, %502 : vector<8x128xf32>
    %504 = math.tanh %503 : vector<8x128xf32>
    %505 = arith.mulf %500, %504 : vector<8x128xf32>
    %c0_143 = arith.constant 0 : index
    %c0_144 = arith.constant 0 : index
    %506 = arith.index_cast %474 : i32 to index
    %c0_145 = arith.constant 0 : index
    %507 = vector.load %arg7[%c0_143, %c0_144, %506, %c0_145] : memref<1x2x64x128xf32, #tpu.memory_space<vmem>>, vector<1x1x8x128xf32>
    %508 = vector.shape_cast %507 : vector<1x1x8x128xf32> to vector<8x128xf32>
    %509 = vector.shape_cast %505 : vector<8x128xf32> to vector<1x1x8x128xf32>
    tpu.vector_store %arg7[%c0_143, %c0_144, %506, %c0_145], %509 {strides = array<i32>} : memref<1x2x64x128xf32, #tpu.memory_space<vmem>>, vector<1x1x8x128xf32>,
    %c7_i32_146 = arith.constant 7 : i32
    %510 = arith.subi %c7_i32_146, %c6_i32 : i32
    %c8_i32_147 = arith.constant 8 : i32
    %511 = arith.muli %510, %c8_i32_147 : i32
    %512 = tpu.assume_multiple %511, 8 : i32
    %513 = arith.index_cast %512 : i32 to index
    %c512_148 = arith.constant 512 : index
    %514 = vector.load %arg10[%513, %c512_148] : memref<64x1024xbf16, #tpu.memory_space<vmem>>, vector<8x512xbf16>
    %515 = arith.extf %514 : vector<8x512xbf16> to vector<8x512xf32>
    %516 = arith.truncf %468 : vector<8x128xf32> to vector<8x128xbf16>
    %cst_149 = arith.constant dense<0.000000e+00> : vector<8x512xf32>
    %517 = tpu.matmul %516, %18, %cst_149 {dimension_numbers = #tpu.dot_dimension_numbers<[1], [0], [0], [1], [0, 0, 1, 1], [], []>} : vector<8x128xbf16>, vector<128x512xbf16>, vector<8x512xf32> -> vector<8x512xf32>
    %518 = arith.addf %515, %517 : vector<8x512xf32>
    %519 = vector.extract_strided_slice %518 {offsets = [0, 0], sizes = [8, 128], strides = [1, 1]} : vector<8x512xf32> to vector<8x128xf32>
    %520 = arith.negf %519 : vector<8x128xf32>
    %521 = math.exp %520 : vector<8x128xf32>
    %cst_150 = arith.constant 1.000000e+00 : f32
    %522 = vector.broadcast %cst_150 : f32 to vector<8x128xf32>
    %523 = arith.addf %522, %521 : vector<8x128xf32>
    %524 = arith.divf %522, %523 : vector<8x128xf32>
    %525 = vector.extract_strided_slice %518 {offsets = [0, 128], sizes = [8, 128], strides = [1, 1]} : vector<8x512xf32> to vector<8x128xf32>
    %526 = arith.negf %525 : vector<8x128xf32>
    %527 = math.exp %526 : vector<8x128xf32>
    %cst_151 = arith.constant 1.000000e+00 : f32
    %528 = vector.broadcast %cst_151 : f32 to vector<8x128xf32>
    %529 = arith.addf %528, %527 : vector<8x128xf32>
    %530 = arith.divf %528, %529 : vector<8x128xf32>
    %531 = vector.extract_strided_slice %518 {offsets = [0, 256], sizes = [8, 128], strides = [1, 1]} : vector<8x512xf32> to vector<8x128xf32>
    %532 = math.tanh %531 : vector<8x128xf32>
    %533 = vector.extract_strided_slice %518 {offsets = [0, 384], sizes = [8, 128], strides = [1, 1]} : vector<8x512xf32> to vector<8x128xf32>
    %534 = arith.negf %533 : vector<8x128xf32>
    %535 = math.exp %534 : vector<8x128xf32>
    %cst_152 = arith.constant 1.000000e+00 : f32
    %536 = vector.broadcast %cst_152 : f32 to vector<8x128xf32>
    %537 = arith.addf %536, %535 : vector<8x128xf32>
    %538 = arith.divf %536, %537 : vector<8x128xf32>
    %539 = arith.mulf %530, %466 : vector<8x128xf32>
    %540 = arith.mulf %524, %532 : vector<8x128xf32>
    %541 = arith.addf %539, %540 : vector<8x128xf32>
    %542 = math.tanh %541 : vector<8x128xf32>
    %543 = arith.mulf %538, %542 : vector<8x128xf32>
    %c0_153 = arith.constant 0 : index
    %c1_154 = arith.constant 1 : index
    %544 = arith.index_cast %512 : i32 to index
    %c0_155 = arith.constant 0 : index
    %545 = vector.load %arg7[%c0_153, %c1_154, %544, %c0_155] : memref<1x2x64x128xf32, #tpu.memory_space<vmem>>, vector<1x1x8x128xf32>
    %546 = vector.shape_cast %545 : vector<1x1x8x128xf32> to vector<8x128xf32>
    %547 = vector.shape_cast %543 : vector<8x128xf32> to vector<1x1x8x128xf32>
    tpu.vector_store %arg7[%c0_153, %c1_154, %544, %c0_155], %547 {strides = array<i32>} : memref<1x2x64x128xf32, #tpu.memory_space<vmem>>, vector<1x1x8x128xf32>,
    %c7_i32_156 = arith.constant 7 : i32
    %c8_i32_157 = arith.constant 8 : i32
    %548 = arith.muli %c7_i32_156, %c8_i32_157 : i32
    %549 = tpu.assume_multiple %548, 8 : i32
    %550 = arith.index_cast %549 : i32 to index
    %c0_158 = arith.constant 0 : index
    %551 = vector.load %arg10[%550, %c0_158] : memref<64x1024xbf16, #tpu.memory_space<vmem>>, vector<8x512xbf16>
    %552 = arith.extf %551 : vector<8x512xbf16> to vector<8x512xf32>
    %553 = arith.truncf %505 : vector<8x128xf32> to vector<8x128xbf16>
    %cst_159 = arith.constant dense<0.000000e+00> : vector<8x512xf32>
    %554 = tpu.matmul %553, %16, %cst_159 {dimension_numbers = #tpu.dot_dimension_numbers<[1], [0], [0], [1], [0, 0, 1, 1], [], []>} : vector<8x128xbf16>, vector<128x512xbf16>, vector<8x512xf32> -> vector<8x512xf32>
    %555 = arith.addf %552, %554 : vector<8x512xf32>
    %556 = vector.extract_strided_slice %555 {offsets = [0, 0], sizes = [8, 128], strides = [1, 1]} : vector<8x512xf32> to vector<8x128xf32>
    %557 = arith.negf %556 : vector<8x128xf32>
    %558 = math.exp %557 : vector<8x128xf32>
    %cst_160 = arith.constant 1.000000e+00 : f32
    %559 = vector.broadcast %cst_160 : f32 to vector<8x128xf32>
    %560 = arith.addf %559, %558 : vector<8x128xf32>
    %561 = arith.divf %559, %560 : vector<8x128xf32>
    %562 = vector.extract_strided_slice %555 {offsets = [0, 128], sizes = [8, 128], strides = [1, 1]} : vector<8x512xf32> to vector<8x128xf32>
    %563 = arith.negf %562 : vector<8x128xf32>
    %564 = math.exp %563 : vector<8x128xf32>
    %cst_161 = arith.constant 1.000000e+00 : f32
    %565 = vector.broadcast %cst_161 : f32 to vector<8x128xf32>
    %566 = arith.addf %565, %564 : vector<8x128xf32>
    %567 = arith.divf %565, %566 : vector<8x128xf32>
    %568 = vector.extract_strided_slice %555 {offsets = [0, 256], sizes = [8, 128], strides = [1, 1]} : vector<8x512xf32> to vector<8x128xf32>
    %569 = math.tanh %568 : vector<8x128xf32>
    %570 = vector.extract_strided_slice %555 {offsets = [0, 384], sizes = [8, 128], strides = [1, 1]} : vector<8x512xf32> to vector<8x128xf32>
    %571 = arith.negf %570 : vector<8x128xf32>
    %572 = math.exp %571 : vector<8x128xf32>
    %cst_162 = arith.constant 1.000000e+00 : f32
    %573 = vector.broadcast %cst_162 : f32 to vector<8x128xf32>
    %574 = arith.addf %573, %572 : vector<8x128xf32>
    %575 = arith.divf %573, %574 : vector<8x128xf32>
    %576 = arith.mulf %567, %503 : vector<8x128xf32>
    %577 = arith.mulf %561, %569 : vector<8x128xf32>
    %578 = arith.addf %576, %577 : vector<8x128xf32>
    %579 = math.tanh %578 : vector<8x128xf32>
    %580 = arith.mulf %575, %579 : vector<8x128xf32>
    %c0_163 = arith.constant 0 : index
    %c0_164 = arith.constant 0 : index
    %581 = arith.index_cast %549 : i32 to index
    %c0_165 = arith.constant 0 : index
    %582 = vector.load %arg7[%c0_163, %c0_164, %581, %c0_165] : memref<1x2x64x128xf32, #tpu.memory_space<vmem>>, vector<1x1x8x128xf32>
    %583 = vector.shape_cast %582 : vector<1x1x8x128xf32> to vector<8x128xf32>
    %584 = vector.shape_cast %580 : vector<8x128xf32> to vector<1x1x8x128xf32>
    tpu.vector_store %arg7[%c0_163, %c0_164, %581, %c0_165], %584 {strides = array<i32>} : memref<1x2x64x128xf32, #tpu.memory_space<vmem>>, vector<1x1x8x128xf32>,
    %c7_i32_166 = arith.constant 7 : i32
    %585 = arith.subi %c7_i32_166, %c7_i32_156 : i32
    %c8_i32_167 = arith.constant 8 : i32
    %586 = arith.muli %585, %c8_i32_167 : i32
    %587 = tpu.assume_multiple %586, 8 : i32
    %588 = arith.index_cast %587 : i32 to index
    %c512_168 = arith.constant 512 : index
    %589 = vector.load %arg10[%588, %c512_168] : memref<64x1024xbf16, #tpu.memory_space<vmem>>, vector<8x512xbf16>
    %590 = arith.extf %589 : vector<8x512xbf16> to vector<8x512xf32>
    %591 = arith.truncf %543 : vector<8x128xf32> to vector<8x128xbf16>
    %cst_169 = arith.constant dense<0.000000e+00> : vector<8x512xf32>
    %592 = tpu.matmul %591, %18, %cst_169 {dimension_numbers = #tpu.dot_dimension_numbers<[1], [0], [0], [1], [0, 0, 1, 1], [], []>} : vector<8x128xbf16>, vector<128x512xbf16>, vector<8x512xf32> -> vector<8x512xf32>
    %593 = arith.addf %590, %592 : vector<8x512xf32>
    %594 = vector.extract_strided_slice %593 {offsets = [0, 0], sizes = [8, 128], strides = [1, 1]} : vector<8x512xf32> to vector<8x128xf32>
    %595 = arith.negf %594 : vector<8x128xf32>
    %596 = math.exp %595 : vector<8x128xf32>
    %cst_170 = arith.constant 1.000000e+00 : f32
    %597 = vector.broadcast %cst_170 : f32 to vector<8x128xf32>
    %598 = arith.addf %597, %596 : vector<8x128xf32>
    %599 = arith.divf %597, %598 : vector<8x128xf32>
    %600 = vector.extract_strided_slice %593 {offsets = [0, 128], sizes = [8, 128], strides = [1, 1]} : vector<8x512xf32> to vector<8x128xf32>
    %601 = arith.negf %600 : vector<8x128xf32>
    %602 = math.exp %601 : vector<8x128xf32>
    %cst_171 = arith.constant 1.000000e+00 : f32
    %603 = vector.broadcast %cst_171 : f32 to vector<8x128xf32>
    %604 = arith.addf %603, %602 : vector<8x128xf32>
    %605 = arith.divf %603, %604 : vector<8x128xf32>
    %606 = vector.extract_strided_slice %593 {offsets = [0, 256], sizes = [8, 128], strides = [1, 1]} : vector<8x512xf32> to vector<8x128xf32>
    %607 = math.tanh %606 : vector<8x128xf32>
    %608 = vector.extract_strided_slice %593 {offsets = [0, 384], sizes = [8, 128], strides = [1, 1]} : vector<8x512xf32> to vector<8x128xf32>
    %609 = arith.negf %608 : vector<8x128xf32>
    %610 = math.exp %609 : vector<8x128xf32>
    %cst_172 = arith.constant 1.000000e+00 : f32
    %611 = vector.broadcast %cst_172 : f32 to vector<8x128xf32>
    %612 = arith.addf %611, %610 : vector<8x128xf32>
    %613 = arith.divf %611, %612 : vector<8x128xf32>
    %614 = arith.mulf %605, %541 : vector<8x128xf32>
    %615 = arith.mulf %599, %607 : vector<8x128xf32>
    %616 = arith.addf %614, %615 : vector<8x128xf32>
    %617 = math.tanh %616 : vector<8x128xf32>
    %618 = arith.mulf %613, %617 : vector<8x128xf32>
    %c0_173 = arith.constant 0 : index
    %c1_174 = arith.constant 1 : index
    %619 = arith.index_cast %587 : i32 to index
    %c0_175 = arith.constant 0 : index
    %620 = vector.load %arg7[%c0_173, %c1_174, %619, %c0_175] : memref<1x2x64x128xf32, #tpu.memory_space<vmem>>, vector<1x1x8x128xf32>
    %621 = vector.shape_cast %620 : vector<1x1x8x128xf32> to vector<8x128xf32>
    %622 = vector.shape_cast %618 : vector<8x128xf32> to vector<1x1x8x128xf32>
    tpu.vector_store %arg7[%c0_173, %c1_174, %619, %c0_175], %622 {strides = array<i32>} : memref<1x2x64x128xf32, #tpu.memory_space<vmem>>, vector<1x1x8x128xf32>,
    %c8_i32_176 = arith.constant 8 : i32
    %c0_177 = arith.constant 0 : index
    %c0_178 = arith.constant 0 : index
    %c0_179 = arith.constant 0 : index
    %c0_180 = arith.constant 0 : index
    %623 = vector.load %arg8[%c0_177, %c0_178, %c0_179, %c0_180] : memref<1x2x8x128xf32, #tpu.memory_space<vmem>>, vector<1x1x8x128xf32>
    %624 = vector.shape_cast %623 : vector<1x1x8x128xf32> to vector<8x128xf32>
    %625 = vector.shape_cast %580 : vector<8x128xf32> to vector<1x1x8x128xf32>
    tpu.vector_store %arg8[%c0_177, %c0_178, %c0_179, %c0_180], %625 {strides = array<i32>} : memref<1x2x8x128xf32, #tpu.memory_space<vmem>>, vector<1x1x8x128xf32>,
    %c0_181 = arith.constant 0 : index
    %c0_182 = arith.constant 0 : index
    %c0_183 = arith.constant 0 : index
    %c0_184 = arith.constant 0 : index
    %626 = vector.load %arg9[%c0_181, %c0_182, %c0_183, %c0_184] : memref<1x2x8x128xf32, #tpu.memory_space<vmem>>, vector<1x1x8x128xf32>
    %627 = vector.shape_cast %626 : vector<1x1x8x128xf32> to vector<8x128xf32>
    %628 = vector.shape_cast %578 : vector<8x128xf32> to vector<1x1x8x128xf32>
    tpu.vector_store %arg9[%c0_181, %c0_182, %c0_183, %c0_184], %628 {strides = array<i32>} : memref<1x2x8x128xf32, #tpu.memory_space<vmem>>, vector<1x1x8x128xf32>,
    %c0_185 = arith.constant 0 : index
    %c1_186 = arith.constant 1 : index
    %c0_187 = arith.constant 0 : index
    %c0_188 = arith.constant 0 : index
    %629 = vector.load %arg8[%c0_185, %c1_186, %c0_187, %c0_188] : memref<1x2x8x128xf32, #tpu.memory_space<vmem>>, vector<1x1x8x128xf32>
    %630 = vector.shape_cast %629 : vector<1x1x8x128xf32> to vector<8x128xf32>
    %631 = vector.shape_cast %618 : vector<8x128xf32> to vector<1x1x8x128xf32>
    tpu.vector_store %arg8[%c0_185, %c1_186, %c0_187, %c0_188], %631 {strides = array<i32>} : memref<1x2x8x128xf32, #tpu.memory_space<vmem>>, vector<1x1x8x128xf32>,
    %c0_189 = arith.constant 0 : index
    %c1_190 = arith.constant 1 : index
    %c0_191 = arith.constant 0 : index
    %c0_192 = arith.constant 0 : index
    %632 = vector.load %arg9[%c0_189, %c1_190, %c0_191, %c0_192] : memref<1x2x8x128xf32, #tpu.memory_space<vmem>>, vector<1x1x8x128xf32>
    %633 = vector.shape_cast %632 : vector<1x1x8x128xf32> to vector<8x128xf32>
    %634 = vector.shape_cast %616 : vector<8x128xf32> to vector<1x1x8x128xf32>
    tpu.vector_store %arg9[%c0_189, %c1_190, %c0_191, %c0_192], %634 {strides = array<i32>} : memref<1x2x8x128xf32, #tpu.memory_space<vmem>>, vector<1x1x8x128xf32>,
    return
  }
  func.func @transform_0(%arg0: i32) -> (i32, i32) {
    %c0_i32 = arith.constant 0 : i32
    %c0_i32_0 = arith.constant 0 : i32
    %c0_i32_1 = arith.constant 0 : i32
    return %c0_i32, %c0_i32_0 : i32, i32
  }
  func.func @transform_1(%arg0: i32) -> (i32, i32) {
    %c0_i32 = arith.constant 0 : i32
    %c0_i32_0 = arith.constant 0 : i32
    %c0_i32_1 = arith.constant 0 : i32
    return %c0_i32, %c0_i32_0 : i32, i32
  }
  func.func @transform_2(%arg0: i32) -> (i32, i32, i32) {
    %c0_i32 = arith.constant 0 : i32
    %c0_i32_0 = arith.constant 0 : i32
    %c0_i32_1 = arith.constant 0 : i32
    return %arg0, %c0_i32, %c0_i32_0 : i32, i32, i32
  }
  func.func @transform_3(%arg0: i32) -> (i32, i32, i32) {
    %c0_i32 = arith.constant 0 : i32
    %c0_i32_0 = arith.constant 0 : i32
    %c0_i32_1 = arith.constant 0 : i32
    return %arg0, %c0_i32, %c0_i32_0 : i32, i32, i32
  }
  func.func @transform_4(%arg0: i32) -> (i32, i32, i32, i32) {
    %c0_i32 = arith.constant 0 : i32
    %c0_i32_0 = arith.constant 0 : i32
    %c0_i32_1 = arith.constant 0 : i32
    %c0_i32_2 = arith.constant 0 : i32
    return %arg0, %c0_i32, %c0_i32_0, %c0_i32_1 : i32, i32, i32, i32
  }
  func.func @transform_5(%arg0: i32) -> (i32, i32, i32) {
    %c0_i32 = arith.constant 0 : i32
    %c0_i32_0 = arith.constant 0 : i32
    %c0_i32_1 = arith.constant 0 : i32
    return %arg0, %c0_i32, %c0_i32_0 : i32, i32, i32
  }
  func.func @transform_6(%arg0: i32) -> (i32, i32, i32, i32) {
    %c0_i32 = arith.constant 0 : i32
    %c0_i32_0 = arith.constant 0 : i32
    %c0_i32_1 = arith.constant 0 : i32
    %c0_i32_2 = arith.constant 0 : i32
    return %arg0, %c0_i32, %c0_i32_0, %c0_i32_1 : i32, i32, i32, i32
  }
  func.func @transform_7(%arg0: i32) -> (i32, i32, i32, i32) {
    %c0_i32 = arith.constant 0 : i32
    %c0_i32_0 = arith.constant 0 : i32
    %c0_i32_1 = arith.constant 0 : i32
    %c0_i32_2 = arith.constant 0 : i32
    return %arg0, %c0_i32, %c0_i32_0, %c0_i32_1 : i32, i32, i32, i32
  }
  func.func @transform_8(%arg0: i32) -> (i32, i32, i32, i32) {
    %c0_i32 = arith.constant 0 : i32
    %c0_i32_0 = arith.constant 0 : i32
    %c0_i32_1 = arith.constant 0 : i32
    %c0_i32_2 = arith.constant 0 : i32
    return %arg0, %c0_i32, %c0_i32_0, %c0_i32_1 : i32, i32, i32, i32
  }
}

</mosaic_0001>

<bundles_post_ra>
// kernel: birecurrent_conv_encoder_forward.2
= control target key start
LH: loop header
LB: loop body
LE: loop exit
PB: predicated region body
PF: predicated region fallthrough
CT: control target
= control target key end

     0   :  { %s208_s16 = smov 120   ;;  %s209_s17 = smov 104   ;;  %vm38_vm0 = vcmask 1043456   ;;  %vm34_vm1 = vcmask 195584   ;;  %s254_s0 = inlined_call_operand.vmem [shape: bf16[16,64], index: 0, kind: input, shape index: {}]   ;;  %s255_s1 = inlined_call_operand.vmem [shape: bf16[24,128], index: 1, kind: input, shape index: {}]   ;;  %s256_s2 = inlined_call_operand.vmem [shape: f32[1,128], index: 2, kind: input, shape index: {}]   ;;  %s257_s3 = inlined_call_operand.vmem [shape: bf16[16,128], index: 3, kind: output, shape index: {}]  }
   0x1   :  { %v191_v0 = vld [vmem:[%s254_s0] sm:$0xff]  ;;  %v19_v1 = vld [vmem:[%s255_s1 + $0x8] sm:$0xf]  ;;  %s210_s18 = smov 88   ;;  %s211_s0 = smov 112  }
   0x2   :  { %v30_v2 = vunpack.c.l.b16 %v19_v1  ;;  %56 = vrot.lane.b32.xlu0 %v191_v0, %s208_s16  ;;  %98 = vrot.lane.b32.xlu1 %v191_v0, %s209_s17  ;;  %v192_v5 = vld [vmem:[%s255_s1] sm:$0xff]  ;;  %s212_s21 = smov 96  }
   0x3   :  { %140 = vrot.lane.b32.xlu2 %v191_v0, %s210_s18  ;;  %v203_v28 = vld [vmem:[%s256_s2] ss:$0 sm:$0xff] }
   0x4   :  { %v32_v3 = vpack.c.b16 %v30_v2, %v30_v2 }
   0x6   :  { %v40_v4 = vsel %vm38_vm0, %v32_v3, 0 }
   0x7   :  { %48 = vmatpush.bf16.msra.mxu0 %v40_v4  ;;  %67 = vmatpush.bf16.msra.mxu1 %v40_v4 }
   0x8   :  { %109 = vmatpush.bf16.msra.mxu3 %v40_v4  ;;  %88 = vmatpush.bf16.msra.mxu2 %v40_v4 }
   0xa   :  { %77 = vrot.lane.b32.xlu0 %v191_v0, %s211_s0  ;;  %119 = vrot.lane.b32.xlu1 %v191_v0, %s212_s21 }
   0xb   :  { %49 = vmatpush.bf16.msra.mxu0 %v192_v5  ;;  %68 = vmatpush.bf16.msra.mxu1 %v192_v5 }
   0xc   :  { %110 = vmatpush.bf16.msra.mxu3 %v192_v5  ;;  %89 = vmatpush.bf16.msra.mxu2 %v192_v5 }
   0xe   :  { %185 = vmatmul.msk.bf16.vlgmr.msra.gmra.mxu0 %vm34_vm1, %v191_v0 }
   0xf   :  { %130 = vmatpush.bf16.msrb.mxu0 %v40_v4  ;;  %151 = vmatpush.bf16.msrb.mxu1 %v40_v4 }
  0x13   :  { %131 = vmatpush.bf16.msrb.mxu0 %v192_v5  ;;  %152 = vmatpush.bf16.msrb.mxu1 %v192_v5 }
  0x5d   :  { %v141_v10 = vpop.permute.xlu2 %140 }
  0x74   :  { %v57_v6 = vpop.permute.xlu0 %56  ;;  %v99_v7 = vpop.permute.xlu1 %98 }
  0x75   :  { %186 = vmatmul.msk.bf16.vlgmr.msra.gmra.mxu1 %vm34_vm1, %v57_v6  ;;  %188 = vmatmul.msk.bf16.vlgmr.msra.gmra.mxu3 %vm34_vm1, %v99_v7 }
  0x7c   :  { %v78_v8 = vpop.permute.xlu0 %77  ;;  %v120_v9 = vpop.permute.xlu1 %119 }
  0x7d   :  { %187 = vmatmul.msk.bf16.vlgmr.msra.gmra.mxu2 %vm34_vm1, %v78_v8  ;;  %189 = vmatmul.msk.bf16.vlgmr.msrb.gmra.mxu0 %vm34_vm1, %v120_v9 }
  0x85   :  { %190 = vmatmul.msk.bf16.vlgmr.msrb.gmra.mxu1 %vm34_vm1, %v141_v10 }
  0x8b   :  { %v51_v11 = vpop.f32.mrf.mxu0 }
  0x93   :  { %v53_v13 = vpop.f32.mrf.mxu0 }
  0xf2   :  { %v70_v12 = vpop.f32.mrf.mxu1 }
  0xf3   :  { %v75_v15 = vmax.f32 %v51_v11, %v70_v12 }
  0xf8   :  { %v112_v16 = vpop.f32.mrf.mxu3 }
  0xfa   :  { %v72_v14 = vpop.f32.mrf.mxu1  ;;  %v133_v19 = vpop.f32.mrf.mxu0 }
  0xfb   :  { %v76_v23 = vmax.f32 %v53_v13, %v72_v14 }
 0x100   :  { %v91_v17 = vpop.f32.mrf.mxu2  ;;  %v114_v26 = vpop.f32.mrf.mxu3 }
 0x101   :  { %v96_v18 = vmax.f32 %v75_v15, %v91_v17 }
 0x102   :  { %v154_v21 = vpop.f32.mrf.mxu1  ;;  %v135_v30 = vpop.f32.mrf.mxu0 }
 0x103   :  { %v117_v20 = vmax.f32 %v96_v18, %v112_v16 }
 0x105   :  { %v138_v22 = vmax.f32 %v117_v20, %v133_v19 }
 0x107   :  { %v159_v27 = vmax.f32 %v138_v22, %v154_v21 }
 0x108   :  { %v93_v24 = vpop.f32.mrf.mxu2 }
 0x109   :  { %v97_v25 = vmax.f32 %v76_v23, %v93_v24  ;;  %v165_v32 = vadd.f32 %v203_v28, %v159_v27 }
 0x10a   :  { %v156_v33 = vpop.f32.mrf.mxu1 }
 0x10b   :  { %v118_v29 = vmax.f32 %v97_v25, %v114_v26  ;;  %204 = vtanh.f32 %v165_v32 }
 0x10d   :  { %v139_v31 = vmax.f32 %v118_v29, %v135_v30 }
 0x10f   :  { %v160_v34 = vmax.f32 %v139_v31, %v156_v33 }
 0x111   :  { %v166_v35 = vadd.f32 %v203_v28, %v160_v34  ;;  %v205_v36 = vpop.eup %204 }
 0x113   :  { %206 = vtanh.f32 %v166_v35 }
 0x119   :  { %v207_v37 = vpop.eup %206 }
 0x11a   :  { %v196_v38 = vpack.c.bf16 %v207_v37, %v205_v36 }
 0x11c   :  { %197 = vst [vmem:[%s257_s3] sm:$0xff] %v196_v38  }

// kernel: birecurrent_conv_encoder_forward.3
= control target key start
LH: loop header
LB: loop body
LE: loop exit
PB: predicated region body
PF: predicated region fallthrough
CT: control target
= control target key end

     0   :  { %s7924_s3 = inlined_call_operand.vmem [shape: bf16[1,128,1024], index: 3, kind: input, shape index: {}]   ;;  %s7925_s1 = inlined_call_operand.vmem [shape: bf16[64,128], index: 1, kind: input, shape index: {}]   ;;  %s7926_s2 = inlined_call_operand.vmem [shape: bf16[1,128,1024], index: 2, kind: input, shape index: {}]   ;;  %s7927_s0 = inlined_call_operand.vmem [shape: bf16[64,128], index: 0, kind: input, shape index: {}]   ;;  %s7928_s4 = inlined_call_operand.vmem [shape: bf16[1,2,128,512], index: 4, kind: input, shape index: {}]   ;;  %s7929_s5 = inlined_call_operand.vmem [shape: f32[1,1,1024], index: 5, kind: input, shape index: {}]   ;;  %s7930_s6 = inlined_call_operand.vmem [shape: f32[1,2,64,128], index: 6, kind: output, shape index: {0}]   ;;  %s7931_s8 = inlined_call_operand.vmem [shape: f32[1,2,8,128], index: 8, kind: output, shape index: {2}]   ;;  %s7932_s7 = inlined_call_operand.vmem [shape: f32[1,2,8,128], index: 7, kind: output, shape index: {1}]  }
   0x1   :  { %v4206_v0 = vld [vmem:[%s7924_s3 + $0x1c0] sm:$0xf]  ;;  %v4989_v2 = vld [vmem:[%s7924_s3 + $0x1c4] sm:$0xf]  ;;  %v4214_v5 = vld [vmem:[%s7924_s3 + $0x1c8] sm:$0xf] }
   0x2   :  { %v4993_v1 = vld [vmem:[%s7924_s3 + $0x1dc] sm:$0xf0]  ;;  %v4208_v4 = vld [vmem:[%s7924_s3 + $0x1e0] sm:$0xf0]  ;;  %v4994_v6 = vld [vmem:[%s7924_s3 + $0x1e4] sm:$0xf0] }
   0x3   :  { %v4207_v3 = vor.u32 %v4993_v1, %v4206_v0  ;;  %v4211_v7 = vor.u32 %v4989_v2, %v4208_v4  ;;  %v4215_v8 = vor.u32 %v4994_v6, %v4214_v5  ;;  %v4990_v9 = vld [vmem:[%s7924_s3 + $0x1cc] sm:$0xf]  ;;  %v4174_v11 = vld [vmem:[%s7924_s3 + $0x180] sm:$0xf]  ;;  %v4981_v14 = vld [vmem:[%s7924_s3 + $0x184] sm:$0xf] }
   0x4   :  { %v4216_v10 = vld [vmem:[%s7924_s3 + $0x1e8] sm:$0xf0]  ;;  %v4985_v13 = vld [vmem:[%s7924_s3 + $0x19c] sm:$0xf0]  ;;  %v4176_v15 = vld [vmem:[%s7924_s3 + $0x1a0] sm:$0xf0] }
   0x5   :  { %515 = vmatpush.bf16.msra.mxu0 %v4207_v3  ;;  %v4219_v12 = vor.u32 %v4990_v9, %v4216_v10  ;;  %544 = vmatpush.bf16.msra.mxu1 %v4211_v7  ;;  %v4175_v16 = vor.u32 %v4985_v13, %v4174_v11  ;;  %v4179_v17 = vor.u32 %v4981_v14, %v4176_v15  ;;  %v4182_v18 = vld [vmem:[%s7924_s3 + $0x188] sm:$0xf]  ;;  %v4982_v20 = vld [vmem:[%s7924_s3 + $0x18c] sm:$0xf]  ;;  %v4142_v23 = vld [vmem:[%s7924_s3 + $0x140] sm:$0xf] }
   0x6   :  { %573 = vmatpush.bf16.msra.mxu2 %v4215_v8  ;;  %v4986_v19 = vld [vmem:[%s7924_s3 + $0x1a4] sm:$0xf0]  ;;  %v4184_v22 = vld [vmem:[%s7924_s3 + $0x1a8] sm:$0xf0]  ;;  %v4977_v24 = vld [vmem:[%s7924_s3 + $0x15c] sm:$0xf0] }
   0x7   :  { %602 = vmatpush.bf16.msra.mxu3 %v4219_v12  ;;  %v4183_v21 = vor.u32 %v4986_v19, %v4182_v18  ;;  %v4187_v25 = vor.u32 %v4982_v20, %v4184_v22  ;;  %v4973_v26 = vld [vmem:[%s7924_s3 + $0x144] sm:$0xf]  ;;  %v4150_v28 = vld [vmem:[%s7924_s3 + $0x148] sm:$0xf]  ;;  %v4143_v29 = vor.u32 %v4977_v24, %v4142_v23  ;;  %v4974_v31 = vld [vmem:[%s7924_s3 + $0x14c] sm:$0xf] }
   0x8   :  { %v4144_v27 = vld [vmem:[%s7924_s3 + $0x160] sm:$0xf0]  ;;  %v4978_v30 = vld [vmem:[%s7924_s3 + $0x164] sm:$0xf0]  ;;  %v4152_v32 = vld [vmem:[%s7924_s3 + $0x168] sm:$0xf0] }
   0x9   :  { %516 = vmatpush.bf16.msra.mxu0 %v4175_v16  ;;  %545 = vmatpush.bf16.msra.mxu1 %v4179_v17  ;;  %v4147_v33 = vor.u32 %v4973_v26, %v4144_v27  ;;  %v4151_v34 = vor.u32 %v4978_v30, %v4150_v28  ;;  %v4110_v35 = vld [vmem:[%s7924_s3 + $0x100] sm:$0xf]  ;;  %v4965_v37 = vld [vmem:[%s7924_s3 + $0x104] sm:$0xf]  ;;  %v4155_v38 = vor.u32 %v4974_v31, %v4152_v32  ;;  %v4118_v40 = vld [vmem:[%s7924_s3 + $0x108] sm:$0xf] }
   0xa   :  { %574 = vmatpush.bf16.msra.mxu2 %v4183_v21  ;;  %v4969_v36 = vld [vmem:[%s7924_s3 + $0x11c] sm:$0xf0]  ;;  %v4112_v39 = vld [vmem:[%s7924_s3 + $0x120] sm:$0xf0]  ;;  %v4970_v41 = vld [vmem:[%s7924_s3 + $0x124] sm:$0xf0] }
   0xb   :  { %603 = vmatpush.bf16.msra.mxu3 %v4187_v25  ;;  %v4966_v42 = vld [vmem:[%s7924_s3 + $0x10c] sm:$0xf]  ;;  %v4111_v44 = vor.u32 %v4969_v36, %v4110_v35  ;;  %v4115_v45 = vor.u32 %v4965_v37, %v4112_v39  ;;  %v4119_v46 = vor.u32 %v4970_v41, %v4118_v40  ;;  %v4078_v47 = vld [vmem:[%s7924_s3 + $0xc0] sm:$0xf]  ;;  %v4957_v49 = vld [vmem:[%s7924_s3 + $0xc4] sm:$0xf] }
   0xc   :  { %v4120_v43 = vld [vmem:[%s7924_s3 + $0x128] sm:$0xf0]  ;;  %v4961_v48 = vld [vmem:[%s7924_s3 + $0xdc] sm:$0xf0]  ;;  %v4080_v51 = vld [vmem:[%s7924_s3 + $0xe0] sm:$0xf0] }
   0xd   :  { %517 = vmatpush.bf16.msra.mxu0 %v4143_v29  ;;  %546 = vmatpush.bf16.msra.mxu1 %v4147_v33  ;;  %v4123_v50 = vor.u32 %v4966_v42, %v4120_v43  ;;  %v4086_v52 = vld [vmem:[%s7924_s3 + $0xc8] sm:$0xf]  ;;  %v4958_v54 = vld [vmem:[%s7924_s3 + $0xcc] sm:$0xf]  ;;  %v4079_v56 = vor.u32 %v4961_v48, %v4078_v47  ;;  %v4083_v57 = vor.u32 %v4957_v49, %v4080_v51  ;;  %v4046_v59 = vld [vmem:[%s7924_s3 + $0x80] sm:$0xf] }
   0xe   :  { %575 = vmatpush.bf16.msra.mxu2 %v4151_v34  ;;  %v4962_v53 = vld [vmem:[%s7924_s3 + $0xe4] sm:$0xf0]  ;;  %v4088_v55 = vld [vmem:[%s7924_s3 + $0xe8] sm:$0xf0]  ;;  %v4953_v60 = vld [vmem:[%s7924_s3 + $0x9c] sm:$0xf0] }
   0xf   :  { %604 = vmatpush.bf16.msra.mxu3 %v4155_v38  ;;  %v4087_v58 = vor.u32 %v4962_v53, %v4086_v52  ;;  %v4949_v61 = vld [vmem:[%s7924_s3 + $0x84] sm:$0xf]  ;;  %v4091_v62 = vor.u32 %v4958_v54, %v4088_v55  ;;  %v4054_v0 = vld [vmem:[%s7924_s3 + $0x88] sm:$0xf]  ;;  %v4950_v2 = vld [vmem:[%s7924_s3 + $0x8c] sm:$0xf]  ;;  %v4047_v4 = vor.u32 %v4953_v60, %v4046_v59 }
  0x10   :  { %v4048_v63 = vld [vmem:[%s7924_s3 + $0xa0] sm:$0xf0]  ;;  %v4954_v1 = vld [vmem:[%s7924_s3 + $0xa4] sm:$0xf0]  ;;  %v4056_v3 = vld [vmem:[%s7924_s3 + $0xa8] sm:$0xf0] }
  0x11   :  { %518 = vmatpush.bf16.msra.mxu0 %v4111_v44  ;;  %547 = vmatpush.bf16.msra.mxu1 %v4115_v45  ;;  %v4051_v5 = vor.u32 %v4949_v61, %v4048_v63  ;;  %v4055_v6 = vor.u32 %v4954_v1, %v4054_v0  ;;  %v4014_v7 = vld [vmem:[%s7924_s3 + $0x40] sm:$0xf]  ;;  %v4941_v9 = vld [vmem:[%s7924_s3 + $0x44] sm:$0xf]  ;;  %v4059_v10 = vor.u32 %v4950_v2, %v4056_v3  ;;  %v4022_v12 = vld [vmem:[%s7924_s3 + $0x48] sm:$0xf] }
  0x12   :  { %576 = vmatpush.bf16.msra.mxu2 %v4119_v46  ;;  %v4945_v8 = vld [vmem:[%s7924_s3 + $0x5c] sm:$0xf0]  ;;  %v4016_v11 = vld [vmem:[%s7924_s3 + $0x60] sm:$0xf0]  ;;  %v4946_v13 = vld [vmem:[%s7924_s3 + $0x64] sm:$0xf0] }
  0x13   :  { %605 = vmatpush.bf16.msra.mxu3 %v4123_v50  ;;  %v4942_v14 = vld [vmem:[%s7924_s3 + $0x4c] sm:$0xf]  ;;  %v4015_v16 = vor.u32 %v4945_v8, %v4014_v7  ;;  %v3982_v17 = vld [vmem:[%s7924_s3] sm:$0xf]  ;;  %v4019_v18 = vor.u32 %v4941_v9, %v4016_v11  ;;  %v4023_v19 = vor.u32 %v4946_v13, %v4022_v12  ;;  %v4933_v21 = vld [vmem:[%s7924_s3 + $0x4] sm:$0xf] }
  0x14   :  { %v4024_v15 = vld [vmem:[%s7924_s3 + $0x68] sm:$0xf0]  ;;  %v4937_v20 = vld [vmem:[%s7924_s3 + $0x1c] sm:$0xf0]  ;;  %v3984_v22 = vld [vmem:[%s7924_s3 + $0x20] sm:$0xf0] }
  0x15   :  { %519 = vmatpush.bf16.msra.mxu0 %v4079_v56  ;;  %548 = vmatpush.bf16.msra.mxu1 %v4083_v57  ;;  %v4027_v23 = vor.u32 %v4942_v14, %v4024_v15  ;;  %v3990_v24 = vld [vmem:[%s7924_s3 + $0x8] sm:$0xf]  ;;  %v4934_v26 = vld [vmem:[%s7924_s3 + $0xc] sm:$0xf]  ;;  %v4222_v28 = vld [vmem:[%s7924_s3 + $0x1d0] sm:$0xf]  ;;  %v3983_v30 = vor.u32 %v4937_v20, %v3982_v17  ;;  %v3987_v33 = vor.u32 %v4933_v21, %v3984_v22 }
  0x16   :  { %577 = vmatpush.bf16.msra.mxu2 %v4087_v58  ;;  %v4938_v25 = vld [vmem:[%s7924_s3 + $0x24] sm:$0xf0]  ;;  %v3992_v27 = vld [vmem:[%s7924_s3 + $0x28] sm:$0xf0]  ;;  %v4995_v29 = vld [vmem:[%s7924_s3 + $0x1ec] sm:$0xf0] }
  0x17   :  { %606 = vmatpush.bf16.msra.mxu3 %v4091_v62  ;;  %v4991_v31 = vld [vmem:[%s7924_s3 + $0x1d4] sm:$0xf]  ;;  %v3991_v34 = vor.u32 %v4938_v25, %v3990_v24  ;;  %v5571_v35 = vld [vmem:[%s7925_s1] sm:$0xff]  ;;  %v3995_v36 = vor.u32 %v4934_v26, %v3992_v27  ;;  %v4223_v37 = vor.u32 %v4995_v29, %v4222_v28  ;;  %v4992_v38 = vld [vmem:[%s7924_s3 + $0x1dc] sm:$0xf] }
  0x18   :  { %v4224_v32 = vld [vmem:[%s7924_s3 + $0x1f0] sm:$0xf0]  ;;  %v4230_v39 = vld [vmem:[%s7924_s3 + $0x1d8] sm:$0xf]  ;;  %v4232_v42 = vld [vmem:[%s7924_s3 + $0x1f8] sm:$0xf0] }
  0x19   :  { %520 = vmatpush.bf16.msra.mxu0 %v4047_v4  ;;  %549 = vmatpush.bf16.msra.mxu1 %v4051_v5  ;;  %v4996_v40 = vld [vmem:[%s7924_s3 + $0x1f4] sm:$0xf0]  ;;  %v4227_v41 = vor.u32 %v4991_v31, %v4224_v32  ;;  %v4190_v43 = vld [vmem:[%s7924_s3 + $0x190] sm:$0xf]  ;;  %v4983_v45 = vld [vmem:[%s7924_s3 + $0x194] sm:$0xf]  ;;  %v4235_v48 = vor.u32 %v4992_v38, %v4232_v42 }
  0x1a   :  { %578 = vmatpush.bf16.msra.mxu2 %v4055_v6  ;;  %v4987_v44 = vld [vmem:[%s7924_s3 + $0x1ac] sm:$0xf0]  ;;  %v4192_v46 = vld [vmem:[%s7924_s3 + $0x1b0] sm:$0xf0]  ;;  %v4231_v47 = vor.u32 %v4996_v40, %v4230_v39  ;;  %v4984_v50 = vld [vmem:[%s7924_s3 + $0x19c] sm:$0xf] }
  0x1b   :  { %607 = vmatpush.bf16.msra.mxu3 %v4059_v10  ;;  %v4191_v49 = vor.u32 %v4987_v44, %v4190_v43  ;;  %v4198_v51 = vld [vmem:[%s7924_s3 + $0x198] sm:$0xf]  ;;  %v4195_v53 = vor.u32 %v4983_v45, %v4192_v46  ;;  %v4200_v54 = vld [vmem:[%s7924_s3 + $0x1b8] sm:$0xf0]  ;;  %v4158_v55 = vld [vmem:[%s7924_s3 + $0x150] sm:$0xf] }
  0x1c   :  { %v4988_v52 = vld [vmem:[%s7924_s3 + $0x1b4] sm:$0xf0]  ;;  %v4979_v56 = vld [vmem:[%s7924_s3 + $0x16c] sm:$0xf0]  ;;  %v4975_v57 = vld [vmem:[%s7924_s3 + $0x154] sm:$0xf]  ;;  %v4203_v60 = vor.u32 %v4984_v50, %v4200_v54 }
  0x1d   :  { %521 = vmatpush.bf16.msra.mxu0 %v4015_v16  ;;  %550 = vmatpush.bf16.msra.mxu1 %v4019_v18  ;;  %v4160_v58 = vld [vmem:[%s7924_s3 + $0x170] sm:$0xf0]  ;;  %v4199_v59 = vor.u32 %v4988_v52, %v4198_v51  ;;  %v4159_v61 = vor.u32 %v4979_v56, %v4158_v55  ;;  %v4976_v62 = vld [vmem:[%s7924_s3 + $0x15c] sm:$0xf]  ;;  %v4166_v63 = vld [vmem:[%s7924_s3 + $0x158] sm:$0xf] }
  0x1e   :  { %579 = vmatpush.bf16.msra.mxu2 %v4023_v19  ;;  %v4980_v0 = vld [vmem:[%s7924_s3 + $0x174] sm:$0xf0]  ;;  %v4163_v1 = vor.u32 %v4975_v57, %v4160_v58  ;;  %v4168_v2 = vld [vmem:[%s7924_s3 + $0x178] sm:$0xf0]  ;;  %v4126_v3 = vld [vmem:[%s7924_s3 + $0x110] sm:$0xf] }
  0x1f   :  { %608 = vmatpush.bf16.msra.mxu3 %v4027_v23  ;;  %v4971_v4 = vld [vmem:[%s7924_s3 + $0x12c] sm:$0xf0]  ;;  %v4967_v5 = vld [vmem:[%s7924_s3 + $0x114] sm:$0xf]  ;;  %v4167_v7 = vor.u32 %v4980_v0, %v4166_v63  ;;  %v4171_v8 = vor.u32 %v4976_v62, %v4168_v2  ;;  %v4968_v10 = vld [vmem:[%s7924_s3 + $0x11c] sm:$0xf] }
  0x20   :  { %v4128_v6 = vld [vmem:[%s7924_s3 + $0x130] sm:$0xf0]  ;;  %v4127_v9 = vor.u32 %v4971_v4, %v4126_v3  ;;  %v4134_v11 = vld [vmem:[%s7924_s3 + $0x118] sm:$0xf]  ;;  %v4136_v14 = vld [vmem:[%s7924_s3 + $0x138] sm:$0xf0] }
  0x21   :  { %522 = vmatpush.bf16.msra.mxu0 %v3983_v30  ;;  %551 = vmatpush.bf16.msra.mxu1 %v3987_v33  ;;  %v4972_v12 = vld [vmem:[%s7924_s3 + $0x134] sm:$0xf0]  ;;  %v4131_v13 = vor.u32 %v4967_v5, %v4128_v6  ;;  %v4094_v15 = vld [vmem:[%s7924_s3 + $0xd0] sm:$0xf]  ;;  %v4959_v17 = vld [vmem:[%s7924_s3 + $0xd4] sm:$0xf]  ;;  %v4139_v21 = vor.u32 %v4968_v10, %v4136_v14 }
  0x22   :  { %580 = vmatpush.bf16.msra.mxu2 %v3991_v34  ;;  %v4963_v16 = vld [vmem:[%s7924_s3 + $0xec] sm:$0xf0]  ;;  %v4096_v18 = vld [vmem:[%s7924_s3 + $0xf0] sm:$0xf0]  ;;  %v5676_v19 = vld [vmem:[%s7925_s1 + $0x8] sm:$0xff]  ;;  %v4135_v20 = vor.u32 %v4972_v12, %v4134_v11 }
  0x23   :  { %609 = vmatpush.bf16.msra.mxu3 %v3995_v36  ;;  %v4095_v22 = vor.u32 %v4963_v16, %v4094_v15  ;;  %v4960_v23 = vld [vmem:[%s7924_s3 + $0xdc] sm:$0xf]  ;;  %v4102_v24 = vld [vmem:[%s7924_s3 + $0xd8] sm:$0xf]  ;;  %v4099_v26 = vor.u32 %v4959_v17, %v4096_v18  ;;  %v4062_v28 = vld [vmem:[%s7924_s3 + $0x90] sm:$0xf] }
  0x24   :  { %523 = vmatmul.bf16.vlgmr.msra.gmra.mxu0 %v5571_v35  ;;  %552 = vmatmul.bf16.vlgmr.msra.gmra.mxu1 %v5571_v35  ;;  %v4964_v25 = vld [vmem:[%s7924_s3 + $0xf4] sm:$0xf0]  ;;  %v4104_v27 = vld [vmem:[%s7924_s3 + $0xf8] sm:$0xf0]  ;;  %v4955_v29 = vld [vmem:[%s7924_s3 + $0xac] sm:$0xf0] }
  0x25   :  { %631 = vmatpush.bf16.msrb.mxu0 %v4223_v37  ;;  %660 = vmatpush.bf16.msrb.mxu1 %v4227_v41  ;;  %v4951_v30 = vld [vmem:[%s7924_s3 + $0x94] sm:$0xf]  ;;  %v4103_v32 = vor.u32 %v4964_v25, %v4102_v24  ;;  %v4107_v33 = vor.u32 %v4960_v23, %v4104_v27  ;;  %v4063_v34 = vor.u32 %v4955_v29, %v4062_v28  ;;  %v4952_v37 = vld [vmem:[%s7924_s3 + $0x9c] sm:$0xf]  ;;  %v4030_v39 = vld [vmem:[%s7924_s3 + $0x50] sm:$0xf] }
  0x26   :  { %581 = vmatmul.bf16.vlgmr.msra.gmra.mxu2 %v5571_v35  ;;  %610 = vmatmul.bf16.vlgmr.msra.gmra.mxu3 %v5571_v35  ;;  %v4064_v31 = vld [vmem:[%s7924_s3 + $0xb0] sm:$0xf0]  ;;  %v4072_v38 = vld [vmem:[%s7924_s3 + $0xb8] sm:$0xf0]  ;;  %v4947_v40 = vld [vmem:[%s7924_s3 + $0x6c] sm:$0xf0] }
  0x27   :  { %689 = vmatpush.bf16.msrb.mxu2 %v4231_v47  ;;  %718 = vmatpush.bf16.msrb.mxu3 %v4235_v48  ;;  %v4067_v36 = vor.u32 %v4951_v30, %v4064_v31  ;;  %v4943_v41 = vld [vmem:[%s7924_s3 + $0x54] sm:$0xf]  ;;  %v4075_v42 = vor.u32 %v4952_v37, %v4072_v38  ;;  %v4031_v43 = vor.u32 %v4947_v40, %v4030_v39  ;;  %v4070_v45 = vld [vmem:[%s7924_s3 + $0x98] sm:$0xf]  ;;  %v4040_v50 = vld [vmem:[%s7924_s3 + $0x78] sm:$0xf0] }
  0x28   :  { %v4032_v44 = vld [vmem:[%s7924_s3 + $0x70] sm:$0xf0]  ;;  %v4956_v46 = vld [vmem:[%s7924_s3 + $0xb4] sm:$0xf0]  ;;  %v3998_v51 = vld [vmem:[%s7924_s3 + $0x10] sm:$0xf] }
  0x29   :  { %632 = vmatpush.bf16.msrb.mxu0 %v4191_v49  ;;  %661 = vmatpush.bf16.msrb.mxu1 %v4195_v53  ;;  %v4035_v47 = vor.u32 %v4943_v41, %v4032_v44  ;;  %v4071_v48 = vor.u32 %v4956_v46, %v4070_v45  ;;  %v4944_v49 = vld [vmem:[%s7924_s3 + $0x5c] sm:$0xf]  ;;  %v4939_v52 = vld [vmem:[%s7924_s3 + $0x2c] sm:$0xf0]  ;;  %v4935_v53 = vld [vmem:[%s7924_s3 + $0x14] sm:$0xf] }
  0x2a   :  { %v4000_v54 = vld [vmem:[%s7924_s3 + $0x30] sm:$0xf0]  ;;  %v4038_v55 = vld [vmem:[%s7924_s3 + $0x58] sm:$0xf]  ;;  %v4043_v57 = vor.u32 %v4944_v49, %v4040_v50  ;;  %v3999_v58 = vor.u32 %v4939_v52, %v3998_v51  ;;  %v4936_v63 = vld [vmem:[%s7924_s3 + $0x1c] sm:$0xf] }
  0x2b   :  { %690 = vmatpush.bf16.msrb.mxu2 %v4199_v59  ;;  %719 = vmatpush.bf16.msrb.mxu3 %v4203_v60  ;;  %v4948_v56 = vld [vmem:[%s7924_s3 + $0x74] sm:$0xf0]  ;;  %v4003_v62 = vor.u32 %v4935_v53, %v4000_v54  ;;  %v4008_v0 = vld [vmem:[%s7924_s3 + $0x38] sm:$0xf0]  ;;  %v5769_v3 = vld [vmem:[%s7925_s1 + $0x10] sm:$0xff] }
  0x2c   :  { %v4039_v59 = vor.u32 %v4948_v56, %v4038_v55  ;;  %v4006_v60 = vld [vmem:[%s7924_s3 + $0x18] sm:$0xf]  ;;  %v4011_v2 = vor.u32 %v4936_v63, %v4008_v0  ;;  %v4478_v4 = vld [vmem:[%s7926_s2 + $0x1c0] sm:$0xf]  ;;  %v4921_v6 = vld [vmem:[%s7926_s2 + $0x1c4] sm:$0xf] }
  0x2d   :  { %633 = vmatpush.bf16.msrb.mxu0 %v4159_v61  ;;  %662 = vmatpush.bf16.msrb.mxu1 %v4163_v1  ;;  %v4940_v61 = vld [vmem:[%s7924_s3 + $0x34] sm:$0xf0]  ;;  %v4925_v5 = vld [vmem:[%s7926_s2 + $0x1dc] sm:$0xf0]  ;;  %v4488_v10 = vld [vmem:[%s7926_s2 + $0x1e8] sm:$0xf0] }
  0x2e   :  { %v4007_v1 = vor.u32 %v4940_v61, %v4006_v60  ;;  %v4917_v14 = vld [vmem:[%s7926_s2 + $0x19c] sm:$0xf0]  ;;  %v4913_v15 = vld [vmem:[%s7926_s2 + $0x184] sm:$0xf]  ;;  %v4914_v18 = vld [vmem:[%s7926_s2 + $0x18c] sm:$0xf] }
  0x2f   :  { %691 = vmatpush.bf16.msrb.mxu2 %v4167_v7  ;;  %720 = vmatpush.bf16.msrb.mxu3 %v4171_v8  ;;  %v4479_v7 = vor.u32 %v4925_v5, %v4478_v4  ;;  %v4480_v8 = vld [vmem:[%s7926_s2 + $0x1e0] sm:$0xf0]  ;;  %v4486_v23 = vld [vmem:[%s7926_s2 + $0x1c8] sm:$0xf]  ;;  %v4414_v27 = vld [vmem:[%s7926_s2 + $0x140] sm:$0xf] }
  0x30   :  { %v4483_v11 = vor.u32 %v4921_v6, %v4480_v8  ;;  %v4448_v17 = vld [vmem:[%s7926_s2 + $0x1a0] sm:$0xf0]  ;;  %v4926_v24 = vld [vmem:[%s7926_s2 + $0x1e4] sm:$0xf0]  ;;  %v4909_v28 = vld [vmem:[%s7926_s2 + $0x15c] sm:$0xf0] }
  0x31   :  { %634 = vmatpush.bf16.msrb.mxu0 %v4127_v9  ;;  %663 = vmatpush.bf16.msrb.mxu1 %v4131_v13  ;;  %v4922_v9 = vld [vmem:[%s7926_s2 + $0x1cc] sm:$0xf]  ;;  %v4446_v13 = vld [vmem:[%s7926_s2 + $0x180] sm:$0xf]  ;;  %v4487_v25 = vor.u32 %v4926_v24, %v4486_v23  ;;  %v4905_v29 = vld [vmem:[%s7926_s2 + $0x144] sm:$0xf]  ;;  %v4415_v30 = vor.u32 %v4909_v28, %v4414_v27 }
  0x32   :  { %v4491_v12 = vor.u32 %v4922_v9, %v4488_v10  ;;  %v4447_v16 = vor.u32 %v4917_v14, %v4446_v13  ;;  %v4416_v31 = vld [vmem:[%s7926_s2 + $0x160] sm:$0xf0]  ;;  %v4454_v37 = vld [vmem:[%s7926_s2 + $0x188] sm:$0xf]  ;;  %v4382_v39 = vld [vmem:[%s7926_s2 + $0x100] sm:$0xf] }
  0x33   :  { %692 = vmatpush.bf16.msrb.mxu2 %v4135_v20  ;;  %721 = vmatpush.bf16.msrb.mxu3 %v4139_v21  ;;  %v4456_v20 = vld [vmem:[%s7926_s2 + $0x1a8] sm:$0xf0]  ;;  %v4451_v21 = vor.u32 %v4913_v15, %v4448_v17  ;;  %v4918_v38 = vld [vmem:[%s7926_s2 + $0x1a4] sm:$0xf0]  ;;  %v4901_v41 = vld [vmem:[%s7926_s2 + $0x11c] sm:$0xf0] }
  0x34   :  { %528 = vmatmul.bf16.gmra.mxu0 %v5676_v19  ;;  %557 = vmatmul.bf16.gmra.mxu1 %v5676_v19  ;;  %v4455_v40 = vor.u32 %v4918_v38, %v4454_v37  ;;  %v4383_v44 = vor.u32 %v4901_v41, %v4382_v39  ;;  %v4898_v46 = vld [vmem:[%s7926_s2 + $0x10c] sm:$0xf]  ;;  %v4910_v50 = vld [vmem:[%s7926_s2 + $0x164] sm:$0xf0]  ;;  %v4350_v52 = vld [vmem:[%s7926_s2 + $0xc0] sm:$0xf] }
  0x35   :  { %635 = vmatpush.bf16.msrb.mxu0 %v4095_v22  ;;  %664 = vmatpush.bf16.msrb.mxu1 %v4099_v26  ;;  %v4459_v22 = vor.u32 %v4914_v18, %v4456_v20  ;;  %v5820_v26 = vld [vmem:[%s7925_s1 + $0x18] sm:$0xff]  ;;  %v4893_v53 = vld [vmem:[%s7926_s2 + $0xdc] sm:$0xf0]  ;;  %v4889_v54 = vld [vmem:[%s7926_s2 + $0xc4] sm:$0xf] }
  0x36   :  { %586 = vmatmul.bf16.gmra.mxu2 %v5676_v19  ;;  %615 = vmatmul.bf16.gmra.mxu3 %v5676_v19  ;;  %v4351_v55 = vor.u32 %v4893_v53, %v4350_v52  ;;  %v4352_v56 = vld [vmem:[%s7926_s2 + $0xe0] sm:$0xf0]  ;;  %v4390_v60 = vld [vmem:[%s7926_s2 + $0x108] sm:$0xf]  ;;  %v4885_v0 = vld [vmem:[%s7926_s2 + $0x9c] sm:$0xf0] }
  0x37   :  { %693 = vmatpush.bf16.msrb.mxu2 %v4103_v32  ;;  %722 = vmatpush.bf16.msrb.mxu3 %v4107_v33  ;;  %v4906_v32 = vld [vmem:[%s7926_s2 + $0x14c] sm:$0xf]  ;;  %v4902_v61 = vld [vmem:[%s7926_s2 + $0x124] sm:$0xf0]  ;;  %v4877_v13 = vld [vmem:[%s7926_s2 + $0x5c] sm:$0xf0] }
  0x38   :  { %v4424_v33 = vld [vmem:[%s7926_s2 + $0x168] sm:$0xf0]  ;;  %v4391_v63 = vor.u32 %v4902_v61, %v4390_v60  ;;  %v4358_v8 = vld [vmem:[%s7926_s2 + $0xc8] sm:$0xf]  ;;  %v4873_v14 = vld [vmem:[%s7926_s2 + $0x44] sm:$0xf] }
  0x39   :  { %636 = vmatpush.bf16.msrb.mxu0 %v4063_v34  ;;  %665 = vmatpush.bf16.msrb.mxu1 %v4067_v36  ;;  %v4419_v34 = vor.u32 %v4905_v29, %v4416_v31  ;;  %v4427_v36 = vor.u32 %v4906_v32, %v4424_v33  ;;  %v4882_v6 = vld [vmem:[%s7926_s2 + $0x8c] sm:$0xf]  ;;  %v4894_v10 = vld [vmem:[%s7926_s2 + $0xe4] sm:$0xf0]  ;;  %v4254_v23 = vld [vmem:[%s7926_s2] sm:$0xf] }
  0x3a   :  { %v4886_v17 = vld [vmem:[%s7926_s2 + $0xa4] sm:$0xf0]  ;;  %v4865_v27 = vld [vmem:[%s7926_s2 + $0x4] sm:$0xf]  ;;  %v4866_v37 = vld [vmem:[%s7926_s2 + $0xc] sm:$0xf] }
  0x3b   :  { %694 = vmatpush.bf16.msrb.mxu2 %v4071_v48  ;;  %723 = vmatpush.bf16.msrb.mxu3 %v4075_v42  ;;  %v4897_v42 = vld [vmem:[%s7926_s2 + $0x104] sm:$0xf]  ;;  %v4422_v48 = vld [vmem:[%s7926_s2 + $0x148] sm:$0xf]  ;;  %v4264_v39 = vld [vmem:[%s7926_s2 + $0x28] sm:$0xf0] }
  0x3c   :  { %v4423_v51 = vor.u32 %v4910_v50, %v4422_v48  ;;  %v4256_v28 = vld [vmem:[%s7926_s2 + $0x20] sm:$0xf0]  ;;  %v4294_v31 = vld [vmem:[%s7926_s2 + $0x48] sm:$0xf]  ;;  %v4494_v41 = vld [vmem:[%s7926_s2 + $0x1d0] sm:$0xf] }
  0x3d   :  { %637 = vmatpush.bf16.msrb.mxu0 %v4031_v43  ;;  %666 = vmatpush.bf16.msrb.mxu1 %v4035_v47  ;;  %v4384_v43 = vld [vmem:[%s7926_s2 + $0x120] sm:$0xf0]  ;;  %v4392_v47 = vld [vmem:[%s7926_s2 + $0x128] sm:$0xf0]  ;;  %v4878_v32 = vld [vmem:[%s7926_s2 + $0x64] sm:$0xf0] }
  0x3e   :  { %v4387_v45 = vor.u32 %v4897_v42, %v4384_v43  ;;  %v4395_v49 = vor.u32 %v4898_v46, %v4392_v47  ;;  %v4295_v33 = vor.u32 %v4878_v32, %v4294_v31  ;;  %v4927_v42 = vld [vmem:[%s7926_s2 + $0x1ec] sm:$0xf0]  ;;  %v4923_v43 = vld [vmem:[%s7926_s2 + $0x1d4] sm:$0xf]  ;;  %v4504_v47 = vld [vmem:[%s7926_s2 + $0x1f8] sm:$0xf0] }
  0x3f   :  { %695 = vmatpush.bf16.msrb.mxu2 %v4039_v59  ;;  %724 = vmatpush.bf16.msrb.mxu3 %v4043_v57  ;;  %v4360_v57 = vld [vmem:[%s7926_s2 + $0xe8] sm:$0xf0]  ;;  %v4462_v48 = vld [vmem:[%s7926_s2 + $0x190] sm:$0xf]  ;;  %v4464_v52 = vld [vmem:[%s7926_s2 + $0x1b0] sm:$0xf0] }
  0x40   :  { %v4919_v50 = vld [vmem:[%s7926_s2 + $0x1ac] sm:$0xf0] }
  0x41   :  { %638 = vmatpush.bf16.msrb.mxu0 %v3999_v58  ;;  %667 = vmatpush.bf16.msrb.mxu1 %v4003_v62  ;;  %v4355_v58 = vor.u32 %v4889_v54, %v4352_v56  ;;  %v4318_v62 = vld [vmem:[%s7926_s2 + $0x80] sm:$0xf]  ;;  %v4463_v53 = vor.u32 %v4919_v50, %v4462_v48  ;;  %v4472_v56 = vld [vmem:[%s7926_s2 + $0x1b8] sm:$0xf0]  ;;  %v4430_v60 = vld [vmem:[%s7926_s2 + $0x150] sm:$0xf] }
  0x42   :  { %v4319_v4 = vor.u32 %v4885_v0, %v4318_v62  ;;  %v4911_v61 = vld [vmem:[%s7926_s2 + $0x16c] sm:$0xf0]  ;;  %v4907_v62 = vld [vmem:[%s7926_s2 + $0x154] sm:$0xf] }
  0x43   :  { %696 = vmatpush.bf16.msrb.mxu2 %v4007_v1  ;;  %725 = vmatpush.bf16.msrb.mxu3 %v4011_v2  ;;  %v4881_v1 = vld [vmem:[%s7926_s2 + $0x84] sm:$0xf]  ;;  %v4432_v0 = vld [vmem:[%s7926_s2 + $0x170] sm:$0xf0] }
  0x44   :  { %533 = vmatmul.bf16.gmra.mxu0 %v5769_v3  ;;  %562 = vmatmul.bf16.gmra.mxu1 %v5769_v3  ;;  %v4320_v2 = vld [vmem:[%s7926_s2 + $0xa0] sm:$0xf0] }
  0x45   :  { %1091 = vmatpush.bf16.msra.mxu0 %v4479_v7  ;;  %1120 = vmatpush.bf16.msra.mxu1 %v4483_v11  ;;  %v4323_v5 = vor.u32 %v4881_v1, %v4320_v2  ;;  %v4328_v7 = vld [vmem:[%s7926_s2 + $0xa8] sm:$0xf0]  ;;  %v4359_v11 = vor.u32 %v4894_v10, %v4358_v8  ;;  %v4908_v1 = vld [vmem:[%s7926_s2 + $0x15c] sm:$0xf]  ;;  %v4903_v8 = vld [vmem:[%s7926_s2 + $0x12c] sm:$0xf0] }
  0x46   :  { %591 = vmatmul.bf16.gmra.mxu2 %v5769_v3  ;;  %620 = vmatmul.bf16.gmra.mxu3 %v5769_v3  ;;  %v4331_v9 = vor.u32 %v4882_v6, %v4328_v7  ;;  %v4440_v2 = vld [vmem:[%s7926_s2 + $0x178] sm:$0xf0]  ;;  %v4920_v6 = vld [vmem:[%s7926_s2 + $0x1b4] sm:$0xf0]  ;;  %v4398_v7 = vld [vmem:[%s7926_s2 + $0x110] sm:$0xf] }
  0x47   :  { %1178 = vmatpush.bf16.msra.mxu3 %v4491_v12  ;;  %1149 = vmatpush.bf16.msra.mxu2 %v4487_v25  ;;  %v4286_v12 = vld [vmem:[%s7926_s2 + $0x40] sm:$0xf]  ;;  %v4399_v10 = vor.u32 %v4903_v8, %v4398_v7  ;;  %v4270_v7 = vld [vmem:[%s7926_s2 + $0x10] sm:$0xf] }
  0x48   :  { %v4287_v15 = vor.u32 %v4877_v13, %v4286_v12  ;;  %v4869_v25 = vld [vmem:[%s7926_s2 + $0x1c] sm:$0xf0]  ;;  %v4400_v12 = vld [vmem:[%s7926_s2 + $0x130] sm:$0xf0] }
  0x49   :  { %1092 = vmatpush.bf16.msra.mxu0 %v4447_v16  ;;  %1121 = vmatpush.bf16.msra.mxu1 %v4451_v21  ;;  %v4288_v16 = vld [vmem:[%s7926_s2 + $0x60] sm:$0xf0]  ;;  %v4874_v21 = vld [vmem:[%s7926_s2 + $0x4c] sm:$0xf]  ;;  %v4255_v29 = vor.u32 %v4869_v25, %v4254_v23  ;;  %v4366_v23 = vld [vmem:[%s7926_s2 + $0xd0] sm:$0xf] }
  0x4a   :  { %v4291_v18 = vor.u32 %v4873_v14, %v4288_v16  ;;  %v6073_v14 = vld [vmem:[%s7927_s0] sm:$0xff]  ;;  %v4891_v25 = vld [vmem:[%s7926_s2 + $0xd4] sm:$0xf] }
  0x4b   :  { %1179 = vmatpush.bf16.msra.mxu3 %v4459_v22  ;;  %1150 = vmatpush.bf16.msra.mxu2 %v4455_v40  ;;  %v4296_v22 = vld [vmem:[%s7926_s2 + $0x68] sm:$0xf0]  ;;  %v4267_v40 = vor.u32 %v4866_v37, %v4264_v39  ;;  %v4406_v37 = vld [vmem:[%s7926_s2 + $0x118] sm:$0xf] }
  0x4c   :  { %v4299_v24 = vor.u32 %v4874_v21, %v4296_v22  ;;  %v4912_v21 = vld [vmem:[%s7926_s2 + $0x174] sm:$0xf0] }
  0x4d   :  { %1093 = vmatpush.bf16.msra.mxu0 %v4415_v30  ;;  %1122 = vmatpush.bf16.msra.mxu1 %v4419_v34  ;;  %v4259_v30 = vor.u32 %v4865_v27, %v4256_v28  ;;  %v4262_v34 = vld [vmem:[%s7926_s2 + $0x8] sm:$0xf]  ;;  %v4368_v28 = vld [vmem:[%s7926_s2 + $0xf0] sm:$0xf0]  ;;  %v4904_v39 = vld [vmem:[%s7926_s2 + $0x134] sm:$0xf0] }
  0x4f   :  { %1180 = vmatpush.bf16.msra.mxu3 %v4427_v36  ;;  %1151 = vmatpush.bf16.msra.mxu2 %v4423_v51  ;;  %v4870_v36 = vld [vmem:[%s7926_s2 + $0x24] sm:$0xf0]  ;;  %v4915_v51 = vld [vmem:[%s7926_s2 + $0x194] sm:$0xf] }
  0x50   :  { %v4263_v38 = vor.u32 %v4870_v36, %v4262_v34  ;;  %v4467_v54 = vor.u32 %v4915_v51, %v4464_v52  ;;  %v4892_v34 = vld [vmem:[%s7926_s2 + $0xdc] sm:$0xf] }
  0x51   :  { %1094 = vmatpush.bf16.msra.mxu0 %v4383_v44  ;;  %1123 = vmatpush.bf16.msra.mxu1 %v4387_v45  ;;  %v4495_v44 = vor.u32 %v4927_v42, %v4494_v41  ;;  %v4496_v45 = vld [vmem:[%s7926_s2 + $0x1f0] sm:$0xf0]  ;;  %v4376_v36 = vld [vmem:[%s7926_s2 + $0xf8] sm:$0xf0]  ;;  %v4887_v41 = vld [vmem:[%s7926_s2 + $0xac] sm:$0xf0]  ;;  %v4407_v42 = vor.u32 %v4904_v39, %v4406_v37 }
  0x52   :  { %v4499_v46 = vor.u32 %v4923_v43, %v4496_v45  ;;  %v4336_v45 = vld [vmem:[%s7926_s2 + $0xb0] sm:$0xf0]  ;;  %v4884_v51 = vld [vmem:[%s7926_s2 + $0x9c] sm:$0xf]  ;;  %v4654_v37 = vld [vmem:[%s7928_s4 + $0xe0] sm:$0xf] }
  0x53   :  { %1181 = vmatpush.bf16.msra.mxu3 %v4395_v49  ;;  %1152 = vmatpush.bf16.msra.mxu2 %v4391_v63  ;;  %v4431_v63 = vor.u32 %v4911_v61, %v4430_v60  ;;  %v4344_v52 = vld [vmem:[%s7926_s2 + $0xb8] sm:$0xf0]  ;;  %v4304_v60 = vld [vmem:[%s7926_s2 + $0x70] sm:$0xf0]  ;;  %v5025_v39 = vld [vmem:[%s7928_s4 + $0xe4] sm:$0xf] }
  0x54   :  { %538 = vmatmul.bf16.gmra.mxu0 %v5820_v26  ;;  %567 = vmatmul.bf16.gmra.mxu1 %v5820_v26 }
  0x55   :  { %1095 = vmatpush.bf16.msra.mxu0 %v4351_v55  ;;  %1124 = vmatpush.bf16.msra.mxu1 %v4355_v58  ;;  %v4916_v55 = vld [vmem:[%s7926_s2 + $0x19c] sm:$0xf]  ;;  %v4928_v58 = vld [vmem:[%s7926_s2 + $0x1f4] sm:$0xf0] }
  0x56   :  { %596 = vmatmul.bf16.gmra.mxu2 %v5820_v26  ;;  %625 = vmatmul.bf16.gmra.mxu3 %v5820_v26 }
  0x57   :  { %1153 = vmatpush.bf16.msra.mxu2 %v4359_v11  ;;  %v4899_v11 = vld [vmem:[%s7926_s2 + $0x114] sm:$0xf] }
  0x58   :  { %v4403_v13 = vor.u32 %v4899_v11, %v4400_v12  ;;  %v4272_v11 = vld [vmem:[%s7926_s2 + $0x30] sm:$0xf0] }
  0x59   :  { %1096 = vmatpush.bf16.msra.mxu0 %v4319_v4  ;;  %1125 = vmatpush.bf16.msra.mxu1 %v4323_v5  ;;  %v4470_v4 = vld [vmem:[%s7926_s2 + $0x198] sm:$0xf]  ;;  %v4443_v5 = vor.u32 %v4908_v1, %v4440_v2 }
  0x5d   :  { %1097 = vmatpush.bf16.msra.mxu0 %v4287_v15  ;;  %1126 = vmatpush.bf16.msra.mxu1 %v4291_v18  ;;  %v4438_v18 = vld [vmem:[%s7926_s2 + $0x158] sm:$0xf] }
  0x5e   :  { %v4439_v22 = vor.u32 %v4912_v21, %v4438_v18 }
  0x61   :  { %1098 = vmatpush.bf16.msra.mxu0 %v4255_v29  ;;  %1127 = vmatpush.bf16.msra.mxu1 %v4259_v30  ;;  %v4371_v30 = vor.u32 %v4891_v25, %v4368_v28 }
  0x64   :  { %639 = vmatmul.bf16.vlgmr.msrb.gmra.mxu0 %v5571_v35  ;;  %668 = vmatmul.bf16.vlgmr.msrb.gmra.mxu1 %v5571_v35 }
  0x65   :  { %1207 = vmatpush.bf16.msrb.mxu0 %v4495_v44  ;;  %1236 = vmatpush.bf16.msrb.mxu1 %v4499_v46  ;;  %v4883_v44 = vld [vmem:[%s7926_s2 + $0x94] sm:$0xf] }
  0x66   :  { %697 = vmatmul.bf16.vlgmr.msrb.gmra.mxu2 %v5571_v35  ;;  %726 = vmatmul.bf16.vlgmr.msrb.gmra.mxu3 %v5571_v35  ;;  %v4890_v35 = vld [vmem:[%s7926_s2 + $0xcc] sm:$0xf]  ;;  %v4339_v46 = vor.u32 %v4883_v44, %v4336_v45 }
  0x67   :  { %v4363_v59 = vor.u32 %v4890_v35, %v4360_v57  ;;  %v4502_v35 = vld [vmem:[%s7926_s2 + $0x1d8] sm:$0xf]  ;;  %v4475_v57 = vor.u32 %v4916_v55, %v4472_v56 }
  0x68   :  { %v4896_v55 = vld [vmem:[%s7926_s2 + $0xf4] sm:$0xf0] }
  0x69   :  { %1182 = vmatpush.bf16.msra.mxu3 %v4363_v59  ;;  %1208 = vmatpush.bf16.msrb.mxu0 %v4463_v53  ;;  %v4503_v59 = vor.u32 %v4928_v58, %v4502_v35  ;;  %v4374_v53 = vld [vmem:[%s7926_s2 + $0xd8] sm:$0xf]  ;;  %v4302_v35 = vld [vmem:[%s7926_s2 + $0x50] sm:$0xf]  ;;  %v4875_v58 = vld [vmem:[%s7926_s2 + $0x54] sm:$0xf] }
  0x6a   :  { %1237 = vmatpush.bf16.msrb.mxu1 %v4467_v54  ;;  %v4347_v54 = vor.u32 %v4884_v51, %v4344_v52  ;;  %v4375_v56 = vor.u32 %v4896_v55, %v4374_v53  ;;  %v5026_v51 = vld [vmem:[%s7928_s4 + $0xec] sm:$0xf]  ;;  %v4664_v52 = vld [vmem:[%s7928_s4 + $0xf8] sm:$0xf0]  ;;  %v4638_v53 = vld [vmem:[%s7928_s4 + $0xc0] sm:$0xf] }
  0x6b   :  { %v5023_v55 = vld [vmem:[%s7928_s4 + $0xcc] sm:$0xf0] }
  0x6d   :  { %1183 = vmatpush.bf16.msra.mxu3 %v4331_v9  ;;  %1209 = vmatpush.bf16.msrb.mxu0 %v4431_v63  ;;  %v4471_v9 = vor.u32 %v4920_v6, %v4470_v4  ;;  %v4342_v63 = vld [vmem:[%s7926_s2 + $0x98] sm:$0xf]  ;;  %v4312_v6 = vld [vmem:[%s7926_s2 + $0x78] sm:$0xf0] }
  0x71   :  { %1184 = vmatpush.bf16.msra.mxu3 %v4299_v24  ;;  %1210 = vmatpush.bf16.msrb.mxu0 %v4399_v10  ;;  %v4895_v24 = vld [vmem:[%s7926_s2 + $0xec] sm:$0xf0]  ;;  %v4867_v10 = vld [vmem:[%s7926_s2 + $0x14] sm:$0xf] }
  0x72   :  { %v4367_v27 = vor.u32 %v4895_v24, %v4366_v23  ;;  %v4872_v23 = vld [vmem:[%s7926_s2 + $0x34] sm:$0xf0]  ;;  %v4868_v24 = vld [vmem:[%s7926_s2 + $0x1c] sm:$0xf] }
  0x74   :  { %644 = vmatmul.bf16.gmra.mxu0 %v5676_v19  ;;  %673 = vmatmul.bf16.gmra.mxu1 %v5676_v19 }
  0x75   :  { %1185 = vmatpush.bf16.msra.mxu3 %v4267_v40  ;;  %1211 = vmatpush.bf16.msrb.mxu0 %v4367_v27  ;;  %v4334_v40 = vld [vmem:[%s7926_s2 + $0x90] sm:$0xf] }
  0x76   :  { %702 = vmatmul.bf16.gmra.mxu2 %v5676_v19  ;;  %731 = vmatmul.bf16.gmra.mxu3 %v5676_v19  ;;  %v4326_v19 = vld [vmem:[%s7926_s2 + $0x88] sm:$0xf]  ;;  %v4335_v43 = vor.u32 %v4887_v41, %v4334_v40  ;;  %v4656_v41 = vld [vmem:[%s7928_s4 + $0xf0] sm:$0xf0] }
  0x77   :  { %v4327_v20 = vor.u32 %v4886_v17, %v4326_v19  ;;  %v4900_v19 = vld [vmem:[%s7926_s2 + $0x11c] sm:$0xf] }
  0x78   :  { %v4408_v17 = vld [vmem:[%s7926_s2 + $0x138] sm:$0xf0] }
  0x79   :  { %1154 = vmatpush.bf16.msra.mxu2 %v4327_v20  ;;  %v4411_v20 = vor.u32 %v4900_v19, %v4408_v17  ;;  %1212 = vmatpush.bf16.msrb.mxu0 %v4335_v43  ;;  %v4310_v19 = vld [vmem:[%s7926_s2 + $0x58] sm:$0xf]  ;;  %v6263_v43 = vor.u32 %v5025_v39, %v4656_v41  ;;  %v4606_v39 = vld [vmem:[%s7928_s4 + $0x80] sm:$0xf]  ;;  %v5015_v41 = vld [vmem:[%s7928_s4 + $0x8c] sm:$0xf0] }
  0x7a   :  { %v4880_v17 = vld [vmem:[%s7926_s2 + $0x74] sm:$0xf0] }
  0x7b   :  { %v4311_v18 = vor.u32 %v4880_v17, %v4310_v19  ;;  %v4624_v19 = vld [vmem:[%s7928_s4 + $0xb0] sm:$0xf0] }
  0x7d   :  { %1155 = vmatpush.bf16.msra.mxu2 %v4295_v33 }
  0x81   :  { %1156 = vmatpush.bf16.msra.mxu2 %v4263_v38  ;;  %v4379_v38 = vor.u32 %v4892_v34, %v4376_v36 }
  0x84   :  { %649 = vmatmul.bf16.gmra.mxu0 %v5769_v3  ;;  %678 = vmatmul.bf16.gmra.mxu1 %v5769_v3 }
  0x85   :  { %1265 = vmatpush.bf16.msrb.mxu2 %v4503_v59 }
  0x86   :  { %707 = vmatmul.bf16.gmra.mxu2 %v5769_v3  ;;  %736 = vmatmul.bf16.gmra.mxu3 %v5769_v3  ;;  %v4924_v3 = vld [vmem:[%s7926_s2 + $0x1dc] sm:$0xf] }
  0x87   :  { %v4507_v49 = vor.u32 %v4924_v3, %v4504_v47  ;;  %v6144_v47 = vld [vmem:[%s7927_s0 + $0x8] sm:$0xff] }
  0x89   :  { %1294 = vmatpush.bf16.msrb.mxu3 %v4507_v49  ;;  %1266 = vmatpush.bf16.msrb.mxu2 %v4471_v9  ;;  %v4871_v9 = vld [vmem:[%s7926_s2 + $0x2c] sm:$0xf0] }
  0x8a   :  { %v4271_v12 = vor.u32 %v4871_v9, %v4270_v7 }
  0x8d   :  { %1295 = vmatpush.bf16.msrb.mxu3 %v4475_v57  ;;  %1267 = vmatpush.bf16.msrb.mxu2 %v4439_v22  ;;  %v4879_v57 = vld [vmem:[%s7926_s2 + $0x6c] sm:$0xf0]  ;;  %v4278_v22 = vld [vmem:[%s7926_s2 + $0x18] sm:$0xf] }
  0x8e   :  { %v4303_v59 = vor.u32 %v4879_v57, %v4302_v35  ;;  %v4279_v28 = vor.u32 %v4872_v23, %v4278_v22  ;;  %v4640_v35 = vld [vmem:[%s7928_s4 + $0xd0] sm:$0xf0]  ;;  %v6293_v57 = vor.u32 %v5023_v55, %v4638_v53  ;;  %v5013_v53 = vld [vmem:[%s7928_s4 + $0x84] sm:$0xf] }
  0x8f   :  { %v4608_v55 = vld [vmem:[%s7928_s4 + $0x90] sm:$0xf0] }
  0x90   :  { %1213 = vmatpush.bf16.msrb.mxu0 %v4303_v59 }
  0x91   :  { %1296 = vmatpush.bf16.msrb.mxu3 %v4443_v5  ;;  %1268 = vmatpush.bf16.msrb.mxu2 %v4407_v42  ;;  %v4876_v5 = vld [vmem:[%s7926_s2 + $0x5c] sm:$0xf] }
  0x92   :  { %v4315_v8 = vor.u32 %v4876_v5, %v4312_v6  ;;  %v4648_v5 = vld [vmem:[%s7928_s4 + $0xd8] sm:$0xf0]  ;;  %v4662_v6 = vld [vmem:[%s7928_s4 + $0xe8] sm:$0xf] }
  0x94   :  { %654 = vmatmul.bf16.gmra.mxu0 %v5820_v26  ;;  %683 = vmatmul.bf16.gmra.mxu1 %v5820_v26 }
  0x95   :  { %1297 = vmatpush.bf16.msrb.mxu3 %v4411_v20  ;;  %1269 = vmatpush.bf16.msrb.mxu2 %v4375_v56  ;;  %v6221_v20 = vld [vmem:[%s7927_s0 + $0x10] sm:$0xff]  ;;  %v5021_v56 = vld [vmem:[%s7928_s4 + $0xc4] sm:$0xf] }
  0x96   :  { %712 = vmatmul.bf16.gmra.mxu2 %v5820_v26  ;;  %741 = vmatmul.bf16.gmra.mxu3 %v5820_v26  ;;  %v4435_v26 = vor.u32 %v4907_v62, %v4432_v0  ;;  %v4307_v62 = vor.u32 %v4875_v58, %v4304_v60  ;;  %v4888_v0 = vld [vmem:[%s7926_s2 + $0xb4] sm:$0xf0]  ;;  %v6295_v58 = vor.u32 %v5021_v56, %v4640_v35  ;;  %v4630_v35 = vld [vmem:[%s7928_s4 + $0xa8] sm:$0xf] }
  0x97   :  { %v4343_v2 = vor.u32 %v4888_v0, %v4342_v63  ;;  %1214 = vmatpush.bf16.msrb.mxu0 %v4271_v12  ;;  %v6305_v60 = vld [vmem:[%s7927_s0 + $0x18] sm:$0xff]  ;;  %v5017_v12 = vld [vmem:[%s7928_s4 + $0xa4] sm:$0xf]  ;;  %v6392_v56 = vor.u32 %v5013_v53, %v4608_v55 }
  0x98   :  { %1238 = vmatpush.bf16.msrb.mxu1 %v4435_v26  ;;  %v5009_v53 = vld [vmem:[%s7928_s4 + $0x64] sm:$0xf] }
  0x99   :  { %1298 = vmatpush.bf16.msrb.mxu3 %v4379_v38  ;;  %1270 = vmatpush.bf16.msrb.mxu2 %v4343_v2  ;;  %v5027_v38 = vld [vmem:[%s7928_s4 + $0xec] sm:$0xf0]  ;;  %v5022_v2 = vld [vmem:[%s7928_s4 + $0xcc] sm:$0xf] }
  0x9a   :  { %v6256_v40 = vor.u32 %v5027_v38, %v4654_v37  ;;  %v6322_v7 = vor.u32 %v5022_v2, %v4648_v5  ;;  %v5024_v38 = vld [vmem:[%s7928_s4 + $0xd4] sm:$0xf0] }
  0x9b   :  { %v5020_v2 = vld [vmem:[%s7928_s4 + $0xb4] sm:$0xf0] }
  0x9c   :  { %1239 = vmatpush.bf16.msrb.mxu1 %v4403_v13  ;;  %v4275_v13 = vor.u32 %v4867_v10, %v4272_v11  ;;  %8047 = vst [vmem:[#allocation3_spill] sm:$0xff] %v6256_v40  ;;  %v4622_v10 = vld [vmem:[%s7928_s4 + $0xa0] sm:$0xf]  ;;  %v5019_v11 = vld [vmem:[%s7928_s4 + $0xac] sm:$0xf0] }
  0x9d   :  { %1299 = vmatpush.bf16.msrb.mxu3 %v4347_v54  ;;  %1271 = vmatpush.bf16.msrb.mxu2 %v4311_v18  ;;  %v6282_v54 = vor.u32 %v5026_v51, %v4664_v52  ;;  %v6351_v18 = vor.u32 %v5017_v12, %v4624_v19  ;;  %v6383_v52 = vor.u32 %v5015_v41, %v4606_v39  ;;  %v5014_v12 = vld [vmem:[%s7928_s4 + $0x8c] sm:$0xf]  ;;  %v4616_v19 = vld [vmem:[%s7928_s4 + $0x98] sm:$0xf0]  ;;  %v4590_v39 = vld [vmem:[%s7928_s4 + $0x60] sm:$0xf] }
  0x9e   :  { %v5011_v41 = vld [vmem:[%s7928_s4 + $0x6c] sm:$0xf0] }
  0x9f   :  { %8052 = vst [vmem:[#allocation8_spill] sm:$0xff] %v6282_v54  ;;  %v6445_v55 = vor.u32 %v5011_v41, %v4590_v39  ;;  %v4600_v39 = vld [vmem:[%s7928_s4 + $0x78] sm:$0xf0] }
  0xa0   :  { %1240 = vmatpush.bf16.msrb.mxu1 %v4371_v30  ;;  %v4280_v30 = vld [vmem:[%s7926_s2 + $0x38] sm:$0xf0] }
  0xa1   :  { %v6075_v15 = vpop.f32.mrf.mxu0  ;;  %v6077_v16 = vpop.f32.mrf.mxu1  ;;  %1300 = vmatpush.bf16.msrb.mxu3 %v4315_v8  ;;  %v4283_v36 = vor.u32 %v4868_v24, %v4280_v30  ;;  %1272 = vmatpush.bf16.msrb.mxu2 %v4279_v28  ;;  %v5028_v8 = vld [vmem:[%s7928_s4 + $0xf4] sm:$0xf0]  ;;  %v5018_v28 = vld [vmem:[%s7928_s4 + $0xac] sm:$0xf]  ;;  %v4632_v30 = vld [vmem:[%s7928_s4 + $0xb8] sm:$0xf0] }
  0xa2   :  { %v6328_v9 = vor.u32 %v5028_v8, %v4662_v6  ;;  %v6370_v37 = vor.u32 %v5018_v28, %v4632_v30  ;;  %v6405_v6 = vor.u32 %v5020_v2, %v4630_v35  ;;  %v6420_v28 = vor.u32 %v5014_v12, %v4616_v19  ;;  %v4614_v30 = vld [vmem:[%s7928_s4 + $0x88] sm:$0xf]  ;;  %v5012_v2 = vld [vmem:[%s7928_s4 + $0x74] sm:$0xf0] }
  0xa3   :  { %v4598_v35 = vld [vmem:[%s7928_s4 + $0x68] sm:$0xf] }
  0xa4   :  { %1099 = vmatmul.bf16.vlgmr.msra.gmra.mxu0 %v6073_v14  ;;  %1128 = vmatmul.bf16.vlgmr.msra.gmra.mxu1 %v6073_v14  ;;  %8057 = vst [vmem:[#allocation13_spill] sm:$0xff] %v6328_v9 }
  0xa5   :  { %1241 = vmatpush.bf16.msrb.mxu1 %v4339_v46  ;;  %1301 = vmatpush.bf16.msrb.mxu3 %v4283_v36  ;;  %v4646_v36 = vld [vmem:[%s7928_s4 + $0xc8] sm:$0xf] }
  0xa6   :  { %1157 = vmatmul.bf16.vlgmr.msra.gmra.mxu2 %v6073_v14  ;;  %1186 = vmatmul.bf16.vlgmr.msra.gmra.mxu3 %v6073_v14  ;;  %v6381_v51 = vor.u32 %v5024_v38, %v4646_v36  ;;  %v5016_v36 = vld [vmem:[%s7928_s4 + $0x94] sm:$0xf0] }
  0xa7   :  { %1703 = vmatpush.bf16.msra.mxu0 %v6256_v40  ;;  %1729 = vmatpush.bf16.msra.mxu2 %v6328_v9  ;;  %v6429_v38 = vor.u32 %v5016_v36, %v4614_v30  ;;  %v6460_v30 = vor.u32 %v5012_v2, %v4598_v35  ;;  %v5010_v36 = vld [vmem:[%s7928_s4 + $0x6c] sm:$0xf]  ;;  %v5007_v35 = vld [vmem:[%s7928_s4 + $0x4c] sm:$0xf0]  ;;  %v5005_v2 = vld [vmem:[%s7928_s4 + $0x44] sm:$0xf] }
  0xa9   :  { %v6107_v29 = vpop.f32.mrf.mxu2  ;;  %v6109_v31 = vpop.f32.mrf.mxu3  ;;  %1242 = vmatpush.bf16.msrb.mxu1 %v4307_v62  ;;  %1742 = vmatpush.bf16.msra.mxu3 %v6282_v54 }
  0xaa   :  { %v6111_v32 = vpop.f32.mrf.mxu0  ;;  %v6113_v33 = vpop.f32.mrf.mxu1 }
  0xab   :  { %1704 = vmatpush.bf16.msra.mxu0 %v6293_v57  ;;  %1730 = vmatpush.bf16.msra.mxu2 %v6381_v51 }
  0xad   :  { %1243 = vmatpush.bf16.msrb.mxu1 %v4275_v13  ;;  %1743 = vmatpush.bf16.msra.mxu3 %v6322_v7  ;;  %v6344_v13 = vor.u32 %v5019_v11, %v4622_v10 }
  0xaf   :  { %1705 = vmatpush.bf16.msra.mxu0 %v6344_v13  ;;  %1731 = vmatpush.bf16.msra.mxu2 %v6405_v6 }
  0xb1   :  { %v6139_v3 = vpop.f32.mrf.mxu2  ;;  %v6146_v48 = vpop.f32.mrf.mxu3  ;;  %1716 = vmatpush.bf16.msra.mxu1 %v6263_v43  ;;  %1744 = vmatpush.bf16.msra.mxu3 %v6370_v37 }
  0xb2   :  { %v6148_v49 = vpop.f32.mrf.mxu0  ;;  %v6150_v50 = vpop.f32.mrf.mxu1 }
  0xb3   :  { %1706 = vmatpush.bf16.msra.mxu0 %v6383_v52  ;;  %1732 = vmatpush.bf16.msra.mxu2 %v6429_v38 }
  0xb4   :  { %1104 = vmatmul.bf16.gmra.mxu0 %v6144_v47  ;;  %1133 = vmatmul.bf16.gmra.mxu1 %v6144_v47 }
  0xb5   :  { %1717 = vmatpush.bf16.msra.mxu1 %v6295_v58  ;;  %1745 = vmatpush.bf16.msra.mxu3 %v6420_v28 }
  0xb6   :  { %1162 = vmatmul.bf16.gmra.mxu2 %v6144_v47  ;;  %1191 = vmatmul.bf16.gmra.mxu3 %v6144_v47 }
  0xb7   :  { %1707 = vmatpush.bf16.msra.mxu0 %v6445_v55  ;;  %1733 = vmatpush.bf16.msra.mxu2 %v6460_v30 }
  0xb9   :  { %v6180_v61 = vpop.f32.mrf.mxu2  ;;  %v6188_v26 = vpop.f32.mrf.mxu3  ;;  %1718 = vmatpush.bf16.msra.mxu1 %v6351_v18 }
  0xba   :  { %v6190_v1 = vpop.f32.mrf.mxu0  ;;  %v6192_v4 = vpop.f32.mrf.mxu1 }
  0xbd   :  { %1719 = vmatpush.bf16.msra.mxu1 %v6392_v56 }
  0xc1   :  { %v6223_v21 = vpop.f32.mrf.mxu2  ;;  %v6234_v25 = vpop.f32.mrf.mxu3 }
  0xc2   :  { %v6236_v27 = vpop.f32.mrf.mxu0  ;;  %v6241_v34 = vpop.f32.mrf.mxu1 }
  0xc4   :  { %1109 = vmatmul.bf16.gmra.mxu0 %v6221_v20  ;;  %1138 = vmatmul.bf16.gmra.mxu1 %v6221_v20 }
  0xc6   :  { %1167 = vmatmul.bf16.gmra.mxu2 %v6221_v20  ;;  %1196 = vmatmul.bf16.gmra.mxu3 %v6221_v20 }
  0xc9   :  { %v6261_v42 = vpop.f32.mrf.mxu2  ;;  %v6265_v44 = vpop.f32.mrf.mxu3 }
  0xca   :  { %8048 = vst [vmem:[#allocation4_spill] sm:$0xff] %v6261_v42  ;;  %v6267_v45 = vpop.f32.mrf.mxu0  ;;  %v6270_v46 = vpop.f32.mrf.mxu1 }
  0xcb   :  { %8049 = vst [vmem:[#allocation5_spill] sm:$0xff] %v6265_v44 }
  0xcc   :  { %8050 = vst [vmem:[#allocation6_spill] sm:$0xff] %v6267_v45 }
  0xcd   :  { %8051 = vst [vmem:[#allocation7_spill] sm:$0xff] %v6270_v46  ;;  %v5058_v46 = vld [vmem:[%s7928_s4 + $0x1ec] sm:$0xf] }
  0xd1   :  { %v6300_v59 = vpop.f32.mrf.mxu2  ;;  %v6307_v62 = vpop.f32.mrf.mxu3 }
  0xd2   :  { %8053 = vst [vmem:[#allocation9_spill] sm:$0xff] %v6300_v59  ;;  %v6309_v63 = vpop.f32.mrf.mxu0  ;;  %v6311_v0 = vpop.f32.mrf.mxu1  ;;  %v5060_v59 = vld [vmem:[%s7928_s4 + $0x1f4] sm:$0xf0] }
  0xd3   :  { %8054 = vst [vmem:[#allocation10_spill] sm:$0xff] %v6307_v62  ;;  %v4785_v62 = vld [vmem:[%s7928_s4 + $0x1e0] sm:$0xf] }
  0xd4   :  { %8055 = vst [vmem:[#allocation11_spill] sm:$0xff] %v6309_v63  ;;  %1114 = vmatmul.bf16.gmra.mxu0 %v6305_v60  ;;  %1143 = vmatmul.bf16.gmra.mxu1 %v6305_v60 }
  0xd5   :  { %8056 = vst [vmem:[#allocation12_spill] sm:$0xff] %v6311_v0 }
  0xd6   :  { %1172 = vmatmul.bf16.gmra.mxu2 %v6305_v60  ;;  %1201 = vmatmul.bf16.gmra.mxu3 %v6305_v60 }
  0xd9   :  { %v6349_v17 = vpop.f32.mrf.mxu2  ;;  %v6353_v22 = vpop.f32.mrf.mxu3 }
  0xda   :  { %8058 = vst [vmem:[#allocation14_spill] sm:$0xff] %v6349_v17  ;;  %v6355_v23 = vpop.f32.mrf.mxu0  ;;  %v6358_v24 = vpop.f32.mrf.mxu1 }
  0xdb   :  { %8059 = vst [vmem:[#allocation15_spill] sm:$0xff] %v6353_v22 }
  0xdc   :  { %8060 = vst [vmem:[#allocation16_spill] sm:$0xff] %v6355_v23 }
  0xdd   :  { %8061 = vst [vmem:[#allocation17_spill] sm:$0xff] %v6358_v24  ;;  %v5004_v24 = vld [vmem:[%s7928_s4 + $0x34] sm:$0xf0] }
  0xe1   :  { %v6403_v5 = vpop.f32.mrf.mxu2  ;;  %v6407_v8 = vpop.f32.mrf.mxu3 }
  0xe2   :  { %8062 = vst [vmem:[#allocation18_spill] sm:$0xff] %v6403_v5  ;;  %v6409_v10 = vpop.f32.mrf.mxu0  ;;  %v6411_v11 = vpop.f32.mrf.mxu1  ;;  %v4566_v5 = vld [vmem:[%s7928_s4 + $0x28] sm:$0xf] }
  0xe3   :  { %8063 = vst [vmem:[#allocation19_spill] sm:$0xff] %v6407_v8 }
  0xe4   :  { %8064 = vst [vmem:[#allocation20_spill] sm:$0xff] %v6409_v10  ;;  %1215 = vmatmul.bf16.vlgmr.msrb.gmra.mxu0 %v6073_v14  ;;  %1244 = vmatmul.bf16.vlgmr.msrb.gmra.mxu1 %v6073_v14  ;;  %v6473_v10 = vor.u32 %v5010_v36, %v4600_v39  ;;  %v4576_v39 = vld [vmem:[%s7928_s4 + $0x50] sm:$0xf0] }
  0xe5   :  { %8065 = vst [vmem:[#allocation21_spill] sm:$0xff] %v6411_v11 }
  0xe6   :  { %1273 = vmatmul.bf16.vlgmr.msrb.gmra.mxu2 %v6073_v14  ;;  %1302 = vmatmul.bf16.vlgmr.msrb.gmra.mxu3 %v6073_v14  ;;  %v4592_v14 = vld [vmem:[%s7928_s4 + $0x70] sm:$0xf0] }
  0xe7   :  { %v6458_v19 = vor.u32 %v5009_v53, %v4592_v14  ;;  %v4574_v14 = vld [vmem:[%s7928_s4 + $0x40] sm:$0xf]  ;;  %1746 = vmatpush.bf16.msra.mxu3 %v6473_v10 }
  0xe8   :  { %v6489_v36 = vor.u32 %v5007_v35, %v4574_v14  ;;  %v5006_v14 = vld [vmem:[%s7928_s4 + $0x4c] sm:$0xf]  ;;  %v4584_v35 = vld [vmem:[%s7928_s4 + $0x58] sm:$0xf0] }
  0xe9   :  { %v6456_v12 = vpop.f32.mrf.mxu2  ;;  %v6468_v41 = vpop.f32.mrf.mxu3  ;;  %1720 = vmatpush.bf16.msra.mxu1 %v6458_v19  ;;  %v6511_v8 = vor.u32 %v5006_v14, %v4584_v35  ;;  %v4560_v35 = vld [vmem:[%s7928_s4 + $0x30] sm:$0xf0] }
  0xea   :  { %8066 = vst [vmem:[#allocation22_spill] sm:$0xff] %v6456_v12  ;;  %v6470_v11 = vpop.f32.mrf.mxu0  ;;  %v6475_v53 = vpop.f32.mrf.mxu1  ;;  %1708 = vmatpush.bf16.msra.mxu0 %v6489_v36 }
  0xeb   :  { %8067 = vst [vmem:[#allocation23_spill] sm:$0xff] %v6468_v41  ;;  %v6500_v41 = vor.u32 %v5005_v2, %v4576_v39  ;;  %1747 = vmatpush.bf16.msra.mxu3 %v6511_v8  ;;  %v5001_v2 = vld [vmem:[%s7928_s4 + $0x24] sm:$0xf] }
  0xec   :  { %8068 = vst [vmem:[#allocation24_spill] sm:$0xff] %v6470_v11  ;;  %v5008_v11 = vld [vmem:[%s7928_s4 + $0x54] sm:$0xf0]  ;;  %v6542_v17 = vor.u32 %v5001_v2, %v4560_v35  ;;  %v4997_v2 = vld [vmem:[%s7928_s4 + $0x4] sm:$0xf] }
  0xed   :  { %8069 = vst [vmem:[#allocation25_spill] sm:$0xff] %v6475_v53  ;;  %v4582_v53 = vld [vmem:[%s7928_s4 + $0x48] sm:$0xf]  ;;  %1721 = vmatpush.bf16.msra.mxu1 %v6500_v41  ;;  %v4544_v35 = vld [vmem:[%s7928_s4 + $0x10] sm:$0xf0] }
  0xee   :  { %v6502_v12 = vor.u32 %v5008_v11, %v4582_v53  ;;  %v4558_v11 = vld [vmem:[%s7928_s4 + $0x20] sm:$0xf]  ;;  %v5003_v53 = vld [vmem:[%s7928_s4 + $0x2c] sm:$0xf0] }
  0xef   :  { %v6527_v14 = vor.u32 %v5003_v53, %v4558_v11  ;;  %v6544_v11 = vor.u32 %v5004_v24, %v4566_v5  ;;  %v5002_v53 = vld [vmem:[%s7928_s4 + $0x2c] sm:$0xf]  ;;  %v4542_v24 = vld [vmem:[%s7928_s4] sm:$0xf]  ;;  %v4999_v5 = vld [vmem:[%s7928_s4 + $0xc] sm:$0xf0] }
  0xf0   :  { %1734 = vmatpush.bf16.msra.mxu2 %v6502_v12 }
  0xf1   :  { %v6525_v39 = vpop.f32.mrf.mxu2  ;;  %v6538_v23 = vpop.f32.mrf.mxu3  ;;  %1709 = vmatpush.bf16.msra.mxu0 %v6527_v14  ;;  %1722 = vmatpush.bf16.msra.mxu1 %v6542_v17 }
  0xf2   :  { %8070 = vst [vmem:[#allocation26_spill] sm:$0xff] %v6525_v39  ;;  %v6540_v22 = vpop.f32.mrf.mxu0  ;;  %v4568_v39 = vld [vmem:[%s7928_s4 + $0x38] sm:$0xf0]  ;;  %v6552_v0 = vpop.f32.mrf.mxu1 }
  0xf3   :  { %8071 = vst [vmem:[#allocation27_spill] sm:$0xff] %v6538_v23  ;;  %v6555_v63 = vor.u32 %v5002_v53, %v4568_v39  ;;  %v6570_v39 = vor.u32 %v4999_v5, %v4542_v24  ;;  %v4550_v53 = vld [vmem:[%s7928_s4 + $0x8] sm:$0xf]  ;;  %v4998_v5 = vld [vmem:[%s7928_s4 + $0xc] sm:$0xf] }
  0xf4   :  { %8072 = vst [vmem:[#allocation28_spill] sm:$0xff] %v6540_v22  ;;  %1735 = vmatpush.bf16.msra.mxu2 %v6544_v11  ;;  %1220 = vmatmul.bf16.gmra.mxu0 %v6144_v47  ;;  %v6583_v22 = vor.u32 %v4997_v2, %v4544_v35  ;;  %v4552_v23 = vld [vmem:[%s7928_s4 + $0x18] sm:$0xf0]  ;;  %v5057_v35 = vld [vmem:[%s7928_s4 + $0x1e4] sm:$0xf] }
  0xf5   :  { %8073 = vst [vmem:[#allocation29_spill] sm:$0xff] %v6552_v0  ;;  %1748 = vmatpush.bf16.msra.mxu3 %v6555_v63  ;;  %v5000_v0 = vld [vmem:[%s7928_s4 + $0x14] sm:$0xf0]  ;;  %1249 = vmatmul.bf16.gmra.mxu1 %v6144_v47  ;;  %v6598_v2 = vor.u32 %v4998_v5, %v4552_v23  ;;  %v4793_v5 = vld [vmem:[%s7928_s4 + $0x1e8] sm:$0xf] }
  0xf6   :  { %1278 = vmatmul.bf16.gmra.mxu2 %v6144_v47  ;;  %8074 = vst [vmem:[#allocation30_spill] sm:$0xff] %v6583_v22  ;;  %v6585_v24 = vor.u32 %v5000_v0, %v4550_v53  ;;  %1307 = vmatmul.bf16.gmra.mxu3 %v6144_v47  ;;  %v5059_v0 = vld [vmem:[%s7928_s4 + $0x1ec] sm:$0xf0]  ;;  %v4787_v53 = vld [vmem:[%s7928_s4 + $0x1f0] sm:$0xf0] }
  0xf7   :  { %1710 = vmatpush.bf16.msra.mxu0 %v6570_v39  ;;  %8076 = vst [vmem:[#allocation32_spill] sm:$0xff] %v6598_v2  ;;  %1723 = vmatpush.bf16.msra.mxu1 %v6583_v22  ;;  %v6611_v47 = vor.u32 %v5059_v0, %v4785_v62  ;;  %v6613_v23 = vor.u32 %v5057_v35, %v4787_v53  ;;  %v4795_v0 = vld [vmem:[%s7928_s4 + $0x1f8] sm:$0xf0]  ;;  %v4769_v35 = vld [vmem:[%s7928_s4 + $0x1c0] sm:$0xf] }
  0xf8   :  { %8075 = vst [vmem:[#allocation31_spill] sm:$0xff] %v6585_v24  ;;  %1736 = vmatpush.bf16.msra.mxu2 %v6585_v24  ;;  %v6627_v62 = vor.u32 %v5060_v59, %v4793_v5  ;;  %v5055_v53 = vld [vmem:[%s7928_s4 + $0x1cc] sm:$0xf0]  ;;  %v6644_v59 = vor.u32 %v5058_v46, %v4795_v0  ;;  %v5056_v0 = vld [vmem:[%s7928_s4 + $0x1d4] sm:$0xf0] }
  0xf9   :  { %8077 = vst [vmem:[#allocation33_spill] sm:$0xff] %v6611_v47  ;;  %v6624_v45 = vpop.f32.mrf.mxu2  ;;  %1749 = vmatpush.bf16.msra.mxu3 %v6598_v2  ;;  %v6638_v44 = vpop.f32.mrf.mxu3  ;;  %v6646_v5 = vor.u32 %v5055_v53, %v4769_v35  ;;  %v4771_v2 = vld [vmem:[%s7928_s4 + $0x1d0] sm:$0xf0]  ;;  %v5054_v35 = vld [vmem:[%s7928_s4 + $0x1cc] sm:$0xf] }
  0xfa   :  { %8078 = vst [vmem:[#allocation34_spill] sm:$0xff] %v6613_v23  ;;  %v6640_v42 = vpop.f32.mrf.mxu0  ;;  %v4779_v53 = vld [vmem:[%s7928_s4 + $0x1d8] sm:$0xf0] }
  0xfb   :  { %8079 = vst [vmem:[#allocation35_spill] sm:$0xff] %v6624_v45  ;;  %1992 = vmatpush.bf16.msrb.mxu0 %v6611_v47  ;;  %2005 = vmatpush.bf16.msrb.mxu1 %v6613_v23  ;;  %v5053_v45 = vld [vmem:[%s7928_s4 + $0x1c4] sm:$0xf]  ;;  %v5050_v47 = vld [vmem:[%s7928_s4 + $0x1ac] sm:$0xf] }
  0xfc   :  { %8080 = vst [vmem:[#allocation36_spill] sm:$0xff] %v6627_v62  ;;  %2018 = vmatpush.bf16.msrb.mxu2 %v6627_v62  ;;  %v6660_v46 = vor.u32 %v5053_v45, %v4771_v2  ;;  %v4753_v45 = vld [vmem:[%s7928_s4 + $0x1a0] sm:$0xf]  ;;  %v5051_v2 = vld [vmem:[%s7928_s4 + $0x1ac] sm:$0xf0] }
  0xfd   :  { %8081 = vst [vmem:[#allocation37_spill] sm:$0xff] %v6638_v44  ;;  %v6657_v44 = vpop.f32.mrf.mxu1  ;;  %2031 = vmatpush.bf16.msrb.mxu3 %v6644_v59  ;;  %v5049_v62 = vld [vmem:[%s7928_s4 + $0x1a4] sm:$0xf]  ;;  %v4763_v24 = vld [vmem:[%s7928_s4 + $0x1b8] sm:$0xf0] }
  0xfe   :  { %8082 = vst [vmem:[#allocation38_spill] sm:$0xff] %v6640_v42  ;;  %v4777_v42 = vld [vmem:[%s7928_s4 + $0x1c8] sm:$0xf] }
  0xff   :  { %8083 = vst [vmem:[#allocation39_spill] sm:$0xff] %v6644_v59  ;;  %v6672_v23 = vor.u32 %v5056_v0, %v4777_v42  ;;  %v4755_v59 = vld [vmem:[%s7928_s4 + $0x1b0] sm:$0xf0]  ;;  %v4761_v42 = vld [vmem:[%s7928_s4 + $0x1a8] sm:$0xf]  ;;  %1993 = vmatpush.bf16.msrb.mxu0 %v6646_v5  ;;  %2006 = vmatpush.bf16.msrb.mxu1 %v6660_v46 }
 0x100   :  { %8084 = vst [vmem:[#allocation40_spill] sm:$0xff] %v6646_v5  ;;  %v5052_v0 = vld [vmem:[%s7928_s4 + $0x1b4] sm:$0xf0]  ;;  %v6710_v5 = vor.u32 %v5050_v47, %v4763_v24  ;;  %v4739_v24 = vld [vmem:[%s7928_s4 + $0x190] sm:$0xf0] }
 0x101   :  { %8085 = vst [vmem:[#allocation41_spill] sm:$0xff] %v6657_v44  ;;  %v6674_v44 = vor.u32 %v5054_v35, %v4779_v53  ;;  %v6696_v35 = vor.u32 %v5051_v2, %v4753_v45  ;;  %v6698_v53 = vor.u32 %v5049_v62, %v4755_v59  ;;  %2019 = vmatpush.bf16.msrb.mxu2 %v6672_v23  ;;  %v6712_v45 = vpop.f32.mrf.mxu2  ;;  %v4737_v62 = vld [vmem:[%s7928_s4 + $0x180] sm:$0xf]  ;;  %v5047_v59 = vld [vmem:[%s7928_s4 + $0x18c] sm:$0xf0] }
 0x102   :  { %8086 = vst [vmem:[#allocation42_spill] sm:$0xff] %v6660_v46  ;;  %v6707_v22 = vor.u32 %v5052_v0, %v4761_v42  ;;  %v5045_v2 = vld [vmem:[%s7928_s4 + $0x184] sm:$0xf]  ;;  %v6723_v42 = vpop.f32.mrf.mxu3  ;;  %v6725_v0 = vpop.f32.mrf.mxu0  ;;  %v4745_v47 = vld [vmem:[%s7928_s4 + $0x188] sm:$0xf] }
 0x103   :  { %8087 = vst [vmem:[#allocation43_spill] sm:$0xff] %v6672_v23  ;;  %2032 = vmatpush.bf16.msrb.mxu3 %v6674_v44  ;;  %1994 = vmatpush.bf16.msrb.mxu0 %v6696_v35 }
 0x104   :  { %8088 = vst [vmem:[#allocation44_spill] sm:$0xff] %v6674_v44  ;;  %2007 = vmatpush.bf16.msrb.mxu1 %v6698_v53  ;;  %1225 = vmatmul.bf16.gmra.mxu0 %v6221_v20 }
 0x105   :  { %8089 = vst [vmem:[#allocation45_spill] sm:$0xff] %v6696_v35  ;;  %v6738_v44 = vpop.f32.mrf.mxu1  ;;  %2020 = vmatpush.bf16.msrb.mxu2 %v6707_v22  ;;  %v6750_v35 = vor.u32 %v5045_v2, %v4739_v24  ;;  %1254 = vmatmul.bf16.gmra.mxu1 %v6221_v20  ;;  %v5044_v24 = vld [vmem:[%s7928_s4 + $0x174] sm:$0xf0] }
 0x106   :  { %8090 = vst [vmem:[#allocation46_spill] sm:$0xff] %v6698_v53  ;;  %v4747_v53 = vld [vmem:[%s7928_s4 + $0x198] sm:$0xf0]  ;;  %1283 = vmatmul.bf16.gmra.mxu2 %v6221_v20  ;;  %1312 = vmatmul.bf16.gmra.mxu3 %v6221_v20 }
 0x107   :  { %8091 = vst [vmem:[#allocation47_spill] sm:$0xff] %v6707_v22  ;;  %2033 = vmatpush.bf16.msrb.mxu3 %v6710_v5 }
 0x108   :  { %8092 = vst [vmem:[#allocation48_spill] sm:$0xff] %v6710_v5  ;;  %2008 = vmatpush.bf16.msrb.mxu1 %v6750_v35 }
 0x109   :  { %8093 = vst [vmem:[#allocation49_spill] sm:$0xff] %v6712_v45  ;;  %v5048_v45 = vld [vmem:[%s7928_s4 + $0x194] sm:$0xf0] }
 0x10a   :  { %8094 = vst [vmem:[#allocation50_spill] sm:$0xff] %v6723_v42  ;;  %v5046_v42 = vld [vmem:[%s7928_s4 + $0x18c] sm:$0xf]  ;;  %v6752_v23 = vor.u32 %v5048_v45, %v4745_v47  ;;  %v5041_v45 = vld [vmem:[%s7928_s4 + $0x164] sm:$0xf] }
 0x10b   :  { %8095 = vst [vmem:[#allocation51_spill] sm:$0xff] %v6725_v0  ;;  %v6741_v0 = vor.u32 %v5047_v59, %v4737_v62  ;;  %v4721_v62 = vld [vmem:[%s7928_s4 + $0x160] sm:$0xf]  ;;  %v5043_v59 = vld [vmem:[%s7928_s4 + $0x16c] sm:$0xf0] }
 0x10c   :  { %8096 = vst [vmem:[#allocation52_spill] sm:$0xff] %v6738_v44  ;;  %v6755_v44 = vor.u32 %v5046_v42, %v4747_v53  ;;  %v4723_v53 = vld [vmem:[%s7928_s4 + $0x170] sm:$0xf0]  ;;  %v6773_v2 = vor.u32 %v5043_v59, %v4721_v62  ;;  %v4729_v42 = vld [vmem:[%s7928_s4 + $0x168] sm:$0xf]  ;;  %2021 = vmatpush.bf16.msrb.mxu2 %v6752_v23 }
 0x10d   :  { %8097 = vst [vmem:[#allocation53_spill] sm:$0xff] %v6741_v0  ;;  %1995 = vmatpush.bf16.msrb.mxu0 %v6741_v0  ;;  %v5042_v47 = vld [vmem:[%s7928_s4 + $0x16c] sm:$0xf]  ;;  %v6786_v20 = vor.u32 %v5041_v45, %v4723_v53  ;;  %v6788_v62 = vor.u32 %v5044_v24, %v4729_v42  ;;  %v4731_v59 = vld [vmem:[%s7928_s4 + $0x178] sm:$0xf0]  ;;  %v6793_v0 = vpop.f32.mrf.mxu2  ;;  %v6807_v42 = vpop.f32.mrf.mxu3 }
 0x10e   :  { %8098 = vst [vmem:[#allocation54_spill] sm:$0xff] %v6750_v35  ;;  %2034 = vmatpush.bf16.msrb.mxu3 %v6755_v44  ;;  %v6796_v5 = vor.u32 %v5042_v47, %v4731_v59  ;;  %v4705_v35 = vld [vmem:[%s7928_s4 + $0x140] sm:$0xf]  ;;  %v5039_v45 = vld [vmem:[%s7928_s4 + $0x14c] sm:$0xf0]  ;;  %v6809_v24 = vpop.f32.mrf.mxu0 }
 0x10f   :  { %8099 = vst [vmem:[#allocation55_spill] sm:$0xff] %v6752_v23  ;;  %v5037_v53 = vld [vmem:[%s7928_s4 + $0x144] sm:$0xf]  ;;  %v4707_v47 = vld [vmem:[%s7928_s4 + $0x150] sm:$0xf0]  ;;  %2009 = vmatpush.bf16.msrb.mxu1 %v6786_v20 }
 0x110   :  { %8100 = vst [vmem:[#allocation56_spill] sm:$0xff] %v6755_v44  ;;  %v4713_v59 = vld [vmem:[%s7928_s4 + $0x148] sm:$0xf]  ;;  %v6820_v44 = vor.u32 %v5039_v45, %v4705_v35  ;;  %2022 = vmatpush.bf16.msrb.mxu2 %v6788_v62  ;;  %v6830_v23 = vor.u32 %v5037_v53, %v4707_v47  ;;  %v4715_v35 = vld [vmem:[%s7928_s4 + $0x158] sm:$0xf0] }
 0x111   :  { %8101 = vst [vmem:[#allocation57_spill] sm:$0xff] %v6773_v2  ;;  %1996 = vmatpush.bf16.msrb.mxu0 %v6773_v2  ;;  %v5033_v53 = vld [vmem:[%s7928_s4 + $0x124] sm:$0xf]  ;;  %v5036_v47 = vld [vmem:[%s7928_s4 + $0x134] sm:$0xf0] }
 0x112   :  { %8102 = vst [vmem:[#allocation58_spill] sm:$0xff] %v6786_v20  ;;  %2035 = vmatpush.bf16.msrb.mxu3 %v6796_v5 }
 0x113   :  { %8103 = vst [vmem:[#allocation59_spill] sm:$0xff] %v6788_v62  ;;  %v5035_v62 = vld [vmem:[%s7928_s4 + $0x12c] sm:$0xf0]  ;;  %2010 = vmatpush.bf16.msrb.mxu1 %v6830_v23 }
 0x114   :  { %8104 = vst [vmem:[#allocation60_spill] sm:$0xff] %v6793_v0  ;;  %v6817_v0 = vpop.f32.mrf.mxu1  ;;  %1230 = vmatmul.bf16.gmra.mxu0 %v6305_v60 }
 0x115   :  { %8105 = vst [vmem:[#allocation61_spill] sm:$0xff] %v6796_v5  ;;  %1997 = vmatpush.bf16.msrb.mxu0 %v6820_v44  ;;  %v4699_v5 = vld [vmem:[%s7928_s4 + $0x138] sm:$0xf0]  ;;  %v6873_v46 = vpop.f32.mrf.mxu2  ;;  %1259 = vmatmul.bf16.gmra.mxu1 %v6305_v60 }
 0x116   :  { %8106 = vst [vmem:[#allocation62_spill] sm:$0xff] %v6807_v42  ;;  %v5040_v42 = vld [vmem:[%s7928_s4 + $0x154] sm:$0xf0]  ;;  %1288 = vmatmul.bf16.gmra.mxu2 %v6305_v60  ;;  %1317 = vmatmul.bf16.gmra.mxu3 %v6305_v60  ;;  %v6939_v60 = vld [vmem:[%s7929_s5] sm:$0xff] }
 0x117   :  { %8107 = vst [vmem:[#allocation63_spill] sm:$0xff] %v6809_v24  ;;  %v5038_v24 = vld [vmem:[%s7928_s4 + $0x14c] sm:$0xf]  ;;  %v6832_v22 = vor.u32 %v5040_v42, %v4713_v59  ;;  %v4691_v42 = vld [vmem:[%s7928_s4 + $0x130] sm:$0xf0] }
 0x118   :  { %8108 = vst [vmem:[#allocation64_spill] sm:$0xff] %v6817_v0  ;;  %v6838_v45 = vor.u32 %v5038_v24, %v4715_v35  ;;  %v4689_v0 = vld [vmem:[%s7928_s4 + $0x120] sm:$0xf]  ;;  %v4697_v24 = vld [vmem:[%s7928_s4 + $0x128] sm:$0xf]  ;;  %v6869_v20 = vor.u32 %v5033_v53, %v4691_v42  ;;  %v6887_v42 = vpop.f32.mrf.mxu3 }
 0x119   :  { %8109 = vst [vmem:[#allocation65_spill] sm:$0xff] %v6820_v44  ;;  %v6859_v59 = vor.u32 %v5035_v62, %v4689_v0  ;;  %v5034_v35 = vld [vmem:[%s7928_s4 + $0x12c] sm:$0xf]  ;;  %2023 = vmatpush.bf16.msrb.mxu2 %v6832_v22  ;;  %v6871_v2 = vor.u32 %v5036_v47, %v4697_v24  ;;  %v4673_v62 = vld [vmem:[%s7928_s4 + $0x100] sm:$0xf]  ;;  %v6889_v24 = vpop.f32.mrf.mxu0 }
 0x11a   :  { %8110 = vst [vmem:[#allocation66_spill] sm:$0xff] %v6830_v23  ;;  %2036 = vmatpush.bf16.msrb.mxu3 %v6838_v45  ;;  %v6876_v0 = vor.u32 %v5034_v35, %v4699_v5  ;;  %v5031_v23 = vld [vmem:[%s7928_s4 + $0x10c] sm:$0xf0]  ;;  %v5029_v53 = vld [vmem:[%s7928_s4 + $0x104] sm:$0xf]  ;;  %2011 = vmatpush.bf16.msrb.mxu1 %v6869_v20 }
 0x11b   :  { %8111 = vst [vmem:[#allocation67_spill] sm:$0xff] %v6832_v22  ;;  %v4675_v5 = vld [vmem:[%s7928_s4 + $0x110] sm:$0xf0]  ;;  %v4681_v47 = vld [vmem:[%s7928_s4 + $0x108] sm:$0xf]  ;;  %1998 = vmatpush.bf16.msrb.mxu0 %v6859_v59 }
 0x11c   :  { %8112 = vst [vmem:[#allocation68_spill] sm:$0xff] %v6838_v45  ;;  %v5032_v35 = vld [vmem:[%s7928_s4 + $0x114] sm:$0xf0]  ;;  %v6903_v45 = vor.u32 %v5031_v23, %v4673_v62  ;;  %v6913_v22 = vor.u32 %v5029_v53, %v4675_v5 }
 0x11d   :  { %8113 = vst [vmem:[#allocation69_spill] sm:$0xff] %v6859_v59  ;;  %2024 = vmatpush.bf16.msrb.mxu2 %v6871_v2  ;;  %v6915_v44 = vor.u32 %v5032_v35, %v4681_v47  ;;  %v6927_v62 = vpop.f32.mrf.mxu2  ;;  %v6944_v47 = vperm.slane %v6939_v60, 0 }
 0x11e   :  { %8114 = vst [vmem:[#allocation70_spill] sm:$0xff] %v6869_v20  ;;  %2037 = vmatpush.bf16.msrb.mxu3 %v6876_v0  ;;  %2012 = vmatpush.bf16.msrb.mxu1 %v6913_v22 }
 0x11f   :  { %8115 = vst [vmem:[#allocation71_spill] sm:$0xff] %v6871_v2  ;;  %1999 = vmatpush.bf16.msrb.mxu0 %v6903_v45 }
 0x120   :  { %8116 = vst [vmem:[#allocation72_spill] sm:$0xff] %v6873_v46  ;;  %v6900_v46 = vpop.f32.mrf.mxu1  ;;  %v6930_v53 = vpop.f32.mrf.mxu3 }
 0x121   :  { %8117 = vst [vmem:[#allocation73_spill] sm:$0xff] %v6876_v0  ;;  %2025 = vmatpush.bf16.msrb.mxu2 %v6915_v44 }
 0x122   :  { %8118 = vst [vmem:[#allocation74_spill] sm:$0xff] %v6887_v42  ;;  %v4683_v42 = vld [vmem:[%s7928_s4 + $0x118] sm:$0xf0] }
 0x123   :  { %8119 = vst [vmem:[#allocation75_spill] sm:$0xff] %v6889_v24  ;;  %v5030_v24 = vld [vmem:[%s7928_s4 + $0x10c] sm:$0xf] }
 0x124   :  { %8120 = vst [vmem:[#allocation76_spill] sm:$0xff] %v6900_v46  ;;  %v6919_v23 = vor.u32 %v5030_v24, %v4683_v42  ;;  %v6932_v42 = vpop.f32.mrf.mxu0  ;;  %v6949_v46 = vperm.slane %v6939_v60, 1 }
 0x125   :  { %8121 = vst [vmem:[#allocation77_spill] sm:$0xff] %v6903_v45  ;;  %v6941_v5 = vpop.f32.mrf.mxu2 }
 0x126   :  { %8122 = vst [vmem:[#allocation78_spill] sm:$0xff] %v6913_v22  ;;  %2038 = vmatpush.bf16.msrb.mxu3 %v6919_v23 }
 0x127   :  { %8123 = vst [vmem:[#allocation79_spill] sm:$0xff] %v6915_v44  ;;  %v5318_v44 = vmov 0  }
 0x128   :  { %8124 = vst [vmem:[#allocation80_spill] sm:$0xff] %v6919_v23  ;;  %v6934_v24 = vpop.f32.mrf.mxu1  ;;  %v6946_v35 = vpop.f32.mrf.mxu3  ;;  %1711 = vmatmul.bf16.vlgmr.msra.gmra.mxu0 %v5318_v44  ;;  %1724 = vmatmul.bf16.vlgmr.msra.gmra.mxu1 %v5318_v44 }
 0x129   :  { %8125 = vst [vmem:[#allocation81_spill] sm:$0xff] %v6927_v62  ;;  %1737 = vmatmul.bf16.vlgmr.msra.gmra.mxu2 %v5318_v44  ;;  %1750 = vmatmul.bf16.vlgmr.msra.gmra.mxu3 %v5318_v44 }
 0x12a   :  { %8126 = vst [vmem:[#allocation82_spill] sm:$0xff] %v6930_v53  ;;  %2124 = vmatpush.bf16.msra.mxu0 %v6256_v40  ;;  %2137 = vmatpush.bf16.msra.mxu1 %v6263_v43 }
 0x12b   :  { %8127 = vst [vmem:[#allocation83_spill] sm:$0xff] %v6932_v42  ;;  %2150 = vmatpush.bf16.msra.mxu2 %v6328_v9  ;;  %2163 = vmatpush.bf16.msra.mxu3 %v6282_v54 }
 0x12c   :  { %8128 = vst [vmem:[#allocation84_spill] sm:$0xff] %v6934_v24  ;;  %v1100_v62 = vpop.f32.mrf.mxu0 }
 0x12d   :  { %8129 = vst [vmem:[#allocation85_spill] sm:$0xff] %v6941_v5  ;;  %v1101_v42 = vadd.f32 %v1100_v62, %v6075_v15  ;;  %v1158_v15 = vpop.f32.mrf.mxu2 }
 0x12e   :  { %8130 = vst [vmem:[#allocation86_spill] sm:$0xff] %v6946_v35  ;;  %v6957_v35 = vperm.slane %v6939_v60, 2  ;;  %v1159_v62 = vadd.f32 %v1158_v15, %v6107_v29  ;;  %2125 = vmatpush.bf16.msra.mxu0 %v6293_v57  ;;  %2138 = vmatpush.bf16.msra.mxu1 %v6295_v58 }
 0x12f   :  { %v1341_v23 = vadd.f32 %v6944_v47, %v1101_v42  ;;  %2151 = vmatpush.bf16.msra.mxu2 %v6381_v51  ;;  %2164 = vmatpush.bf16.msra.mxu3 %v6322_v7 }
 0x130   :  { %v1129_v53 = vpop.f32.mrf.mxu1 }
 0x131   :  { %v1130_v24 = vadd.f32 %v1129_v53, %v6077_v16  ;;  %v6964_v16 = vperm.slane %v6939_v60, 3  ;;  %v1187_v53 = vpop.f32.mrf.mxu3 }
 0x132   :  { %2126 = vmatpush.bf16.msra.mxu0 %v6344_v13  ;;  %2139 = vmatpush.bf16.msra.mxu1 %v6351_v18 }
 0x133   :  { %v1342_v5 = vadd.f32 %v6949_v46, %v1130_v24  ;;  %v1188_v24 = vadd.f32 %v1187_v53, %v6109_v31  ;;  %2152 = vmatpush.bf16.msra.mxu2 %v6405_v6  ;;  %2165 = vmatpush.bf16.msra.mxu3 %v6370_v37 }
 0x134   :  { %v1102_v42 = vpop.f32.mrf.mxu0 }
 0x135   :  { %v6959_v22 = vpack.c.bf16 %v1342_v5, %v1341_v23  ;;  %v1103_v40 = vadd.f32 %v1102_v42, %v6111_v32  ;;  %v1343_v5 = vadd.f32 %v6957_v35, %v1159_v62  ;;  %v1344_v54 = vadd.f32 %v6964_v16, %v1188_v24  ;;  %v1160_v15 = vpop.f32.mrf.mxu2 }
 0x136   :  { %v1161_v62 = vadd.f32 %v1160_v15, %v6139_v3  ;;  %2127 = vmatpush.bf16.msra.mxu0 %v6383_v52  ;;  %2140 = vmatpush.bf16.msra.mxu1 %v6392_v56 }
 0x137   :  { %v1349_v29 = vadd.f32 %v6944_v47, %v1103_v40  ;;  %v6979_v32 = vpack.c.bf16 %v1344_v54, %v1343_v5  ;;  %2153 = vmatpush.bf16.msra.mxu2 %v6429_v38  ;;  %2166 = vmatpush.bf16.msra.mxu3 %v6420_v28 }
 0x138   :  { %v1131_v23 = vpop.f32.mrf.mxu1  ;;  %v1351_v24 = vadd.f32 %v6957_v35, %v1161_v62  ;;  %2000 = vmatmul.bf16.vlgmr.msrb.gmra.mxu0 %v5318_v44  ;;  %2013 = vmatmul.bf16.vlgmr.msrb.gmra.mxu1 %v5318_v44 }
 0x139   :  { %v1132_v9 = vadd.f32 %v1131_v23, %v6113_v33  ;;  %v1189_v40 = vpop.f32.mrf.mxu3  ;;  %2026 = vmatmul.bf16.vlgmr.msrb.gmra.mxu2 %v5318_v44  ;;  %2039 = vmatmul.bf16.vlgmr.msrb.gmra.mxu3 %v5318_v44 }
 0x13a   :  { %v1190_v42 = vadd.f32 %v1189_v40, %v6146_v48  ;;  %2128 = vmatpush.bf16.msra.mxu0 %v6445_v55  ;;  %2141 = vmatpush.bf16.msra.mxu1 %v6458_v19 }
 0x13b   :  { %v1350_v31 = vadd.f32 %v6949_v46, %v1132_v9  ;;  %2154 = vmatpush.bf16.msra.mxu2 %v6460_v30  ;;  %2167 = vmatpush.bf16.msra.mxu3 %v6473_v10 }
 0x13c   :  { %v1105_v53 = vpop.f32.mrf.mxu0  ;;  %v1352_v5 = vadd.f32 %v6964_v16, %v1190_v42 }
 0x13d   :  { %v6984_v33 = vpack.c.bf16 %v1350_v31, %v1349_v29  ;;  %v1106_v54 = vadd.f32 %v1105_v53, %v6148_v49  ;;  %v1163_v29 = vpop.f32.mrf.mxu2 }
 0x13e   :  { %v7000_v49 = vpack.c.bf16 %v1352_v5, %v1351_v24  ;;  %v1164_v31 = vadd.f32 %v1163_v29, %v6180_v61  ;;  %2129 = vmatpush.bf16.msra.mxu0 %v6489_v36  ;;  %2142 = vmatpush.bf16.msra.mxu1 %v6500_v41 }
 0x13f   :  { %8131 = vst [vmem:[#allocation87_spill] sm:$0xff] %v6984_v33  ;;  %v1357_v3 = vadd.f32 %v6944_v47, %v1106_v54  ;;  %2155 = vmatpush.bf16.msra.mxu2 %v6502_v12  ;;  %2168 = vmatpush.bf16.msra.mxu3 %v6511_v8 }
 0x140   :  { %v1134_v9 = vpop.f32.mrf.mxu1  ;;  %8132 = vst [vmem:[#allocation88_spill] sm:$0xff] %v7000_v49  ;;  %v1359_v42 = vadd.f32 %v6957_v35, %v1164_v31 }
 0x141   :  { %v1135_v23 = vadd.f32 %v1134_v9, %v6150_v50  ;;  %v1192_v15 = vpop.f32.mrf.mxu3 }
 0x142   :  { %v1193_v40 = vadd.f32 %v1192_v15, %v6188_v26  ;;  %2130 = vmatpush.bf16.msra.mxu0 %v6527_v14  ;;  %2143 = vmatpush.bf16.msra.mxu1 %v6542_v17 }
 0x143   :  { %v1358_v48 = vadd.f32 %v6949_v46, %v1135_v23  ;;  %2156 = vmatpush.bf16.msra.mxu2 %v6544_v11  ;;  %2169 = vmatpush.bf16.msra.mxu3 %v6555_v63 }
 0x144   :  { %v1107_v62 = vpop.f32.mrf.mxu0  ;;  %v1360_v9 = vadd.f32 %v6964_v16, %v1193_v40  ;;  %v8136_v40 = vld [vmem:[#allocation30_spill] sm:$0xff] }
 0x145   :  { %v7004_v50 = vpack.c.bf16 %v1358_v48, %v1357_v3  ;;  %v1108_v44 = vadd.f32 %v1107_v62, %v6190_v1  ;;  %v1165_v24 = vpop.f32.mrf.mxu2 }
 0x146   :  { %v7020_v1 = vpack.c.bf16 %v1360_v9, %v1359_v42  ;;  %v1166_v23 = vadd.f32 %v1165_v24, %v6223_v21  ;;  %2131 = vmatpush.bf16.msra.mxu0 %v6570_v39  ;;  %2144 = vmatpush.bf16.msra.mxu1 %v8136_v40  ;;  %v8138_v42 = vld [vmem:[#allocation32_spill] sm:$0xff] }
 0x147   :  { %8133 = vst [vmem:[#allocation89_spill] sm:$0xff] %v7004_v50  ;;  %v1365_v61 = vadd.f32 %v6944_v47, %v1108_v44  ;;  %v8137_v44 = vld [vmem:[#allocation31_spill] sm:$0xff]  ;;  %2170 = vmatpush.bf16.msra.mxu3 %v8138_v42  ;;  %v8141_v9 = vld [vmem:[#allocation36_spill] sm:$0xff]  ;;  %v8150_v50 = vld [vmem:[#allocation6_spill] sm:$0xff] }
 0x148   :  { %v1136_v53 = vpop.f32.mrf.mxu1  ;;  %8134 = vst [vmem:[#allocation90_spill] sm:$0xff] %v7020_v1  ;;  %v1367_v15 = vadd.f32 %v6957_v35, %v1166_v23  ;;  %2157 = vmatpush.bf16.msra.mxu2 %v8137_v44  ;;  %v8145_v23 = vld [vmem:[#allocation40_spill] sm:$0xff] }
 0x149   :  { %v1137_v54 = vadd.f32 %v1136_v53, %v6192_v4  ;;  %v1194_v5 = vpop.f32.mrf.mxu3 }
 0x14a   :  { %v1195_v48 = vadd.f32 %v1194_v5, %v6234_v25  ;;  %v8139_v25 = vld [vmem:[#allocation33_spill] sm:$0xff]  ;;  %v8146_v5 = vld [vmem:[#allocation4_spill] sm:$0xff] }
 0x14b   :  { %v1366_v26 = vadd.f32 %v6949_v46, %v1137_v54  ;;  %2255 = vmatpush.bf16.msrb.mxu0 %v8139_v25  ;;  %v8140_v54 = vld [vmem:[#allocation34_spill] sm:$0xff] }
 0x14c   :  { %v1110_v3 = vpop.f32.mrf.mxu0  ;;  %v1368_v53 = vadd.f32 %v6964_v16, %v1195_v48  ;;  %2268 = vmatpush.bf16.msrb.mxu1 %v8140_v54  ;;  %2281 = vmatpush.bf16.msrb.mxu2 %v8141_v9 }
 0x14d   :  { %v7024_v4 = vpack.c.bf16 %v1366_v26, %v1365_v61  ;;  %v1111_v29 = vadd.f32 %v1110_v3, %v6236_v27  ;;  %v8142_v61 = vld [vmem:[#allocation39_spill] sm:$0xff]  ;;  %v1168_v24 = vpop.f32.mrf.mxu2 }
 0x14e   :  { %2294 = vmatpush.bf16.msrb.mxu3 %v8142_v61  ;;  %v1169_v3 = vadd.f32 %v1168_v24, %v8146_v5  ;;  %v8153_v5 = vld [vmem:[#allocation45_spill] sm:$0xff] }
 0x14f   :  { %8135 = vst [vmem:[#allocation91_spill] sm:$0xff] %v7024_v4  ;;  %v1373_v21 = vadd.f32 %v6944_v47, %v1111_v29  ;;  %2256 = vmatpush.bf16.msrb.mxu0 %v8145_v23  ;;  %v8149_v4 = vld [vmem:[#allocation5_spill] sm:$0xff] }
 0x150   :  { %v1139_v31 = vpop.f32.mrf.mxu1 }
 0x151   :  { %v1140_v62 = vadd.f32 %v1139_v31, %v6241_v34  ;;  %v7043_v34 = vpack.c.bf16 %v1368_v53, %v1367_v15  ;;  %v1197_v48 = vpop.f32.mrf.mxu3  ;;  %v8147_v31 = vld [vmem:[#allocation42_spill] sm:$0xff]  ;;  %v8151_v15 = vld [vmem:[#allocation44_spill] sm:$0xff]  ;;  %v1375_v53 = vadd.f32 %v6957_v35, %v1169_v3 }
 0x152   :  { %2269 = vmatpush.bf16.msrb.mxu1 %v8147_v31  ;;  %v1198_v1 = vadd.f32 %v1197_v48, %v8149_v4  ;;  %2295 = vmatpush.bf16.msrb.mxu3 %v8151_v15  ;;  %v8155_v4 = vld [vmem:[#allocation47_spill] sm:$0xff] }
 0x153   :  { %v1374_v27 = vadd.f32 %v6949_v46, %v1140_v62  ;;  %8143 = vst [vmem:[#allocation30_spill] sm:$0xff] %v7043_v34  ;;  %v8148_v62 = vld [vmem:[#allocation43_spill] sm:$0xff]  ;;  %2257 = vmatpush.bf16.msrb.mxu0 %v8153_v5  ;;  %v8161_v5 = vld [vmem:[#allocation54_spill] sm:$0xff] }
 0x154   :  { %v1112_v29 = vpop.f32.mrf.mxu0  ;;  %2282 = vmatpush.bf16.msrb.mxu2 %v8148_v62  ;;  %v8154_v62 = vld [vmem:[#allocation46_spill] sm:$0xff] }
 0x155   :  { %v7045_v26 = vpack.c.bf16 %v1374_v27, %v1373_v21  ;;  %v1113_v49 = vadd.f32 %v1112_v29, %v8150_v50  ;;  %v8152_v21 = vld [vmem:[#allocation7_spill] sm:$0xff]  ;;  %v8156_v50 = vld [vmem:[#allocation48_spill] sm:$0xff]  ;;  %v1170_v3 = vpop.f32.mrf.mxu2 }
 0x156   :  { %2270 = vmatpush.bf16.msrb.mxu1 %v8154_v62  ;;  %2296 = vmatpush.bf16.msrb.mxu3 %v8156_v50  ;;  %v8163_v62 = vld [vmem:[#allocation10_spill] sm:$0xff] }
 0x157   :  { %8144 = vst [vmem:[#allocation92_spill] sm:$0xff] %v7045_v26  ;;  %v1376_v26 = vadd.f32 %v6964_v16, %v1198_v1  ;;  %v1381_v24 = vadd.f32 %v6944_v47, %v1113_v49  ;;  %v8160_v1 = vld [vmem:[#allocation9_spill] sm:$0xff] }
 0x158   :  { %v1141_v33 = vpop.f32.mrf.mxu1  ;;  %2283 = vmatpush.bf16.msrb.mxu2 %v8155_v4  ;;  %v8164_v4 = vld [vmem:[#allocation11_spill] sm:$0xff] }
 0x159   :  { %v1142_v27 = vadd.f32 %v1141_v33, %v8152_v21  ;;  %v7063_v48 = vpack.c.bf16 %v1376_v26, %v1375_v53  ;;  %v8159_v33 = vld [vmem:[#allocation53_spill] sm:$0xff]  ;;  %v1171_v21 = vadd.f32 %v1170_v3, %v8160_v1  ;;  %v1199_v49 = vpop.f32.mrf.mxu3  ;;  %v8165_v26 = vld [vmem:[#allocation56_spill] sm:$0xff] }
 0x15a   :  { %2258 = vmatpush.bf16.msrb.mxu0 %v8159_v33  ;;  %2271 = vmatpush.bf16.msrb.mxu1 %v8161_v5  ;;  %v1200_v31 = vadd.f32 %v1199_v49, %v8163_v62  ;;  %v8166_v53 = vld [vmem:[#allocation12_spill] sm:$0xff]  ;;  %v8167_v1 = vld [vmem:[#allocation57_spill] sm:$0xff]  ;;  %v8169_v62 = vld [vmem:[#allocation59_spill] sm:$0xff] }
 0x15b   :  { %v1382_v34 = vadd.f32 %v6949_v46, %v1142_v27  ;;  %8157 = vst [vmem:[#allocation4_spill] sm:$0xff] %v7063_v48  ;;  %v8162_v27 = vld [vmem:[#allocation55_spill] sm:$0xff]  ;;  %2297 = vmatpush.bf16.msrb.mxu3 %v8165_v26 }
 0x15c   :  { %v1115_v15 = vpop.f32.mrf.mxu0  ;;  %2284 = vmatpush.bf16.msrb.mxu2 %v8162_v27  ;;  %v8168_v27 = vld [vmem:[#allocation58_spill] sm:$0xff] }
 0x15d   :  { %v7065_v29 = vpack.c.bf16 %v1382_v34, %v1381_v24  ;;  %v1116_v23 = vadd.f32 %v1115_v15, %v8164_v4  ;;  %v1383_v34 = vadd.f32 %v6957_v35, %v1171_v21  ;;  %v8170_v15 = vld [vmem:[#allocation61_spill] sm:$0xff]  ;;  %v1173_v21 = vpop.f32.mrf.mxu2 }
 0x15e   :  { %2259 = vmatpush.bf16.msrb.mxu0 %v8167_v1  ;;  %2272 = vmatpush.bf16.msrb.mxu1 %v8168_v27  ;;  %v8175_v1 = vld [vmem:[#allocation66_spill] sm:$0xff]  ;;  %v8177_v27 = vld [vmem:[#allocation15_spill] sm:$0xff] }
 0x15f   :  { %8158 = vst [vmem:[#allocation5_spill] sm:$0xff] %v7065_v29  ;;  %v1384_v29 = vadd.f32 %v6964_v16, %v1200_v31  ;;  %v1389_v3 = vadd.f32 %v6944_v47, %v1116_v23  ;;  %2298 = vmatpush.bf16.msrb.mxu3 %v8170_v15  ;;  %v8174_v31 = vld [vmem:[#allocation14_spill] sm:$0xff] }
 0x160   :  { %v1144_v50 = vpop.f32.mrf.mxu1  ;;  %2285 = vmatpush.bf16.msrb.mxu2 %v8169_v62  ;;  %v8178_v62 = vld [vmem:[#allocation16_spill] sm:$0xff] }
 0x161   :  { %v1145_v24 = vadd.f32 %v1144_v50, %v8166_v53  ;;  %v7083_v4 = vpack.c.bf16 %v1384_v29, %v1383_v34  ;;  %v8173_v50 = vld [vmem:[#allocation65_spill] sm:$0xff]  ;;  %v1174_v53 = vadd.f32 %v1173_v21, %v8174_v31  ;;  %v1202_v23 = vpop.f32.mrf.mxu3  ;;  %v8179_v29 = vld [vmem:[#allocation68_spill] sm:$0xff] }
 0x162   :  { %2260 = vmatpush.bf16.msrb.mxu0 %v8173_v50  ;;  %2273 = vmatpush.bf16.msrb.mxu1 %v8175_v1  ;;  %v1203_v5 = vadd.f32 %v1202_v23, %v8177_v27  ;;  %v8180_v34 = vld [vmem:[#allocation17_spill] sm:$0xff]  ;;  %v8184_v23 = vld [vmem:[#allocation78_spill] sm:$0xff] }
 0x163   :  { %v1390_v48 = vadd.f32 %v6949_v46, %v1145_v24  ;;  %8171 = vst [vmem:[#allocation6_spill] sm:$0xff] %v7083_v4  ;;  %v8176_v24 = vld [vmem:[#allocation67_spill] sm:$0xff]  ;;  %2299 = vmatpush.bf16.msrb.mxu3 %v8179_v29  ;;  %v8189_v4 = vld [vmem:[#allocation21_spill] sm:$0xff] }
 0x164   :  { %v1117_v26 = vpop.f32.mrf.mxu0  ;;  %2286 = vmatpush.bf16.msrb.mxu2 %v8176_v24 }
 0x165   :  { %v7085_v49 = vpack.c.bf16 %v1390_v48, %v1389_v3  ;;  %v1118_v33 = vadd.f32 %v1117_v26, %v8178_v62  ;;  %v1391_v48 = vadd.f32 %v6957_v35, %v1174_v53  ;;  %v1175_v62 = vpop.f32.mrf.mxu2  ;;  %v7113_v53 = vperm.slane %v6939_v60, 5 }
 0x166   :  { %2261 = vmatpush.bf16.msrb.mxu0 %v6859_v59  ;;  %2274 = vmatpush.bf16.msrb.mxu1 %v6869_v20 }
 0x167   :  { %8172 = vst [vmem:[#allocation7_spill] sm:$0xff] %v7085_v49  ;;  %v1392_v49 = vadd.f32 %v6964_v16, %v1203_v5  ;;  %v1397_v21 = vadd.f32 %v6944_v47, %v1118_v33  ;;  %2300 = vmatpush.bf16.msrb.mxu3 %v6876_v0  ;;  %v8183_v47 = vld [vmem:[#allocation18_spill] sm:$0xff] }
 0x168   :  { %v1146_v15 = vpop.f32.mrf.mxu1  ;;  %2287 = vmatpush.bf16.msrb.mxu2 %v6871_v2  ;;  %v1176_v5 = vadd.f32 %v1175_v62, %v8183_v47 }
 0x169   :  { %v1147_v3 = vadd.f32 %v1146_v15, %v8180_v34  ;;  %v7103_v27 = vpack.c.bf16 %v1392_v49, %v1391_v48  ;;  %v7108_v15 = vperm.slane %v6939_v60, 4  ;;  %v1204_v33 = vpop.f32.mrf.mxu3  ;;  %v8185_v34 = vld [vmem:[#allocation79_spill] sm:$0xff] }
 0x16a   :  { %2262 = vmatpush.bf16.msrb.mxu0 %v6903_v45  ;;  %2275 = vmatpush.bf16.msrb.mxu1 %v8184_v23  ;;  %v8186_v49 = vld [vmem:[#allocation19_spill] sm:$0xff] }
 0x16b   :  { %v1398_v31 = vadd.f32 %v6949_v46, %v1147_v3  ;;  %8181 = vst [vmem:[#allocation9_spill] sm:$0xff] %v7103_v27  ;;  %v1205_v48 = vadd.f32 %v1204_v33, %v8186_v49  ;;  %v8187_v3 = vld [vmem:[#allocation20_spill] sm:$0xff]  ;;  %v1399_v27 = vadd.f32 %v6957_v35, %v1176_v5  ;;  %v7133_v49 = vperm.slane %v6939_v60, 7  ;;  %v8192_v35 = vld [vmem:[#allocation22_spill] sm:$0xff] }
 0x16c   :  { %v1216_v46 = vpop.f32.mrf.mxu0  ;;  %2288 = vmatpush.bf16.msrb.mxu2 %v8185_v34  ;;  %v7128_v34 = vperm.slane %v6939_v60, 6 }
 0x16d   :  { %v7105_v26 = vpack.c.bf16 %v1398_v31, %v1397_v21  ;;  %v1217_v21 = vadd.f32 %v1216_v46, %v8187_v3  ;;  %v1400_v47 = vadd.f32 %v6964_v16, %v1205_v48  ;;  %v1274_v46 = vpop.f32.mrf.mxu2  ;;  %v8193_v16 = vld [vmem:[#allocation23_spill] sm:$0xff] }
 0x16e   :  { %v1275_v5 = vadd.f32 %v1274_v46, %v8192_v35 }
 0x16f   :  { %8182 = vst [vmem:[#allocation10_spill] sm:$0xff] %v7105_v26  ;;  %v8188_v26 = vld [vmem:[#allocation80_spill] sm:$0xff]  ;;  %v1345_v45 = vadd.f32 %v7108_v15, %v1217_v21  ;;  %v7125_v23 = vpack.c.bf16 %v1400_v47, %v1399_v27  ;;  %v8195_v47 = vld [vmem:[#allocation25_spill] sm:$0xff] }
 0x170   :  { %v1245_v31 = vpop.f32.mrf.mxu1  ;;  %2301 = vmatpush.bf16.msrb.mxu3 %v8188_v26  ;;  %v8194_v21 = vld [vmem:[#allocation24_spill] sm:$0xff]  ;;  %v1347_v27 = vadd.f32 %v7128_v34, %v1275_v5  ;;  %v8198_v26 = vld [vmem:[#allocation26_spill] sm:$0xff] }
 0x171   :  { %v1246_v62 = vadd.f32 %v1245_v31, %v8189_v4  ;;  %8190 = vst [vmem:[#allocation11_spill] sm:$0xff] %v7125_v23  ;;  %v1303_v4 = vpop.f32.mrf.mxu3  ;;  %v8200_v5 = vld [vmem:[#allocation28_spill] sm:$0xff] }
 0x172   :  { %v1304_v48 = vadd.f32 %v1303_v4, %v8193_v16 }
 0x173   :  { %v1346_v0 = vadd.f32 %v7113_v53, %v1246_v62 }
 0x174   :  { %v1218_v3 = vpop.f32.mrf.mxu0 }
 0x175   :  { %v7130_v33 = vpack.c.bf16 %v1346_v0, %v1345_v45  ;;  %v1219_v31 = vadd.f32 %v1218_v3, %v8194_v21  ;;  %v1348_v45 = vadd.f32 %v7133_v49, %v1304_v48  ;;  %v1276_v35 = vpop.f32.mrf.mxu2  ;;  %v8199_v21 = vld [vmem:[#allocation27_spill] sm:$0xff] }
 0x176   :  { %v1277_v4 = vadd.f32 %v1276_v35, %v8198_v26  ;;  %v8204_v35 = vld [vmem:[#allocation35_spill] sm:$0xff] }
 0x177   :  { %8191 = vst [vmem:[#allocation12_spill] sm:$0xff] %v7130_v33  ;;  %v1353_v0 = vadd.f32 %v7108_v15, %v1219_v31  ;;  %v7143_v33 = vpack.c.bf16 %v1348_v45, %v1347_v27 }
 0x178   :  { %v1247_v62 = vpop.f32.mrf.mxu1  ;;  %v1355_v48 = vadd.f32 %v7128_v34, %v1277_v4  ;;  %v8206_v4 = vld [vmem:[#allocation38_spill] sm:$0xff] }
 0x179   :  { %v1248_v23 = vadd.f32 %v1247_v62, %v8195_v47  ;;  %8196 = vst [vmem:[#allocation14_spill] sm:$0xff] %v7143_v33  ;;  %v1305_v16 = vpop.f32.mrf.mxu3  ;;  %v8201_v47 = vld [vmem:[#allocation29_spill] sm:$0xff] }
 0x17a   :  { %v1306_v2 = vadd.f32 %v1305_v16, %v8199_v21 }
 0x17b   :  { %v1354_v60 = vadd.f32 %v7113_v53, %v1248_v23 }
 0x17c   :  { %v1221_v3 = vpop.f32.mrf.mxu0  ;;  %v1356_v23 = vadd.f32 %v7133_v49, %v1306_v2 }
 0x17d   :  { %v7145_v46 = vpack.c.bf16 %v1354_v60, %v1353_v0  ;;  %v1222_v20 = vadd.f32 %v1221_v3, %v8200_v5  ;;  %v1279_v60 = vpop.f32.mrf.mxu2  ;;  %v8205_v5 = vld [vmem:[#allocation37_spill] sm:$0xff] }
 0x17e   :  { %v7155_v0 = vpack.c.bf16 %v1356_v23, %v1355_v48  ;;  %v1280_v16 = vadd.f32 %v1279_v60, %v8204_v35  ;;  %v8210_v35 = vld [vmem:[#allocation49_spill] sm:$0xff] }
 0x17f   :  { %8197 = vst [vmem:[#allocation15_spill] sm:$0xff] %v7145_v46  ;;  %v1361_v27 = vadd.f32 %v7108_v15, %v1222_v20 }
 0x180   :  { %v1250_v62 = vpop.f32.mrf.mxu1  ;;  %8202 = vst [vmem:[#allocation16_spill] sm:$0xff] %v7155_v0  ;;  %v1363_v2 = vadd.f32 %v7128_v34, %v1280_v16  ;;  %v8212_v16 = vld [vmem:[#allocation51_spill] sm:$0xff] }
 0x181   :  { %v1251_v31 = vadd.f32 %v1250_v62, %v8201_v47  ;;  %v1308_v21 = vpop.f32.mrf.mxu3  ;;  %v8207_v47 = vld [vmem:[#allocation41_spill] sm:$0xff] }
 0x182   :  { %v1309_v33 = vadd.f32 %v1308_v21, %v8205_v5 }
 0x183   :  { %v1362_v45 = vadd.f32 %v7113_v53, %v1251_v31 }
 0x184   :  { %v1223_v3 = vpop.f32.mrf.mxu0  ;;  %v1364_v31 = vadd.f32 %v7133_v49, %v1309_v33 }
 0x185   :  { %v7157_v26 = vpack.c.bf16 %v1362_v45, %v1361_v27  ;;  %v1224_v46 = vadd.f32 %v1223_v3, %v8206_v4  ;;  %v1281_v60 = vpop.f32.mrf.mxu2  ;;  %v8211_v4 = vld [vmem:[#allocation50_spill] sm:$0xff] }
 0x186   :  { %v7167_v27 = vpack.c.bf16 %v1364_v31, %v1363_v2  ;;  %v1282_v21 = vadd.f32 %v1281_v60, %v8210_v35  ;;  %v8216_v35 = vld [vmem:[#allocation60_spill] sm:$0xff] }
 0x187   :  { %8203 = vst [vmem:[#allocation17_spill] sm:$0xff] %v7157_v26  ;;  %v1369_v48 = vadd.f32 %v7108_v15, %v1224_v46 }
 0x188   :  { %v1252_v62 = vpop.f32.mrf.mxu1  ;;  %8208 = vst [vmem:[#allocation18_spill] sm:$0xff] %v7167_v27  ;;  %v1371_v33 = vadd.f32 %v7128_v34, %v1282_v21  ;;  %v8218_v21 = vld [vmem:[#allocation63_spill] sm:$0xff] }
 0x189   :  { %v1253_v20 = vadd.f32 %v1252_v62, %v8207_v47  ;;  %v1310_v5 = vpop.f32.mrf.mxu3  ;;  %v8213_v47 = vld [vmem:[#allocation52_spill] sm:$0xff] }
 0x18a   :  { %v1311_v0 = vadd.f32 %v1310_v5, %v8211_v4 }
 0x18b   :  { %v1370_v23 = vadd.f32 %v7113_v53, %v1253_v20 }
 0x18c   :  { %v1226_v3 = vpop.f32.mrf.mxu0  ;;  %v1372_v20 = vadd.f32 %v7133_v49, %v1311_v0 }
 0x18d   :  { %v7169_v45 = vpack.c.bf16 %v1370_v23, %v1369_v48  ;;  %v1227_v26 = vadd.f32 %v1226_v3, %v8212_v16  ;;  %v1284_v60 = vpop.f32.mrf.mxu2  ;;  %v8217_v16 = vld [vmem:[#allocation62_spill] sm:$0xff] }
 0x18e   :  { %v7179_v48 = vpack.c.bf16 %v1372_v20, %v1371_v33  ;;  %v1285_v5 = vadd.f32 %v1284_v60, %v8216_v35  ;;  %v8222_v35 = vld [vmem:[#allocation72_spill] sm:$0xff] }
 0x18f   :  { %8209 = vst [vmem:[#allocation19_spill] sm:$0xff] %v7169_v45  ;;  %v1377_v2 = vadd.f32 %v7108_v15, %v1227_v26 }
 0x190   :  { %v1255_v62 = vpop.f32.mrf.mxu1  ;;  %8214 = vst [vmem:[#allocation20_spill] sm:$0xff] %v7179_v48  ;;  %v1379_v0 = vadd.f32 %v7128_v34, %v1285_v5  ;;  %v8224_v5 = vld [vmem:[#allocation75_spill] sm:$0xff] }
 0x191   :  { %v1256_v46 = vadd.f32 %v1255_v62, %v8213_v47  ;;  %v1313_v4 = vpop.f32.mrf.mxu3  ;;  %v8219_v47 = vld [vmem:[#allocation64_spill] sm:$0xff] }
 0x192   :  { %v1314_v27 = vadd.f32 %v1313_v4, %v8217_v16 }
 0x193   :  { %v1378_v31 = vadd.f32 %v7113_v53, %v1256_v46 }
 0x194   :  { %v1228_v3 = vpop.f32.mrf.mxu0  ;;  %v1380_v46 = vadd.f32 %v7133_v49, %v1314_v27 }
 0x195   :  { %v7181_v23 = vpack.c.bf16 %v1378_v31, %v1377_v2  ;;  %v1229_v45 = vadd.f32 %v1228_v3, %v8218_v21  ;;  %v1286_v60 = vpop.f32.mrf.mxu2  ;;  %v8223_v21 = vld [vmem:[#allocation74_spill] sm:$0xff] }
 0x196   :  { %v7191_v2 = vpack.c.bf16 %v1380_v46, %v1379_v0  ;;  %v1287_v4 = vadd.f32 %v1286_v60, %v8222_v35  ;;  %v8228_v35 = vld [vmem:[#allocation81_spill] sm:$0xff] }
 0x197   :  { %8215 = vst [vmem:[#allocation21_spill] sm:$0xff] %v7181_v23  ;;  %v1385_v33 = vadd.f32 %v7108_v15, %v1229_v45 }
 0x198   :  { %v1257_v62 = vpop.f32.mrf.mxu1  ;;  %8220 = vst [vmem:[#allocation22_spill] sm:$0xff] %v7191_v2  ;;  %v1387_v27 = vadd.f32 %v7128_v34, %v1287_v4 }
 0x199   :  { %v1258_v26 = vadd.f32 %v1257_v62, %v8219_v47  ;;  %v1315_v16 = vpop.f32.mrf.mxu3  ;;  %v8225_v47 = vld [vmem:[#allocation76_spill] sm:$0xff] }
 0x19a   :  { %v1316_v48 = vadd.f32 %v1315_v16, %v8223_v21 }
 0x19b   :  { %v1386_v20 = vadd.f32 %v7113_v53, %v1258_v26 }
 0x19c   :  { %v1231_v3 = vpop.f32.mrf.mxu0  ;;  %v1388_v26 = vadd.f32 %v7133_v49, %v1316_v48 }
 0x19d   :  { %v7193_v31 = vpack.c.bf16 %v1386_v20, %v1385_v33  ;;  %v1232_v23 = vadd.f32 %v1231_v3, %v8224_v5  ;;  %v1289_v60 = vpop.f32.mrf.mxu2  ;;  %v8229_v5 = vld [vmem:[#allocation82_spill] sm:$0xff] }
 0x19e   :  { %v7203_v33 = vpack.c.bf16 %v1388_v26, %v1387_v27  ;;  %v1290_v16 = vadd.f32 %v1289_v60, %v8228_v35  ;;  %v1539_v27 = vunpack.c.l.bf16 %v6959_v22 }
 0x19f   :  { %8221 = vst [vmem:[#allocation23_spill] sm:$0xff] %v7193_v31  ;;  %v1393_v0 = vadd.f32 %v7108_v15, %v1232_v23 }
 0x1a0   :  { %v1260_v62 = vpop.f32.mrf.mxu1  ;;  %8226 = vst [vmem:[#allocation24_spill] sm:$0xff] %v7203_v33  ;;  %v8231_v33 = vld [vmem:[#allocation83_spill] sm:$0xff] }
 0x1a1   :  { %v1261_v45 = vadd.f32 %v1260_v62, %v8225_v47  ;;  %v1318_v21 = vpop.f32.mrf.mxu3  ;;  %v1395_v62 = vadd.f32 %v7128_v34, %v1290_v16 }
 0x1a2   :  { %v1319_v2 = vadd.f32 %v1318_v21, %v8229_v5  ;;  %v8232_v21 = vld [vmem:[#allocation84_spill] sm:$0xff] }
 0x1a3   :  { %v1394_v46 = vadd.f32 %v7113_v53, %v1261_v45 }
 0x1a4   :  { %v1233_v3 = vpop.f32.mrf.mxu0  ;;  %v1396_v48 = vadd.f32 %v7133_v49, %v1319_v2 }
 0x1a5   :  { %v7205_v20 = vpack.c.bf16 %v1394_v46, %v1393_v0  ;;  %v1291_v23 = vpop.f32.mrf.mxu2  ;;  %v1540_v0 = vunpack.c.h.bf16 %v6959_v22  ;;  %v1234_v31 = vadd.f32 %v1233_v3, %v8231_v33  ;;  %v8234_v3 = vld [vmem:[#allocation86_spill] sm:$0xff] }
 0x1a6   :  { %v7211_v47 = vpack.c.bf16 %v1396_v48, %v1395_v62 }
 0x1a7   :  { %8227 = vst [vmem:[#allocation25_spill] sm:$0xff] %v7205_v20  ;;  %v1401_v2 = vadd.f32 %v7108_v15, %v1234_v31 }
 0x1a8   :  { %v1262_v4 = vpop.f32.mrf.mxu1  ;;  %8230 = vst [vmem:[#allocation26_spill] sm:$0xff] %v7211_v47  ;;  %v1542_v47 = vunpack.c.h.bf16 %v6979_v32 }
 0x1a9   :  { %v1320_v45 = vpop.f32.mrf.mxu3  ;;  %v1263_v5 = vadd.f32 %v1262_v4, %v8232_v21 }
 0x1aa   :  { %v1321_v4 = vadd.f32 %v1320_v45, %v8234_v3  ;;  %v1541_v45 = vunpack.c.l.bf16 %v6979_v32 }
 0x1ab   :  { %v1402_v62 = vadd.f32 %v7113_v53, %v1263_v5 }
 0x1ac   :  { %v1712_v26 = vpop.f32.mrf.mxu0  ;;  %v1404_v53 = vadd.f32 %v7133_v49, %v1321_v4 }
 0x1ad   :  { %v1755_v46 = vadd.f32 %v1712_v26, %v1539_v27  ;;  %v1738_v48 = vpop.f32.mrf.mxu2 }
 0x1ae   :  { %v1757_v3 = vadd.f32 %v1738_v48, %v1541_v45 }
 0x1af   :  { %v4668_v20 = vmul.f32 -1.442695, %v1755_v46 }
 0x1b0   :  { %v1725_v60 = vpop.f32.mrf.mxu1 }
 0x1b1   :  { %v1756_v35 = vadd.f32 %v1725_v60, %v1540_v0  ;;  %5062 = vpow2.f32 %v4668_v20  ;;  %v1751_v59 = vpop.f32.mrf.mxu3  ;;  %v8233_v60 = vld [vmem:[#allocation85_spill] sm:$0xff] }
 0x1b2   :  { %v1758_v27 = vadd.f32 %v1751_v59, %v1542_v47  ;;  %v1292_v33 = vadd.f32 %v1291_v23, %v8233_v60 }
 0x1b3   :  { %v4669_v16 = vmul.f32 -1.442695, %v1756_v35  ;;  %v1435_v35 = vpack.c.bf16 %v1402_v62, %v1401_v2 }
 0x1b4   :  { %v1714_v22 = vpop.f32.mrf.mxu0  ;;  %v4670_v46 = vmul.f32 -1.442695, %v1758_v27  ;;  %v1403_v15 = vadd.f32 %v7128_v34, %v1292_v33 }
 0x1b5   :  { %5064 = vpow2.f32 %v4669_v16  ;;  %v1740_v31 = vpop.f32.mrf.mxu2  ;;  %v1828_v59 = vunpack.c.l.bf16 %v1435_v35  ;;  %v1829_v22 = vunpack.c.h.bf16 %v1435_v35 }
 0x1b6   :  { %5066 = vpow2.f32 %v4670_v46 }
 0x1b7   :  { %v5063_v0 = vpop.eup %5062 }
 0x1b8   :  { %v1727_v26 = vpop.f32.mrf.mxu1  ;;  %v1762_v21 = vadd.f32 1.0, %v5063_v0  ;;  %v7225_v0 = vpack.c.bf16 %v1404_v53, %v1403_v15 }
 0x1b9   :  { %v1753_v47 = vpop.f32.mrf.mxu3 }
 0x1ba   :  { %5068 = vrcp.f32 %v1762_v21  ;;  %v1831_v31 = vunpack.c.h.bf16 %v7225_v0  ;;  %v1774_v53 = vand.u32 2147483648, %v1762_v21  ;;  %vm1768_vm1 = vweird.f32 %v1762_v21 }
 0x1bb   :  { %v5065_v20 = vpop.eup %5064 }
 0x1bc   :  { %v1781_v16 = vadd.f32 1.0, %v5065_v20  ;;  %v2001_v5 = vpop.f32.mrf.mxu0  ;;  %v5067_v62 = vpop.eup %5066  ;;  %v1772_v20 = vand.u32 2147483647, %v1762_v21 }
 0x1bd   :  { %v2044_v23 = vadd.f32 %v2001_v5, %v1828_v59  ;;  %v7227_v34 = vadd.f32 1.0, %v5067_v62  ;;  %v2027_v32 = vpop.f32.mrf.mxu2 }
 0x1be   :  { %5070 = vrcp.f32 %v1781_v16  ;;  %v1793_v15 = vand.u32 2147483648, %v1781_v16  ;;  %vm1787_vm3 = vweird.f32 %v1781_v16  ;;  %vm1773_vm4 = vcmp.eq.f32.partialorder %v1772_v20, 8.507059e+37 }
 0x1bf   :  { %v4799_v27 = vmul.f32 -1.442695, %v2044_v23  ;;  %vm1807_vm9 = vweird.f32 %v7227_v34 }
 0x1c0   :  { %v2014_v26 = vpop.f32.mrf.mxu1  ;;  %v5069_v60 = vpop.eup %5068 }
 0x1c1   :  { %v2045_v2 = vadd.f32 %v2014_v26, %v1829_v22  ;;  %v1764_v4 = vmul.f32 %v5069_v60, %v1762_v21  ;;  %5072 = vpow2.f32 %v4799_v27  ;;  %v2040_v48 = vpop.f32.mrf.mxu3  ;;  %vm1769_vm0 = vweird.f32 %v5069_v60 }
 0x1c2   :  { %5074 = vrcp.f32 %v7227_v34  ;;  %v1791_v22 = vand.u32 2147483647, %v1781_v16  ;;  %v2047_v23 = vadd.f32 %v2040_v48, %v1831_v31  ;;  %vm1770_vm5 = vmor %vm1768_vm1, %vm1769_vm0 }
 0x1c3   :  { %v4800_v49 = vmul.f32 -1.442695, %v2045_v2  ;;  %v1765_v35 = vsub.f32 1.0, %v1764_v4  ;;  %v1794_v4 = vor.u32 1.1754944e-38, %v1793_v15 }
 0x1c4   :  { %v5071_v33 = vpop.eup %5070  ;;  %v2003_v47 = vpop.f32.mrf.mxu0  ;;  %v4801_v27 = vmul.f32 -1.442695, %v2047_v23  ;;  %vm1792_vm7 = vcmp.eq.f32.partialorder %v1791_v22, 8.507059e+37  ;;  %v1830_v22 = vunpack.c.l.bf16 %v7225_v0 }
 0x1c5   :  { %v1783_v46 = vmul.f32 %v5071_v33, %v1781_v16  ;;  %5076 = vpow2.f32 %v4800_v49  ;;  %v1766_v5 = vmul.f32 %v5069_v60, %v1765_v35  ;;  %vm1788_vm2 = vweird.f32 %v5071_v33 }
 0x1c6   :  { %5078 = vtanh.f32 %v1757_v3  ;;  %vm1789_vm6 = vmor %vm1787_vm3, %vm1788_vm2 }
 0x1c7   :  { %v1784_v59 = vsub.f32 1.0, %v1783_v46  ;;  %v5073_v2 = vpop.eup %5072  ;;  %v1767_v62 = vadd.f32 %v5069_v60, %v1766_v5  ;;  %v1775_v46 = vor.u32 1.1754944e-38, %v1774_v53  ;;  %5080 = vpow2.f32 %v4801_v27  ;;  %v2029_v53 = vpop.f32.mrf.mxu2 }
 0x1c8   :  { %v2016_v26 = vpop.f32.mrf.mxu1  ;;  %v5075_v49 = vpop.eup %5074  ;;  %v7231_v29 = vadd.f32 1.0, %v5073_v2 }
 0x1c9   :  { %v1785_v45 = vmul.f32 %v5071_v33, %v1784_v59  ;;  %v1771_v47 = vsel %vm1770_vm5, %v5069_v60, %v1767_v62  ;;  %v1803_v31 = vmul.f32 %v5075_v49, %v7227_v34  ;;  %v2042_v26 = vpop.f32.mrf.mxu3  ;;  %vm1808_vm8 = vweird.f32 %v5075_v49 }
 0x1ca   :  { %v1776_v59 = vsel %vm1773_vm4, %v1775_v46, %v1771_v47  ;;  %5082 = vrcp.f32 %v7231_v29  ;;  %v2046_v46 = vadd.f32 %v2027_v32, %v1830_v22  ;;  %vm7245_vm10 = vmor %vm1807_vm9, %vm1808_vm8  ;;  %vm2057_vm13 = vweird.f32 %v7231_v29 }
 0x1cb   :  { %v1786_v3 = vadd.f32 %v5071_v33, %v1785_v45  ;;  %v5077_v35 = vpop.eup %5076  ;;  %v1804_v5 = vsub.f32 1.0, %v1803_v31 }
 0x1cc   :  { %v5079_v21 = vpop.eup %5078  ;;  %v2070_v20 = vadd.f32 1.0, %v5077_v35 }
 0x1cd   :  { %v1790_v16 = vsel %vm1789_vm6, %v5071_v33, %v1786_v3  ;;  %v1818_v15 = vmul.f32 %v5079_v21, %v1776_v59  ;;  %v1805_v45 = vmul.f32 %v5075_v49, %v1804_v5  ;;  %v5081_v2 = vpop.eup %5080  ;;  %v1811_v33 = vand.u32 2147483647, %v7227_v34 }
 0x1ce   :  { %v1795_v48 = vsel %vm1792_vm7, %v1794_v4, %v1790_v16  ;;  %5084 = vrcp.f32 %v2070_v20  ;;  %v1813_v4 = vand.u32 2147483648, %v7227_v34  ;;  %v7241_v3 = vadd.f32 1.0, %v5081_v2 }
 0x1cf   :  { %v1817_v23 = vmul.f32 0.0, %v1795_v48  ;;  %v1806_v62 = vadd.f32 %v5075_v49, %v1805_v45  ;;  %vm1812_vm11 = vcmp.eq.f32.partialorder %v1811_v33, 8.507059e+37  ;;  %v2063_v16 = vand.u32 2147483648, %v7231_v29 }
 0x1d0   :  { %v5083_v27 = vpop.eup %5082  ;;  %v1814_v32 = vor.u32 1.1754944e-38, %v1813_v4  ;;  %v2082_v53 = vand.u32 2147483648, %v2070_v20  ;;  %vm2076_vm15 = vweird.f32 %v2070_v20  ;;  %vm2096_vm5 = vweird.f32 %v7241_v3 }
 0x1d1   :  { %v7235_v60 = vadd.f32 %v1818_v15, %v1817_v23  ;;  %v2053_v35 = vmul.f32 %v5083_v27, %v7231_v29  ;;  %v1810_v59 = vsel %vm7245_vm10, %v5075_v49, %v1806_v62  ;;  %vm2058_vm12 = vweird.f32 %v5083_v27 }
 0x1d2   :  { %v2061_v15 = vand.u32 2147483647, %v7231_v29  ;;  %v2080_v23 = vand.u32 2147483647, %v2070_v20  ;;  %v1815_v26 = vsel %vm1812_vm11, %v1814_v32, %v1810_v59  ;;  %vm2059_vm0 = vmor %vm2057_vm13, %vm2058_vm12  ;;  %v2064_v62 = vor.u32 1.1754944e-38, %v2063_v16 }
 0x1d3   :  { %5086 = vtanh.f32 %v7235_v60  ;;  %v2054_v31 = vsub.f32 1.0, %v2053_v35  ;;  %v2083_v35 = vor.u32 1.1754944e-38, %v2082_v53  ;;  %v2102_v53 = vand.u32 2147483648, %v7241_v3 }
 0x1d4   :  { %v5085_v47 = vpop.eup %5084  ;;  %5088 = vrcp.f32 %v7241_v3  ;;  %vm2062_vm1 = vcmp.eq.f32.partialorder %v2061_v15, 8.507059e+37  ;;  %vm2081_vm3 = vcmp.eq.f32.partialorder %v2080_v23, 8.507059e+37  ;;  %v8238_v15 = vld [vmem:[#allocation13_spill] sm:$0xff]  ;;  %v2100_v23 = vand.u32 2147483647, %v7241_v3 }
 0x1d5   :  { %v2072_v21 = vmul.f32 %v5085_v47, %v2070_v20  ;;  %5090 = vtanh.f32 %v2046_v46  ;;  %v2055_v48 = vmul.f32 %v5083_v27, %v2054_v31  ;;  %vm2077_vm14 = vweird.f32 %v5085_v47 }
 0x1d6   :  { %vm2078_vm2 = vmor %vm2076_vm15, %vm2077_vm14  ;;  %vm2101_vm7 = vcmp.eq.f32.partialorder %v2100_v23, 8.507059e+37  ;;  %v8256_v23 = vld [vmem:[#allocation68_spill] sm:$0xff] }
 0x1d7   :  { %v2073_v34 = vsub.f32 1.0, %v2072_v21  ;;  %v2056_v22 = vadd.f32 %v5083_v27, %v2055_v48 }
 0x1d9   :  { %v5087_v5 = vpop.eup %5086  ;;  %v2074_v45 = vmul.f32 %v5085_v47, %v2073_v34  ;;  %v2060_v33 = vsel %vm2059_vm0, %v5083_v27, %v2056_v22  ;;  %v8237_v34 = vld [vmem:[#allocation3_spill] sm:$0xff] }
 0x1da   :  { %v1821_v49 = vmul.f32 %v5087_v5, %v1815_v26  ;;  %v5089_v2 = vpop.eup %5088  ;;  %v2065_v0 = vsel %vm2062_vm1, %v2064_v62, %v2060_v33  ;;  %v8239_v5 = vld [vmem:[#allocation8_spill] sm:$0xff]  ;;  %v8241_v33 = vld [vmem:[#allocation42_spill] sm:$0xff] }
 0x1db   :  { %v2075_v4 = vadd.f32 %v5085_v47, %v2074_v45  ;;  %v2092_v46 = vmul.f32 %v5089_v2, %v7241_v3  ;;  %v5091_v29 = vpop.eup %5090  ;;  %vm2097_vm4 = vweird.f32 %v5089_v2  ;;  %v2103_v45 = vor.u32 1.1754944e-38, %v2102_v53  ;;  %v8255_v53 = vld [vmem:[#allocation61_spill] sm:$0xff] }
 0x1dc   :  { %1822 = vst [vmem:[%s7930_s6] sm:$0xff] %v1821_v49  ;;  %v2123_v31 = vpack.c.bf16 %v1821_v49, %v1821_v49  ;;  %v2107_v59 = vmul.f32 %v5091_v29, %v2065_v0  ;;  %vm2098_vm6 = vmor %vm2096_vm5, %vm2097_vm4  ;;  %v8244_v29 = vld [vmem:[#allocation45_spill] sm:$0xff]  ;;  %v8246_v0 = vld [vmem:[#allocation47_spill] sm:$0xff] }
 0x1dd   :  { %v2079_v21 = vsel %vm2078_vm2, %v5085_v47, %v2075_v4  ;;  %v2093_v20 = vsub.f32 1.0, %v2092_v46  ;;  %v8242_v4 = vld [vmem:[#allocation43_spill] sm:$0xff]  ;;  %v8243_v46 = vld [vmem:[#allocation44_spill] sm:$0xff] }
 0x1de   :  { %v2084_v32 = vsel %vm2081_vm3, %v2083_v35, %v2079_v21  ;;  %2132 = vmatmul.bf16.vlgmr.msra.gmra.mxu0 %v2123_v31  ;;  %2145 = vmatmul.bf16.vlgmr.msra.gmra.mxu1 %v2123_v31  ;;  %v8245_v35 = vld [vmem:[#allocation46_spill] sm:$0xff]  ;;  %v8248_v21 = vld [vmem:[#allocation53_spill] sm:$0xff] }
 0x1df   :  { %v2106_v27 = vmul.f32 0.0, %v2084_v32  ;;  %v2094_v16 = vmul.f32 %v5089_v2, %v2093_v20  ;;  %2158 = vmatmul.bf16.vlgmr.msra.gmra.mxu2 %v2123_v31  ;;  %2171 = vmatmul.bf16.vlgmr.msra.gmra.mxu3 %v2123_v31  ;;  %v8247_v31 = vld [vmem:[#allocation48_spill] sm:$0xff]  ;;  %v8250_v20 = vld [vmem:[#allocation55_spill] sm:$0xff] }
 0x1e0   :  { %2387 = vmatpush.bf16.msra.mxu0 %v8237_v34  ;;  %2400 = vmatpush.bf16.msra.mxu1 %v6263_v43  ;;  %v8251_v32 = vld [vmem:[#allocation56_spill] sm:$0xff] }
 0x1e1   :  { %v7261_v48 = vadd.f32 %v2107_v59, %v2106_v27  ;;  %2413 = vmatpush.bf16.msra.mxu2 %v8238_v15  ;;  %2426 = vmatpush.bf16.msra.mxu3 %v8239_v5  ;;  %v2095_v47 = vadd.f32 %v5089_v2, %v2094_v16  ;;  %v8249_v59 = vld [vmem:[#allocation54_spill] sm:$0xff]  ;;  %v8252_v27 = vld [vmem:[#allocation57_spill] sm:$0xff] }
 0x1e2   :  { %v8253_v16 = vld [vmem:[#allocation58_spill] sm:$0xff] }
 0x1e3   :  { %5092 = vtanh.f32 %v7261_v48  ;;  %v2099_v26 = vsel %vm2098_vm6, %v5089_v2, %v2095_v47  ;;  %v8240_v2 = vld [vmem:[#allocation40_spill] sm:$0xff]  ;;  %v8254_v47 = vld [vmem:[#allocation59_spill] sm:$0xff] }
 0x1e4   :  { %2388 = vmatpush.bf16.msra.mxu0 %v6293_v57  ;;  %2401 = vmatpush.bf16.msra.mxu1 %v6295_v58  ;;  %v2104_v49 = vsel %vm2101_vm7, %v2103_v45, %v2099_v26  ;;  %v8257_v26 = vld [vmem:[#allocation69_spill] sm:$0xff]  ;;  %v8258_v45 = vld [vmem:[#allocation70_spill] sm:$0xff] }
 0x1e5   :  { %2414 = vmatpush.bf16.msra.mxu2 %v6381_v51  ;;  %2427 = vmatpush.bf16.msra.mxu3 %v6322_v7 }
 0x1e8   :  { %2389 = vmatpush.bf16.msra.mxu0 %v6344_v13  ;;  %2402 = vmatpush.bf16.msra.mxu1 %v6351_v18 }
 0x1e9   :  { %v5093_v22 = vpop.eup %5092  ;;  %2415 = vmatpush.bf16.msra.mxu2 %v6405_v6  ;;  %2428 = vmatpush.bf16.msra.mxu3 %v6370_v37 }
 0x1ea   :  { %v2110_v3 = vmul.f32 %v5093_v22, %v2104_v49  ;;  %v8259_v22 = vld [vmem:[#allocation71_spill] sm:$0xff]  ;;  %v8260_v49 = vld [vmem:[#allocation73_spill] sm:$0xff] }
 0x1ec   :  { %4802 = vst [vmem:[%s7930_s6 + $0x78] sm:$0xff] %v2110_v3  ;;  %v2254_v62 = vpack.c.bf16 %v2110_v3, %v2110_v3  ;;  %2390 = vmatpush.bf16.msra.mxu0 %v6383_v52  ;;  %2403 = vmatpush.bf16.msra.mxu1 %v6392_v56  ;;  %v8261_v3 = vld [vmem:[#allocation77_spill] sm:$0xff] }
 0x1ed   :  { %2416 = vmatpush.bf16.msra.mxu2 %v6429_v38  ;;  %2429 = vmatpush.bf16.msra.mxu3 %v6420_v28 }
 0x1ee   :  { %2263 = vmatmul.bf16.vlgmr.msrb.gmra.mxu0 %v2254_v62  ;;  %2276 = vmatmul.bf16.vlgmr.msrb.gmra.mxu1 %v2254_v62 }
 0x1ef   :  { %2289 = vmatmul.bf16.vlgmr.msrb.gmra.mxu2 %v2254_v62  ;;  %2302 = vmatmul.bf16.vlgmr.msrb.gmra.mxu3 %v2254_v62  ;;  %v8262_v62 = vld [vmem:[#allocation78_spill] sm:$0xff] }
 0x1f0   :  { %2391 = vmatpush.bf16.msra.mxu0 %v6445_v55  ;;  %2404 = vmatpush.bf16.msra.mxu1 %v6458_v19 }
 0x1f1   :  { %2417 = vmatpush.bf16.msra.mxu2 %v6460_v30  ;;  %2430 = vmatpush.bf16.msra.mxu3 %v6473_v10 }
 0x1f4   :  { %2392 = vmatpush.bf16.msra.mxu0 %v6489_v36  ;;  %2405 = vmatpush.bf16.msra.mxu1 %v6500_v41 }
 0x1f5   :  { %2418 = vmatpush.bf16.msra.mxu2 %v6502_v12  ;;  %2431 = vmatpush.bf16.msra.mxu3 %v6511_v8 }
 0x1f8   :  { %2393 = vmatpush.bf16.msra.mxu0 %v6527_v14  ;;  %2406 = vmatpush.bf16.msra.mxu1 %v6542_v17 }
 0x1f9   :  { %2419 = vmatpush.bf16.msra.mxu2 %v6544_v11  ;;  %2432 = vmatpush.bf16.msra.mxu3 %v6555_v63 }
 0x1fc   :  { %2394 = vmatpush.bf16.msra.mxu0 %v6570_v39  ;;  %2407 = vmatpush.bf16.msra.mxu1 %v8136_v40 }
 0x1fd   :  { %2420 = vmatpush.bf16.msra.mxu2 %v8137_v44  ;;  %2433 = vmatpush.bf16.msra.mxu3 %v8138_v42 }
 0x200   :  { %2518 = vmatpush.bf16.msrb.mxu0 %v8139_v25  ;;  %2531 = vmatpush.bf16.msrb.mxu1 %v8140_v54 }
 0x201   :  { %2544 = vmatpush.bf16.msrb.mxu2 %v8141_v9  ;;  %2557 = vmatpush.bf16.msrb.mxu3 %v8142_v61 }
 0x204   :  { %2519 = vmatpush.bf16.msrb.mxu0 %v8240_v2  ;;  %2532 = vmatpush.bf16.msrb.mxu1 %v8241_v33 }
 0x205   :  { %2545 = vmatpush.bf16.msrb.mxu2 %v8242_v4  ;;  %2558 = vmatpush.bf16.msrb.mxu3 %v8243_v46  ;;  %v8268_v46 = vld [vmem:[#allocation26_spill] sm:$0xff] }
 0x208   :  { %2520 = vmatpush.bf16.msrb.mxu0 %v8244_v29  ;;  %2533 = vmatpush.bf16.msrb.mxu1 %v8245_v35 }
 0x209   :  { %2546 = vmatpush.bf16.msrb.mxu2 %v8246_v0  ;;  %2559 = vmatpush.bf16.msrb.mxu3 %v8247_v31 }
 0x20c   :  { %2521 = vmatpush.bf16.msrb.mxu0 %v8248_v21  ;;  %2534 = vmatpush.bf16.msrb.mxu1 %v8249_v59 }
 0x20d   :  { %2547 = vmatpush.bf16.msrb.mxu2 %v8250_v20  ;;  %2560 = vmatpush.bf16.msrb.mxu3 %v8251_v32 }
 0x210   :  { %2522 = vmatpush.bf16.msrb.mxu0 %v8252_v27  ;;  %2535 = vmatpush.bf16.msrb.mxu1 %v8253_v16 }
 0x211   :  { %2548 = vmatpush.bf16.msrb.mxu2 %v8254_v47  ;;  %2561 = vmatpush.bf16.msrb.mxu3 %v8255_v53  ;;  %v8263_v53 = vld [vmem:[#allocation79_spill] sm:$0xff] }
 0x214   :  { %2523 = vmatpush.bf16.msrb.mxu0 %v8173_v50  ;;  %2536 = vmatpush.bf16.msrb.mxu1 %v8175_v1  ;;  %v8264_v50 = vld [vmem:[#allocation80_spill] sm:$0xff]  ;;  %v8265_v1 = vld [vmem:[#allocation87_spill] sm:$0xff] }
 0x215   :  { %2549 = vmatpush.bf16.msrb.mxu2 %v8176_v24  ;;  %2562 = vmatpush.bf16.msrb.mxu3 %v8256_v23  ;;  %v2119_v24 = vunpack.c.l.bf16 %v8265_v1  ;;  %v2120_v23 = vunpack.c.h.bf16 %v8265_v1 }
 0x218   :  { %2524 = vmatpush.bf16.msrb.mxu0 %v8257_v26  ;;  %2537 = vmatpush.bf16.msrb.mxu1 %v8258_v45 }
 0x219   :  { %2550 = vmatpush.bf16.msrb.mxu2 %v8259_v22  ;;  %2563 = vmatpush.bf16.msrb.mxu3 %v8260_v49  ;;  %v8266_v49 = vld [vmem:[#allocation88_spill] sm:$0xff] }
 0x21c   :  { %2525 = vmatpush.bf16.msrb.mxu0 %v8261_v3  ;;  %2538 = vmatpush.bf16.msrb.mxu1 %v8262_v62  ;;  %v2122_v3 = vunpack.c.h.bf16 %v8266_v49 }
 0x21d   :  { %2551 = vmatpush.bf16.msrb.mxu2 %v8263_v53  ;;  %2564 = vmatpush.bf16.msrb.mxu3 %v8264_v50 }
 0x25b   :  { %v2133_v47 = vpop.f32.mrf.mxu0  ;;  %v2146_v26 = vpop.f32.mrf.mxu1 }
 0x25c   :  { %v2176_v16 = vadd.f32 %v2133_v47, %v2119_v24  ;;  %v2177_v45 = vadd.f32 %v2146_v26, %v2120_v23  ;;  %v8267_v47 = vld [vmem:[#allocation25_spill] sm:$0xff]  ;;  %v2121_v26 = vunpack.c.l.bf16 %v8266_v49 }
 0x25d   :  { %v2251_v23 = vunpack.c.h.bf16 %v8267_v47 }
 0x25e   :  { %v4803_v27 = vmul.f32 -1.442695, %v2176_v16  ;;  %v4804_v22 = vmul.f32 -1.442695, %v2177_v45 }
 0x260   :  { %5094 = vpow2.f32 %v4803_v27  ;;  %v2250_v27 = vunpack.c.l.bf16 %v8267_v47 }
 0x261   :  { %5096 = vpow2.f32 %v4804_v22 }
 0x262   :  { %v2159_v32 = vpop.f32.mrf.mxu2  ;;  %v2172_v62 = vpop.f32.mrf.mxu3 }
 0x263   :  { %v2179_v20 = vadd.f32 %v2172_v62, %v2122_v3  ;;  %v2135_v53 = vpop.f32.mrf.mxu0  ;;  %v2148_v59 = vpop.f32.mrf.mxu1  ;;  %v2178_v3 = vadd.f32 %v2159_v32, %v2121_v26 }
 0x265   :  { %v4805_v50 = vmul.f32 -1.442695, %v2179_v20 }
 0x266   :  { %v5095_v21 = vpop.eup %5094 }
 0x267   :  { %v5097_v31 = vpop.eup %5096  ;;  %v2183_v0 = vadd.f32 1.0, %v5095_v21  ;;  %5098 = vpow2.f32 %v4805_v50 }
 0x268   :  { %v2202_v1 = vadd.f32 1.0, %v5097_v31 }
 0x269   :  { %5100 = vrcp.f32 %v2183_v0  ;;  %v2193_v29 = vand.u32 2147483647, %v2183_v0  ;;  %v2195_v26 = vand.u32 2147483648, %v2183_v0  ;;  %vm2189_vm11 = vweird.f32 %v2183_v0 }
 0x26a   :  { %5102 = vrcp.f32 %v2202_v1  ;;  %v2161_v24 = vpop.f32.mrf.mxu2  ;;  %v2174_v16 = vpop.f32.mrf.mxu3  ;;  %v2214_v32 = vand.u32 2147483648, %v2202_v1  ;;  %vm2208_vm10 = vweird.f32 %v2202_v1 }
 0x26b   :  { %v2264_v45 = vpop.f32.mrf.mxu0  ;;  %v2277_v22 = vpop.f32.mrf.mxu1  ;;  %vm2194_vm13 = vcmp.eq.f32.partialorder %v2193_v29, 8.507059e+37 }
 0x26c   :  { %v2307_v53 = vadd.f32 %v2264_v45, %v2250_v27  ;;  %v2308_v59 = vadd.f32 %v2277_v22, %v2251_v23  ;;  %v2253_v27 = vunpack.c.h.bf16 %v8268_v46 }
 0x26d   :  { %v5099_v20 = vpop.eup %5098 }
 0x26e   :  { %v7338_v62 = vadd.f32 1.0, %v5099_v20  ;;  %v4807_v50 = vmul.f32 -1.442695, %v2307_v53  ;;  %v4808_v21 = vmul.f32 -1.442695, %v2308_v59 }
 0x26f   :  { %v5101_v31 = vpop.eup %5100  ;;  %v2212_v20 = vand.u32 2147483647, %v2202_v1 }
 0x270   :  { %v5103_v35 = vpop.eup %5102  ;;  %v2185_v24 = vmul.f32 %v5101_v31, %v2183_v0  ;;  %5104 = vrcp.f32 %v7338_v62  ;;  %vm2190_vm8 = vweird.f32 %v5101_v31  ;;  %vm2228_vm1 = vweird.f32 %v7338_v62 }
 0x271   :  { %v2204_v16 = vmul.f32 %v5103_v35, %v2202_v1  ;;  %5106 = vtanh.f32 %v2178_v3  ;;  %vm2209_vm9 = vweird.f32 %v5103_v35  ;;  %vm2191_vm12 = vmor %vm2189_vm11, %vm2190_vm8  ;;  %vm2213_vm15 = vcmp.eq.f32.partialorder %v2212_v20, 8.507059e+37 }
 0x272   :  { %v2186_v47 = vsub.f32 1.0, %v2185_v24  ;;  %5108 = vpow2.f32 %v4807_v50  ;;  %v2290_v49 = vpop.f32.mrf.mxu2  ;;  %v2303_v23 = vpop.f32.mrf.mxu3  ;;  %vm2210_vm14 = vmor %vm2208_vm10, %vm2209_vm9  ;;  %v2252_v20 = vunpack.c.l.bf16 %v8268_v46 }
 0x273   :  { %v2205_v45 = vsub.f32 1.0, %v2204_v16  ;;  %5110 = vpow2.f32 %v4808_v21  ;;  %v2266_v22 = vpop.f32.mrf.mxu0  ;;  %v2279_v53 = vpop.f32.mrf.mxu1  ;;  %v2310_v4 = vadd.f32 %v2303_v23, %v2253_v27  ;;  %v2196_v16 = vor.u32 1.1754944e-38, %v2195_v26 }
 0x274   :  { %v2187_v59 = vmul.f32 %v5101_v31, %v2186_v47  ;;  %v2215_v47 = vor.u32 1.1754944e-38, %v2214_v32 }
 0x275   :  { %v2206_v33 = vmul.f32 %v5103_v35, %v2205_v45  ;;  %v4809_v50 = vmul.f32 -1.442695, %v2310_v4 }
 0x276   :  { %v5105_v3 = vpop.eup %5104  ;;  %v2188_v24 = vadd.f32 %v5101_v31, %v2187_v59 }
 0x277   :  { %v5107_v2 = vpop.eup %5106  ;;  %v2207_v61 = vadd.f32 %v5103_v35, %v2206_v33  ;;  %v2224_v21 = vmul.f32 %v5105_v3, %v7338_v62  ;;  %5112 = vpow2.f32 %v4809_v50  ;;  %vm2229_vm0 = vweird.f32 %v5105_v3 }
 0x278   :  { %v5109_v22 = vpop.eup %5108  ;;  %v2192_v53 = vsel %vm2191_vm12, %v5101_v31, %v2188_v24  ;;  %vm2230_vm2 = vmor %vm2228_vm1, %vm2229_vm0 }
 0x279   :  { %v5111_v27 = vpop.eup %5110  ;;  %v2197_v23 = vsel %vm2194_vm13, %v2196_v16, %v2192_v53  ;;  %v2211_v45 = vsel %vm2210_vm14, %v5103_v35, %v2207_v61  ;;  %v2225_v1 = vsub.f32 1.0, %v2224_v21  ;;  %v2314_v59 = vadd.f32 1.0, %v5109_v22 }
 0x27a   :  { %v2216_v0 = vsel %vm2213_vm15, %v2215_v47, %v2211_v45  ;;  %v2239_v4 = vmul.f32 %v5107_v2, %v2197_v23  ;;  %v2333_v9 = vadd.f32 1.0, %v5111_v27  ;;  %v2292_v54 = vpop.f32.mrf.mxu2  ;;  %v2305_v29 = vpop.f32.mrf.mxu3  ;;  %v2234_v61 = vand.u32 2147483648, %v7338_v62 }
 0x27b   :  { %v2238_v33 = vmul.f32 %v2216_v0, %v7235_v60  ;;  %v2226_v26 = vmul.f32 %v5105_v3, %v2225_v1  ;;  %5114 = vrcp.f32 %v2314_v59  ;;  %v2232_v54 = vand.u32 2147483647, %v7338_v62 }
 0x27c   :  { %5116 = vrcp.f32 %v2333_v9  ;;  %v2309_v60 = vadd.f32 %v2290_v49, %v2252_v20  ;;  %v2235_v21 = vor.u32 1.1754944e-38, %v2234_v61  ;;  %v2345_v27 = vand.u32 2147483648, %v2333_v9 }
 0x27d   :  { %v7344_v25 = vadd.f32 %v2239_v4, %v2238_v33  ;;  %v5113_v31 = vpop.eup %5112  ;;  %v2227_v32 = vadd.f32 %v5105_v3, %v2226_v26  ;;  %vm2233_vm3 = vcmp.eq.f32.partialorder %v2232_v54, 8.507059e+37  ;;  %v2326_v23 = vand.u32 2147483648, %v2314_v59 }
 0x27e   :  { %v7349_v2 = vadd.f32 1.0, %v5113_v31  ;;  %v2324_v62 = vand.u32 2147483647, %v2314_v59  ;;  %v2343_v29 = vand.u32 2147483647, %v2333_v9  ;;  %vm2320_vm6 = vweird.f32 %v2314_v59 }
 0x27f   :  { %5118 = vtanh.f32 %v7344_v25  ;;  %v2231_v16 = vsel %vm2230_vm2, %v5105_v3, %v2227_v32  ;;  %vm2339_vm7 = vweird.f32 %v2333_v9  ;;  %v2327_v31 = vor.u32 1.1754944e-38, %v2326_v23 }
 0x280   :  { %5120 = vrcp.f32 %v7349_v2  ;;  %v2236_v45 = vsel %vm2233_vm3, %v2235_v21, %v2231_v16  ;;  %v2346_v61 = vor.u32 1.1754944e-38, %v2345_v27  ;;  %vm2325_vm10 = vcmp.eq.f32.partialorder %v2324_v62, 8.507059e+37  ;;  %v8270_v62 = vld [vmem:[#allocation34_spill] sm:$0xff] }
 0x281   :  { %v5115_v35 = vpop.eup %5114  ;;  %5122 = vtanh.f32 %v2309_v60  ;;  %vm2344_vm11 = vcmp.eq.f32.partialorder %v2343_v29, 8.507059e+37  ;;  %vm2359_vm13 = vweird.f32 %v7349_v2  ;;  %v8274_v29 = vld [vmem:[#allocation42_spill] sm:$0xff] }
 0x282   :  { %v5117_v24 = vpop.eup %5116  ;;  %v2316_v50 = vmul.f32 %v5115_v35, %v2314_v59  ;;  %vm2321_vm4 = vweird.f32 %v5115_v35 }
 0x283   :  { %v2335_v46 = vmul.f32 %v5117_v24, %v2333_v9  ;;  %vm2340_vm5 = vweird.f32 %v5117_v24  ;;  %vm2322_vm8 = vmor %vm2320_vm6, %vm2321_vm4 }
 0x284   :  { %v2317_v22 = vsub.f32 1.0, %v2316_v50  ;;  %vm2341_vm9 = vmor %vm2339_vm7, %vm2340_vm5 }
 0x285   :  { %v5119_v47 = vpop.eup %5118  ;;  %v2336_v53 = vsub.f32 1.0, %v2335_v46 }
 0x286   :  { %v2318_v1 = vmul.f32 %v5115_v35, %v2317_v22  ;;  %v2242_v49 = vmul.f32 %v5119_v47, %v2236_v45  ;;  %v5121_v0 = vpop.eup %5120 }
 0x287   :  { %v2337_v4 = vmul.f32 %v5117_v24, %v2336_v53  ;;  %v2355_v3 = vmul.f32 %v5121_v0, %v7349_v2  ;;  %v5123_v20 = vpop.eup %5122  ;;  %vm2360_vm12 = vweird.f32 %v5121_v0 }
 0x288   :  { %v2319_v33 = vadd.f32 %v5115_v35, %v2318_v1  ;;  %4806 = vst [vmem:[%s7930_s6 + $0x8] sm:$0xff] %v2242_v49  ;;  %v2386_v26 = vpack.c.bf16 %v2242_v49, %v2242_v49  ;;  %vm2361_vm14 = vmor %vm2359_vm13, %vm2360_vm12  ;;  %v8269_v1 = vld [vmem:[#allocation33_spill] sm:$0xff]  ;;  %v8271_v49 = vld [vmem:[#allocation36_spill] sm:$0xff] }
 0x289   :  { %v2338_v32 = vadd.f32 %v5117_v24, %v2337_v4  ;;  %v2356_v60 = vsub.f32 1.0, %v2355_v3  ;;  %v8273_v4 = vld [vmem:[#allocation40_spill] sm:$0xff] }
 0x28a   :  { %v2323_v54 = vsel %vm2322_vm8, %v5115_v35, %v2319_v33  ;;  %2395 = vmatmul.bf16.vlgmr.msra.gmra.mxu0 %v2386_v26  ;;  %2408 = vmatmul.bf16.vlgmr.msra.gmra.mxu1 %v2386_v26  ;;  %v8275_v33 = vld [vmem:[#allocation43_spill] sm:$0xff]  ;;  %v8276_v3 = vld [vmem:[#allocation44_spill] sm:$0xff] }
 0x28b   :  { %v2328_v59 = vsel %vm2325_vm10, %v2327_v31, %v2323_v54  ;;  %v2342_v50 = vsel %vm2341_vm9, %v5117_v24, %v2338_v32  ;;  %2421 = vmatmul.bf16.vlgmr.msra.gmra.mxu2 %v2386_v26  ;;  %2434 = vmatmul.bf16.vlgmr.msra.gmra.mxu3 %v2386_v26  ;;  %v2357_v46 = vmul.f32 %v5121_v0, %v2356_v60  ;;  %v2365_v24 = vand.u32 2147483648, %v7349_v2  ;;  %v8277_v26 = vld [vmem:[#allocation45_spill] sm:$0xff]  ;;  %v8278_v31 = vld [vmem:[#allocation46_spill] sm:$0xff]  ;;  %v8279_v32 = vld [vmem:[#allocation47_spill] sm:$0xff] }
 0x28c   :  { %v2347_v16 = vsel %vm2344_vm11, %v2346_v61, %v2342_v50  ;;  %v2370_v21 = vmul.f32 %v5123_v20, %v2328_v59  ;;  %2650 = vmatpush.bf16.msra.mxu0 %v8237_v34  ;;  %2663 = vmatpush.bf16.msra.mxu1 %v6263_v43  ;;  %v8280_v20 = vld [vmem:[#allocation48_spill] sm:$0xff]  ;;  %v8281_v61 = vld [vmem:[#allocation53_spill] sm:$0xff]  ;;  %v8282_v54 = vld [vmem:[#allocation54_spill] sm:$0xff] }
 0x28d   :  { %v2369_v9 = vmul.f32 %v2347_v16, %v7261_v48  ;;  %2676 = vmatpush.bf16.msra.mxu2 %v8238_v15  ;;  %2689 = vmatpush.bf16.msra.mxu3 %v8239_v5  ;;  %v2358_v22 = vadd.f32 %v5121_v0, %v2357_v46  ;;  %v2363_v48 = vand.u32 2147483647, %v7349_v2  ;;  %v2366_v53 = vor.u32 1.1754944e-38, %v2365_v24  ;;  %v8283_v60 = vld [vmem:[#allocation55_spill] sm:$0xff]  ;;  %v8284_v59 = vld [vmem:[#allocation56_spill] sm:$0xff]  ;;  %v8285_v50 = vld [vmem:[#allocation57_spill] sm:$0xff] }
 0x28e   :  { %v8286_v16 = vld [vmem:[#allocation58_spill] sm:$0xff]  ;;  %v8288_v46 = vld [vmem:[#allocation61_spill] sm:$0xff]  ;;  %v8291_v24 = vld [vmem:[#allocation67_spill] sm:$0xff] }
 0x28f   :  { %v7363_v35 = vadd.f32 %v2370_v21, %v2369_v9  ;;  %v2362_v47 = vsel %vm2361_vm14, %v5121_v0, %v2358_v22  ;;  %vm2364_vm15 = vcmp.eq.f32.partialorder %v2363_v48, 8.507059e+37  ;;  %v8272_v0 = vld [vmem:[#allocation39_spill] sm:$0xff]  ;;  %v8289_v9 = vld [vmem:[#allocation65_spill] sm:$0xff]  ;;  %v8290_v22 = vld [vmem:[#allocation66_spill] sm:$0xff] }
 0x290   :  { %2651 = vmatpush.bf16.msra.mxu0 %v6293_v57  ;;  %2664 = vmatpush.bf16.msra.mxu1 %v6295_v58  ;;  %v2367_v23 = vsel %vm2364_vm15, %v2366_v53, %v2362_v47  ;;  %v8287_v21 = vld [vmem:[#allocation59_spill] sm:$0xff]  ;;  %v8292_v48 = vld [vmem:[#allocation68_spill] sm:$0xff]  ;;  %v8293_v47 = vld [vmem:[#allocation69_spill] sm:$0xff] }
 0x291   :  { %5124 = vtanh.f32 %v7363_v35  ;;  %2677 = vmatpush.bf16.msra.mxu2 %v6381_v51  ;;  %2690 = vmatpush.bf16.msra.mxu3 %v6322_v7  ;;  %v8294_v53 = vld [vmem:[#allocation70_spill] sm:$0xff] }
 0x294   :  { %2652 = vmatpush.bf16.msra.mxu0 %v6344_v13  ;;  %2665 = vmatpush.bf16.msra.mxu1 %v6351_v18 }
 0x295   :  { %2678 = vmatpush.bf16.msra.mxu2 %v6405_v6  ;;  %2691 = vmatpush.bf16.msra.mxu3 %v6370_v37 }
 0x297   :  { %v5125_v27 = vpop.eup %5124 }
 0x298   :  { %v2373_v45 = vmul.f32 %v5125_v27, %v2367_v23  ;;  %2653 = vmatpush.bf16.msra.mxu0 %v6383_v52  ;;  %2666 = vmatpush.bf16.msra.mxu1 %v6392_v56  ;;  %v8295_v27 = vld [vmem:[#allocation71_spill] sm:$0xff]  ;;  %v8296_v23 = vld [vmem:[#allocation73_spill] sm:$0xff] }
 0x299   :  { %2679 = vmatpush.bf16.msra.mxu2 %v6429_v38  ;;  %2692 = vmatpush.bf16.msra.mxu3 %v6420_v28 }
 0x29a   :  { %4810 = vst [vmem:[%s7930_s6 + $0x70] sm:$0xff] %v2373_v45  ;;  %v2517_v2 = vpack.c.bf16 %v2373_v45, %v2373_v45  ;;  %v8297_v45 = vld [vmem:[#allocation77_spill] sm:$0xff] }
 0x29c   :  { %2526 = vmatmul.bf16.vlgmr.msrb.gmra.mxu0 %v2517_v2  ;;  %2539 = vmatmul.bf16.vlgmr.msrb.gmra.mxu1 %v2517_v2 }
 0x29d   :  { %2552 = vmatmul.bf16.vlgmr.msrb.gmra.mxu2 %v2517_v2  ;;  %2565 = vmatmul.bf16.vlgmr.msrb.gmra.mxu3 %v2517_v2  ;;  %v8298_v2 = vld [vmem:[#allocation78_spill] sm:$0xff] }
 0x29e   :  { %2654 = vmatpush.bf16.msra.mxu0 %v6445_v55  ;;  %2667 = vmatpush.bf16.msra.mxu1 %v6458_v19 }
 0x29f   :  { %2680 = vmatpush.bf16.msra.mxu2 %v6460_v30  ;;  %2693 = vmatpush.bf16.msra.mxu3 %v6473_v10 }
 0x2a2   :  { %2655 = vmatpush.bf16.msra.mxu0 %v6489_v36  ;;  %2668 = vmatpush.bf16.msra.mxu1 %v6500_v41 }
 0x2a3   :  { %2681 = vmatpush.bf16.msra.mxu2 %v6502_v12  ;;  %2694 = vmatpush.bf16.msra.mxu3 %v6511_v8 }
 0x2a6   :  { %2656 = vmatpush.bf16.msra.mxu0 %v6527_v14  ;;  %2669 = vmatpush.bf16.msra.mxu1 %v6542_v17 }
 0x2a7   :  { %2682 = vmatpush.bf16.msra.mxu2 %v6544_v11  ;;  %2695 = vmatpush.bf16.msra.mxu3 %v6555_v63 }
 0x2aa   :  { %2657 = vmatpush.bf16.msra.mxu0 %v6570_v39  ;;  %2670 = vmatpush.bf16.msra.mxu1 %v8136_v40 }
 0x2ab   :  { %2683 = vmatpush.bf16.msra.mxu2 %v8137_v44  ;;  %2696 = vmatpush.bf16.msra.mxu3 %v8138_v42 }
 0x2ae   :  { %2781 = vmatpush.bf16.msrb.mxu0 %v8269_v1  ;;  %2794 = vmatpush.bf16.msrb.mxu1 %v8270_v62 }
 0x2af   :  { %2807 = vmatpush.bf16.msrb.mxu2 %v8271_v49  ;;  %2820 = vmatpush.bf16.msrb.mxu3 %v8272_v0 }
 0x2b2   :  { %2782 = vmatpush.bf16.msrb.mxu0 %v8273_v4  ;;  %2795 = vmatpush.bf16.msrb.mxu1 %v8274_v29 }
 0x2b3   :  { %2808 = vmatpush.bf16.msrb.mxu2 %v8275_v33  ;;  %2821 = vmatpush.bf16.msrb.mxu3 %v8276_v3 }
 0x2b6   :  { %2783 = vmatpush.bf16.msrb.mxu0 %v8277_v26  ;;  %2796 = vmatpush.bf16.msrb.mxu1 %v8278_v31 }
 0x2b7   :  { %2809 = vmatpush.bf16.msrb.mxu2 %v8279_v32  ;;  %2822 = vmatpush.bf16.msrb.mxu3 %v8280_v20 }
 0x2ba   :  { %2784 = vmatpush.bf16.msrb.mxu0 %v8281_v61  ;;  %2797 = vmatpush.bf16.msrb.mxu1 %v8282_v54 }
 0x2bb   :  { %2810 = vmatpush.bf16.msrb.mxu2 %v8283_v60  ;;  %2823 = vmatpush.bf16.msrb.mxu3 %v8284_v59 }
 0x2be   :  { %2785 = vmatpush.bf16.msrb.mxu0 %v8285_v50  ;;  %2798 = vmatpush.bf16.msrb.mxu1 %v8286_v16 }
 0x2bf   :  { %2811 = vmatpush.bf16.msrb.mxu2 %v8287_v21  ;;  %2824 = vmatpush.bf16.msrb.mxu3 %v8288_v46  ;;  %v8299_v46 = vld [vmem:[#allocation79_spill] sm:$0xff] }
 0x2c2   :  { %2786 = vmatpush.bf16.msrb.mxu0 %v8289_v9  ;;  %2799 = vmatpush.bf16.msrb.mxu1 %v8290_v22  ;;  %v8300_v9 = vld [vmem:[#allocation80_spill] sm:$0xff]  ;;  %v8301_v22 = vld [vmem:[#allocation89_spill] sm:$0xff] }
 0x2c3   :  { %2812 = vmatpush.bf16.msrb.mxu2 %v8291_v24  ;;  %2825 = vmatpush.bf16.msrb.mxu3 %v8292_v48  ;;  %v2382_v24 = vunpack.c.l.bf16 %v8301_v22  ;;  %v2383_v48 = vunpack.c.h.bf16 %v8301_v22 }
 0x2c6   :  { %2787 = vmatpush.bf16.msrb.mxu0 %v8293_v47  ;;  %2800 = vmatpush.bf16.msrb.mxu1 %v8294_v53 }
 0x2c7   :  { %2813 = vmatpush.bf16.msrb.mxu2 %v8295_v27  ;;  %2826 = vmatpush.bf16.msrb.mxu3 %v8296_v23  ;;  %v8302_v23 = vld [vmem:[#allocation90_spill] sm:$0xff] }
 0x2ca   :  { %2788 = vmatpush.bf16.msrb.mxu0 %v8297_v45  ;;  %2801 = vmatpush.bf16.msrb.mxu1 %v8298_v2  ;;  %v2385_v45 = vunpack.c.h.bf16 %v8302_v23 }
 0x2cb   :  { %2814 = vmatpush.bf16.msrb.mxu2 %v8299_v46  ;;  %2827 = vmatpush.bf16.msrb.mxu3 %v8300_v9 }
 0x307   :  { %v2396_v21 = vpop.f32.mrf.mxu0  ;;  %v2409_v47 = vpop.f32.mrf.mxu1 }
 0x308   :  { %v2439_v16 = vadd.f32 %v2396_v21, %v2382_v24  ;;  %v2440_v53 = vadd.f32 %v2409_v47, %v2383_v48  ;;  %v8303_v24 = vld [vmem:[#allocation23_spill] sm:$0xff] }
 0x309   :  { %v2513_v48 = vunpack.c.l.bf16 %v8303_v24  ;;  %v2514_v47 = vunpack.c.h.bf16 %v8303_v24 }
 0x30a   :  { %v4811_v50 = vmul.f32 -1.442695, %v2439_v16  ;;  %v4812_v27 = vmul.f32 -1.442695, %v2440_v53 }
 0x30c   :  { %5126 = vpow2.f32 %v4811_v50  ;;  %v2384_v50 = vunpack.c.l.bf16 %v8302_v23 }
 0x30d   :  { %5128 = vpow2.f32 %v4812_v27 }
 0x30e   :  { %v2422_v59 = vpop.f32.mrf.mxu2  ;;  %v2435_v2 = vpop.f32.mrf.mxu3 }
 0x30f   :  { %v2442_v60 = vadd.f32 %v2435_v2, %v2385_v45  ;;  %v2398_v46 = vpop.f32.mrf.mxu0  ;;  %v2411_v54 = vpop.f32.mrf.mxu1 }
 0x310   :  { %v2441_v54 = vadd.f32 %v2422_v59, %v2384_v50 }
 0x311   :  { %v4813_v9 = vmul.f32 -1.442695, %v2442_v60 }
 0x312   :  { %v5127_v61 = vpop.eup %5126 }
 0x313   :  { %v5129_v20 = vpop.eup %5128  ;;  %v2446_v32 = vadd.f32 1.0, %v5127_v61  ;;  %5130 = vpow2.f32 %v4813_v9 }
 0x314   :  { %v2465_v22 = vadd.f32 1.0, %v5129_v20 }
 0x315   :  { %5132 = vrcp.f32 %v2446_v32  ;;  %v2456_v29 = vand.u32 2147483647, %v2446_v32  ;;  %v2458_v59 = vand.u32 2147483648, %v2446_v32  ;;  %vm2452_vm2 = vweird.f32 %v2446_v32 }
 0x316   :  { %5134 = vrcp.f32 %v2465_v22  ;;  %v2424_v21 = vpop.f32.mrf.mxu2  ;;  %v2437_v16 = vpop.f32.mrf.mxu3  ;;  %v2477_v33 = vand.u32 2147483648, %v2465_v22  ;;  %vm2471_vm3 = vweird.f32 %v2465_v22 }
 0x317   :  { %v8304_v16 = vld [vmem:[#allocation24_spill] sm:$0xff]  ;;  %vm2457_vm6 = vcmp.eq.f32.partialorder %v2456_v29, 8.507059e+37 }
 0x318   :  { %v2516_v23 = vunpack.c.h.bf16 %v8304_v16 }
 0x319   :  { %v5131_v53 = vpop.eup %5130  ;;  %v2527_v27 = vpop.f32.mrf.mxu0 }
 0x31a   :  { %v2540_v46 = vpop.f32.mrf.mxu1  ;;  %v7438_v60 = vadd.f32 1.0, %v5131_v53  ;;  %v2570_v45 = vadd.f32 %v2527_v27, %v2513_v48  ;;  %v2475_v48 = vand.u32 2147483647, %v2465_v22 }
 0x31b   :  { %v2571_v61 = vadd.f32 %v2540_v46, %v2514_v47  ;;  %v5133_v9 = vpop.eup %5132 }
 0x31c   :  { %v5135_v20 = vpop.eup %5134  ;;  %v2448_v2 = vmul.f32 %v5133_v9, %v2446_v32  ;;  %5136 = vrcp.f32 %v7438_v60  ;;  %v4815_v26 = vmul.f32 -1.442695, %v2570_v45  ;;  %vm2453_vm0 = vweird.f32 %v5133_v9 }
 0x31d   :  { %v2467_v21 = vmul.f32 %v5135_v20, %v2465_v22  ;;  %5138 = vtanh.f32 %v2441_v54  ;;  %v4816_v24 = vmul.f32 -1.442695, %v2571_v61  ;;  %vm2472_vm1 = vweird.f32 %v5135_v20  ;;  %vm2454_vm4 = vmor %vm2452_vm2, %vm2453_vm0 }
 0x31e   :  { %v2449_v31 = vsub.f32 1.0, %v2448_v2  ;;  %5140 = vpow2.f32 %v4815_v26  ;;  %v2459_v45 = vor.u32 1.1754944e-38, %v2458_v59  ;;  %vm2473_vm5 = vmor %vm2471_vm3, %vm2472_vm1  ;;  %v2478_v26 = vor.u32 1.1754944e-38, %v2477_v33 }
 0x31f   :  { %v2468_v3 = vsub.f32 1.0, %v2467_v21  ;;  %5142 = vpow2.f32 %v4816_v24  ;;  %vm2476_vm7 = vcmp.eq.f32.partialorder %v2475_v48, 8.507059e+37  ;;  %v2497_v29 = vand.u32 2147483648, %v7438_v60 }
 0x320   :  { %v2450_v50 = vmul.f32 %v5133_v9, %v2449_v31  ;;  %v2553_v47 = vpop.f32.mrf.mxu2  ;;  %v2566_v53 = vpop.f32.mrf.mxu3  ;;  %vm2491_vm9 = vweird.f32 %v7438_v60 }
 0x321   :  { %v2469_v27 = vmul.f32 %v5135_v20, %v2468_v3  ;;  %v2573_v46 = vadd.f32 %v2566_v53, %v2516_v23  ;;  %v2529_v4 = vpop.f32.mrf.mxu0 }
 0x322   :  { %v2542_v0 = vpop.f32.mrf.mxu1  ;;  %v5137_v2 = vpop.eup %5136  ;;  %v2451_v54 = vadd.f32 %v5133_v9, %v2450_v50 }
 0x323   :  { %v2470_v61 = vadd.f32 %v5135_v20, %v2469_v27  ;;  %v2487_v31 = vmul.f32 %v5137_v2, %v7438_v60  ;;  %v5139_v21 = vpop.eup %5138  ;;  %v4817_v3 = vmul.f32 -1.442695, %v2573_v46  ;;  %vm2492_vm8 = vweird.f32 %v5137_v2 }
 0x324   :  { %v2455_v49 = vsel %vm2454_vm4, %v5133_v9, %v2451_v54  ;;  %v5141_v4 = vpop.eup %5140  ;;  %vm2493_vm10 = vmor %vm2491_vm9, %vm2492_vm8 }
 0x325   :  { %v2460_v24 = vsel %vm2457_vm6, %v2459_v45, %v2455_v49  ;;  %v2474_v23 = vsel %vm2473_vm5, %v5135_v20, %v2470_v61  ;;  %v2488_v0 = vsub.f32 1.0, %v2487_v31  ;;  %5144 = vpow2.f32 %v4817_v3  ;;  %v5143_v22 = vpop.eup %5142 }
 0x326   :  { %v2479_v50 = vsel %vm2476_vm7, %v2478_v26, %v2474_v23  ;;  %v2502_v32 = vmul.f32 %v5139_v21, %v2460_v24  ;;  %v2577_v27 = vadd.f32 1.0, %v5141_v4  ;;  %v7445_v62 = vadd.f32 1.0, %v5143_v22 }
 0x327   :  { %v2501_v59 = vmul.f32 %v2479_v50, %v7344_v25  ;;  %v2489_v53 = vmul.f32 %v5137_v2, %v2488_v0  ;;  %v2495_v25 = vand.u32 2147483647, %v7438_v60  ;;  %v2498_v45 = vor.u32 1.1754944e-38, %v2497_v29 }
 0x328   :  { %v2555_v1 = vpop.f32.mrf.mxu2  ;;  %v2568_v33 = vpop.f32.mrf.mxu3  ;;  %5146 = vrcp.f32 %v2577_v27  ;;  %v2589_v4 = vand.u32 2147483648, %v2577_v27  ;;  %v2587_v50 = vand.u32 2147483647, %v2577_v27  ;;  %vm2583_vm14 = vweird.f32 %v2577_v27 }
 0x329   :  { %v7447_v9 = vadd.f32 %v2502_v32, %v2501_v59  ;;  %v2490_v49 = vadd.f32 %v5137_v2, %v2489_v53  ;;  %5148 = vrcp.f32 %v7445_v62  ;;  %v2515_v1 = vunpack.c.l.bf16 %v8304_v16 }
 0x32a   :  { %vm2496_vm11 = vcmp.eq.f32.partialorder %v2495_v25, 8.507059e+37  ;;  %v2608_v16 = vand.u32 2147483648, %v7445_v62  ;;  %v2606_v59 = vand.u32 2147483647, %v7445_v62  ;;  %vm2602_vm15 = vweird.f32 %v7445_v62 }
 0x32b   :  { %5150 = vtanh.f32 %v7447_v9  ;;  %v5145_v20 = vpop.eup %5144  ;;  %v2494_v46 = vsel %vm2493_vm10, %v5137_v2, %v2490_v49  ;;  %v2572_v61 = vadd.f32 %v2553_v47, %v2515_v1  ;;  %v2590_v49 = vor.u32 1.1754944e-38, %v2589_v4  ;;  %v8305_v4 = vld [vmem:[#allocation33_spill] sm:$0xff] }
 0x32c   :  { %v7455_v48 = vadd.f32 1.0, %v5145_v20  ;;  %v2499_v24 = vsel %vm2496_vm11, %v2498_v45, %v2494_v46  ;;  %v2609_v20 = vor.u32 1.1754944e-38, %v2608_v16  ;;  %vm2588_vm2 = vcmp.eq.f32.partialorder %v2587_v50, 8.507059e+37  ;;  %v8307_v50 = vld [vmem:[#allocation36_spill] sm:$0xff] }
 0x32d   :  { %vm2607_vm3 = vcmp.eq.f32.partialorder %v2606_v59, 8.507059e+37  ;;  %v8311_v59 = vld [vmem:[#allocation43_spill] sm:$0xff] }
 0x32e   :  { %v5147_v54 = vpop.eup %5146  ;;  %5152 = vrcp.f32 %v7455_v48  ;;  %vm2622_vm5 = vweird.f32 %v7455_v48 }
 0x32f   :  { %v5149_v31 = vpop.eup %5148  ;;  %v2579_v21 = vmul.f32 %v5147_v54, %v2577_v27  ;;  %5154 = vtanh.f32 %v2572_v61  ;;  %vm2584_vm12 = vweird.f32 %v5147_v54 }
 0x330   :  { %v2598_v3 = vmul.f32 %v5149_v31, %v7445_v62  ;;  %vm2603_vm13 = vweird.f32 %v5149_v31  ;;  %vm2585_vm0 = vmor %vm2583_vm14, %vm2584_vm12 }
 0x331   :  { %v5151_v26 = vpop.eup %5150  ;;  %v2580_v23 = vsub.f32 1.0, %v2579_v21  ;;  %vm2604_vm1 = vmor %vm2602_vm15, %vm2603_vm13 }
 0x332   :  { %v2505_v60 = vmul.f32 %v5151_v26, %v2499_v24  ;;  %v2599_v0 = vsub.f32 1.0, %v2598_v3  ;;  %v2628_v3 = vand.u32 2147483648, %v7455_v48 }
 0x333   :  { %v2581_v2 = vmul.f32 %v5147_v54, %v2580_v23 }
 0x334   :  { %4814 = vst [vmem:[%s7930_s6 + $0x10] sm:$0xff] %v2505_v60  ;;  %v2649_v47 = vpack.c.bf16 %v2505_v60, %v2505_v60  ;;  %v5153_v32 = vpop.eup %5152  ;;  %v2600_v22 = vmul.f32 %v5149_v31, %v2599_v0  ;;  %v2629_v23 = vor.u32 1.1754944e-38, %v2628_v3  ;;  %v8327_v3 = vld [vmem:[#allocation67_spill] sm:$0xff] }
 0x335   :  { %v2582_v53 = vadd.f32 %v5147_v54, %v2581_v2  ;;  %v2618_v33 = vmul.f32 %v5153_v32, %v7455_v48  ;;  %v5155_v27 = vpop.eup %5154  ;;  %vm2623_vm4 = vweird.f32 %v5153_v32  ;;  %v8306_v2 = vld [vmem:[#allocation34_spill] sm:$0xff] }
 0x336   :  { %2658 = vmatmul.bf16.vlgmr.msra.gmra.mxu0 %v2649_v47  ;;  %2671 = vmatmul.bf16.vlgmr.msra.gmra.mxu1 %v2649_v47  ;;  %v2601_v29 = vadd.f32 %v5149_v31, %v2600_v22  ;;  %vm2624_vm6 = vmor %vm2622_vm5, %vm2623_vm4  ;;  %v8310_v22 = vld [vmem:[#allocation42_spill] sm:$0xff] }
 0x337   :  { %2684 = vmatmul.bf16.vlgmr.msra.gmra.mxu2 %v2649_v47  ;;  %2697 = vmatmul.bf16.vlgmr.msra.gmra.mxu3 %v2649_v47  ;;  %v2586_v25 = vsel %vm2585_vm0, %v5147_v54, %v2582_v53  ;;  %v2619_v1 = vsub.f32 1.0, %v2618_v33  ;;  %v8308_v47 = vld [vmem:[#allocation39_spill] sm:$0xff]  ;;  %v8312_v53 = vld [vmem:[#allocation44_spill] sm:$0xff]  ;;  %v8313_v33 = vld [vmem:[#allocation45_spill] sm:$0xff] }
 0x338   :  { %2910 = vmatpush.bf16.msra.mxu0 %v8237_v34  ;;  %2923 = vmatpush.bf16.msra.mxu1 %v6263_v43  ;;  %v2591_v46 = vsel %vm2588_vm2, %v2590_v49, %v2586_v25  ;;  %v2605_v45 = vsel %vm2604_vm1, %v5149_v31, %v2601_v29  ;;  %v8314_v49 = vld [vmem:[#allocation46_spill] sm:$0xff]  ;;  %v8315_v29 = vld [vmem:[#allocation47_spill] sm:$0xff]  ;;  %v8317_v25 = vld [vmem:[#allocation53_spill] sm:$0xff] }
 0x339   :  { %2936 = vmatpush.bf16.msra.mxu2 %v8238_v15  ;;  %2949 = vmatpush.bf16.msra.mxu3 %v8239_v5  ;;  %v2610_v62 = vsel %vm2607_vm3, %v2609_v20, %v2605_v45  ;;  %v2633_v61 = vmul.f32 %v5155_v27, %v2591_v46  ;;  %v2620_v21 = vmul.f32 %v5153_v32, %v2619_v1  ;;  %v8316_v20 = vld [vmem:[#allocation48_spill] sm:$0xff]  ;;  %v8318_v1 = vld [vmem:[#allocation54_spill] sm:$0xff]  ;;  %v8319_v27 = vld [vmem:[#allocation55_spill] sm:$0xff] }
 0x33a   :  { %v2632_v26 = vmul.f32 %v2610_v62, %v7363_v35  ;;  %v2626_v35 = vand.u32 2147483647, %v7455_v48  ;;  %v8320_v46 = vld [vmem:[#allocation56_spill] sm:$0xff]  ;;  %v8321_v45 = vld [vmem:[#allocation57_spill] sm:$0xff]  ;;  %v8322_v62 = vld [vmem:[#allocation58_spill] sm:$0xff] }
 0x33b   :  { %v2621_v31 = vadd.f32 %v5153_v32, %v2620_v21  ;;  %v8324_v21 = vld [vmem:[#allocation61_spill] sm:$0xff] }
 0x33c   :  { %2911 = vmatpush.bf16.msra.mxu0 %v6293_v57  ;;  %2924 = vmatpush.bf16.msra.mxu1 %v6295_v58  ;;  %v7473_v54 = vadd.f32 %v2633_v61, %v2632_v26  ;;  %vm2627_vm7 = vcmp.eq.f32.partialorder %v2626_v35, 8.507059e+37  ;;  %v8323_v61 = vld [vmem:[#allocation59_spill] sm:$0xff]  ;;  %v8325_v26 = vld [vmem:[#allocation65_spill] sm:$0xff]  ;;  %v8328_v35 = vld [vmem:[#allocation68_spill] sm:$0xff] }
 0x33d   :  { %2937 = vmatpush.bf16.msra.mxu2 %v6381_v51  ;;  %2950 = vmatpush.bf16.msra.mxu3 %v6322_v7  ;;  %v2625_v24 = vsel %vm2624_vm6, %v5153_v32, %v2621_v31  ;;  %v8309_v32 = vld [vmem:[#allocation40_spill] sm:$0xff]  ;;  %v8326_v31 = vld [vmem:[#allocation66_spill] sm:$0xff] }
 0x33e   :  { %5156 = vtanh.f32 %v7473_v54  ;;  %v2630_v0 = vsel %vm2627_vm7, %v2629_v23, %v2625_v24  ;;  %v8329_v24 = vld [vmem:[#allocation69_spill] sm:$0xff]  ;;  %v8330_v23 = vld [vmem:[#allocation70_spill] sm:$0xff] }
 0x340   :  { %2912 = vmatpush.bf16.msra.mxu0 %v6344_v13  ;;  %2925 = vmatpush.bf16.msra.mxu1 %v6351_v18 }
 0x341   :  { %2938 = vmatpush.bf16.msra.mxu2 %v6405_v6  ;;  %2951 = vmatpush.bf16.msra.mxu3 %v6370_v37 }
 0x344   :  { %2913 = vmatpush.bf16.msra.mxu0 %v6383_v52  ;;  %2926 = vmatpush.bf16.msra.mxu1 %v6392_v56  ;;  %v5157_v60 = vpop.eup %5156 }
 0x345   :  { %2939 = vmatpush.bf16.msra.mxu2 %v6429_v38  ;;  %2952 = vmatpush.bf16.msra.mxu3 %v6420_v28  ;;  %v2636_v48 = vmul.f32 %v5157_v60, %v2630_v0  ;;  %v8331_v60 = vld [vmem:[#allocation71_spill] sm:$0xff]  ;;  %v8332_v0 = vld [vmem:[#allocation73_spill] sm:$0xff] }
 0x347   :  { %4818 = vst [vmem:[%s7930_s6 + $0x68] sm:$0xff] %v2636_v48  ;;  %v2780_v16 = vpack.c.bf16 %v2636_v48, %v2636_v48  ;;  %v8333_v48 = vld [vmem:[#allocation77_spill] sm:$0xff] }
 0x348   :  { %2914 = vmatpush.bf16.msra.mxu0 %v6445_v55  ;;  %2927 = vmatpush.bf16.msra.mxu1 %v6458_v19 }
 0x349   :  { %2940 = vmatpush.bf16.msra.mxu2 %v6460_v30  ;;  %2953 = vmatpush.bf16.msra.mxu3 %v6473_v10 }
 0x34a   :  { %2789 = vmatmul.bf16.vlgmr.msrb.gmra.mxu0 %v2780_v16  ;;  %2802 = vmatmul.bf16.vlgmr.msrb.gmra.mxu1 %v2780_v16 }
 0x34b   :  { %2815 = vmatmul.bf16.vlgmr.msrb.gmra.mxu2 %v2780_v16  ;;  %2828 = vmatmul.bf16.vlgmr.msrb.gmra.mxu3 %v2780_v16  ;;  %v8334_v16 = vld [vmem:[#allocation78_spill] sm:$0xff] }
 0x34c   :  { %2915 = vmatpush.bf16.msra.mxu0 %v6489_v36  ;;  %2928 = vmatpush.bf16.msra.mxu1 %v6500_v41 }
 0x34d   :  { %2941 = vmatpush.bf16.msra.mxu2 %v6502_v12  ;;  %2954 = vmatpush.bf16.msra.mxu3 %v6511_v8 }
 0x350   :  { %2916 = vmatpush.bf16.msra.mxu0 %v6527_v14  ;;  %2929 = vmatpush.bf16.msra.mxu1 %v6542_v17 }
 0x351   :  { %2942 = vmatpush.bf16.msra.mxu2 %v6544_v11  ;;  %2955 = vmatpush.bf16.msra.mxu3 %v6555_v63 }
 0x354   :  { %2917 = vmatpush.bf16.msra.mxu0 %v6570_v39  ;;  %2930 = vmatpush.bf16.msra.mxu1 %v8136_v40 }
 0x355   :  { %2943 = vmatpush.bf16.msra.mxu2 %v8137_v44  ;;  %2956 = vmatpush.bf16.msra.mxu3 %v8138_v42 }
 0x358   :  { %3038 = vmatpush.bf16.msrb.mxu0 %v8305_v4  ;;  %3051 = vmatpush.bf16.msrb.mxu1 %v8306_v2 }
 0x359   :  { %3064 = vmatpush.bf16.msrb.mxu2 %v8307_v50  ;;  %3077 = vmatpush.bf16.msrb.mxu3 %v8308_v47 }
 0x35c   :  { %3039 = vmatpush.bf16.msrb.mxu0 %v8309_v32  ;;  %3052 = vmatpush.bf16.msrb.mxu1 %v8310_v22  ;;  %v8340_v32 = vld [vmem:[#allocation22_spill] sm:$0xff] }
 0x35d   :  { %3065 = vmatpush.bf16.msrb.mxu2 %v8311_v59  ;;  %3078 = vmatpush.bf16.msrb.mxu3 %v8312_v53  ;;  %v2779_v47 = vunpack.c.h.bf16 %v8340_v32 }
 0x360   :  { %3040 = vmatpush.bf16.msrb.mxu0 %v8313_v33  ;;  %3053 = vmatpush.bf16.msrb.mxu1 %v8314_v49 }
 0x361   :  { %3066 = vmatpush.bf16.msrb.mxu2 %v8315_v29  ;;  %3079 = vmatpush.bf16.msrb.mxu3 %v8316_v20 }
 0x364   :  { %3041 = vmatpush.bf16.msrb.mxu0 %v8317_v25  ;;  %3054 = vmatpush.bf16.msrb.mxu1 %v8318_v1 }
 0x365   :  { %3067 = vmatpush.bf16.msrb.mxu2 %v8319_v27  ;;  %3080 = vmatpush.bf16.msrb.mxu3 %v8320_v46 }
 0x368   :  { %3042 = vmatpush.bf16.msrb.mxu0 %v8321_v45  ;;  %3055 = vmatpush.bf16.msrb.mxu1 %v8322_v62 }
 0x369   :  { %3068 = vmatpush.bf16.msrb.mxu2 %v8323_v61  ;;  %3081 = vmatpush.bf16.msrb.mxu3 %v8324_v21  ;;  %v8335_v21 = vld [vmem:[#allocation79_spill] sm:$0xff] }
 0x36c   :  { %3043 = vmatpush.bf16.msrb.mxu0 %v8325_v26  ;;  %3056 = vmatpush.bf16.msrb.mxu1 %v8326_v31  ;;  %v8336_v26 = vld [vmem:[#allocation80_spill] sm:$0xff]  ;;  %v8337_v31 = vld [vmem:[#allocation91_spill] sm:$0xff] }
 0x36d   :  { %3069 = vmatpush.bf16.msrb.mxu2 %v8327_v3  ;;  %3082 = vmatpush.bf16.msrb.mxu3 %v8328_v35  ;;  %v2645_v3 = vunpack.c.l.bf16 %v8337_v31  ;;  %v2646_v35 = vunpack.c.h.bf16 %v8337_v31 }
 0x370   :  { %3044 = vmatpush.bf16.msrb.mxu0 %v8329_v24  ;;  %3057 = vmatpush.bf16.msrb.mxu1 %v8330_v23 }
 0x371   :  { %3070 = vmatpush.bf16.msrb.mxu2 %v8331_v60  ;;  %3083 = vmatpush.bf16.msrb.mxu3 %v8332_v0  ;;  %v8338_v0 = vld [vmem:[#allocation30_spill] sm:$0xff] }
 0x374   :  { %3045 = vmatpush.bf16.msrb.mxu0 %v8333_v48  ;;  %3058 = vmatpush.bf16.msrb.mxu1 %v8334_v16  ;;  %v2648_v48 = vunpack.c.h.bf16 %v8338_v0 }
 0x375   :  { %3071 = vmatpush.bf16.msrb.mxu2 %v8335_v21  ;;  %3084 = vmatpush.bf16.msrb.mxu3 %v8336_v26 }
 0x3b3   :  { %v2659_v61 = vpop.f32.mrf.mxu0  ;;  %v2672_v24 = vpop.f32.mrf.mxu1 }
 0x3b4   :  { %v2702_v62 = vadd.f32 %v2659_v61, %v2645_v3  ;;  %v2703_v23 = vadd.f32 %v2672_v24, %v2646_v35 }
 0x3b6   :  { %v4819_v45 = vmul.f32 -1.442695, %v2702_v62  ;;  %v4820_v60 = vmul.f32 -1.442695, %v2703_v23 }
 0x3b8   :  { %5158 = vpow2.f32 %v4819_v45  ;;  %v2647_v45 = vunpack.c.l.bf16 %v8338_v0 }
 0x3b9   :  { %5160 = vpow2.f32 %v4820_v60 }
 0x3ba   :  { %v2685_v46 = vpop.f32.mrf.mxu2  ;;  %v2698_v16 = vpop.f32.mrf.mxu3 }
 0x3bb   :  { %v2705_v27 = vadd.f32 %v2698_v16, %v2648_v48  ;;  %v2661_v21 = vpop.f32.mrf.mxu0  ;;  %v2674_v1 = vpop.f32.mrf.mxu1  ;;  %v2704_v35 = vadd.f32 %v2685_v46, %v2647_v45 }
 0x3bd   :  { %v4821_v26 = vmul.f32 -1.442695, %v2705_v27 }
 0x3be   :  { %v5159_v25 = vpop.eup %5158 }
 0x3bf   :  { %v5161_v20 = vpop.eup %5160  ;;  %v2709_v29 = vadd.f32 1.0, %v5159_v25  ;;  %5162 = vpow2.f32 %v4821_v26  ;;  %v8339_v25 = vld [vmem:[#allocation21_spill] sm:$0xff] }
 0x3c0   :  { %v2728_v31 = vadd.f32 1.0, %v5161_v20  ;;  %v2776_v26 = vunpack.c.l.bf16 %v8339_v25  ;;  %v2777_v20 = vunpack.c.h.bf16 %v8339_v25 }
 0x3c1   :  { %5164 = vrcp.f32 %v2709_v29  ;;  %v2719_v45 = vand.u32 2147483647, %v2709_v29  ;;  %vm2715_vm11 = vweird.f32 %v2709_v29 }
 0x3c2   :  { %5166 = vrcp.f32 %v2728_v31  ;;  %v2687_v61 = vpop.f32.mrf.mxu2  ;;  %v2700_v62 = vpop.f32.mrf.mxu3  ;;  %v2740_v46 = vand.u32 2147483648, %v2728_v31  ;;  %v2738_v22 = vand.u32 2147483647, %v2728_v31  ;;  %vm2734_vm10 = vweird.f32 %v2728_v31 }
 0x3c3   :  { %vm2720_vm14 = vcmp.eq.f32.partialorder %v2719_v45, 8.507059e+37 }
 0x3c4   :  { %vm2739_vm15 = vcmp.eq.f32.partialorder %v2738_v22, 8.507059e+37 }
 0x3c5   :  { %v5163_v3 = vpop.eup %5162 }
 0x3c6   :  { %v7544_v24 = vadd.f32 1.0, %v5163_v3  ;;  %v2721_v3 = vand.u32 2147483648, %v2709_v29 }
 0x3c7   :  { %v5165_v23 = vpop.eup %5164  ;;  %v2790_v60 = vpop.f32.mrf.mxu0 }
 0x3c8   :  { %v2803_v21 = vpop.f32.mrf.mxu1  ;;  %v5167_v1 = vpop.eup %5166  ;;  %v2711_v27 = vmul.f32 %v5165_v23, %v2709_v29  ;;  %5168 = vrcp.f32 %v7544_v24  ;;  %v2833_v61 = vadd.f32 %v2790_v60, %v2776_v26  ;;  %vm2716_vm8 = vweird.f32 %v5165_v23 }
 0x3c9   :  { %v2730_v48 = vmul.f32 %v5167_v1, %v2728_v31  ;;  %5170 = vtanh.f32 %v2704_v35  ;;  %v2834_v0 = vadd.f32 %v2803_v21, %v2777_v20  ;;  %vm2735_vm9 = vweird.f32 %v5167_v1  ;;  %vm2717_vm12 = vmor %vm2715_vm11, %vm2716_vm8 }
 0x3ca   :  { %v2712_v16 = vsub.f32 1.0, %v2711_v27  ;;  %v4823_v33 = vmul.f32 -1.442695, %v2833_v61  ;;  %v2722_v21 = vor.u32 1.1754944e-38, %v2721_v3  ;;  %vm2736_vm13 = vmor %vm2734_vm10, %vm2735_vm9  ;;  %v2741_v61 = vor.u32 1.1754944e-38, %v2740_v46 }
 0x3cb   :  { %v2731_v62 = vsub.f32 1.0, %v2730_v48  ;;  %v4824_v53 = vmul.f32 -1.442695, %v2834_v0  ;;  %v2760_v22 = vand.u32 2147483648, %v7544_v24  ;;  %vm2754_vm1 = vweird.f32 %v7544_v24 }
 0x3cc   :  { %v2713_v49 = vmul.f32 %v5165_v23, %v2712_v16  ;;  %5172 = vpow2.f32 %v4823_v33 }
 0x3cd   :  { %v2732_v59 = vmul.f32 %v5167_v1, %v2731_v62  ;;  %5174 = vpow2.f32 %v4824_v53 }
 0x3ce   :  { %v5169_v50 = vpop.eup %5168  ;;  %v2714_v25 = vadd.f32 %v5165_v23, %v2713_v49  ;;  %v2816_v35 = vpop.f32.mrf.mxu2 }
 0x3cf   :  { %v2829_v60 = vpop.f32.mrf.mxu3  ;;  %v2733_v27 = vadd.f32 %v5167_v1, %v2732_v59  ;;  %v2750_v26 = vmul.f32 %v5169_v50, %v7544_v24  ;;  %v2792_v20 = vpop.f32.mrf.mxu0  ;;  %vm2755_vm0 = vweird.f32 %v5169_v50 }
 0x3d0   :  { %v2805_v48 = vpop.f32.mrf.mxu1  ;;  %v5171_v16 = vpop.eup %5170  ;;  %v2718_v0 = vsel %vm2717_vm12, %v5165_v23, %v2714_v25  ;;  %v2836_v31 = vadd.f32 %v2829_v60, %v2779_v47  ;;  %vm2756_vm2 = vmor %vm2754_vm1, %vm2755_vm0  ;;  %v2778_v60 = vunpack.c.l.bf16 %v8340_v32 }
 0x3d1   :  { %v2723_v49 = vsel %vm2720_vm14, %v2722_v21, %v2718_v0  ;;  %v2737_v29 = vsel %vm2736_vm13, %v5167_v1, %v2733_v27  ;;  %v2751_v33 = vsub.f32 1.0, %v2750_v26 }
 0x3d2   :  { %v2742_v62 = vsel %vm2739_vm15, %v2741_v61, %v2737_v29  ;;  %v2765_v42 = vmul.f32 %v5171_v16, %v2723_v49  ;;  %v4825_v3 = vmul.f32 -1.442695, %v2836_v31  ;;  %v5173_v53 = vpop.eup %5172  ;;  %v2835_v16 = vadd.f32 %v2816_v35, %v2778_v60 }
 0x3d3   :  { %v2764_v59 = vmul.f32 %v2742_v62, %v7447_v9  ;;  %v2752_v44 = vmul.f32 %v5169_v50, %v2751_v33  ;;  %v5175_v20 = vpop.eup %5174  ;;  %v2840_v2 = vadd.f32 1.0, %v5173_v53  ;;  %v2758_v9 = vand.u32 2147483647, %v7544_v24 }
 0x3d4   :  { %5176 = vpow2.f32 %v4825_v3  ;;  %v7555_v23 = vadd.f32 1.0, %v5175_v20 }
 0x3d5   :  { %v7553_v48 = vadd.f32 %v2765_v42, %v2764_v59  ;;  %v2753_v46 = vadd.f32 %v5169_v50, %v2752_v44  ;;  %v2761_v44 = vor.u32 1.1754944e-38, %v2760_v22  ;;  %vm2759_vm3 = vcmp.eq.f32.partialorder %v2758_v9, 8.507059e+37 }
 0x3d6   :  { %v2818_v47 = vpop.f32.mrf.mxu2  ;;  %v2852_v33 = vand.u32 2147483648, %v2840_v2  ;;  %v2871_v62 = vand.u32 2147483648, %v7555_v23  ;;  %v2850_v3 = vand.u32 2147483647, %v2840_v2  ;;  %v2869_v53 = vand.u32 2147483647, %v7555_v23 }
 0x3d7   :  { %v2831_v1 = vpop.f32.mrf.mxu3  ;;  %5178 = vtanh.f32 %v7553_v48  ;;  %v2757_v45 = vsel %vm2756_vm2, %v5169_v50, %v2753_v46  ;;  %vm2846_vm6 = vweird.f32 %v2840_v2  ;;  %vm2865_vm7 = vweird.f32 %v7555_v23 }
 0x3d8   :  { %5180 = vrcp.f32 %v2840_v2  ;;  %v2762_v27 = vsel %vm2759_vm3, %v2761_v44, %v2757_v45  ;;  %v2853_v47 = vor.u32 1.1754944e-38, %v2852_v33  ;;  %v2872_v9 = vor.u32 1.1754944e-38, %v2871_v62  ;;  %v8342_v33 = vld [vmem:[#allocation31_spill] sm:$0xff]  ;;  %v8344_v62 = vld [vmem:[#allocation36_spill] sm:$0xff] }
 0x3d9   :  { %5182 = vrcp.f32 %v7555_v23  ;;  %vm2851_vm10 = vcmp.eq.f32.partialorder %v2850_v3, 8.507059e+37  ;;  %vm2870_vm11 = vcmp.eq.f32.partialorder %v2869_v53, 8.507059e+37  ;;  %v8346_v3 = vld [vmem:[#allocation40_spill] sm:$0xff]  ;;  %v8348_v53 = vld [vmem:[#allocation43_spill] sm:$0xff] }
 0x3da   :  { %v5177_v42 = vpop.eup %5176 }
 0x3db   :  { %v7562_v25 = vadd.f32 1.0, %v5177_v42 }
 0x3dd   :  { %v5179_v21 = vpop.eup %5178  ;;  %5184 = vrcp.f32 %v7562_v25  ;;  %vm2885_vm13 = vweird.f32 %v7562_v25 }
 0x3de   :  { %v5181_v26 = vpop.eup %5180  ;;  %v2768_v61 = vmul.f32 %v5179_v21, %v2762_v27  ;;  %5186 = vtanh.f32 %v2835_v16 }
 0x3df   :  { %v5183_v24 = vpop.eup %5182  ;;  %v2842_v0 = vmul.f32 %v5181_v26, %v2840_v2  ;;  %vm2847_vm4 = vweird.f32 %v5181_v26 }
 0x3e0   :  { %v2861_v31 = vmul.f32 %v5183_v24, %v7555_v23  ;;  %4822 = vst [vmem:[%s7930_s6 + $0x18] sm:$0xff] %v2768_v61  ;;  %v2909_v50 = vpack.c.bf16 %v2768_v61, %v2768_v61  ;;  %vm2866_vm5 = vweird.f32 %v5183_v24  ;;  %vm2848_vm8 = vmor %vm2846_vm6, %vm2847_vm4  ;;  %v2891_v61 = vand.u32 2147483648, %v7562_v25 }
 0x3e1   :  { %v2843_v49 = vsub.f32 1.0, %v2842_v0  ;;  %vm2867_vm9 = vmor %vm2865_vm7, %vm2866_vm5 }
 0x3e2   :  { %v2862_v29 = vsub.f32 1.0, %v2861_v31  ;;  %2918 = vmatmul.bf16.vlgmr.msra.gmra.mxu0 %v2909_v50  ;;  %2931 = vmatmul.bf16.vlgmr.msra.gmra.mxu1 %v2909_v50  ;;  %v2892_v0 = vor.u32 1.1754944e-38, %v2891_v61  ;;  %v8364_v61 = vld [vmem:[#allocation67_spill] sm:$0xff] }
 0x3e3   :  { %v5185_v32 = vpop.eup %5184  ;;  %v2844_v35 = vmul.f32 %v5181_v26, %v2843_v49  ;;  %2944 = vmatmul.bf16.vlgmr.msra.gmra.mxu2 %v2909_v50  ;;  %2957 = vmatmul.bf16.vlgmr.msra.gmra.mxu3 %v2909_v50 }
 0x3e4   :  { %v2863_v59 = vmul.f32 %v5183_v24, %v2862_v29  ;;  %v2881_v20 = vmul.f32 %v5185_v32, %v7562_v25  ;;  %3167 = vmatpush.bf16.msra.mxu0 %v8237_v34  ;;  %3180 = vmatpush.bf16.msra.mxu1 %v6263_v43  ;;  %v5187_v45 = vpop.eup %5186  ;;  %vm2886_vm12 = vweird.f32 %v5185_v32  ;;  %v8341_v29 = vld [vmem:[#allocation34_spill] sm:$0xff] }
 0x3e5   :  { %v2845_v46 = vadd.f32 %v5181_v26, %v2844_v35  ;;  %3193 = vmatpush.bf16.msra.mxu2 %v8238_v15  ;;  %3206 = vmatpush.bf16.msra.mxu3 %v8239_v5  ;;  %vm2887_vm14 = vmor %vm2885_vm13, %vm2886_vm12  ;;  %v8345_v35 = vld [vmem:[#allocation39_spill] sm:$0xff] }
 0x3e6   :  { %v2864_v1 = vadd.f32 %v5183_v24, %v2863_v59  ;;  %v2882_v22 = vsub.f32 1.0, %v2881_v20  ;;  %v8347_v59 = vld [vmem:[#allocation42_spill] sm:$0xff]  ;;  %v8349_v20 = vld [vmem:[#allocation44_spill] sm:$0xff] }
 0x3e7   :  { %v2849_v42 = vsel %vm2848_vm8, %v5181_v26, %v2845_v46  ;;  %v8350_v46 = vld [vmem:[#allocation45_spill] sm:$0xff] }
 0x3e8   :  { %v2854_v44 = vsel %vm2851_vm10, %v2853_v47, %v2849_v42  ;;  %v2868_v60 = vsel %vm2867_vm9, %v5183_v24, %v2864_v1  ;;  %3168 = vmatpush.bf16.msra.mxu0 %v6293_v57  ;;  %3181 = vmatpush.bf16.msra.mxu1 %v6295_v58  ;;  %v2883_v23 = vmul.f32 %v5185_v32, %v2882_v22  ;;  %v8351_v47 = vld [vmem:[#allocation46_spill] sm:$0xff]  ;;  %v8352_v1 = vld [vmem:[#allocation47_spill] sm:$0xff]  ;;  %v8353_v22 = vld [vmem:[#allocation48_spill] sm:$0xff] }
 0x3e9   :  { %v2873_v2 = vsel %vm2870_vm11, %v2872_v9, %v2868_v60  ;;  %v2896_v21 = vmul.f32 %v5187_v45, %v2854_v44  ;;  %3194 = vmatpush.bf16.msra.mxu2 %v6381_v51  ;;  %3207 = vmatpush.bf16.msra.mxu3 %v6322_v7  ;;  %v8354_v9 = vld [vmem:[#allocation53_spill] sm:$0xff]  ;;  %v8355_v42 = vld [vmem:[#allocation54_spill] sm:$0xff]  ;;  %v8356_v45 = vld [vmem:[#allocation55_spill] sm:$0xff] }
 0x3ea   :  { %v2895_v27 = vmul.f32 %v2873_v2, %v7473_v54  ;;  %v2884_v26 = vadd.f32 %v5185_v32, %v2883_v23  ;;  %v2889_v54 = vand.u32 2147483647, %v7562_v25  ;;  %v8357_v44 = vld [vmem:[#allocation56_spill] sm:$0xff]  ;;  %v8358_v60 = vld [vmem:[#allocation57_spill] sm:$0xff]  ;;  %v8359_v2 = vld [vmem:[#allocation58_spill] sm:$0xff] }
 0x3eb   :  { %v8361_v23 = vld [vmem:[#allocation61_spill] sm:$0xff] }
 0x3ec   :  { %v7584_v16 = vadd.f32 %v2896_v21, %v2895_v27  ;;  %3169 = vmatpush.bf16.msra.mxu0 %v6344_v13  ;;  %3182 = vmatpush.bf16.msra.mxu1 %v6351_v18  ;;  %v2888_v24 = vsel %vm2887_vm14, %v5185_v32, %v2884_v26  ;;  %vm2890_vm15 = vcmp.eq.f32.partialorder %v2889_v54, 8.507059e+37  ;;  %v8343_v32 = vld [vmem:[#allocation32_spill] sm:$0xff]  ;;  %v8360_v21 = vld [vmem:[#allocation59_spill] sm:$0xff]  ;;  %v8362_v27 = vld [vmem:[#allocation65_spill] sm:$0xff] }
 0x3ed   :  { %3195 = vmatpush.bf16.msra.mxu2 %v6405_v6  ;;  %3208 = vmatpush.bf16.msra.mxu3 %v6370_v37  ;;  %v2893_v50 = vsel %vm2890_vm15, %v2892_v0, %v2888_v24  ;;  %v8363_v26 = vld [vmem:[#allocation66_spill] sm:$0xff]  ;;  %v8365_v54 = vld [vmem:[#allocation68_spill] sm:$0xff]  ;;  %v8366_v24 = vld [vmem:[#allocation69_spill] sm:$0xff] }
 0x3ee   :  { %5188 = vtanh.f32 %v7584_v16  ;;  %v8367_v0 = vld [vmem:[#allocation70_spill] sm:$0xff] }
 0x3f0   :  { %3170 = vmatpush.bf16.msra.mxu0 %v6383_v52  ;;  %3183 = vmatpush.bf16.msra.mxu1 %v6392_v56 }
 0x3f1   :  { %3196 = vmatpush.bf16.msra.mxu2 %v6429_v38  ;;  %3209 = vmatpush.bf16.msra.mxu3 %v6420_v28 }
 0x3f4   :  { %v5189_v31 = vpop.eup %5188  ;;  %3171 = vmatpush.bf16.msra.mxu0 %v6445_v55  ;;  %3184 = vmatpush.bf16.msra.mxu1 %v6458_v19 }
 0x3f5   :  { %v2899_v49 = vmul.f32 %v5189_v31, %v2893_v50  ;;  %3197 = vmatpush.bf16.msra.mxu2 %v6460_v30  ;;  %3210 = vmatpush.bf16.msra.mxu3 %v6473_v10  ;;  %v8368_v31 = vld [vmem:[#allocation71_spill] sm:$0xff]  ;;  %v8369_v50 = vld [vmem:[#allocation73_spill] sm:$0xff] }
 0x3f7   :  { %4826 = vst [vmem:[%s7930_s6 + $0x60] sm:$0xff] %v2899_v49  ;;  %v3037_v25 = vpack.c.bf16 %v2899_v49, %v2899_v49  ;;  %v8370_v49 = vld [vmem:[#allocation77_spill] sm:$0xff] }
 0x3f8   :  { %3172 = vmatpush.bf16.msra.mxu0 %v6489_v36  ;;  %3185 = vmatpush.bf16.msra.mxu1 %v6500_v41 }
 0x3f9   :  { %3046 = vmatmul.bf16.vlgmr.msrb.gmra.mxu0 %v3037_v25  ;;  %3059 = vmatmul.bf16.vlgmr.msrb.gmra.mxu1 %v3037_v25 }
 0x3fa   :  { %3072 = vmatmul.bf16.vlgmr.msrb.gmra.mxu2 %v3037_v25  ;;  %3085 = vmatmul.bf16.vlgmr.msrb.gmra.mxu3 %v3037_v25  ;;  %v8371_v25 = vld [vmem:[#allocation78_spill] sm:$0xff] }
 0x3fb   :  { %3198 = vmatpush.bf16.msra.mxu2 %v6502_v12  ;;  %3211 = vmatpush.bf16.msra.mxu3 %v6511_v8 }
 0x3fc   :  { %3173 = vmatpush.bf16.msra.mxu0 %v6527_v14  ;;  %3186 = vmatpush.bf16.msra.mxu1 %v6542_v17 }
 0x3ff   :  { %3199 = vmatpush.bf16.msra.mxu2 %v6544_v11  ;;  %3212 = vmatpush.bf16.msra.mxu3 %v6555_v63 }
 0x400   :  { %3174 = vmatpush.bf16.msra.mxu0 %v6570_v39  ;;  %3187 = vmatpush.bf16.msra.mxu1 %v8136_v40 }
 0x403   :  { %3200 = vmatpush.bf16.msra.mxu2 %v8342_v33  ;;  %3213 = vmatpush.bf16.msra.mxu3 %v8343_v32 }
 0x404   :  { %3295 = vmatpush.bf16.msrb.mxu0 %v8305_v4  ;;  %3308 = vmatpush.bf16.msrb.mxu1 %v8341_v29 }
 0x407   :  { %3321 = vmatpush.bf16.msrb.mxu2 %v8344_v62  ;;  %3334 = vmatpush.bf16.msrb.mxu3 %v8345_v35 }
 0x408   :  { %3296 = vmatpush.bf16.msrb.mxu0 %v8346_v3  ;;  %3309 = vmatpush.bf16.msrb.mxu1 %v8347_v59 }
 0x40b   :  { %3322 = vmatpush.bf16.msrb.mxu2 %v8348_v53  ;;  %3335 = vmatpush.bf16.msrb.mxu3 %v8349_v20 }
 0x40c   :  { %3297 = vmatpush.bf16.msrb.mxu0 %v8350_v46  ;;  %3310 = vmatpush.bf16.msrb.mxu1 %v8351_v47 }
 0x40f   :  { %3323 = vmatpush.bf16.msrb.mxu2 %v8352_v1  ;;  %3336 = vmatpush.bf16.msrb.mxu3 %v8353_v22 }
 0x410   :  { %3298 = vmatpush.bf16.msrb.mxu0 %v8354_v9  ;;  %3311 = vmatpush.bf16.msrb.mxu1 %v8355_v42 }
 0x413   :  { %3324 = vmatpush.bf16.msrb.mxu2 %v8356_v45  ;;  %3337 = vmatpush.bf16.msrb.mxu3 %v8357_v44 }
 0x414   :  { %3299 = vmatpush.bf16.msrb.mxu0 %v8358_v60  ;;  %3312 = vmatpush.bf16.msrb.mxu1 %v8359_v2 }
 0x417   :  { %3325 = vmatpush.bf16.msrb.mxu2 %v8360_v21  ;;  %3338 = vmatpush.bf16.msrb.mxu3 %v8361_v23  ;;  %v8372_v23 = vld [vmem:[#allocation79_spill] sm:$0xff] }
 0x418   :  { %3300 = vmatpush.bf16.msrb.mxu0 %v8362_v27  ;;  %3313 = vmatpush.bf16.msrb.mxu1 %v8363_v26  ;;  %v8373_v27 = vld [vmem:[#allocation80_spill] sm:$0xff] }
 0x419   :  { %v8374_v26 = vld [vmem:[#allocation92_spill] sm:$0xff] }
 0x41b   :  { %3326 = vmatpush.bf16.msrb.mxu2 %v8364_v61  ;;  %3339 = vmatpush.bf16.msrb.mxu3 %v8365_v54  ;;  %v2905_v61 = vunpack.c.l.bf16 %v8374_v26  ;;  %v2906_v54 = vunpack.c.h.bf16 %v8374_v26 }
 0x41c   :  { %3301 = vmatpush.bf16.msrb.mxu0 %v8366_v24  ;;  %3314 = vmatpush.bf16.msrb.mxu1 %v8367_v0 }
 0x41f   :  { %3327 = vmatpush.bf16.msrb.mxu2 %v8368_v31  ;;  %3340 = vmatpush.bf16.msrb.mxu3 %v8369_v50  ;;  %v8375_v50 = vld [vmem:[#allocation4_spill] sm:$0xff] }
 0x420   :  { %3302 = vmatpush.bf16.msrb.mxu0 %v8370_v49  ;;  %3315 = vmatpush.bf16.msrb.mxu1 %v8371_v25  ;;  %v2908_v49 = vunpack.c.h.bf16 %v8375_v50 }
 0x423   :  { %3328 = vmatpush.bf16.msrb.mxu2 %v8372_v23  ;;  %3341 = vmatpush.bf16.msrb.mxu3 %v8373_v27 }
 0x45f   :  { %v2919_v21 = vpop.f32.mrf.mxu0  ;;  %v2932_v24 = vpop.f32.mrf.mxu1 }
 0x460   :  { %v2962_v2 = vadd.f32 %v2919_v21, %v2905_v61  ;;  %v2963_v0 = vadd.f32 %v2932_v24, %v2906_v54 }
 0x462   :  { %v4827_v60 = vmul.f32 -1.442695, %v2962_v2  ;;  %v4828_v31 = vmul.f32 -1.442695, %v2963_v0 }
 0x464   :  { %5190 = vpow2.f32 %v4827_v60  ;;  %v2907_v60 = vunpack.c.l.bf16 %v8375_v50 }
 0x465   :  { %5192 = vpow2.f32 %v4828_v31 }
 0x466   :  { %v2945_v44 = vpop.f32.mrf.mxu2  ;;  %v2958_v25 = vpop.f32.mrf.mxu3 }
 0x467   :  { %v2965_v45 = vadd.f32 %v2958_v25, %v2908_v49  ;;  %v2921_v23 = vpop.f32.mrf.mxu0  ;;  %v2934_v42 = vpop.f32.mrf.mxu1  ;;  %v2964_v54 = vadd.f32 %v2945_v44, %v2907_v60 }
 0x469   :  { %v4829_v27 = vmul.f32 -1.442695, %v2965_v45  ;;  %v8376_v45 = vld [vmem:[#allocation19_spill] sm:$0xff] }
 0x46a   :  { %v5191_v9 = vpop.eup %5190  ;;  %v3034_v49 = vunpack.c.h.bf16 %v8376_v45 }
 0x46b   :  { %v5193_v22 = vpop.eup %5192  ;;  %v2969_v1 = vadd.f32 1.0, %v5191_v9  ;;  %5194 = vpow2.f32 %v4829_v27  ;;  %v3033_v9 = vunpack.c.l.bf16 %v8376_v45 }
 0x46c   :  { %v2988_v26 = vadd.f32 1.0, %v5193_v22 }
 0x46d   :  { %5196 = vrcp.f32 %v2969_v1  ;;  %v2979_v44 = vand.u32 2147483647, %v2969_v1  ;;  %v2981_v60 = vand.u32 2147483648, %v2969_v1  ;;  %vm2975_vm3 = vweird.f32 %v2969_v1 }
 0x46e   :  { %5198 = vrcp.f32 %v2988_v26  ;;  %v2947_v21 = vpop.f32.mrf.mxu2  ;;  %v2960_v2 = vpop.f32.mrf.mxu3  ;;  %v3000_v47 = vand.u32 2147483648, %v2988_v26  ;;  %v2998_v59 = vand.u32 2147483647, %v2988_v26  ;;  %vm2994_vm2 = vweird.f32 %v2988_v26 }
 0x46f   :  { %v8377_v21 = vld [vmem:[#allocation20_spill] sm:$0xff]  ;;  %v2982_v35 = vor.u32 1.1754944e-38, %v2981_v60  ;;  %vm2980_vm6 = vcmp.eq.f32.partialorder %v2979_v44, 8.507059e+37 }
 0x470   :  { %v3036_v50 = vunpack.c.h.bf16 %v8377_v21  ;;  %vm2999_vm7 = vcmp.eq.f32.partialorder %v2998_v59, 8.507059e+37 }
 0x471   :  { %v5195_v61 = vpop.eup %5194 }
 0x472   :  { %v7653_v24 = vadd.f32 1.0, %v5195_v61 }
 0x473   :  { %v5197_v0 = vpop.eup %5196 }
 0x474   :  { %v5199_v31 = vpop.eup %5198  ;;  %v2971_v23 = vmul.f32 %v5197_v0, %v2969_v1  ;;  %5200 = vrcp.f32 %v7653_v24  ;;  %vm2976_vm0 = vweird.f32 %v5197_v0  ;;  %vm3014_vm9 = vweird.f32 %v7653_v24 }
 0x475   :  { %v2990_v42 = vmul.f32 %v5199_v31, %v2988_v26  ;;  %5202 = vtanh.f32 %v2964_v54  ;;  %vm2995_vm1 = vweird.f32 %v5199_v31  ;;  %vm2977_vm4 = vmor %vm2975_vm3, %vm2976_vm0 }
 0x476   :  { %v2972_v27 = vsub.f32 1.0, %v2971_v23  ;;  %v3047_v22 = vpop.f32.mrf.mxu0  ;;  %v3060_v25 = vpop.f32.mrf.mxu1  ;;  %vm2996_vm5 = vmor %vm2994_vm2, %vm2995_vm1 }
 0x477   :  { %v2991_v2 = vsub.f32 1.0, %v2990_v42  ;;  %v3090_v61 = vadd.f32 %v3047_v22, %v3033_v9  ;;  %v3091_v20 = vadd.f32 %v3060_v25, %v3034_v49 }
 0x478   :  { %v2973_v46 = vmul.f32 %v5197_v0, %v2972_v27  ;;  %v3001_v27 = vor.u32 1.1754944e-38, %v3000_v47 }
 0x479   :  { %v2992_v53 = vmul.f32 %v5199_v31, %v2991_v2  ;;  %v4831_v3 = vmul.f32 -1.442695, %v3090_v61  ;;  %v4832_v45 = vmul.f32 -1.442695, %v3091_v20 }
 0x47a   :  { %v5201_v23 = vpop.eup %5200  ;;  %v2974_v54 = vadd.f32 %v5197_v0, %v2973_v46 }
 0x47b   :  { %v2993_v62 = vadd.f32 %v5199_v31, %v2992_v53  ;;  %v3010_v42 = vmul.f32 %v5201_v23, %v7653_v24  ;;  %5204 = vpow2.f32 %v4831_v3  ;;  %v5203_v9 = vpop.eup %5202  ;;  %vm3015_vm8 = vweird.f32 %v5201_v23 }
 0x47c   :  { %v2978_v22 = vsel %vm2977_vm4, %v5197_v0, %v2974_v54  ;;  %5206 = vpow2.f32 %v4832_v45  ;;  %vm3016_vm10 = vmor %vm3014_vm9, %vm3015_vm8 }
 0x47d   :  { %v2983_v49 = vsel %vm2980_vm6, %v2982_v35, %v2978_v22  ;;  %v2997_v25 = vsel %vm2996_vm5, %v5199_v31, %v2993_v62  ;;  %v3011_v2 = vsub.f32 1.0, %v3010_v42  ;;  %v3073_v26 = vpop.f32.mrf.mxu2  ;;  %v3086_v46 = vpop.f32.mrf.mxu3  ;;  %v3020_v35 = vand.u32 2147483648, %v7653_v24 }
 0x47e   :  { %v3002_v1 = vsel %vm2999_vm7, %v3001_v27, %v2997_v25  ;;  %v3025_v20 = vmul.f32 %v5203_v9, %v2983_v49  ;;  %v3093_v61 = vadd.f32 %v3086_v46, %v3036_v50  ;;  %v3049_v60 = vpop.f32.mrf.mxu0  ;;  %v3062_v53 = vpop.f32.mrf.mxu1  ;;  %v3018_v31 = vand.u32 2147483647, %v7653_v24 }
 0x47f   :  { %v3024_v29 = vmul.f32 %v3002_v1, %v7553_v48  ;;  %v3012_v3 = vmul.f32 %v5201_v23, %v3011_v2  ;;  %v3021_v54 = vor.u32 1.1754944e-38, %v3020_v35 }
 0x480   :  { %v4833_v4 = vmul.f32 -1.442695, %v3093_v61  ;;  %vm3019_vm11 = vcmp.eq.f32.partialorder %v3018_v31, 8.507059e+37 }
 0x481   :  { %v5205_v32 = vpop.eup %5204  ;;  %v7661_v47 = vadd.f32 %v3025_v20, %v3024_v29  ;;  %v3013_v44 = vadd.f32 %v5201_v23, %v3012_v3 }
 0x482   :  { %v5207_v0 = vpop.eup %5206  ;;  %v3097_v62 = vadd.f32 1.0, %v5205_v32  ;;  %5208 = vpow2.f32 %v4833_v4  ;;  %v3035_v4 = vunpack.c.l.bf16 %v8377_v21 }
 0x483   :  { %5210 = vtanh.f32 %v7661_v47  ;;  %v3116_v59 = vadd.f32 1.0, %v5207_v0  ;;  %v3017_v50 = vsel %vm3016_vm10, %v5201_v23, %v3013_v44 }
 0x484   :  { %5212 = vrcp.f32 %v3097_v62  ;;  %v3022_v9 = vsel %vm3019_vm11, %v3021_v54, %v3017_v50  ;;  %v3092_v22 = vadd.f32 %v3073_v26, %v3035_v4  ;;  %v3109_v21 = vand.u32 2147483648, %v3097_v62 }
 0x485   :  { %5214 = vrcp.f32 %v3116_v59  ;;  %v3075_v48 = vpop.f32.mrf.mxu2  ;;  %v3088_v29 = vpop.f32.mrf.mxu3  ;;  %v3128_v20 = vand.u32 2147483648, %v3116_v59  ;;  %v3107_v60 = vand.u32 2147483647, %v3097_v62  ;;  %v3126_v53 = vand.u32 2147483647, %v3116_v59 }
 0x486   :  { %vm3103_vm14 = vweird.f32 %v3097_v62  ;;  %vm3122_vm15 = vweird.f32 %v3116_v59  ;;  %v3110_v44 = vor.u32 1.1754944e-38, %v3109_v21  ;;  %v8379_v21 = vld [vmem:[#allocation33_spill] sm:$0xff] }
 0x487   :  { %v3129_v48 = vor.u32 1.1754944e-38, %v3128_v20  ;;  %vm3108_vm2 = vcmp.eq.f32.partialorder %v3107_v60, 8.507059e+37  ;;  %vm3127_vm3 = vcmp.eq.f32.partialorder %v3126_v53, 8.507059e+37  ;;  %v8380_v20 = vld [vmem:[#allocation34_spill] sm:$0xff]  ;;  %v8382_v60 = vld [vmem:[#allocation39_spill] sm:$0xff] }
 0x488   :  { %v5209_v45 = vpop.eup %5208  ;;  %v8384_v53 = vld [vmem:[#allocation42_spill] sm:$0xff] }
 0x489   :  { %v5211_v32 = vpop.eup %5210  ;;  %v7668_v42 = vadd.f32 1.0, %v5209_v45 }
 0x48a   :  { %v5213_v27 = vpop.eup %5212  ;;  %v3028_v49 = vmul.f32 %v5211_v32, %v3022_v9 }
 0x48b   :  { %v5215_v25 = vpop.eup %5214  ;;  %v3099_v24 = vmul.f32 %v5213_v27, %v3097_v62  ;;  %5216 = vrcp.f32 %v7668_v42  ;;  %vm3104_vm12 = vweird.f32 %v5213_v27  ;;  %vm3142_vm5 = vweird.f32 %v7668_v42 }
 0x48c   :  { %v3118_v2 = vmul.f32 %v5215_v25, %v3116_v59  ;;  %4830 = vst [vmem:[%s7930_s6 + $0x20] sm:$0xff] %v3028_v49  ;;  %v3166_v46 = vpack.c.bf16 %v3028_v49, %v3028_v49  ;;  %5218 = vtanh.f32 %v3092_v22  ;;  %vm3123_vm13 = vweird.f32 %v5215_v25  ;;  %vm3105_vm0 = vmor %vm3103_vm14, %vm3104_vm12 }
 0x48d   :  { %v3100_v23 = vsub.f32 1.0, %v3099_v24  ;;  %vm3124_vm1 = vmor %vm3122_vm15, %vm3123_vm13  ;;  %v3148_v49 = vand.u32 2147483648, %v7668_v42 }
 0x48e   :  { %v3119_v1 = vsub.f32 1.0, %v3118_v2  ;;  %3175 = vmatmul.bf16.vlgmr.msra.gmra.mxu0 %v3166_v46  ;;  %3188 = vmatmul.bf16.vlgmr.msra.gmra.mxu1 %v3166_v46 }
 0x48f   :  { %v3101_v61 = vmul.f32 %v5213_v27, %v3100_v23  ;;  %3201 = vmatmul.bf16.vlgmr.msra.gmra.mxu2 %v3166_v46  ;;  %3214 = vmatmul.bf16.vlgmr.msra.gmra.mxu3 %v3166_v46  ;;  %v3149_v24 = vor.u32 1.1754944e-38, %v3148_v49  ;;  %v8401_v49 = vld [vmem:[#allocation67_spill] sm:$0xff] }
 0x490   :  { %v3120_v26 = vmul.f32 %v5215_v25, %v3119_v1  ;;  %3424 = vmatpush.bf16.msra.mxu0 %v8237_v34  ;;  %3437 = vmatpush.bf16.msra.mxu1 %v6263_v43  ;;  %v8378_v1 = vld [vmem:[#allocation32_spill] sm:$0xff] }
 0x491   :  { %v5217_v3 = vpop.eup %5216  ;;  %v3102_v0 = vadd.f32 %v5213_v27, %v3101_v61  ;;  %3450 = vmatpush.bf16.msra.mxu2 %v8238_v15  ;;  %3463 = vmatpush.bf16.msra.mxu3 %v8239_v5  ;;  %v8381_v61 = vld [vmem:[#allocation36_spill] sm:$0xff] }
 0x492   :  { %v3121_v35 = vadd.f32 %v5215_v25, %v3120_v26  ;;  %v3138_v31 = vmul.f32 %v5217_v3, %v7668_v42  ;;  %v5219_v62 = vpop.eup %5218  ;;  %vm3143_vm4 = vweird.f32 %v5217_v3  ;;  %v8383_v26 = vld [vmem:[#allocation40_spill] sm:$0xff] }
 0x493   :  { %v3106_v29 = vsel %vm3105_vm0, %v5213_v27, %v3102_v0  ;;  %vm3144_vm6 = vmor %vm3142_vm5, %vm3143_vm4  ;;  %v8386_v0 = vld [vmem:[#allocation44_spill] sm:$0xff] }
 0x494   :  { %v3111_v50 = vsel %vm3108_vm2, %v3110_v44, %v3106_v29  ;;  %v3125_v54 = vsel %vm3124_vm1, %v5215_v25, %v3121_v35  ;;  %v3139_v59 = vsub.f32 1.0, %v3138_v31  ;;  %3425 = vmatpush.bf16.msra.mxu0 %v6293_v57  ;;  %3438 = vmatpush.bf16.msra.mxu1 %v6295_v58  ;;  %v8387_v44 = vld [vmem:[#allocation45_spill] sm:$0xff]  ;;  %v8388_v35 = vld [vmem:[#allocation46_spill] sm:$0xff]  ;;  %v8389_v31 = vld [vmem:[#allocation47_spill] sm:$0xff] }
 0x495   :  { %v3130_v45 = vsel %vm3127_vm3, %v3129_v48, %v3125_v54  ;;  %v3153_v4 = vmul.f32 %v5219_v62, %v3111_v50  ;;  %3451 = vmatpush.bf16.msra.mxu2 %v6381_v51  ;;  %3464 = vmatpush.bf16.msra.mxu3 %v6322_v7  ;;  %v8390_v48 = vld [vmem:[#allocation48_spill] sm:$0xff]  ;;  %v8391_v29 = vld [vmem:[#allocation53_spill] sm:$0xff]  ;;  %v8392_v62 = vld [vmem:[#allocation54_spill] sm:$0xff] }
 0x496   :  { %v3152_v32 = vmul.f32 %v3130_v45, %v7584_v16  ;;  %v3140_v9 = vmul.f32 %v5217_v3, %v3139_v59  ;;  %v3146_v16 = vand.u32 2147483647, %v7668_v42  ;;  %v8393_v50 = vld [vmem:[#allocation55_spill] sm:$0xff]  ;;  %v8394_v54 = vld [vmem:[#allocation56_spill] sm:$0xff]  ;;  %v8395_v59 = vld [vmem:[#allocation57_spill] sm:$0xff] }
 0x497   :  { %v8396_v45 = vld [vmem:[#allocation58_spill] sm:$0xff] }
 0x498   :  { %v7686_v27 = vadd.f32 %v3153_v4, %v3152_v32  ;;  %v3141_v22 = vadd.f32 %v5217_v3, %v3140_v9  ;;  %3426 = vmatpush.bf16.msra.mxu0 %v6344_v13  ;;  %3439 = vmatpush.bf16.msra.mxu1 %v6351_v18  ;;  %vm3147_vm7 = vcmp.eq.f32.partialorder %v3146_v16, 8.507059e+37  ;;  %v8397_v4 = vld [vmem:[#allocation59_spill] sm:$0xff]  ;;  %v8398_v32 = vld [vmem:[#allocation61_spill] sm:$0xff]  ;;  %v8402_v16 = vld [vmem:[#allocation68_spill] sm:$0xff] }
 0x499   :  { %3452 = vmatpush.bf16.msra.mxu2 %v6405_v6  ;;  %3465 = vmatpush.bf16.msra.mxu3 %v6370_v37  ;;  %v8399_v9 = vld [vmem:[#allocation65_spill] sm:$0xff] }
 0x49a   :  { %5220 = vtanh.f32 %v7686_v27  ;;  %v3145_v25 = vsel %vm3144_vm6, %v5217_v3, %v3141_v22  ;;  %v8385_v3 = vld [vmem:[#allocation43_spill] sm:$0xff]  ;;  %v8400_v22 = vld [vmem:[#allocation66_spill] sm:$0xff] }
 0x49b   :  { %v3150_v23 = vsel %vm3147_vm7, %v3149_v24, %v3145_v25  ;;  %v8403_v25 = vld [vmem:[#allocation69_spill] sm:$0xff]  ;;  %v8404_v24 = vld [vmem:[#allocation70_spill] sm:$0xff] }
 0x49c   :  { %3427 = vmatpush.bf16.msra.mxu0 %v6383_v52  ;;  %3440 = vmatpush.bf16.msra.mxu1 %v6392_v56 }
 0x49d   :  { %3453 = vmatpush.bf16.msra.mxu2 %v6429_v38  ;;  %3466 = vmatpush.bf16.msra.mxu3 %v6420_v28 }
 0x4a0   :  { %v5221_v2 = vpop.eup %5220  ;;  %3428 = vmatpush.bf16.msra.mxu0 %v6445_v55  ;;  %3441 = vmatpush.bf16.msra.mxu1 %v6458_v19 }
 0x4a1   :  { %v3156_v46 = vmul.f32 %v5221_v2, %v3150_v23  ;;  %3454 = vmatpush.bf16.msra.mxu2 %v6460_v30  ;;  %3467 = vmatpush.bf16.msra.mxu3 %v6473_v10  ;;  %v8405_v2 = vld [vmem:[#allocation71_spill] sm:$0xff]  ;;  %v8406_v23 = vld [vmem:[#allocation73_spill] sm:$0xff] }
 0x4a3   :  { %4834 = vst [vmem:[%s7930_s6 + $0x58] sm:$0xff] %v3156_v46  ;;  %v3294_v42 = vpack.c.bf16 %v3156_v46, %v3156_v46  ;;  %v8407_v46 = vld [vmem:[#allocation77_spill] sm:$0xff] }
 0x4a4   :  { %3429 = vmatpush.bf16.msra.mxu0 %v6489_v36  ;;  %3442 = vmatpush.bf16.msra.mxu1 %v6500_v41 }
 0x4a5   :  { %3303 = vmatmul.bf16.vlgmr.msrb.gmra.mxu0 %v3294_v42  ;;  %3316 = vmatmul.bf16.vlgmr.msrb.gmra.mxu1 %v3294_v42 }
 0x4a6   :  { %3329 = vmatmul.bf16.vlgmr.msrb.gmra.mxu2 %v3294_v42  ;;  %3342 = vmatmul.bf16.vlgmr.msrb.gmra.mxu3 %v3294_v42  ;;  %v8408_v42 = vld [vmem:[#allocation78_spill] sm:$0xff] }
 0x4a7   :  { %3455 = vmatpush.bf16.msra.mxu2 %v6502_v12  ;;  %3468 = vmatpush.bf16.msra.mxu3 %v6511_v8 }
 0x4a8   :  { %3430 = vmatpush.bf16.msra.mxu0 %v6527_v14  ;;  %3443 = vmatpush.bf16.msra.mxu1 %v6542_v17 }
 0x4ab   :  { %3456 = vmatpush.bf16.msra.mxu2 %v6544_v11  ;;  %3469 = vmatpush.bf16.msra.mxu3 %v6555_v63 }
 0x4ac   :  { %3431 = vmatpush.bf16.msra.mxu0 %v6570_v39  ;;  %3444 = vmatpush.bf16.msra.mxu1 %v8136_v40 }
 0x4af   :  { %3457 = vmatpush.bf16.msra.mxu2 %v8342_v33  ;;  %3470 = vmatpush.bf16.msra.mxu3 %v8378_v1 }
 0x4b0   :  { %3552 = vmatpush.bf16.msrb.mxu0 %v8379_v21  ;;  %3565 = vmatpush.bf16.msrb.mxu1 %v8380_v20 }
 0x4b3   :  { %3578 = vmatpush.bf16.msrb.mxu2 %v8381_v61  ;;  %3591 = vmatpush.bf16.msrb.mxu3 %v8382_v60 }
 0x4b4   :  { %3553 = vmatpush.bf16.msrb.mxu0 %v8383_v26  ;;  %3566 = vmatpush.bf16.msrb.mxu1 %v8384_v53 }
 0x4b7   :  { %3579 = vmatpush.bf16.msrb.mxu2 %v8385_v3  ;;  %3592 = vmatpush.bf16.msrb.mxu3 %v8386_v0 }
 0x4b8   :  { %3554 = vmatpush.bf16.msrb.mxu0 %v8387_v44  ;;  %3567 = vmatpush.bf16.msrb.mxu1 %v8388_v35 }
 0x4bb   :  { %3580 = vmatpush.bf16.msrb.mxu2 %v8389_v31  ;;  %3593 = vmatpush.bf16.msrb.mxu3 %v8390_v48 }
 0x4bc   :  { %3555 = vmatpush.bf16.msrb.mxu0 %v8391_v29  ;;  %3568 = vmatpush.bf16.msrb.mxu1 %v8392_v62 }
 0x4bf   :  { %3581 = vmatpush.bf16.msrb.mxu2 %v8393_v50  ;;  %3594 = vmatpush.bf16.msrb.mxu3 %v8394_v54 }
 0x4c0   :  { %3556 = vmatpush.bf16.msrb.mxu0 %v8395_v59  ;;  %3569 = vmatpush.bf16.msrb.mxu1 %v8396_v45 }
 0x4c3   :  { %3582 = vmatpush.bf16.msrb.mxu2 %v8397_v4  ;;  %3595 = vmatpush.bf16.msrb.mxu3 %v8398_v32  ;;  %v8409_v32 = vld [vmem:[#allocation79_spill] sm:$0xff] }
 0x4c4   :  { %3557 = vmatpush.bf16.msrb.mxu0 %v8399_v9  ;;  %3570 = vmatpush.bf16.msrb.mxu1 %v8400_v22  ;;  %v8410_v9 = vld [vmem:[#allocation80_spill] sm:$0xff]  ;;  %v8411_v22 = vld [vmem:[#allocation5_spill] sm:$0xff] }
 0x4c7   :  { %3583 = vmatpush.bf16.msrb.mxu2 %v8401_v49  ;;  %3596 = vmatpush.bf16.msrb.mxu3 %v8402_v16  ;;  %v3162_v49 = vunpack.c.l.bf16 %v8411_v22  ;;  %v3163_v16 = vunpack.c.h.bf16 %v8411_v22 }
 0x4c8   :  { %3558 = vmatpush.bf16.msrb.mxu0 %v8403_v25  ;;  %3571 = vmatpush.bf16.msrb.mxu1 %v8404_v24 }
 0x4cb   :  { %3584 = vmatpush.bf16.msrb.mxu2 %v8405_v2  ;;  %3597 = vmatpush.bf16.msrb.mxu3 %v8406_v23  ;;  %v8412_v23 = vld [vmem:[#allocation6_spill] sm:$0xff] }
 0x4cc   :  { %3559 = vmatpush.bf16.msrb.mxu0 %v8407_v46  ;;  %3572 = vmatpush.bf16.msrb.mxu1 %v8408_v42  ;;  %v3165_v46 = vunpack.c.h.bf16 %v8412_v23 }
 0x4cf   :  { %3585 = vmatpush.bf16.msrb.mxu2 %v8409_v32  ;;  %3598 = vmatpush.bf16.msrb.mxu3 %v8410_v9 }
 0x50b   :  { %v3176_v4 = vpop.f32.mrf.mxu0  ;;  %v3189_v25 = vpop.f32.mrf.mxu1 }
 0x50c   :  { %v3219_v45 = vadd.f32 %v3176_v4, %v3162_v49  ;;  %v3220_v24 = vadd.f32 %v3189_v25, %v3163_v16 }
 0x50e   :  { %v4835_v59 = vmul.f32 -1.442695, %v3219_v45  ;;  %v4836_v2 = vmul.f32 -1.442695, %v3220_v24 }
 0x510   :  { %5222 = vpow2.f32 %v4835_v59  ;;  %v3164_v59 = vunpack.c.l.bf16 %v8412_v23 }
 0x511   :  { %5224 = vpow2.f32 %v4836_v2 }
 0x512   :  { %v3202_v54 = vpop.f32.mrf.mxu2  ;;  %v3215_v42 = vpop.f32.mrf.mxu3 }
 0x513   :  { %v3222_v50 = vadd.f32 %v3215_v42, %v3165_v46  ;;  %v3178_v32 = vpop.f32.mrf.mxu0  ;;  %v3191_v62 = vpop.f32.mrf.mxu1  ;;  %v3221_v16 = vadd.f32 %v3202_v54, %v3164_v59 }
 0x514   :  { %v8413_v62 = vld [vmem:[#allocation17_spill] sm:$0xff] }
 0x515   :  { %v4837_v9 = vmul.f32 -1.442695, %v3222_v50  ;;  %v3290_v50 = vunpack.c.l.bf16 %v8413_v62 }
 0x516   :  { %v5223_v29 = vpop.eup %5222 }
 0x517   :  { %v5225_v48 = vpop.eup %5224  ;;  %v3226_v31 = vadd.f32 1.0, %v5223_v29  ;;  %5226 = vpow2.f32 %v4837_v9  ;;  %v3291_v29 = vunpack.c.h.bf16 %v8413_v62 }
 0x518   :  { %v3245_v22 = vadd.f32 1.0, %v5225_v48 }
 0x519   :  { %5228 = vrcp.f32 %v3226_v31  ;;  %v3236_v59 = vand.u32 2147483647, %v3226_v31  ;;  %vm3232_vm11 = vweird.f32 %v3226_v31 }
 0x51a   :  { %5230 = vrcp.f32 %v3245_v22  ;;  %v3204_v4 = vpop.f32.mrf.mxu2  ;;  %v3217_v45 = vpop.f32.mrf.mxu3  ;;  %v3257_v54 = vand.u32 2147483648, %v3245_v22  ;;  %v3255_v53 = vand.u32 2147483647, %v3245_v22  ;;  %vm3251_vm10 = vweird.f32 %v3245_v22 }
 0x51b   :  { %vm3237_vm14 = vcmp.eq.f32.partialorder %v3236_v59, 8.507059e+37 }
 0x51c   :  { %vm3256_vm15 = vcmp.eq.f32.partialorder %v3255_v53, 8.507059e+37 }
 0x51d   :  { %v5227_v49 = vpop.eup %5226 }
 0x51e   :  { %v7755_v25 = vadd.f32 1.0, %v5227_v49  ;;  %v3238_v49 = vand.u32 2147483648, %v3226_v31 }
 0x51f   :  { %v5229_v24 = vpop.eup %5228 }
 0x520   :  { %v5231_v2 = vpop.eup %5230  ;;  %v3228_v32 = vmul.f32 %v5229_v24, %v3226_v31  ;;  %5232 = vrcp.f32 %v7755_v25  ;;  %vm3233_vm8 = vweird.f32 %v5229_v24  ;;  %v3277_v53 = vand.u32 2147483648, %v7755_v25 }
 0x521   :  { %v3247_v48 = vmul.f32 %v5231_v2, %v3245_v22  ;;  %5234 = vtanh.f32 %v3221_v16  ;;  %vm3252_vm9 = vweird.f32 %v5231_v2  ;;  %vm3234_vm12 = vmor %vm3232_vm11, %vm3233_vm8  ;;  %v3239_v16 = vor.u32 1.1754944e-38, %v3238_v49 }
 0x522   :  { %v3304_v9 = vpop.f32.mrf.mxu0  ;;  %v3317_v46 = vpop.f32.mrf.mxu1  ;;  %v3229_v42 = vsub.f32 1.0, %v3228_v32  ;;  %vm3253_vm13 = vmor %vm3251_vm10, %vm3252_vm9  ;;  %vm3271_vm1 = vweird.f32 %v7755_v25 }
 0x523   :  { %v3347_v4 = vadd.f32 %v3304_v9, %v3290_v50  ;;  %v3348_v23 = vadd.f32 %v3317_v46, %v3291_v29  ;;  %v3248_v45 = vsub.f32 1.0, %v3247_v48  ;;  %v3258_v48 = vor.u32 1.1754944e-38, %v3257_v54 }
 0x524   :  { %v3230_v35 = vmul.f32 %v5229_v24, %v3229_v42  ;;  %v8414_v42 = vld [vmem:[#allocation18_spill] sm:$0xff] }
 0x525   :  { %v4839_v44 = vmul.f32 -1.442695, %v3347_v4  ;;  %v4840_v0 = vmul.f32 -1.442695, %v3348_v23  ;;  %v3249_v3 = vmul.f32 %v5231_v2, %v3248_v45  ;;  %v3293_v4 = vunpack.c.h.bf16 %v8414_v42 }
 0x526   :  { %v5233_v26 = vpop.eup %5232  ;;  %v3231_v62 = vadd.f32 %v5229_v24, %v3230_v35 }
 0x527   :  { %5236 = vpow2.f32 %v4839_v44  ;;  %v3250_v32 = vadd.f32 %v5231_v2, %v3249_v3  ;;  %v3267_v50 = vmul.f32 %v5233_v26, %v7755_v25  ;;  %v5235_v29 = vpop.eup %5234  ;;  %vm3272_vm0 = vweird.f32 %v5233_v26 }
 0x528   :  { %5238 = vpow2.f32 %v4840_v0  ;;  %v3235_v9 = vsel %vm3234_vm12, %v5229_v24, %v3231_v62  ;;  %vm3273_vm2 = vmor %vm3271_vm1, %vm3272_vm0 }
 0x529   :  { %v3330_v46 = vpop.f32.mrf.mxu2  ;;  %v3343_v23 = vpop.f32.mrf.mxu3  ;;  %v3240_v45 = vsel %vm3237_vm14, %v3239_v16, %v3235_v9  ;;  %v3254_v22 = vsel %vm3253_vm13, %v5231_v2, %v3250_v32  ;;  %v3268_v35 = vsub.f32 1.0, %v3267_v50  ;;  %v3292_v50 = vunpack.c.l.bf16 %v8414_v42 }
 0x52a   :  { %v3306_v44 = vpop.f32.mrf.mxu0  ;;  %v3319_v31 = vpop.f32.mrf.mxu1  ;;  %v3259_v49 = vsel %vm3256_vm15, %v3258_v48, %v3254_v22  ;;  %v3282_v3 = vmul.f32 %v5235_v29, %v3240_v45  ;;  %v3350_v60 = vadd.f32 %v3343_v23, %v3293_v4 }
 0x52b   :  { %v3281_v0 = vmul.f32 %v3259_v49, %v7661_v47  ;;  %v3269_v61 = vmul.f32 %v5233_v26, %v3268_v35  ;;  %v3275_v47 = vand.u32 2147483647, %v7755_v25  ;;  %v3349_v23 = vadd.f32 %v3330_v46, %v3292_v50 }
 0x52c   :  { %v4841_v54 = vmul.f32 -1.442695, %v3350_v60 }
 0x52d   :  { %v5237_v20 = vpop.eup %5236  ;;  %v7763_v59 = vadd.f32 %v3282_v3, %v3281_v0  ;;  %v3270_v21 = vadd.f32 %v5233_v26, %v3269_v61  ;;  %v3278_v61 = vor.u32 1.1754944e-38, %v3277_v53  ;;  %vm3276_vm3 = vcmp.eq.f32.partialorder %v3275_v47, 8.507059e+37 }
 0x52e   :  { %v5239_v24 = vpop.eup %5238  ;;  %v3354_v62 = vadd.f32 1.0, %v5237_v20  ;;  %5240 = vpow2.f32 %v4841_v54 }
 0x52f   :  { %v7765_v16 = vadd.f32 1.0, %v5239_v24  ;;  %5242 = vtanh.f32 %v7763_v59  ;;  %v3274_v20 = vsel %vm3273_vm2, %v5233_v26, %v3270_v21 }
 0x530   :  { %5244 = vrcp.f32 %v3354_v62  ;;  %v3279_v9 = vsel %vm3276_vm3, %v3278_v61, %v3274_v20  ;;  %v3366_v44 = vand.u32 2147483648, %v3354_v62  ;;  %v3364_v46 = vand.u32 2147483647, %v3354_v62 }
 0x531   :  { %v3332_v2 = vpop.f32.mrf.mxu2  ;;  %v3345_v60 = vpop.f32.mrf.mxu3  ;;  %5246 = vrcp.f32 %v7765_v16  ;;  %v3385_v31 = vand.u32 2147483648, %v7765_v16  ;;  %v3383_v0 = vand.u32 2147483647, %v7765_v16  ;;  %vm3360_vm6 = vweird.f32 %v3354_v62 }
 0x532   :  { %vm3379_vm7 = vweird.f32 %v7765_v16  ;;  %v3367_v53 = vor.u32 1.1754944e-38, %v3366_v44  ;;  %vm3365_vm10 = vcmp.eq.f32.partialorder %v3364_v46, 8.507059e+37  ;;  %v8447_v44 = vld [vmem:[#allocation7_spill] sm:$0xff] }
 0x533   :  { %v3386_v60 = vor.u32 1.1754944e-38, %v3385_v31  ;;  %vm3384_vm11 = vcmp.eq.f32.partialorder %v3383_v0, 8.507059e+37  ;;  %v3419_v31 = vunpack.c.l.bf16 %v8447_v44 }
 0x534   :  { %v5241_v32 = vpop.eup %5240 }
 0x535   :  { %v5243_v29 = vpop.eup %5242  ;;  %v7773_v48 = vadd.f32 1.0, %v5241_v32 }
 0x536   :  { %v5245_v4 = vpop.eup %5244  ;;  %v3285_v45 = vmul.f32 %v5243_v29, %v3279_v9  ;;  %v8437_v9 = vld [vmem:[#allocation67_spill] sm:$0xff] }
 0x537   :  { %v5247_v25 = vpop.eup %5246  ;;  %v3356_v22 = vmul.f32 %v5245_v4, %v3354_v62  ;;  %5248 = vrcp.f32 %v7773_v48  ;;  %vm3361_vm4 = vweird.f32 %v5245_v4  ;;  %vm3399_vm13 = vweird.f32 %v7773_v48 }
 0x538   :  { %v3375_v35 = vmul.f32 %v5247_v25, %v7765_v16  ;;  %4838 = vst [vmem:[%s7930_s6 + $0x28] sm:$0xff] %v3285_v45  ;;  %v3423_v26 = vpack.c.bf16 %v3285_v45, %v3285_v45  ;;  %5250 = vtanh.f32 %v3349_v23  ;;  %vm3380_vm5 = vweird.f32 %v5247_v25  ;;  %vm3362_vm8 = vmor %vm3360_vm6, %vm3361_vm4  ;;  %v8439_v23 = vld [vmem:[#allocation69_spill] sm:$0xff]  ;;  %v8440_v45 = vld [vmem:[#allocation70_spill] sm:$0xff] }
 0x539   :  { %v3357_v21 = vsub.f32 1.0, %v3356_v22  ;;  %vm3381_vm9 = vmor %vm3379_vm7, %vm3380_vm5  ;;  %v8442_v22 = vld [vmem:[#allocation73_spill] sm:$0xff] }
 0x53a   :  { %v3376_v42 = vsub.f32 1.0, %v3375_v35  ;;  %3432 = vmatmul.bf16.vlgmr.msra.gmra.mxu0 %v3423_v26  ;;  %3445 = vmatmul.bf16.vlgmr.msra.gmra.mxu1 %v3423_v26  ;;  %v8443_v35 = vld [vmem:[#allocation77_spill] sm:$0xff] }
 0x53b   :  { %v3358_v49 = vmul.f32 %v5245_v4, %v3357_v21  ;;  %3458 = vmatmul.bf16.vlgmr.msra.gmra.mxu2 %v3423_v26  ;;  %3471 = vmatmul.bf16.vlgmr.msra.gmra.mxu3 %v3423_v26  ;;  %v8444_v21 = vld [vmem:[#allocation78_spill] sm:$0xff]  ;;  %v8445_v26 = vld [vmem:[#allocation79_spill] sm:$0xff] }
 0x53c   :  { %v3377_v3 = vmul.f32 %v5247_v25, %v3376_v42  ;;  %3681 = vmatpush.bf16.msra.mxu0 %v8237_v34  ;;  %3694 = vmatpush.bf16.msra.mxu1 %v6263_v43  ;;  %v8446_v42 = vld [vmem:[#allocation80_spill] sm:$0xff] }
 0x53d   :  { %v5249_v54 = vpop.eup %5248  ;;  %v3359_v24 = vadd.f32 %v5245_v4, %v3358_v49  ;;  %3707 = vmatpush.bf16.msra.mxu2 %v8238_v15  ;;  %3720 = vmatpush.bf16.msra.mxu3 %v8239_v5  ;;  %v3420_v49 = vunpack.c.h.bf16 %v8447_v44 }
 0x53e   :  { %v3378_v47 = vadd.f32 %v5247_v25, %v3377_v3  ;;  %v3395_v2 = vmul.f32 %v5249_v54, %v7773_v48  ;;  %v5251_v34 = vpop.eup %5250  ;;  %vm3400_vm12 = vweird.f32 %v5249_v54 }
 0x53f   :  { %v3363_v62 = vsel %vm3362_vm8, %v5245_v4, %v3359_v24  ;;  %vm3401_vm14 = vmor %vm3399_vm13, %vm3400_vm12  ;;  %v8438_v4 = vld [vmem:[#allocation68_spill] sm:$0xff] }
 0x540   :  { %v3368_v20 = vsel %vm3365_vm10, %v3367_v53, %v3363_v62  ;;  %v3382_v43 = vsel %vm3381_vm9, %v5247_v25, %v3378_v47  ;;  %v3396_v16 = vsub.f32 1.0, %v3395_v2  ;;  %3682 = vmatpush.bf16.msra.mxu0 %v6293_v57  ;;  %3695 = vmatpush.bf16.msra.mxu1 %v6295_v58  ;;  %v3405_v57 = vand.u32 2147483648, %v7773_v48  ;;  %v8441_v25 = vld [vmem:[#allocation71_spill] sm:$0xff]  ;;  %v8448_v47 = vld [vmem:[#allocation9_spill] sm:$0xff] }
 0x541   :  { %v3387_v61 = vsel %vm3384_vm11, %v3386_v60, %v3382_v43  ;;  %v3410_v32 = vmul.f32 %v5251_v34, %v3368_v20  ;;  %3708 = vmatpush.bf16.msra.mxu2 %v6381_v51  ;;  %3721 = vmatpush.bf16.msra.mxu3 %v6322_v7  ;;  %v3403_v58 = vand.u32 2147483647, %v7773_v48  ;;  %v8436_v48 = vld [vmem:[#allocation66_spill] sm:$0xff]  ;;  %v3422_v2 = vunpack.c.h.bf16 %v8448_v47 }
 0x542   :  { %v3409_v15 = vmul.f32 %v3387_v61, %v7686_v27  ;;  %v3397_v50 = vmul.f32 %v5249_v54, %v3396_v16  ;;  %v8434_v27 = vld [vmem:[#allocation61_spill] sm:$0xff] }
 0x543   :  { %vm3404_vm15 = vcmp.eq.f32.partialorder %v3403_v58, 8.507059e+37  ;;  %v3421_v58 = vunpack.c.l.bf16 %v8448_v47 }
 0x544   :  { %v7795_v5 = vadd.f32 %v3410_v32, %v3409_v15  ;;  %v3398_v29 = vadd.f32 %v5249_v54, %v3397_v50  ;;  %3683 = vmatpush.bf16.msra.mxu0 %v6344_v13  ;;  %3696 = vmatpush.bf16.msra.mxu1 %v6351_v18  ;;  %v3406_v13 = vor.u32 1.1754944e-38, %v3405_v57 }
 0x545   :  { %3709 = vmatpush.bf16.msra.mxu2 %v6405_v6  ;;  %3722 = vmatpush.bf16.msra.mxu3 %v6370_v37 }
 0x546   :  { %5252 = vtanh.f32 %v7795_v5  ;;  %v3402_v7 = vsel %vm3401_vm14, %v5249_v54, %v3398_v29 }
 0x547   :  { %v3407_v51 = vsel %vm3404_vm15, %v3406_v13, %v3402_v7 }
 0x548   :  { %3684 = vmatpush.bf16.msra.mxu0 %v6383_v52  ;;  %3697 = vmatpush.bf16.msra.mxu1 %v6392_v56  ;;  %v8415_v52 = vld [vmem:[#allocation33_spill] sm:$0xff]  ;;  %v8416_v56 = vld [vmem:[#allocation34_spill] sm:$0xff] }
 0x549   :  { %3710 = vmatpush.bf16.msra.mxu2 %v6429_v38  ;;  %3723 = vmatpush.bf16.msra.mxu3 %v6420_v28  ;;  %v8420_v28 = vld [vmem:[#allocation42_spill] sm:$0xff]  ;;  %v8422_v38 = vld [vmem:[#allocation44_spill] sm:$0xff] }
 0x54c   :  { %v5253_v18 = vpop.eup %5252  ;;  %3685 = vmatpush.bf16.msra.mxu0 %v6445_v55  ;;  %3698 = vmatpush.bf16.msra.mxu1 %v6458_v19  ;;  %v8423_v55 = vld [vmem:[#allocation45_spill] sm:$0xff]  ;;  %v8425_v19 = vld [vmem:[#allocation47_spill] sm:$0xff] }
 0x54d   :  { %v3413_v6 = vmul.f32 %v5253_v18, %v3407_v51  ;;  %3711 = vmatpush.bf16.msra.mxu2 %v6460_v30  ;;  %3724 = vmatpush.bf16.msra.mxu3 %v6473_v10  ;;  %v8418_v10 = vld [vmem:[#allocation39_spill] sm:$0xff]  ;;  %v8426_v30 = vld [vmem:[#allocation48_spill] sm:$0xff] }
 0x54f   :  { %4842 = vst [vmem:[%s7930_s6 + $0x50] sm:$0xff] %v3413_v6  ;;  %v3551_v37 = vpack.c.bf16 %v3413_v6, %v3413_v6 }
 0x550   :  { %3686 = vmatpush.bf16.msra.mxu0 %v6489_v36  ;;  %3699 = vmatpush.bf16.msra.mxu1 %v6500_v41  ;;  %v8427_v41 = vld [vmem:[#allocation53_spill] sm:$0xff]  ;;  %v8428_v36 = vld [vmem:[#allocation54_spill] sm:$0xff] }
 0x551   :  { %3560 = vmatmul.bf16.vlgmr.msrb.gmra.mxu0 %v3551_v37  ;;  %3573 = vmatmul.bf16.vlgmr.msrb.gmra.mxu1 %v3551_v37 }
 0x552   :  { %3586 = vmatmul.bf16.vlgmr.msrb.gmra.mxu2 %v3551_v37  ;;  %3599 = vmatmul.bf16.vlgmr.msrb.gmra.mxu3 %v3551_v37 }
 0x553   :  { %3712 = vmatpush.bf16.msra.mxu2 %v6502_v12  ;;  %3725 = vmatpush.bf16.msra.mxu3 %v6511_v8  ;;  %v8417_v8 = vld [vmem:[#allocation36_spill] sm:$0xff]  ;;  %v8424_v12 = vld [vmem:[#allocation46_spill] sm:$0xff] }
 0x554   :  { %3687 = vmatpush.bf16.msra.mxu0 %v6527_v14  ;;  %3700 = vmatpush.bf16.msra.mxu1 %v6542_v17  ;;  %v8419_v17 = vld [vmem:[#allocation40_spill] sm:$0xff]  ;;  %v8429_v14 = vld [vmem:[#allocation55_spill] sm:$0xff] }
 0x557   :  { %3713 = vmatpush.bf16.msra.mxu2 %v6544_v11  ;;  %3726 = vmatpush.bf16.msra.mxu3 %v6555_v63  ;;  %v8421_v63 = vld [vmem:[#allocation43_spill] sm:$0xff]  ;;  %v8430_v11 = vld [vmem:[#allocation56_spill] sm:$0xff] }
 0x558   :  { %3688 = vmatpush.bf16.msra.mxu0 %v6570_v39  ;;  %3701 = vmatpush.bf16.msra.mxu1 %v8136_v40  ;;  %v8431_v39 = vld [vmem:[#allocation57_spill] sm:$0xff]  ;;  %v8432_v40 = vld [vmem:[#allocation58_spill] sm:$0xff] }
 0x55b   :  { %3714 = vmatpush.bf16.msra.mxu2 %v8342_v33  ;;  %3727 = vmatpush.bf16.msra.mxu3 %v8378_v1  ;;  %v8433_v33 = vld [vmem:[#allocation59_spill] sm:$0xff]  ;;  %v8435_v1 = vld [vmem:[#allocation65_spill] sm:$0xff] }
 0x55c   :  { %3809 = vmatpush.bf16.msrb.mxu0 %v8415_v52  ;;  %3822 = vmatpush.bf16.msrb.mxu1 %v8416_v56  ;;  %v8449_v52 = vld [vmem:[#allocation15_spill] sm:$0xff] }
 0x55d   :  { %v3547_v56 = vunpack.c.l.bf16 %v8449_v52 }
 0x55f   :  { %3835 = vmatpush.bf16.msrb.mxu2 %v8417_v8  ;;  %3848 = vmatpush.bf16.msrb.mxu3 %v8418_v10  ;;  %v3548_v8 = vunpack.c.h.bf16 %v8449_v52 }
 0x560   :  { %3810 = vmatpush.bf16.msrb.mxu0 %v8419_v17  ;;  %3823 = vmatpush.bf16.msrb.mxu1 %v8420_v28 }
 0x563   :  { %3836 = vmatpush.bf16.msrb.mxu2 %v8421_v63  ;;  %3849 = vmatpush.bf16.msrb.mxu3 %v8422_v38 }
 0x564   :  { %3811 = vmatpush.bf16.msrb.mxu0 %v8423_v55  ;;  %3824 = vmatpush.bf16.msrb.mxu1 %v8424_v12 }
 0x567   :  { %3837 = vmatpush.bf16.msrb.mxu2 %v8425_v19  ;;  %3850 = vmatpush.bf16.msrb.mxu3 %v8426_v30 }
 0x568   :  { %3812 = vmatpush.bf16.msrb.mxu0 %v8427_v41  ;;  %3825 = vmatpush.bf16.msrb.mxu1 %v8428_v36 }
 0x56b   :  { %3838 = vmatpush.bf16.msrb.mxu2 %v8429_v14  ;;  %3851 = vmatpush.bf16.msrb.mxu3 %v8430_v11 }
 0x56c   :  { %3813 = vmatpush.bf16.msrb.mxu0 %v8431_v39  ;;  %3826 = vmatpush.bf16.msrb.mxu1 %v8432_v40 }
 0x56f   :  { %3839 = vmatpush.bf16.msrb.mxu2 %v8433_v33  ;;  %3852 = vmatpush.bf16.msrb.mxu3 %v8434_v27 }
 0x570   :  { %3814 = vmatpush.bf16.msrb.mxu0 %v8435_v1  ;;  %3827 = vmatpush.bf16.msrb.mxu1 %v8436_v48 }
 0x573   :  { %3840 = vmatpush.bf16.msrb.mxu2 %v8437_v9  ;;  %3853 = vmatpush.bf16.msrb.mxu3 %v8438_v4 }
 0x574   :  { %3815 = vmatpush.bf16.msrb.mxu0 %v8439_v23  ;;  %3828 = vmatpush.bf16.msrb.mxu1 %v8440_v45 }
 0x577   :  { %3841 = vmatpush.bf16.msrb.mxu2 %v8441_v25  ;;  %3854 = vmatpush.bf16.msrb.mxu3 %v8442_v22  ;;  %v8450_v22 = vld [vmem:[#allocation16_spill] sm:$0xff] }
 0x578   :  { %3816 = vmatpush.bf16.msrb.mxu0 %v8443_v35  ;;  %3829 = vmatpush.bf16.msrb.mxu1 %v8444_v21  ;;  %v3550_v35 = vunpack.c.h.bf16 %v8450_v22 }
 0x57b   :  { %3842 = vmatpush.bf16.msrb.mxu2 %v8445_v26  ;;  %3855 = vmatpush.bf16.msrb.mxu3 %v8446_v42 }
 0x5b7   :  { %v3433_v46 = vpop.f32.mrf.mxu0  ;;  %v3446_v3 = vpop.f32.mrf.mxu1 }
 0x5b8   :  { %v3476_v0 = vadd.f32 %v3433_v46, %v3419_v31  ;;  %v3477_v54 = vadd.f32 %v3446_v3, %v3420_v49 }
 0x5ba   :  { %v4843_v24 = vmul.f32 -1.442695, %v3476_v0  ;;  %v4844_v53 = vmul.f32 -1.442695, %v3477_v54 }
 0x5bc   :  { %5254 = vpow2.f32 %v4843_v24 }
 0x5bd   :  { %5256 = vpow2.f32 %v4844_v53 }
 0x5be   :  { %v3459_v60 = vpop.f32.mrf.mxu2  ;;  %v3472_v62 = vpop.f32.mrf.mxu3 }
 0x5bf   :  { %v3479_v34 = vadd.f32 %v3472_v62, %v3422_v2  ;;  %v3435_v20 = vpop.f32.mrf.mxu0  ;;  %v3448_v43 = vpop.f32.mrf.mxu1  ;;  %v3478_v13 = vadd.f32 %v3459_v60, %v3421_v58 }
 0x5c1   :  { %v4845_v16 = vmul.f32 -1.442695, %v3479_v34 }
 0x5c2   :  { %v5255_v61 = vpop.eup %5254 }
 0x5c3   :  { %v5257_v32 = vpop.eup %5256  ;;  %v3483_v15 = vadd.f32 1.0, %v5255_v61  ;;  %5258 = vpow2.f32 %v4845_v16 }
 0x5c4   :  { %v3502_v50 = vadd.f32 1.0, %v5257_v32 }
 0x5c5   :  { %5260 = vrcp.f32 %v3483_v15  ;;  %v3493_v30 = vand.u32 2147483647, %v3483_v15  ;;  %v3495_v41 = vand.u32 2147483648, %v3483_v15  ;;  %vm3489_vm3 = vweird.f32 %v3483_v15 }
 0x5c6   :  { %5262 = vrcp.f32 %v3502_v50  ;;  %v3461_v29 = vpop.f32.mrf.mxu2  ;;  %v3474_v57 = vpop.f32.mrf.mxu3  ;;  %v3514_v19 = vand.u32 2147483648, %v3502_v50  ;;  %v3512_v40 = vand.u32 2147483647, %v3502_v50  ;;  %vm3508_vm2 = vweird.f32 %v3502_v50 }
 0x5c7   :  { %v3496_v1 = vor.u32 1.1754944e-38, %v3495_v41  ;;  %vm3494_vm6 = vcmp.eq.f32.partialorder %v3493_v30, 8.507059e+37  ;;  %v3549_v29 = vunpack.c.l.bf16 %v8450_v22 }
 0x5c8   :  { %v3515_v23 = vor.u32 1.1754944e-38, %v3514_v19  ;;  %vm3513_vm7 = vcmp.eq.f32.partialorder %v3512_v40, 8.507059e+37 }
 0x5c9   :  { %v5259_v7 = vpop.eup %5258 }
 0x5ca   :  { %v7864_v18 = vadd.f32 1.0, %v5259_v7 }
 0x5cb   :  { %v5261_v51 = vpop.eup %5260 }
 0x5cc   :  { %v5263_v6 = vpop.eup %5262  ;;  %v3485_v37 = vmul.f32 %v5261_v51, %v3483_v15  ;;  %5264 = vrcp.f32 %v7864_v18  ;;  %vm3490_vm0 = vweird.f32 %v5261_v51  ;;  %v3534_v43 = vand.u32 2147483648, %v7864_v18 }
 0x5cd   :  { %v3504_v10 = vmul.f32 %v5263_v6, %v3502_v50  ;;  %5266 = vtanh.f32 %v3478_v13  ;;  %vm3509_vm1 = vweird.f32 %v5263_v6  ;;  %vm3491_vm4 = vmor %vm3489_vm3, %vm3490_vm0  ;;  %vm3528_vm9 = vweird.f32 %v7864_v18 }
 0x5ce   :  { %v3561_v17 = vpop.f32.mrf.mxu0  ;;  %v3574_v28 = vpop.f32.mrf.mxu1  ;;  %v3486_v63 = vsub.f32 1.0, %v3485_v37  ;;  %vm3510_vm5 = vmor %vm3508_vm2, %vm3509_vm1  ;;  %v3532_v16 = vand.u32 2147483647, %v7864_v18  ;;  %v3535_v15 = vor.u32 1.1754944e-38, %v3534_v43 }
 0x5cf   :  { %v3604_v38 = vadd.f32 %v3561_v17, %v3547_v56  ;;  %v3605_v55 = vadd.f32 %v3574_v28, %v3548_v8  ;;  %v3505_v12 = vsub.f32 1.0, %v3504_v10 }
 0x5d0   :  { %v3487_v36 = vmul.f32 %v5261_v51, %v3486_v63  ;;  %vm3533_vm11 = vcmp.eq.f32.partialorder %v3532_v16, 8.507059e+37 }
 0x5d1   :  { %v4847_v14 = vmul.f32 -1.442695, %v3604_v38  ;;  %v4848_v11 = vmul.f32 -1.442695, %v3605_v55  ;;  %v3506_v39 = vmul.f32 %v5263_v6, %v3505_v12 }
 0x5d2   :  { %v5265_v33 = vpop.eup %5264  ;;  %v3488_v27 = vadd.f32 %v5261_v51, %v3487_v36 }
 0x5d3   :  { %5268 = vpow2.f32 %v4847_v14  ;;  %v3507_v48 = vadd.f32 %v5263_v6, %v3506_v39  ;;  %v3524_v9 = vmul.f32 %v5265_v33, %v7864_v18  ;;  %v5267_v4 = vpop.eup %5266  ;;  %vm3529_vm8 = vweird.f32 %v5265_v33 }
 0x5d4   :  { %5270 = vpow2.f32 %v4848_v11  ;;  %v3492_v45 = vsel %vm3491_vm4, %v5261_v51, %v3488_v27  ;;  %vm3530_vm10 = vmor %vm3528_vm9, %vm3529_vm8 }
 0x5d5   :  { %v3587_v25 = vpop.f32.mrf.mxu2  ;;  %v3600_v21 = vpop.f32.mrf.mxu3  ;;  %v3497_v26 = vsel %vm3494_vm6, %v3496_v1, %v3492_v45  ;;  %v3511_v42 = vsel %vm3510_vm5, %v5263_v6, %v3507_v48  ;;  %v3525_v44 = vsub.f32 1.0, %v3524_v9 }
 0x5d6   :  { %v3563_v31 = vpop.f32.mrf.mxu0  ;;  %v3576_v49 = vpop.f32.mrf.mxu1  ;;  %v3516_v46 = vsel %vm3513_vm7, %v3515_v23, %v3511_v42  ;;  %v3539_v3 = vmul.f32 %v5267_v4, %v3497_v26  ;;  %v3607_v0 = vadd.f32 %v3600_v21, %v3550_v35  ;;  %v3606_v51 = vadd.f32 %v3587_v25, %v3549_v29 }
 0x5d7   :  { %v3538_v54 = vmul.f32 %v3516_v46, %v7763_v59  ;;  %v3526_v24 = vmul.f32 %v5265_v33, %v3525_v44  ;;  %v8451_v49 = vld [vmem:[#allocation10_spill] sm:$0xff] }
 0x5d8   :  { %v4849_v47 = vmul.f32 -1.442695, %v3607_v0  ;;  %v3676_v46 = vunpack.c.l.bf16 %v8451_v49 }
 0x5d9   :  { %v5269_v53 = vpop.eup %5268  ;;  %v7872_v60 = vadd.f32 %v3539_v3, %v3538_v54  ;;  %v3527_v34 = vadd.f32 %v5265_v33, %v3526_v24  ;;  %v3677_v3 = vunpack.c.h.bf16 %v8451_v49 }
 0x5da   :  { %v5271_v2 = vpop.eup %5270  ;;  %v3611_v62 = vadd.f32 1.0, %v5269_v53  ;;  %5272 = vpow2.f32 %v4849_v47 }
 0x5db   :  { %v3630_v20 = vadd.f32 1.0, %v5271_v2  ;;  %5274 = vtanh.f32 %v7872_v60  ;;  %v3531_v32 = vsel %vm3530_vm10, %v5265_v33, %v3527_v34 }
 0x5dc   :  { %5276 = vrcp.f32 %v3611_v62  ;;  %v3536_v7 = vsel %vm3533_vm11, %v3535_v15, %v3531_v32  ;;  %v3623_v17 = vand.u32 2147483648, %v3611_v62  ;;  %v3621_v38 = vand.u32 2147483647, %v3611_v62 }
 0x5dd   :  { %v3589_v59 = vpop.f32.mrf.mxu2  ;;  %v3602_v61 = vpop.f32.mrf.mxu3  ;;  %5278 = vrcp.f32 %v3630_v20  ;;  %v3642_v28 = vand.u32 2147483648, %v3630_v20  ;;  %v3640_v12 = vand.u32 2147483647, %v3630_v20  ;;  %vm3617_vm14 = vweird.f32 %v3611_v62 }
 0x5de   :  { %vm3636_vm15 = vweird.f32 %v3630_v20  ;;  %v3624_v41 = vor.u32 1.1754944e-38, %v3623_v17  ;;  %vm3622_vm2 = vcmp.eq.f32.partialorder %v3621_v38, 8.507059e+37 }
 0x5df   :  { %v3643_v11 = vor.u32 1.1754944e-38, %v3642_v28  ;;  %vm3641_vm3 = vcmp.eq.f32.partialorder %v3640_v12, 8.507059e+37 }
 0x5e0   :  { %v5273_v50 = vpop.eup %5272 }
 0x5e1   :  { %v5275_v57 = vpop.eup %5274  ;;  %v3650_v58 = vadd.f32 1.0, %v5273_v50 }
 0x5e2   :  { %v5277_v13 = vpop.eup %5276  ;;  %v3542_v6 = vmul.f32 %v5275_v57, %v3536_v7 }
 0x5e3   :  { %v5279_v37 = vpop.eup %5278  ;;  %v3613_v52 = vmul.f32 %v5277_v13, %v3611_v62  ;;  %5280 = vrcp.f32 %v3650_v58  ;;  %vm3618_vm12 = vweird.f32 %v5277_v13  ;;  %v3662_v22 = vand.u32 2147483648, %v3650_v58  ;;  %v8452_v62 = vld [vmem:[#allocation11_spill] sm:$0xff] }
 0x5e4   :  { %v3632_v18 = vmul.f32 %v5279_v37, %v3630_v20  ;;  %4846 = vst [vmem:[%s7930_s6 + $0x30] sm:$0xff] %v3542_v6  ;;  %v3680_v8 = vpack.c.bf16 %v3542_v6, %v3542_v6  ;;  %5282 = vtanh.f32 %v3606_v51  ;;  %vm3637_vm13 = vweird.f32 %v5279_v37  ;;  %vm3619_vm0 = vmor %vm3617_vm14, %vm3618_vm12 }
 0x5e5   :  { %v3614_v56 = vsub.f32 1.0, %v3613_v52  ;;  %vm3638_vm1 = vmor %vm3636_vm15, %vm3637_vm13  ;;  %vm3656_vm5 = vweird.f32 %v3650_v58  ;;  %v3660_v35 = vand.u32 2147483647, %v3650_v58  ;;  %v3663_v26 = vor.u32 1.1754944e-38, %v3662_v22 }
 0x5e6   :  { %v3633_v10 = vsub.f32 1.0, %v3632_v18  ;;  %3689 = vmatmul.bf16.vlgmr.msra.gmra.mxu0 %v3680_v8  ;;  %3702 = vmatmul.bf16.vlgmr.msra.gmra.mxu1 %v3680_v8  ;;  %v3679_v34 = vunpack.c.h.bf16 %v8452_v62 }
 0x5e7   :  { %v3615_v63 = vmul.f32 %v5277_v13, %v3614_v56  ;;  %3715 = vmatmul.bf16.vlgmr.msra.gmra.mxu2 %v3680_v8  ;;  %3728 = vmatmul.bf16.vlgmr.msra.gmra.mxu3 %v3680_v8  ;;  %vm3661_vm7 = vcmp.eq.f32.partialorder %v3660_v35, 8.507059e+37  ;;  %v8453_v8 = vld [vmem:[#allocation12_spill] sm:$0xff] }
 0x5e8   :  { %v3634_v55 = vmul.f32 %v5279_v37, %v3633_v10  ;;  %v3804_v10 = vunpack.c.l.bf16 %v8453_v8  ;;  %v3805_v17 = vunpack.c.h.bf16 %v8453_v8 }
 0x5e9   :  { %v5281_v19 = vpop.eup %5280  ;;  %v3616_v30 = vadd.f32 %v5277_v13, %v3615_v63 }
 0x5ea   :  { %v3635_v36 = vadd.f32 %v5279_v37, %v3634_v55  ;;  %v3652_v14 = vmul.f32 %v5281_v19, %v3650_v58  ;;  %v5283_v40 = vpop.eup %5282  ;;  %vm3657_vm4 = vweird.f32 %v5281_v19 }
 0x5eb   :  { %v3620_v39 = vsel %vm3619_vm0, %v5277_v13, %v3616_v30  ;;  %vm3658_vm6 = vmor %vm3656_vm5, %vm3657_vm4  ;;  %v3678_v13 = vunpack.c.l.bf16 %v8452_v62 }
 0x5ec   :  { %v3625_v33 = vsel %vm3622_vm2, %v3624_v41, %v3620_v39  ;;  %v3639_v27 = vsel %vm3638_vm1, %v5279_v37, %v3635_v36  ;;  %v3653_v1 = vsub.f32 1.0, %v3652_v14 }
 0x5ed   :  { %v3644_v48 = vsel %vm3641_vm3, %v3643_v11, %v3639_v27  ;;  %v3667_v9 = vmul.f32 %v5283_v40, %v3625_v33 }
 0x5ee   :  { %v3666_v4 = vmul.f32 %v3644_v48, %v7795_v5  ;;  %v3654_v23 = vmul.f32 %v5281_v19, %v3653_v1 }
 0x5f0   :  { %v7883_v45 = vadd.f32 %v3667_v9, %v3666_v4  ;;  %v3655_v25 = vadd.f32 %v5281_v19, %v3654_v23 }
 0x5f2   :  { %5284 = vtanh.f32 %v7883_v45  ;;  %v3659_v21 = vsel %vm3658_vm6, %v5281_v19, %v3655_v25 }
 0x5f3   :  { %v3664_v44 = vsel %vm3661_vm7, %v3663_v26, %v3659_v21  ;;  %v8454_v26 = vld [vmem:[#allocation14_spill] sm:$0xff] }
 0x5f8   :  { %v5285_v42 = vpop.eup %5284 }
 0x5f9   :  { %v3670_v31 = vmul.f32 %v5285_v42, %v3664_v44  ;;  %v3807_v42 = vunpack.c.h.bf16 %v8454_v26 }
 0x5fb   :  { %4850 = vst [vmem:[%s7930_s6 + $0x48] sm:$0xff] %v3670_v31  ;;  %v3808_v5 = vpack.c.bf16 %v3670_v31, %v3670_v31 }
 0x5fd   :  { %3817 = vmatmul.bf16.vlgmr.msrb.gmra.mxu0 %v3808_v5  ;;  %3830 = vmatmul.bf16.vlgmr.msrb.gmra.mxu1 %v3808_v5 }
 0x5fe   :  { %3843 = vmatmul.bf16.vlgmr.msrb.gmra.mxu2 %v3808_v5  ;;  %3856 = vmatmul.bf16.vlgmr.msrb.gmra.mxu3 %v3808_v5 }
 0x663   :  { %v3690_v0 = vpop.f32.mrf.mxu0  ;;  %v3703_v54 = vpop.f32.mrf.mxu1 }
 0x664   :  { %v3733_v24 = vadd.f32 %v3690_v0, %v3676_v46  ;;  %v3734_v53 = vadd.f32 %v3703_v54, %v3677_v3 }
 0x666   :  { %v4851_v47 = vmul.f32 -1.442695, %v3733_v24  ;;  %v4852_v2 = vmul.f32 -1.442695, %v3734_v53 }
 0x668   :  { %5286 = vpow2.f32 %v4851_v47 }
 0x669   :  { %5288 = vpow2.f32 %v4852_v2 }
 0x66a   :  { %v3716_v20 = vpop.f32.mrf.mxu2  ;;  %v3729_v43 = vpop.f32.mrf.mxu3 }
 0x66b   :  { %v3736_v16 = vadd.f32 %v3729_v43, %v3679_v34  ;;  %v3692_v59 = vpop.f32.mrf.mxu0  ;;  %v3705_v61 = vpop.f32.mrf.mxu1  ;;  %v3735_v6 = vadd.f32 %v3716_v20, %v3678_v13 }
 0x66d   :  { %v4853_v32 = vmul.f32 -1.442695, %v3736_v16 }
 0x66e   :  { %v5287_v15 = vpop.eup %5286 }
 0x66f   :  { %v5289_v50 = vpop.eup %5288  ;;  %v3740_v29 = vadd.f32 1.0, %v5287_v15  ;;  %5290 = vpow2.f32 %v4853_v32 }
 0x670   :  { %v3759_v57 = vadd.f32 1.0, %v5289_v50 }
 0x671   :  { %5292 = vrcp.f32 %v3740_v29  ;;  %v3750_v36 = vand.u32 2147483647, %v3740_v29  ;;  %v3752_v14 = vand.u32 2147483648, %v3740_v29  ;;  %vm3746_vm11 = vweird.f32 %v3740_v29 }
 0x672   :  { %5294 = vrcp.f32 %v3759_v57  ;;  %v3718_v58 = vpop.f32.mrf.mxu2  ;;  %v3731_v7 = vpop.f32.mrf.mxu3  ;;  %v3771_v41 = vand.u32 2147483648, %v3759_v57  ;;  %v3769_v27 = vand.u32 2147483647, %v3759_v57  ;;  %vm3765_vm10 = vweird.f32 %v3759_v57 }
 0x673   :  { %v3753_v9 = vor.u32 1.1754944e-38, %v3752_v14  ;;  %vm3751_vm14 = vcmp.eq.f32.partialorder %v3750_v36, 8.507059e+37  ;;  %v3806_v58 = vunpack.c.l.bf16 %v8454_v26 }
 0x674   :  { %v3772_v22 = vor.u32 1.1754944e-38, %v3771_v41  ;;  %vm3770_vm15 = vcmp.eq.f32.partialorder %v3769_v27, 8.507059e+37 }
 0x675   :  { %v5291_v51 = vpop.eup %5290 }
 0x676   :  { %v7893_v37 = vadd.f32 1.0, %v5291_v51 }
 0x677   :  { %v5293_v52 = vpop.eup %5292 }
 0x678   :  { %v5295_v18 = vpop.eup %5294  ;;  %v3742_v56 = vmul.f32 %v5293_v52, %v3740_v29  ;;  %5296 = vrcp.f32 %v7893_v37  ;;  %vm3747_vm8 = vweird.f32 %v5293_v52  ;;  %v3791_v61 = vand.u32 2147483648, %v7893_v37 }
 0x679   :  { %v3761_v28 = vmul.f32 %v5295_v18, %v3759_v57  ;;  %5298 = vtanh.f32 %v3735_v6  ;;  %vm3766_vm9 = vweird.f32 %v5295_v18  ;;  %vm3748_vm12 = vmor %vm3746_vm11, %vm3747_vm8  ;;  %vm3785_vm1 = vweird.f32 %v7893_v37 }
 0x67a   :  { %v3818_v63 = vpop.f32.mrf.mxu0  ;;  %v3831_v38 = vpop.f32.mrf.mxu1  ;;  %v3743_v55 = vsub.f32 1.0, %v3742_v56  ;;  %vm3767_vm13 = vmor %vm3765_vm10, %vm3766_vm9  ;;  %v3792_v29 = vor.u32 1.1754944e-38, %v3791_v61 }
 0x67b   :  { %v3861_v12 = vadd.f32 %v3818_v63, %v3804_v10  ;;  %v3862_v19 = vadd.f32 %v3831_v38, %v3805_v17  ;;  %v3762_v30 = vsub.f32 1.0, %v3761_v28 }
 0x67c   :  { %v3744_v11 = vmul.f32 %v5293_v52, %v3743_v55 }
 0x67d   :  { %v4855_v39 = vmul.f32 -1.442695, %v3861_v12  ;;  %v4856_v40 = vmul.f32 -1.442695, %v3862_v19  ;;  %v3763_v33 = vmul.f32 %v5295_v18, %v3762_v30 }
 0x67e   :  { %v5297_v1 = vpop.eup %5296  ;;  %v3745_v48 = vadd.f32 %v5293_v52, %v3744_v11 }
 0x67f   :  { %5300 = vpow2.f32 %v4855_v39  ;;  %v3764_v4 = vadd.f32 %v5295_v18, %v3763_v33  ;;  %v3781_v23 = vmul.f32 %v5297_v1, %v7893_v37  ;;  %v5299_v25 = vpop.eup %5298  ;;  %vm3786_vm0 = vweird.f32 %v5297_v1 }
 0x680   :  { %5302 = vpow2.f32 %v4856_v40  ;;  %v3749_v35 = vsel %vm3748_vm12, %v5293_v52, %v3745_v48  ;;  %vm3787_vm2 = vmor %vm3785_vm1, %vm3786_vm0 }
 0x681   :  { %v3844_v21 = vpop.f32.mrf.mxu2  ;;  %v3857_v44 = vpop.f32.mrf.mxu3  ;;  %v3754_v31 = vsel %vm3751_vm14, %v3753_v9, %v3749_v35  ;;  %v3768_v5 = vsel %vm3767_vm13, %v5295_v18, %v3764_v4  ;;  %v3782_v49 = vsub.f32 1.0, %v3781_v23 }
 0x682   :  { %v3820_v46 = vpop.f32.mrf.mxu0  ;;  %v3833_v3 = vpop.f32.mrf.mxu1  ;;  %v3773_v0 = vsel %vm3770_vm15, %v3772_v22, %v3768_v5  ;;  %v3796_v54 = vmul.f32 %v5299_v25, %v3754_v31  ;;  %v3864_v24 = vadd.f32 %v3857_v44, %v3807_v42  ;;  %v3863_v18 = vadd.f32 %v3844_v21, %v3806_v58 }
 0x683   :  { %v3795_v53 = vmul.f32 %v3773_v0, %v7872_v60  ;;  %v3783_v47 = vmul.f32 %v5297_v1, %v3782_v49  ;;  %v3789_v60 = vand.u32 2147483647, %v7893_v37 }
 0x684   :  { %v4857_v62 = vmul.f32 -1.442695, %v3864_v24 }
 0x685   :  { %v5301_v2 = vpop.eup %5300  ;;  %v3797_v20 = vadd.f32 %v3796_v54, %v3795_v53  ;;  %v3784_v16 = vadd.f32 %v5297_v1, %v3783_v47  ;;  %vm3790_vm3 = vcmp.eq.f32.partialorder %v3789_v60, 8.507059e+37 }
 0x686   :  { %v5303_v34 = vpop.eup %5302  ;;  %v3868_v43 = vadd.f32 1.0, %v5301_v2  ;;  %5304 = vpow2.f32 %v4857_v62 }
 0x687   :  { %v3887_v59 = vadd.f32 1.0, %v5303_v34  ;;  %5306 = vtanh.f32 %v3797_v20  ;;  %3932 = vst [vmem:[%s7931_s8] sm:$0xff] %v3797_v20  ;;  %v3788_v50 = vsel %vm3787_vm2, %v5297_v1, %v3784_v16 }
 0x688   :  { %5308 = vrcp.f32 %v3868_v43  ;;  %v3793_v13 = vsel %vm3790_vm3, %v3792_v29, %v3788_v50  ;;  %v3880_v28 = vand.u32 2147483648, %v3868_v43  ;;  %v3878_v55 = vand.u32 2147483647, %v3868_v43 }
 0x689   :  { %v3846_v32 = vpop.f32.mrf.mxu2  ;;  %v3859_v15 = vpop.f32.mrf.mxu3  ;;  %5310 = vrcp.f32 %v3887_v59  ;;  %v3899_v63 = vand.u32 2147483648, %v3887_v59  ;;  %v3897_v19 = vand.u32 2147483647, %v3887_v59  ;;  %vm3874_vm6 = vweird.f32 %v3868_v43 }
 0x68a   :  { %vm3893_vm7 = vweird.f32 %v3887_v59  ;;  %v3881_v36 = vor.u32 1.1754944e-38, %v3880_v28  ;;  %vm3879_vm10 = vcmp.eq.f32.partialorder %v3878_v55, 8.507059e+37 }
 0x68b   :  { %v3900_v39 = vor.u32 1.1754944e-38, %v3899_v63  ;;  %vm3898_vm11 = vcmp.eq.f32.partialorder %v3897_v19, 8.507059e+37 }
 0x68c   :  { %v5305_v57 = vpop.eup %5304 }
 0x68d   :  { %v5307_v7 = vpop.eup %5306  ;;  %v3907_v51 = vadd.f32 1.0, %v5305_v57 }
 0x68e   :  { %v5309_v6 = vpop.eup %5308  ;;  %v3799_v52 = vmul.f32 %v5307_v7, %v3793_v13 }
 0x68f   :  { %v5311_v56 = vpop.eup %5310  ;;  %v3870_v8 = vmul.f32 %v5309_v6, %v3868_v43  ;;  %5312 = vrcp.f32 %v3907_v51  ;;  %vm3875_vm4 = vweird.f32 %v5309_v6  ;;  %v3919_v21 = vand.u32 2147483648, %v3907_v51 }
 0x690   :  { %4854 = vst [vmem:[%s7930_s6 + $0x38] sm:$0xff] %v3799_v52  ;;  %v3889_v37 = vmul.f32 %v5311_v56, %v3887_v59  ;;  %5314 = vtanh.f32 %v3863_v18  ;;  %vm3894_vm5 = vweird.f32 %v5311_v56  ;;  %vm3876_vm8 = vmor %vm3874_vm6, %vm3875_vm4  ;;  %vm3913_vm13 = vweird.f32 %v3907_v51 }
 0x691   :  { %3931 = vst [vmem:[%s7932_s7] sm:$0xff] %v3799_v52  ;;  %v3871_v10 = vsub.f32 1.0, %v3870_v8  ;;  %vm3895_vm9 = vmor %vm3893_vm7, %vm3894_vm5  ;;  %v3917_v26 = vand.u32 2147483647, %v3907_v51  ;;  %v3920_v44 = vor.u32 1.1754944e-38, %v3919_v21 }
 0x692   :  { %v3890_v17 = vsub.f32 1.0, %v3889_v37 }
 0x693   :  { %v3872_v38 = vmul.f32 %v5309_v6, %v3871_v10  ;;  %vm3918_vm15 = vcmp.eq.f32.partialorder %v3917_v26, 8.507059e+37 }
 0x694   :  { %v3891_v12 = vmul.f32 %v5311_v56, %v3890_v17 }
 0x695   :  { %v5313_v30 = vpop.eup %5312  ;;  %v3873_v41 = vadd.f32 %v5309_v6, %v3872_v38 }
 0x696   :  { %v3892_v14 = vadd.f32 %v5311_v56, %v3891_v12  ;;  %v3909_v11 = vmul.f32 %v5313_v30, %v3907_v51  ;;  %v5315_v33 = vpop.eup %5314  ;;  %vm3914_vm12 = vweird.f32 %v5313_v30 }
 0x697   :  { %v3877_v40 = vsel %vm3876_vm8, %v5309_v6, %v3873_v41  ;;  %vm3915_vm14 = vmor %vm3913_vm13, %vm3914_vm12 }
 0x698   :  { %v3882_v27 = vsel %vm3879_vm10, %v3881_v36, %v3877_v40  ;;  %v3896_v1 = vsel %vm3895_vm9, %v5311_v56, %v3892_v14  ;;  %v3910_v48 = vsub.f32 1.0, %v3909_v11 }
 0x699   :  { %v3901_v9 = vsel %vm3898_vm11, %v3900_v39, %v3896_v1  ;;  %v3924_v4 = vmul.f32 %v5315_v33, %v3882_v27 }
 0x69a   :  { %v3923_v23 = vmul.f32 %v3901_v9, %v7883_v45  ;;  %v3911_v25 = vmul.f32 %v5313_v30, %v3910_v48 }
 0x69c   :  { %v3925_v22 = vadd.f32 %v3924_v4, %v3923_v23  ;;  %v3912_v35 = vadd.f32 %v5313_v30, %v3911_v25 }
 0x69e   :  { %5316 = vtanh.f32 %v3925_v22  ;;  %4860 = vst [vmem:[%s7931_s8 + $0x8] sm:$0xff] %v3925_v22  ;;  %v3916_v42 = vsel %vm3915_vm14, %v5313_v30, %v3912_v35 }
 0x69f   :  { %v3921_v5 = vsel %vm3918_vm15, %v3920_v44, %v3916_v42 }
 0x6a4   :  { %v5317_v31 = vpop.eup %5316 }
 0x6a5   :  { %v3927_v49 = vmul.f32 %v5317_v31, %v3921_v5 }
 0x6a7   :  { %4858 = vst [vmem:[%s7930_s6 + $0x40] sm:$0xff] %v3927_v49 }
 0x6a8   :  { %4859 = vst [vmem:[%s7932_s7 + $0x8] sm:$0xff] %v3927_v49 }

</bundles_post_ra>
